<compile_context>
chip_gen: v5e
topology: v5e:2x2
jax: 0.10.0
libtpu: 0.0.40
codegen_flags: <defaults>
</compile_context>

<pallas_src>
import math
import numpy as np
import jax
import jax.numpy as jnp
from jax import lax
from jax.experimental import pallas as pl
from jax.experimental.pallas import tpu as pltpu

PH = 16       # patch size of the patch-embed conv (k=16, s=16)
KCONV = 7     # 7x7 conv


def _layernorm(x, g, b, eps=1e-5):
    mu = jnp.mean(x, axis=-1, keepdims=True)
    var = jnp.mean((x - mu) ** 2, axis=-1, keepdims=True)
    return (x - mu) * lax.rsqrt(var + eps) * g + b


# ----------------------------------------------------------------------------------
# The single fused kernel: per batch element b it runs
#   stage 1: three 7x7 conv (1->C) + folded BN + ReLU as banded MXU matmuls, (H, W*C)
#   stage 2: patch embedding Conv2d(C,C,k=16,s=16) from the VMEM-resident features
#   stage 3: one cross-attention transformer encoder layer (d_model=16, nhead=4, ff=64)
#   stage 4: bilinear upsample (align_corners=True) as two matmuls + residual add
# ----------------------------------------------------------------------------------
def _make_fused_kernel(H, W, C, ph, nhead):
    h, w = H // ph, W // ph
    D = C
    hd = D // nhead
    scale = 1.0 / math.sqrt(hd)

    def kernel(xp_ref, convm_ref, convb_ref, peb_ref, pebias_ref, pos_ref,
               wqkv_ref, bqkv_ref, wo_ref, bo_ref, w1_ref, b1_ref, w2_ref, b2_ref,
               lng_ref, lnb_ref, ry_ref, rxk_ref, o_ref, feat_scr):
        f32 = jnp.float32

        # ---- stage 1: 7x7 conv + BN(folded) + ReLU, lane-dense (H, W*C), bf16 MXU / f32 acc.
        # TODO(synk): folding B into the matmul M (review, v6e) would trade away the per-batch
        # "parallel" grid axis that feeds both v7x TensorCores at B=2; kept per-batch here.
        for s in range(3):
            acc = jnp.dot(xp_ref[0, s, 0:H, :], convm_ref[s, 0],
                          preferred_element_type=f32)
            for ky in range(1, KCONV):
                acc = acc + jnp.dot(xp_ref[0, s, ky:ky + H, :], convm_ref[s, ky],
                                    preferred_element_type=f32)
            feat_scr[s] = jnp.maximum(acc + convb_ref[s], 0.0)

        # ---- stage 2: patch embedding for all three branches, done in-kernel (no HBM im2col).
        # For each patch row ky: gather the (3*h) matching image rows and hit them with a
        # host-built block-diagonal (W*C, w*D) operator -> all branches / tokens per matmul.
        tok2d = jnp.zeros((3 * h, w * D), f32)            # rows ordered (branch, patch-row py)
        for ky in range(ph):
            rows = []
            for s in range(3):
                for py in range(h):
                    r = py * ph + ky
                    rows.append(feat_scr[s, r:r + 1, :])          # (1, W*C)
            lhs = jnp.concatenate(rows, axis=0)                    # (3h, W*C)
            tok2d = tok2d + jnp.dot(lhs.astype(jnp.bfloat16), peb_ref[ky],
                                    preferred_element_type=f32)
        tok2d = tok2d + pebias_ref[...]                            # (3h, w*D)

        # lane-dense (h, w*D) -> tokens (L, D); token order l = px*h + py (positional encoding
        # is host-permuted to match and stage 4 undoes it, so the permutation cancels —
        # attention / FFN / LN are token-permutation equivariant).
        def to_tokens(t2d):
            return jnp.concatenate([t2d[:, px * D:(px + 1) * D] for px in range(w)], axis=0)

        img_tok = to_tokens(tok2d[0 * h:1 * h, :])
        pimg_tok = to_tokens(tok2d[1 * h:2 * h, :])
        phm_tok = to_tokens(tok2d[2 * h:3 * h, :])

        # ---- stage 3: transformer fusion.
        # TODO(synk): Transformer_Fusion_M source not provided; standard post-norm cross-attention
        # encoder layer: query = img + pos, key = (pre_img + pre_hm) + pos, value = pre_img + pre_hm.
        pos = pos_ref[...]
        mem = pimg_tok + phm_tok
        q_in = img_tok + pos
        k_in = mem + pos

        q = jnp.dot(q_in, wqkv_ref[0], preferred_element_type=f32) + bqkv_ref[0]
        k = jnp.dot(k_in, wqkv_ref[1], preferred_element_type=f32) + bqkv_ref[1]
        v = jnp.dot(mem, wqkv_ref[2], preferred_element_type=f32) + bqkv_ref[2]

        heads = []
        for hh in range(nhead):
            qh = q[:, hh * hd:(hh + 1) * hd]
            kh = k[:, hh * hd:(hh + 1) * hd]
            vh = v[:, hh * hd:(hh + 1) * hd]
            sc = lax.dot_general(qh, kh, (((1,), (1,)), ((), ())),
                                 preferred_element_type=f32) * scale      # (L, L)
            sc = sc - jnp.max(sc, axis=-1, keepdims=True)
            p = jnp.exp(sc)
            p = p / jnp.sum(p, axis=-1, keepdims=True)                     # exact softmax
            heads.append(jnp.dot(p, vh, preferred_element_type=f32))
        # single output projection over the concatenated heads (review)
        attn = jnp.dot(jnp.concatenate(heads, axis=1), wo_ref[...],
                       preferred_element_type=f32) + bo_ref[...]

        src = _layernorm(img_tok + attn, lng_ref[0:1, :], lnb_ref[0:1, :])
        ff = jnp.maximum(jnp.dot(src, w1_ref[...], preferred_element_type=f32)
                         + b1_ref[...], 0.0)
        ff = jnp.dot(ff, w2_ref[...], preferred_element_type=f32) + b2_ref[...]
        fused = _layernorm(src + ff, lng_ref[1:2, :], lnb_ref[1:2, :])      # (L, D)

        # ---- stage 4: bilinear upsample (align_corners=True) + residual with the img branch.
        x_p2d = jnp.concatenate([fused[px * h:(px + 1) * h, :] for px in range(w)],
                                axis=1)                                     # (h, w*D)
        t = jnp.dot(ry_ref[...], x_p2d, preferred_element_type=f32)         # (H, w*D)
        up = jnp.dot(t, rxk_ref[...], preferred_element_type=f32)           # (H, W*C)
        o_ref[0] = up + feat_scr[0]

    return kernel


def make_forward(ph=PH, nhead=4):
    def forward(x, ops):
        B, three, H, W = x.shape
        C = ops['conv_m'].shape[-1] // W
        D = C
        h, w = H // ph, W // ph
        L = h * w
        Hp, Wp = H + KCONV - 1, W + KCONV - 1
        WC = W * C
        dff = ops['w1'].shape[1]

        x_pad = jnp.pad(x, ((0, 0), (0, 0), (3, 3), (3, 3))).astype(jnp.bfloat16)

        def const_spec(shape):
            zeros = (0,) * len(shape)
            return pl.BlockSpec(shape, lambda b, _z=zeros: _z)

        out_flat = pl.pallas_call(
            _make_fused_kernel(H, W, C, ph, nhead),
            out_shape=jax.ShapeDtypeStruct((B, H, WC), jnp.float32),
            grid=(B,),
            in_specs=[
                pl.BlockSpec((1, 3, Hp, Wp), lambda b: (b, 0, 0, 0)),
                const_spec((3, KCONV, Wp, WC)),      # banded conv operator (bf16)
                const_spec((3, 1, WC)),              # folded BN bias, lane layout
                const_spec((ph, WC, w * D)),         # block-diag patch-embed operator (bf16)
                const_spec((1, w * D)),              # patch-embed bias, lane layout
                const_spec((L, D)),                  # positional encoding
                const_spec((3, D, D)), const_spec((3, 1, D)),
                const_spec((D, D)), const_spec((1, D)),
                const_spec((D, dff)), const_spec((1, dff)),
                const_spec((dff, D)), const_spec((1, D)),
                const_spec((2, D)), const_spec((2, D)),
                const_spec((H, h)),                  # row-interp matrix
                const_spec((w * D, WC)),             # kron(col-interp, I_C)
            ],
            out_specs=pl.BlockSpec((1, H, WC), lambda b: (b, 0, 0)),
            scratch_shapes=[pltpu.VMEM((3, H, WC), jnp.float32)],
            compiler_params=pltpu.CompilerParams(
                dimension_semantics=("parallel",),
                vmem_limit_bytes=32 * 1024 * 1024),
        )(x_pad, ops['conv_m'], ops['conv_bias'], ops['peb'], ops['pe_bias'],
          ops['pos'], ops['w_qkv'], ops['b_qkv'], ops['w_o'], ops['b_o'],
          ops['w1'], ops['b1'], ops['w2'], ops['b2'], ops['ln_g'], ops['ln_b'],
          ops['ry'], ops['rx_kron'])

        out = out_flat.reshape(B, H, W, C)
        return jnp.transpose(out, (0, 3, 1, 2))       # NCHW like the PyTorch module

    return jax.jit(forward)


# ----------------------------------------------------------------------------------
# One-time host-side operand derivation (layout plumbing, runs outside the hot path).
# ----------------------------------------------------------------------------------
def _conv_band_matrices(conv_w, W):
    # conv_w: (3, 7, 7, C) -> (3, 7, W+6, W*C) so that out[h, :] = sum_ky x_pad[h+ky, :] @ M[ky]
    S, KH, KW, C = conv_w.shape
    m = np.zeros((S, KH, W + KW - 1, W * C), np.float32)
    for kx in range(KW):
        for wx in range(W):
            m[:, :, wx + kx, wx * C:(wx + 1) * C] = conv_w[:, :, kx, :]
    return m


def _patch_embed_operator(pe_w, W, ph):
    # pe_w: (ph, ph, C, D) in (ky, kx, c_in, c_out) order.
    # TODO(synk): real torch Conv2d weights ((c_out, c_in, kh, kw)) need .transpose(2, 3, 1, 0).
    _, _, C, D = pe_w.shape
    w = W // ph
    op = np.zeros((ph, W * C, w * D), np.float32)
    for ky in range(ph):
        for px in range(w):
            for kx in range(ph):
                col0 = (px * ph + kx) * C
                op[ky, col0:col0 + C, px * D:(px + 1) * D] = pe_w[ky, kx]
    return op


def _sine_pos_encoding(h, w, num_pos_feats, max_spatial_resolution=60):
    # TODO(synk): exact 'lin_sine' + avoid_aliazing formula of PositionEmbeddingSine is not in the
    # provided source; DETR-style interleaved sin/cos, frequencies bounded by pi/max_resolution.
    y = np.broadcast_to(np.arange(1, h + 1, dtype=np.float32)[:, None], (h, w))
    x = np.broadcast_to(np.arange(1, w + 1, dtype=np.float32)[None, :], (h, w))
    k = np.arange(num_pos_feats)
    freq = (k // 2 + 1).astype(np.float32) * np.pi / float(max_spatial_resolution)
    ang_y = y[..., None] * freq
    ang_x = x[..., None] * freq
    pos_y = np.where(k % 2 == 0, np.sin(ang_y), np.cos(ang_y))
    pos_x = np.where(k % 2 == 0, np.sin(ang_x), np.cos(ang_x))
    pos = np.concatenate([pos_y, pos_x], axis=-1)              # (h, w, 2*npf)
    # token order used by the kernel is l = px*h + py
    return np.transpose(pos, (1, 0, 2)).reshape(w * h, 2 * num_pos_feats).astype(np.float32)


def _interp_matrix(out_size, in_size):
    # exact 1-D weights of F.interpolate(mode='bilinear', align_corners=True)
    if in_size == 1:
        return np.ones((out_size, 1), np.float32)
    m = np.zeros((out_size, in_size), np.float32)
    src = np.arange(out_size, dtype=np.float64) * (in_size - 1) / (out_size - 1)
    i0 = np.clip(np.floor(src).astype(np.int64), 0, in_size - 1)
    i1 = np.clip(i0 + 1, 0, in_size - 1)
    frac = (src - i0).astype(np.float32)
    m[np.arange(out_size), i0] += 1.0 - frac
    m[np.arange(out_size), i1] += frac
    return m


def build_params(key, c2=16, nhead=4, dff=64, ph=PH):
    ks = jax.random.split(key, 16)
    D = c2
    conv_w = 0.1 * jax.random.normal(ks[0], (3, KCONV, KCONV, c2), jnp.float32)
    gamma = 1.0 + 0.1 * jax.random.normal(ks[1], (3, c2), jnp.float32)
    beta = 0.1 * jax.random.normal(ks[2], (3, c2), jnp.float32)
    rmean = 0.1 * jax.random.normal(ks[3], (3, c2), jnp.float32)
    rvar = jnp.abs(1.0 + 0.1 * jax.random.normal(ks[4], (3, c2), jnp.float32))
    scale = gamma / jnp.sqrt(rvar + 1e-5)
    return {
        'conv_w': conv_w * scale[:, None, None, :],      # BatchNorm (inference) folded
        'conv_b': beta - rmean * scale,                  # (3, c2)
        'pe_w': 0.02 * jax.random.normal(ks[5], (ph, ph, c2, c2), jnp.float32),
        'pe_b': 0.02 * jax.random.normal(ks[6], (c2,), jnp.float32),
        'w_qkv': 0.1 * jax.random.normal(ks[7], (3, D, D), jnp.float32),
        'b_qkv': 0.02 * jax.random.normal(ks[8], (3, 1, D), jnp.float32),
        'w_o': 0.1 * jax.random.normal(ks[9], (D, D), jnp.float32),
        'b_o': 0.02 * jax.random.normal(ks[10], (1, D), jnp.float32),
        'w1': 0.1 * jax.random.normal(ks[11], (D, dff), jnp.float32),
        'b1': 0.02 * jax.random.normal(ks[12], (1, dff), jnp.float32),
        'w2': 0.1 * jax.random.normal(ks[13], (dff, D), jnp.float32),
        'b2': 0.02 * jax.random.normal(ks[14], (1, D), jnp.float32),
        'ln_g': jnp.ones((2, D), jnp.float32),
        'ln_b': jnp.zeros((2, D), jnp.float32),
    }


def prepare_operands(p, H, W, ph=PH):
    """Build all derived kernel operands ONCE (host), return device arrays."""
    c2 = p['conv_w'].shape[-1]
    h, w = H // ph, W // ph
    conv_w = np.asarray(p['conv_w'])
    conv_b = np.asarray(p['conv_b'])
    pe_w = np.asarray(p['pe_w'])
    pe_b = np.asarray(p['pe_b'])

    conv_m = _conv_band_matrices(conv_w, W)                                  # (3,7,W+6,W*C)
    conv_bias = np.tile(conv_b[:, None, :], (1, W, 1)).reshape(3, 1, W * c2)
    peb = _patch_embed_operator(pe_w, W, ph)                                 # (ph, W*C, w*D)
    pe_bias = np.tile(pe_b, w).reshape(1, w * c2)
    pos = _sine_pos_encoding(h, w, num_pos_feats=c2 // 2)                    # (L, D)
    ry = _interp_matrix(H, h)                                                # (H, h)
    rx_kron = np.kron(_interp_matrix(W, w).T, np.eye(c2, dtype=np.float32))  # (w*C, W*C)

    ops = {
        'conv_m': jnp.asarray(conv_m, jnp.bfloat16),    # bf16: half DMA/VMEM for the big operand
        'conv_bias': jnp.asarray(conv_bias, jnp.float32),
        'peb': jnp.asarray(peb, jnp.bfloat16),
        'pe_bias': jnp.asarray(pe_bias, jnp.float32),
        'pos': jnp.asarray(pos, jnp.float32),
        'ry': jnp.asarray(ry, jnp.float32),
        'rx_kron': jnp.asarray(rx_kron, jnp.float32),
    }
    for k in ('w_qkv', 'b_qkv', 'w_o', 'b_o', 'w1', 'b1', 'w2', 'b2', 'ln_g', 'ln_b'):
        ops[k] = jnp.asarray(p[k], jnp.float32)
    return ops


if __name__ == "__main__":
    key = jax.random.PRNGKey(0)
    k_param, k_data = jax.random.split(key)
    params = build_params(k_param, c2=16)
    H = W = 32
    ops = prepare_operands(params, H, W)            # one-time host prep (not in the hot path)
    forward = make_forward()                        # jitted fused forward

    # small shapes: B=2, 3 input channels (img, pre_img, pre_hm), 32x32 spatial
    x = jax.random.normal(k_data, (2, 3, H, W), jnp.float32)
    out = forward(x, ops)
    out = jax.block_until_ready(out)
    assert out.shape == (2, 16, H, W) and out.dtype == jnp.float32
    assert bool(jnp.all(jnp.isfinite(out)))
    print("KERNEL_OK")
</pallas_src>

<mosaic_0001>
module attributes {stable_mosaic.version = 11 : i64} {
  func.func @kernel(%arg0: i32, %arg1: memref<1x3x38x38xbf16, #tpu.memory_space<vmem>>, %arg2: memref<3x7x38x512xbf16, #tpu.memory_space<vmem>>, %arg3: memref<3x1x512xf32, #tpu.memory_space<vmem>>, %arg4: memref<16x512x32xbf16, #tpu.memory_space<vmem>>, %arg5: memref<1x32xf32, #tpu.memory_space<vmem>>, %arg6: memref<4x16xf32, #tpu.memory_space<vmem>>, %arg7: memref<3x16x16xf32, #tpu.memory_space<vmem>>, %arg8: memref<3x1x16xf32, #tpu.memory_space<vmem>>, %arg9: memref<16x16xf32, #tpu.memory_space<vmem>>, %arg10: memref<1x16xf32, #tpu.memory_space<vmem>>, %arg11: memref<16x64xf32, #tpu.memory_space<vmem>>, %arg12: memref<1x64xf32, #tpu.memory_space<vmem>>, %arg13: memref<64x16xf32, #tpu.memory_space<vmem>>, %arg14: memref<1x16xf32, #tpu.memory_space<vmem>>, %arg15: memref<2x16xf32, #tpu.memory_space<vmem>>, %arg16: memref<2x16xf32, #tpu.memory_space<vmem>>, %arg17: memref<32x2xf32, #tpu.memory_space<vmem>>, %arg18: memref<32x512xf32, #tpu.memory_space<vmem>>, %arg19: memref<1x32x512xf32, #tpu.memory_space<vmem>>, %arg20: memref<3x32x512xf32, #tpu.memory_space<vmem>>) attributes {dimension_semantics = [#tpu.dimension_semantics<parallel>], iteration_bounds = array<i64: 2>, scalar_prefetch = 0 : i64, scratch_operands = 1 : i64, tpu.core_type = #tpu.core_type<tc>, window_params = [{transform_indices = @transform_0, window_bounds = array<i64: 1, 3, 38, 38>}, {pipeline_mode = #tpu.pipeline_mode<synchronous>, transform_indices = @transform_1, window_bounds = array<i64: 3, 7, 38, 512>}, {pipeline_mode = #tpu.pipeline_mode<synchronous>, transform_indices = @transform_2, window_bounds = array<i64: 3, 1, 512>}, {pipeline_mode = #tpu.pipeline_mode<synchronous>, transform_indices = @transform_3, window_bounds = array<i64: 16, 512, 32>}, {pipeline_mode = #tpu.pipeline_mode<synchronous>, transform_indices = @transform_4, window_bounds = array<i64: 1, 32>}, {pipeline_mode = #tpu.pipeline_mode<synchronous>, transform_indices = @transform_5, window_bounds = array<i64: 4, 16>}, {pipeline_mode = #tpu.pipeline_mode<synchronous>, transform_indices = @transform_6, window_bounds = array<i64: 3, 16, 16>}, {pipeline_mode = #tpu.pipeline_mode<synchronous>, transform_indices = @transform_7, window_bounds = array<i64: 3, 1, 16>}, {pipeline_mode = #tpu.pipeline_mode<synchronous>, transform_indices = @transform_8, window_bounds = array<i64: 16, 16>}, {pipeline_mode = #tpu.pipeline_mode<synchronous>, transform_indices = @transform_9, window_bounds = array<i64: 1, 16>}, {pipeline_mode = #tpu.pipeline_mode<synchronous>, transform_indices = @transform_10, window_bounds = array<i64: 16, 64>}, {pipeline_mode = #tpu.pipeline_mode<synchronous>, transform_indices = @transform_11, window_bounds = array<i64: 1, 64>}, {pipeline_mode = #tpu.pipeline_mode<synchronous>, transform_indices = @transform_12, window_bounds = array<i64: 64, 16>}, {pipeline_mode = #tpu.pipeline_mode<synchronous>, transform_indices = @transform_13, window_bounds = array<i64: 1, 16>}, {pipeline_mode = #tpu.pipeline_mode<synchronous>, transform_indices = @transform_14, window_bounds = array<i64: 2, 16>}, {pipeline_mode = #tpu.pipeline_mode<synchronous>, transform_indices = @transform_15, window_bounds = array<i64: 2, 16>}, {pipeline_mode = #tpu.pipeline_mode<synchronous>, transform_indices = @transform_16, window_bounds = array<i64: 32, 2>}, {pipeline_mode = #tpu.pipeline_mode<synchronous>, transform_indices = @transform_17, window_bounds = array<i64: 32, 512>}, {transform_indices = @transform_18, window_bounds = array<i64: 1, 32, 512>}]} {
    %c0 = arith.constant 0 : index
    %c0_0 = arith.constant 0 : index
    %c0_1 = arith.constant 0 : index
    %c0_2 = arith.constant 0 : index
    %0 = vector.load %arg1[%c0, %c0_0, %c0_1, %c0_2] : memref<1x3x38x38xbf16, #tpu.memory_space<vmem>>, vector<1x1x32x38xbf16>
    %1 = vector.shape_cast %0 : vector<1x1x32x38xbf16> to vector<32x38xbf16>
    %c0_3 = arith.constant 0 : index
    %c0_4 = arith.constant 0 : index
    %c0_5 = arith.constant 0 : index
    %c0_6 = arith.constant 0 : index
    %2 = vector.load %arg2[%c0_3, %c0_4, %c0_5, %c0_6] : memref<3x7x38x512xbf16, #tpu.memory_space<vmem>>, vector<1x1x38x512xbf16>
    %3 = vector.shape_cast %2 : vector<1x1x38x512xbf16> to vector<38x512xbf16>
    %cst = arith.constant dense<0.000000e+00> : vector<32x512xf32>
    %4 = tpu.matmul %1, %3, %cst {dimension_numbers = #tpu.dot_dimension_numbers<[1], [0], [0], [1], [0, 0, 1, 1], [], []>} : vector<32x38xbf16>, vector<38x512xbf16>, vector<32x512xf32> -> vector<32x512xf32>
    %c0_7 = arith.constant 0 : index
    %c0_8 = arith.constant 0 : index
    %c1 = arith.constant 1 : index
    %c0_9 = arith.constant 0 : index
    %5 = vector.load %arg1[%c0_7, %c0_8, %c1, %c0_9] : memref<1x3x38x38xbf16, #tpu.memory_space<vmem>>, vector<1x1x32x38xbf16>
    %6 = vector.shape_cast %5 : vector<1x1x32x38xbf16> to vector<32x38xbf16>
    %c0_10 = arith.constant 0 : index
    %c1_11 = arith.constant 1 : index
    %c0_12 = arith.constant 0 : index
    %c0_13 = arith.constant 0 : index
    %7 = vector.load %arg2[%c0_10, %c1_11, %c0_12, %c0_13] : memref<3x7x38x512xbf16, #tpu.memory_space<vmem>>, vector<1x1x38x512xbf16>
    %8 = vector.shape_cast %7 : vector<1x1x38x512xbf16> to vector<38x512xbf16>
    %cst_14 = arith.constant dense<0.000000e+00> : vector<32x512xf32>
    %9 = tpu.matmul %6, %8, %cst_14 {dimension_numbers = #tpu.dot_dimension_numbers<[1], [0], [0], [1], [0, 0, 1, 1], [], []>} : vector<32x38xbf16>, vector<38x512xbf16>, vector<32x512xf32> -> vector<32x512xf32>
    %10 = arith.addf %4, %9 : vector<32x512xf32>
    %c0_15 = arith.constant 0 : index
    %c0_16 = arith.constant 0 : index
    %c2 = arith.constant 2 : index
    %c0_17 = arith.constant 0 : index
    %11 = vector.load %arg1[%c0_15, %c0_16, %c2, %c0_17] : memref<1x3x38x38xbf16, #tpu.memory_space<vmem>>, vector<1x1x32x38xbf16>
    %12 = vector.shape_cast %11 : vector<1x1x32x38xbf16> to vector<32x38xbf16>
    %c0_18 = arith.constant 0 : index
    %c2_19 = arith.constant 2 : index
    %c0_20 = arith.constant 0 : index
    %c0_21 = arith.constant 0 : index
    %13 = vector.load %arg2[%c0_18, %c2_19, %c0_20, %c0_21] : memref<3x7x38x512xbf16, #tpu.memory_space<vmem>>, vector<1x1x38x512xbf16>
    %14 = vector.shape_cast %13 : vector<1x1x38x512xbf16> to vector<38x512xbf16>
    %cst_22 = arith.constant dense<0.000000e+00> : vector<32x512xf32>
    %15 = tpu.matmul %12, %14, %cst_22 {dimension_numbers = #tpu.dot_dimension_numbers<[1], [0], [0], [1], [0, 0, 1, 1], [], []>} : vector<32x38xbf16>, vector<38x512xbf16>, vector<32x512xf32> -> vector<32x512xf32>
    %16 = arith.addf %10, %15 : vector<32x512xf32>
    %c0_23 = arith.constant 0 : index
    %c0_24 = arith.constant 0 : index
    %c3 = arith.constant 3 : index
    %c0_25 = arith.constant 0 : index
    %17 = vector.load %arg1[%c0_23, %c0_24, %c3, %c0_25] : memref<1x3x38x38xbf16, #tpu.memory_space<vmem>>, vector<1x1x32x38xbf16>
    %18 = vector.shape_cast %17 : vector<1x1x32x38xbf16> to vector<32x38xbf16>
    %c0_26 = arith.constant 0 : index
    %c3_27 = arith.constant 3 : index
    %c0_28 = arith.constant 0 : index
    %c0_29 = arith.constant 0 : index
    %19 = vector.load %arg2[%c0_26, %c3_27, %c0_28, %c0_29] : memref<3x7x38x512xbf16, #tpu.memory_space<vmem>>, vector<1x1x38x512xbf16>
    %20 = vector.shape_cast %19 : vector<1x1x38x512xbf16> to vector<38x512xbf16>
    %cst_30 = arith.constant dense<0.000000e+00> : vector<32x512xf32>
    %21 = tpu.matmul %18, %20, %cst_30 {dimension_numbers = #tpu.dot_dimension_numbers<[1], [0], [0], [1], [0, 0, 1, 1], [], []>} : vector<32x38xbf16>, vector<38x512xbf16>, vector<32x512xf32> -> vector<32x512xf32>
    %22 = arith.addf %16, %21 : vector<32x512xf32>
    %c0_31 = arith.constant 0 : index
    %c0_32 = arith.constant 0 : index
    %c4 = arith.constant 4 : index
    %c0_33 = arith.constant 0 : index
    %23 = vector.load %arg1[%c0_31, %c0_32, %c4, %c0_33] : memref<1x3x38x38xbf16, #tpu.memory_space<vmem>>, vector<1x1x32x38xbf16>
    %24 = vector.shape_cast %23 : vector<1x1x32x38xbf16> to vector<32x38xbf16>
    %c0_34 = arith.constant 0 : index
    %c4_35 = arith.constant 4 : index
    %c0_36 = arith.constant 0 : index
    %c0_37 = arith.constant 0 : index
    %25 = vector.load %arg2[%c0_34, %c4_35, %c0_36, %c0_37] : memref<3x7x38x512xbf16, #tpu.memory_space<vmem>>, vector<1x1x38x512xbf16>
    %26 = vector.shape_cast %25 : vector<1x1x38x512xbf16> to vector<38x512xbf16>
    %cst_38 = arith.constant dense<0.000000e+00> : vector<32x512xf32>
    %27 = tpu.matmul %24, %26, %cst_38 {dimension_numbers = #tpu.dot_dimension_numbers<[1], [0], [0], [1], [0, 0, 1, 1], [], []>} : vector<32x38xbf16>, vector<38x512xbf16>, vector<32x512xf32> -> vector<32x512xf32>
    %28 = arith.addf %22, %27 : vector<32x512xf32>
    %c0_39 = arith.constant 0 : index
    %c0_40 = arith.constant 0 : index
    %c5 = arith.constant 5 : index
    %c0_41 = arith.constant 0 : index
    %29 = vector.load %arg1[%c0_39, %c0_40, %c5, %c0_41] : memref<1x3x38x38xbf16, #tpu.memory_space<vmem>>, vector<1x1x32x38xbf16>
    %30 = vector.shape_cast %29 : vector<1x1x32x38xbf16> to vector<32x38xbf16>
    %c0_42 = arith.constant 0 : index
    %c5_43 = arith.constant 5 : index
    %c0_44 = arith.constant 0 : index
    %c0_45 = arith.constant 0 : index
    %31 = vector.load %arg2[%c0_42, %c5_43, %c0_44, %c0_45] : memref<3x7x38x512xbf16, #tpu.memory_space<vmem>>, vector<1x1x38x512xbf16>
    %32 = vector.shape_cast %31 : vector<1x1x38x512xbf16> to vector<38x512xbf16>
    %cst_46 = arith.constant dense<0.000000e+00> : vector<32x512xf32>
    %33 = tpu.matmul %30, %32, %cst_46 {dimension_numbers = #tpu.dot_dimension_numbers<[1], [0], [0], [1], [0, 0, 1, 1], [], []>} : vector<32x38xbf16>, vector<38x512xbf16>, vector<32x512xf32> -> vector<32x512xf32>
    %34 = arith.addf %28, %33 : vector<32x512xf32>
    %c0_47 = arith.constant 0 : index
    %c0_48 = arith.constant 0 : index
    %c6 = arith.constant 6 : index
    %c0_49 = arith.constant 0 : index
    %35 = vector.load %arg1[%c0_47, %c0_48, %c6, %c0_49] : memref<1x3x38x38xbf16, #tpu.memory_space<vmem>>, vector<1x1x32x38xbf16>
    %36 = vector.shape_cast %35 : vector<1x1x32x38xbf16> to vector<32x38xbf16>
    %c0_50 = arith.constant 0 : index
    %c6_51 = arith.constant 6 : index
    %c0_52 = arith.constant 0 : index
    %c0_53 = arith.constant 0 : index
    %37 = vector.load %arg2[%c0_50, %c6_51, %c0_52, %c0_53] : memref<3x7x38x512xbf16, #tpu.memory_space<vmem>>, vector<1x1x38x512xbf16>
    %38 = vector.shape_cast %37 : vector<1x1x38x512xbf16> to vector<38x512xbf16>
    %cst_54 = arith.constant dense<0.000000e+00> : vector<32x512xf32>
    %39 = tpu.matmul %36, %38, %cst_54 {dimension_numbers = #tpu.dot_dimension_numbers<[1], [0], [0], [1], [0, 0, 1, 1], [], []>} : vector<32x38xbf16>, vector<38x512xbf16>, vector<32x512xf32> -> vector<32x512xf32>
    %40 = arith.addf %34, %39 : vector<32x512xf32>
    %c0_55 = arith.constant 0 : index
    %c0_56 = arith.constant 0 : index
    %c0_57 = arith.constant 0 : index
    %41 = vector.load %arg3[%c0_55, %c0_56, %c0_57] : memref<3x1x512xf32, #tpu.memory_space<vmem>>, vector<1x1x512xf32>
    %42 = vector.shape_cast %41 : vector<1x1x512xf32> to vector<1x512xf32>
    %43 = vector.broadcast %42 : vector<1x512xf32> to vector<32x512xf32>
    %44 = arith.addf %40, %43 : vector<32x512xf32>
    %cst_58 = arith.constant 0.000000e+00 : f32
    %45 = vector.broadcast %cst_58 : f32 to vector<32x512xf32>
    %46 = arith.maximumf %44, %45 : vector<32x512xf32>
    %c0_59 = arith.constant 0 : index
    %c0_60 = arith.constant 0 : index
    %c0_61 = arith.constant 0 : index
    %47 = vector.load %arg20[%c0_59, %c0_60, %c0_61] : memref<3x32x512xf32, #tpu.memory_space<vmem>>, vector<1x32x512xf32>
    %48 = vector.shape_cast %47 : vector<1x32x512xf32> to vector<32x512xf32>
    %49 = vector.shape_cast %46 : vector<32x512xf32> to vector<1x32x512xf32>
    tpu.vector_store %arg20[%c0_59, %c0_60, %c0_61], %49 {strides = array<i32>} : memref<3x32x512xf32, #tpu.memory_space<vmem>>, vector<1x32x512xf32>,
    %c0_62 = arith.constant 0 : index
    %c1_63 = arith.constant 1 : index
    %c0_64 = arith.constant 0 : index
    %c0_65 = arith.constant 0 : index
    %50 = vector.load %arg1[%c0_62, %c1_63, %c0_64, %c0_65] : memref<1x3x38x38xbf16, #tpu.memory_space<vmem>>, vector<1x1x32x38xbf16>
    %51 = vector.shape_cast %50 : vector<1x1x32x38xbf16> to vector<32x38xbf16>
    %c1_66 = arith.constant 1 : index
    %c0_67 = arith.constant 0 : index
    %c0_68 = arith.constant 0 : index
    %c0_69 = arith.constant 0 : index
    %52 = vector.load %arg2[%c1_66, %c0_67, %c0_68, %c0_69] : memref<3x7x38x512xbf16, #tpu.memory_space<vmem>>, vector<1x1x38x512xbf16>
    %53 = vector.shape_cast %52 : vector<1x1x38x512xbf16> to vector<38x512xbf16>
    %cst_70 = arith.constant dense<0.000000e+00> : vector<32x512xf32>
    %54 = tpu.matmul %51, %53, %cst_70 {dimension_numbers = #tpu.dot_dimension_numbers<[1], [0], [0], [1], [0, 0, 1, 1], [], []>} : vector<32x38xbf16>, vector<38x512xbf16>, vector<32x512xf32> -> vector<32x512xf32>
    %c0_71 = arith.constant 0 : index
    %c1_72 = arith.constant 1 : index
    %c1_73 = arith.constant 1 : index
    %c0_74 = arith.constant 0 : index
    %55 = vector.load %arg1[%c0_71, %c1_72, %c1_73, %c0_74] : memref<1x3x38x38xbf16, #tpu.memory_space<vmem>>, vector<1x1x32x38xbf16>
    %56 = vector.shape_cast %55 : vector<1x1x32x38xbf16> to vector<32x38xbf16>
    %c1_75 = arith.constant 1 : index
    %c1_76 = arith.constant 1 : index
    %c0_77 = arith.constant 0 : index
    %c0_78 = arith.constant 0 : index
    %57 = vector.load %arg2[%c1_75, %c1_76, %c0_77, %c0_78] : memref<3x7x38x512xbf16, #tpu.memory_space<vmem>>, vector<1x1x38x512xbf16>
    %58 = vector.shape_cast %57 : vector<1x1x38x512xbf16> to vector<38x512xbf16>
    %cst_79 = arith.constant dense<0.000000e+00> : vector<32x512xf32>
    %59 = tpu.matmul %56, %58, %cst_79 {dimension_numbers = #tpu.dot_dimension_numbers<[1], [0], [0], [1], [0, 0, 1, 1], [], []>} : vector<32x38xbf16>, vector<38x512xbf16>, vector<32x512xf32> -> vector<32x512xf32>
    %60 = arith.addf %54, %59 : vector<32x512xf32>
    %c0_80 = arith.constant 0 : index
    %c1_81 = arith.constant 1 : index
    %c2_82 = arith.constant 2 : index
    %c0_83 = arith.constant 0 : index
    %61 = vector.load %arg1[%c0_80, %c1_81, %c2_82, %c0_83] : memref<1x3x38x38xbf16, #tpu.memory_space<vmem>>, vector<1x1x32x38xbf16>
    %62 = vector.shape_cast %61 : vector<1x1x32x38xbf16> to vector<32x38xbf16>
    %c1_84 = arith.constant 1 : index
    %c2_85 = arith.constant 2 : index
    %c0_86 = arith.constant 0 : index
    %c0_87 = arith.constant 0 : index
    %63 = vector.load %arg2[%c1_84, %c2_85, %c0_86, %c0_87] : memref<3x7x38x512xbf16, #tpu.memory_space<vmem>>, vector<1x1x38x512xbf16>
    %64 = vector.shape_cast %63 : vector<1x1x38x512xbf16> to vector<38x512xbf16>
    %cst_88 = arith.constant dense<0.000000e+00> : vector<32x512xf32>
    %65 = tpu.matmul %62, %64, %cst_88 {dimension_numbers = #tpu.dot_dimension_numbers<[1], [0], [0], [1], [0, 0, 1, 1], [], []>} : vector<32x38xbf16>, vector<38x512xbf16>, vector<32x512xf32> -> vector<32x512xf32>
    %66 = arith.addf %60, %65 : vector<32x512xf32>
    %c0_89 = arith.constant 0 : index
    %c1_90 = arith.constant 1 : index
    %c3_91 = arith.constant 3 : index
    %c0_92 = arith.constant 0 : index
    %67 = vector.load %arg1[%c0_89, %c1_90, %c3_91, %c0_92] : memref<1x3x38x38xbf16, #tpu.memory_space<vmem>>, vector<1x1x32x38xbf16>
    %68 = vector.shape_cast %67 : vector<1x1x32x38xbf16> to vector<32x38xbf16>
    %c1_93 = arith.constant 1 : index
    %c3_94 = arith.constant 3 : index
    %c0_95 = arith.constant 0 : index
    %c0_96 = arith.constant 0 : index
    %69 = vector.load %arg2[%c1_93, %c3_94, %c0_95, %c0_96] : memref<3x7x38x512xbf16, #tpu.memory_space<vmem>>, vector<1x1x38x512xbf16>
    %70 = vector.shape_cast %69 : vector<1x1x38x512xbf16> to vector<38x512xbf16>
    %cst_97 = arith.constant dense<0.000000e+00> : vector<32x512xf32>
    %71 = tpu.matmul %68, %70, %cst_97 {dimension_numbers = #tpu.dot_dimension_numbers<[1], [0], [0], [1], [0, 0, 1, 1], [], []>} : vector<32x38xbf16>, vector<38x512xbf16>, vector<32x512xf32> -> vector<32x512xf32>
    %72 = arith.addf %66, %71 : vector<32x512xf32>
    %c0_98 = arith.constant 0 : index
    %c1_99 = arith.constant 1 : index
    %c4_100 = arith.constant 4 : index
    %c0_101 = arith.constant 0 : index
    %73 = vector.load %arg1[%c0_98, %c1_99, %c4_100, %c0_101] : memref<1x3x38x38xbf16, #tpu.memory_space<vmem>>, vector<1x1x32x38xbf16>
    %74 = vector.shape_cast %73 : vector<1x1x32x38xbf16> to vector<32x38xbf16>
    %c1_102 = arith.constant 1 : index
    %c4_103 = arith.constant 4 : index
    %c0_104 = arith.constant 0 : index
    %c0_105 = arith.constant 0 : index
    %75 = vector.load %arg2[%c1_102, %c4_103, %c0_104, %c0_105] : memref<3x7x38x512xbf16, #tpu.memory_space<vmem>>, vector<1x1x38x512xbf16>
    %76 = vector.shape_cast %75 : vector<1x1x38x512xbf16> to vector<38x512xbf16>
    %cst_106 = arith.constant dense<0.000000e+00> : vector<32x512xf32>
    %77 = tpu.matmul %74, %76, %cst_106 {dimension_numbers = #tpu.dot_dimension_numbers<[1], [0], [0], [1], [0, 0, 1, 1], [], []>} : vector<32x38xbf16>, vector<38x512xbf16>, vector<32x512xf32> -> vector<32x512xf32>
    %78 = arith.addf %72, %77 : vector<32x512xf32>
    %c0_107 = arith.constant 0 : index
    %c1_108 = arith.constant 1 : index
    %c5_109 = arith.constant 5 : index
    %c0_110 = arith.constant 0 : index
    %79 = vector.load %arg1[%c0_107, %c1_108, %c5_109, %c0_110] : memref<1x3x38x38xbf16, #tpu.memory_space<vmem>>, vector<1x1x32x38xbf16>
    %80 = vector.shape_cast %79 : vector<1x1x32x38xbf16> to vector<32x38xbf16>
    %c1_111 = arith.constant 1 : index
    %c5_112 = arith.constant 5 : index
    %c0_113 = arith.constant 0 : index
    %c0_114 = arith.constant 0 : index
    %81 = vector.load %arg2[%c1_111, %c5_112, %c0_113, %c0_114] : memref<3x7x38x512xbf16, #tpu.memory_space<vmem>>, vector<1x1x38x512xbf16>
    %82 = vector.shape_cast %81 : vector<1x1x38x512xbf16> to vector<38x512xbf16>
    %cst_115 = arith.constant dense<0.000000e+00> : vector<32x512xf32>
    %83 = tpu.matmul %80, %82, %cst_115 {dimension_numbers = #tpu.dot_dimension_numbers<[1], [0], [0], [1], [0, 0, 1, 1], [], []>} : vector<32x38xbf16>, vector<38x512xbf16>, vector<32x512xf32> -> vector<32x512xf32>
    %84 = arith.addf %78, %83 : vector<32x512xf32>
    %c0_116 = arith.constant 0 : index
    %c1_117 = arith.constant 1 : index
    %c6_118 = arith.constant 6 : index
    %c0_119 = arith.constant 0 : index
    %85 = vector.load %arg1[%c0_116, %c1_117, %c6_118, %c0_119] : memref<1x3x38x38xbf16, #tpu.memory_space<vmem>>, vector<1x1x32x38xbf16>
    %86 = vector.shape_cast %85 : vector<1x1x32x38xbf16> to vector<32x38xbf16>
    %c1_120 = arith.constant 1 : index
    %c6_121 = arith.constant 6 : index
    %c0_122 = arith.constant 0 : index
    %c0_123 = arith.constant 0 : index
    %87 = vector.load %arg2[%c1_120, %c6_121, %c0_122, %c0_123] : memref<3x7x38x512xbf16, #tpu.memory_space<vmem>>, vector<1x1x38x512xbf16>
    %88 = vector.shape_cast %87 : vector<1x1x38x512xbf16> to vector<38x512xbf16>
    %cst_124 = arith.constant dense<0.000000e+00> : vector<32x512xf32>
    %89 = tpu.matmul %86, %88, %cst_124 {dimension_numbers = #tpu.dot_dimension_numbers<[1], [0], [0], [1], [0, 0, 1, 1], [], []>} : vector<32x38xbf16>, vector<38x512xbf16>, vector<32x512xf32> -> vector<32x512xf32>
    %90 = arith.addf %84, %89 : vector<32x512xf32>
    %c1_125 = arith.constant 1 : index
    %c0_126 = arith.constant 0 : index
    %c0_127 = arith.constant 0 : index
    %91 = vector.load %arg3[%c1_125, %c0_126, %c0_127] : memref<3x1x512xf32, #tpu.memory_space<vmem>>, vector<1x1x512xf32>
    %92 = vector.shape_cast %91 : vector<1x1x512xf32> to vector<1x512xf32>
    %93 = vector.broadcast %92 : vector<1x512xf32> to vector<32x512xf32>
    %94 = arith.addf %90, %93 : vector<32x512xf32>
    %cst_128 = arith.constant 0.000000e+00 : f32
    %95 = vector.broadcast %cst_128 : f32 to vector<32x512xf32>
    %96 = arith.maximumf %94, %95 : vector<32x512xf32>
    %c1_129 = arith.constant 1 : index
    %c0_130 = arith.constant 0 : index
    %c0_131 = arith.constant 0 : index
    %97 = vector.load %arg20[%c1_129, %c0_130, %c0_131] : memref<3x32x512xf32, #tpu.memory_space<vmem>>, vector<1x32x512xf32>
    %98 = vector.shape_cast %97 : vector<1x32x512xf32> to vector<32x512xf32>
    %99 = vector.shape_cast %96 : vector<32x512xf32> to vector<1x32x512xf32>
    tpu.vector_store %arg20[%c1_129, %c0_130, %c0_131], %99 {strides = array<i32>} : memref<3x32x512xf32, #tpu.memory_space<vmem>>, vector<1x32x512xf32>,
    %c0_132 = arith.constant 0 : index
    %c2_133 = arith.constant 2 : index
    %c0_134 = arith.constant 0 : index
    %c0_135 = arith.constant 0 : index
    %100 = vector.load %arg1[%c0_132, %c2_133, %c0_134, %c0_135] : memref<1x3x38x38xbf16, #tpu.memory_space<vmem>>, vector<1x1x32x38xbf16>
    %101 = vector.shape_cast %100 : vector<1x1x32x38xbf16> to vector<32x38xbf16>
    %c2_136 = arith.constant 2 : index
    %c0_137 = arith.constant 0 : index
    %c0_138 = arith.constant 0 : index
    %c0_139 = arith.constant 0 : index
    %102 = vector.load %arg2[%c2_136, %c0_137, %c0_138, %c0_139] : memref<3x7x38x512xbf16, #tpu.memory_space<vmem>>, vector<1x1x38x512xbf16>
    %103 = vector.shape_cast %102 : vector<1x1x38x512xbf16> to vector<38x512xbf16>
    %cst_140 = arith.constant dense<0.000000e+00> : vector<32x512xf32>
    %104 = tpu.matmul %101, %103, %cst_140 {dimension_numbers = #tpu.dot_dimension_numbers<[1], [0], [0], [1], [0, 0, 1, 1], [], []>} : vector<32x38xbf16>, vector<38x512xbf16>, vector<32x512xf32> -> vector<32x512xf32>
    %c0_141 = arith.constant 0 : index
    %c2_142 = arith.constant 2 : index
    %c1_143 = arith.constant 1 : index
    %c0_144 = arith.constant 0 : index
    %105 = vector.load %arg1[%c0_141, %c2_142, %c1_143, %c0_144] : memref<1x3x38x38xbf16, #tpu.memory_space<vmem>>, vector<1x1x32x38xbf16>
    %106 = vector.shape_cast %105 : vector<1x1x32x38xbf16> to vector<32x38xbf16>
    %c2_145 = arith.constant 2 : index
    %c1_146 = arith.constant 1 : index
    %c0_147 = arith.constant 0 : index
    %c0_148 = arith.constant 0 : index
    %107 = vector.load %arg2[%c2_145, %c1_146, %c0_147, %c0_148] : memref<3x7x38x512xbf16, #tpu.memory_space<vmem>>, vector<1x1x38x512xbf16>
    %108 = vector.shape_cast %107 : vector<1x1x38x512xbf16> to vector<38x512xbf16>
    %cst_149 = arith.constant dense<0.000000e+00> : vector<32x512xf32>
    %109 = tpu.matmul %106, %108, %cst_149 {dimension_numbers = #tpu.dot_dimension_numbers<[1], [0], [0], [1], [0, 0, 1, 1], [], []>} : vector<32x38xbf16>, vector<38x512xbf16>, vector<32x512xf32> -> vector<32x512xf32>
    %110 = arith.addf %104, %109 : vector<32x512xf32>
    %c0_150 = arith.constant 0 : index
    %c2_151 = arith.constant 2 : index
    %c2_152 = arith.constant 2 : index
    %c0_153 = arith.constant 0 : index
    %111 = vector.load %arg1[%c0_150, %c2_151, %c2_152, %c0_153] : memref<1x3x38x38xbf16, #tpu.memory_space<vmem>>, vector<1x1x32x38xbf16>
    %112 = vector.shape_cast %111 : vector<1x1x32x38xbf16> to vector<32x38xbf16>
    %c2_154 = arith.constant 2 : index
    %c2_155 = arith.constant 2 : index
    %c0_156 = arith.constant 0 : index
    %c0_157 = arith.constant 0 : index
    %113 = vector.load %arg2[%c2_154, %c2_155, %c0_156, %c0_157] : memref<3x7x38x512xbf16, #tpu.memory_space<vmem>>, vector<1x1x38x512xbf16>
    %114 = vector.shape_cast %113 : vector<1x1x38x512xbf16> to vector<38x512xbf16>
    %cst_158 = arith.constant dense<0.000000e+00> : vector<32x512xf32>
    %115 = tpu.matmul %112, %114, %cst_158 {dimension_numbers = #tpu.dot_dimension_numbers<[1], [0], [0], [1], [0, 0, 1, 1], [], []>} : vector<32x38xbf16>, vector<38x512xbf16>, vector<32x512xf32> -> vector<32x512xf32>
    %116 = arith.addf %110, %115 : vector<32x512xf32>
    %c0_159 = arith.constant 0 : index
    %c2_160 = arith.constant 2 : index
    %c3_161 = arith.constant 3 : index
    %c0_162 = arith.constant 0 : index
    %117 = vector.load %arg1[%c0_159, %c2_160, %c3_161, %c0_162] : memref<1x3x38x38xbf16, #tpu.memory_space<vmem>>, vector<1x1x32x38xbf16>
    %118 = vector.shape_cast %117 : vector<1x1x32x38xbf16> to vector<32x38xbf16>
    %c2_163 = arith.constant 2 : index
    %c3_164 = arith.constant 3 : index
    %c0_165 = arith.constant 0 : index
    %c0_166 = arith.constant 0 : index
    %119 = vector.load %arg2[%c2_163, %c3_164, %c0_165, %c0_166] : memref<3x7x38x512xbf16, #tpu.memory_space<vmem>>, vector<1x1x38x512xbf16>
    %120 = vector.shape_cast %119 : vector<1x1x38x512xbf16> to vector<38x512xbf16>
    %cst_167 = arith.constant dense<0.000000e+00> : vector<32x512xf32>
    %121 = tpu.matmul %118, %120, %cst_167 {dimension_numbers = #tpu.dot_dimension_numbers<[1], [0], [0], [1], [0, 0, 1, 1], [], []>} : vector<32x38xbf16>, vector<38x512xbf16>, vector<32x512xf32> -> vector<32x512xf32>
    %122 = arith.addf %116, %121 : vector<32x512xf32>
    %c0_168 = arith.constant 0 : index
    %c2_169 = arith.constant 2 : index
    %c4_170 = arith.constant 4 : index
    %c0_171 = arith.constant 0 : index
    %123 = vector.load %arg1[%c0_168, %c2_169, %c4_170, %c0_171] : memref<1x3x38x38xbf16, #tpu.memory_space<vmem>>, vector<1x1x32x38xbf16>
    %124 = vector.shape_cast %123 : vector<1x1x32x38xbf16> to vector<32x38xbf16>
    %c2_172 = arith.constant 2 : index
    %c4_173 = arith.constant 4 : index
    %c0_174 = arith.constant 0 : index
    %c0_175 = arith.constant 0 : index
    %125 = vector.load %arg2[%c2_172, %c4_173, %c0_174, %c0_175] : memref<3x7x38x512xbf16, #tpu.memory_space<vmem>>, vector<1x1x38x512xbf16>
    %126 = vector.shape_cast %125 : vector<1x1x38x512xbf16> to vector<38x512xbf16>
    %cst_176 = arith.constant dense<0.000000e+00> : vector<32x512xf32>
    %127 = tpu.matmul %124, %126, %cst_176 {dimension_numbers = #tpu.dot_dimension_numbers<[1], [0], [0], [1], [0, 0, 1, 1], [], []>} : vector<32x38xbf16>, vector<38x512xbf16>, vector<32x512xf32> -> vector<32x512xf32>
    %128 = arith.addf %122, %127 : vector<32x512xf32>
    %c0_177 = arith.constant 0 : index
    %c2_178 = arith.constant 2 : index
    %c5_179 = arith.constant 5 : index
    %c0_180 = arith.constant 0 : index
    %129 = vector.load %arg1[%c0_177, %c2_178, %c5_179, %c0_180] : memref<1x3x38x38xbf16, #tpu.memory_space<vmem>>, vector<1x1x32x38xbf16>
    %130 = vector.shape_cast %129 : vector<1x1x32x38xbf16> to vector<32x38xbf16>
    %c2_181 = arith.constant 2 : index
    %c5_182 = arith.constant 5 : index
    %c0_183 = arith.constant 0 : index
    %c0_184 = arith.constant 0 : index
    %131 = vector.load %arg2[%c2_181, %c5_182, %c0_183, %c0_184] : memref<3x7x38x512xbf16, #tpu.memory_space<vmem>>, vector<1x1x38x512xbf16>
    %132 = vector.shape_cast %131 : vector<1x1x38x512xbf16> to vector<38x512xbf16>
    %cst_185 = arith.constant dense<0.000000e+00> : vector<32x512xf32>
    %133 = tpu.matmul %130, %132, %cst_185 {dimension_numbers = #tpu.dot_dimension_numbers<[1], [0], [0], [1], [0, 0, 1, 1], [], []>} : vector<32x38xbf16>, vector<38x512xbf16>, vector<32x512xf32> -> vector<32x512xf32>
    %134 = arith.addf %128, %133 : vector<32x512xf32>
    %c0_186 = arith.constant 0 : index
    %c2_187 = arith.constant 2 : index
    %c6_188 = arith.constant 6 : index
    %c0_189 = arith.constant 0 : index
    %135 = vector.load %arg1[%c0_186, %c2_187, %c6_188, %c0_189] : memref<1x3x38x38xbf16, #tpu.memory_space<vmem>>, vector<1x1x32x38xbf16>
    %136 = vector.shape_cast %135 : vector<1x1x32x38xbf16> to vector<32x38xbf16>
    %c2_190 = arith.constant 2 : index
    %c6_191 = arith.constant 6 : index
    %c0_192 = arith.constant 0 : index
    %c0_193 = arith.constant 0 : index
    %137 = vector.load %arg2[%c2_190, %c6_191, %c0_192, %c0_193] : memref<3x7x38x512xbf16, #tpu.memory_space<vmem>>, vector<1x1x38x512xbf16>
    %138 = vector.shape_cast %137 : vector<1x1x38x512xbf16> to vector<38x512xbf16>
    %cst_194 = arith.constant dense<0.000000e+00> : vector<32x512xf32>
    %139 = tpu.matmul %136, %138, %cst_194 {dimension_numbers = #tpu.dot_dimension_numbers<[1], [0], [0], [1], [0, 0, 1, 1], [], []>} : vector<32x38xbf16>, vector<38x512xbf16>, vector<32x512xf32> -> vector<32x512xf32>
    %140 = arith.addf %134, %139 : vector<32x512xf32>
    %c2_195 = arith.constant 2 : index
    %c0_196 = arith.constant 0 : index
    %c0_197 = arith.constant 0 : index
    %141 = vector.load %arg3[%c2_195, %c0_196, %c0_197] : memref<3x1x512xf32, #tpu.memory_space<vmem>>, vector<1x1x512xf32>
    %142 = vector.shape_cast %141 : vector<1x1x512xf32> to vector<1x512xf32>
    %143 = vector.broadcast %142 : vector<1x512xf32> to vector<32x512xf32>
    %144 = arith.addf %140, %143 : vector<32x512xf32>
    %cst_198 = arith.constant 0.000000e+00 : f32
    %145 = vector.broadcast %cst_198 : f32 to vector<32x512xf32>
    %146 = arith.maximumf %144, %145 : vector<32x512xf32>
    %c2_199 = arith.constant 2 : index
    %c0_200 = arith.constant 0 : index
    %c0_201 = arith.constant 0 : index
    %147 = vector.load %arg20[%c2_199, %c0_200, %c0_201] : memref<3x32x512xf32, #tpu.memory_space<vmem>>, vector<1x32x512xf32>
    %148 = vector.shape_cast %147 : vector<1x32x512xf32> to vector<32x512xf32>
    %149 = vector.shape_cast %146 : vector<32x512xf32> to vector<1x32x512xf32>
    tpu.vector_store %arg20[%c2_199, %c0_200, %c0_201], %149 {strides = array<i32>} : memref<3x32x512xf32, #tpu.memory_space<vmem>>, vector<1x32x512xf32>,
    %cst_202 = arith.constant 0.000000e+00 : f32
    %150 = vector.broadcast %cst_202 : f32 to vector<6x32xf32>
    %c0_203 = arith.constant 0 : index
    %c0_204 = arith.constant 0 : index
    %c0_205 = arith.constant 0 : index
    %151 = vector.load %arg20[%c0_203, %c0_204, %c0_205] : memref<3x32x512xf32, #tpu.memory_space<vmem>>, vector<1x1x512xf32>
    %152 = vector.shape_cast %151 : vector<1x1x512xf32> to vector<1x512xf32>
    %c0_206 = arith.constant 0 : index
    %c16 = arith.constant 16 : index
    %c0_207 = arith.constant 0 : index
    %153 = vector.load %arg20[%c0_206, %c16, %c0_207] : memref<3x32x512xf32, #tpu.memory_space<vmem>>, vector<1x1x512xf32>
    %154 = vector.shape_cast %153 : vector<1x1x512xf32> to vector<1x512xf32>
    %c1_208 = arith.constant 1 : index
    %c0_209 = arith.constant 0 : index
    %c0_210 = arith.constant 0 : index
    %155 = vector.load %arg20[%c1_208, %c0_209, %c0_210] : memref<3x32x512xf32, #tpu.memory_space<vmem>>, vector<1x1x512xf32>
    %156 = vector.shape_cast %155 : vector<1x1x512xf32> to vector<1x512xf32>
    %c1_211 = arith.constant 1 : index
    %c16_212 = arith.constant 16 : index
    %c0_213 = arith.constant 0 : index
    %157 = vector.load %arg20[%c1_211, %c16_212, %c0_213] : memref<3x32x512xf32, #tpu.memory_space<vmem>>, vector<1x1x512xf32>
    %158 = vector.shape_cast %157 : vector<1x1x512xf32> to vector<1x512xf32>
    %c2_214 = arith.constant 2 : index
    %c0_215 = arith.constant 0 : index
    %c0_216 = arith.constant 0 : index
    %159 = vector.load %arg20[%c2_214, %c0_215, %c0_216] : memref<3x32x512xf32, #tpu.memory_space<vmem>>, vector<1x1x512xf32>
    %160 = vector.shape_cast %159 : vector<1x1x512xf32> to vector<1x512xf32>
    %c2_217 = arith.constant 2 : index
    %c16_218 = arith.constant 16 : index
    %c0_219 = arith.constant 0 : index
    %161 = vector.load %arg20[%c2_217, %c16_218, %c0_219] : memref<3x32x512xf32, #tpu.memory_space<vmem>>, vector<1x1x512xf32>
    %162 = vector.shape_cast %161 : vector<1x1x512xf32> to vector<1x512xf32>
    %163 = tpu.concatenate %152, %154, %156, %158, %160, %162 in 0 : vector<1x512xf32>, vector<1x512xf32>, vector<1x512xf32>, vector<1x512xf32>, vector<1x512xf32>, vector<1x512xf32> -> vector<6x512xf32>
    %164 = arith.truncf %163 : vector<6x512xf32> to vector<6x512xbf16>
    %c0_220 = arith.constant 0 : index
    %c0_221 = arith.constant 0 : index
    %c0_222 = arith.constant 0 : index
    %165 = vector.load %arg4[%c0_220, %c0_221, %c0_222] : memref<16x512x32xbf16, #tpu.memory_space<vmem>>, vector<1x512x32xbf16>
    %166 = vector.shape_cast %165 : vector<1x512x32xbf16> to vector<512x32xbf16>
    %cst_223 = arith.constant dense<0.000000e+00> : vector<6x32xf32>
    %167 = tpu.matmul %164, %166, %cst_223 {dimension_numbers = #tpu.dot_dimension_numbers<[1], [0], [0], [1], [0, 0, 1, 1], [], []>} : vector<6x512xbf16>, vector<512x32xbf16>, vector<6x32xf32> -> vector<6x32xf32>
    %168 = arith.addf %150, %167 : vector<6x32xf32>
    %c0_224 = arith.constant 0 : index
    %c1_225 = arith.constant 1 : index
    %c0_226 = arith.constant 0 : index
    %169 = vector.load %arg20[%c0_224, %c1_225, %c0_226] : memref<3x32x512xf32, #tpu.memory_space<vmem>>, vector<1x1x512xf32>
    %170 = vector.shape_cast %169 : vector<1x1x512xf32> to vector<1x512xf32>
    %c0_227 = arith.constant 0 : index
    %c17 = arith.constant 17 : index
    %c0_228 = arith.constant 0 : index
    %171 = vector.load %arg20[%c0_227, %c17, %c0_228] : memref<3x32x512xf32, #tpu.memory_space<vmem>>, vector<1x1x512xf32>
    %172 = vector.shape_cast %171 : vector<1x1x512xf32> to vector<1x512xf32>
    %c1_229 = arith.constant 1 : index
    %c1_230 = arith.constant 1 : index
    %c0_231 = arith.constant 0 : index
    %173 = vector.load %arg20[%c1_229, %c1_230, %c0_231] : memref<3x32x512xf32, #tpu.memory_space<vmem>>, vector<1x1x512xf32>
    %174 = vector.shape_cast %173 : vector<1x1x512xf32> to vector<1x512xf32>
    %c1_232 = arith.constant 1 : index
    %c17_233 = arith.constant 17 : index
    %c0_234 = arith.constant 0 : index
    %175 = vector.load %arg20[%c1_232, %c17_233, %c0_234] : memref<3x32x512xf32, #tpu.memory_space<vmem>>, vector<1x1x512xf32>
    %176 = vector.shape_cast %175 : vector<1x1x512xf32> to vector<1x512xf32>
    %c2_235 = arith.constant 2 : index
    %c1_236 = arith.constant 1 : index
    %c0_237 = arith.constant 0 : index
    %177 = vector.load %arg20[%c2_235, %c1_236, %c0_237] : memref<3x32x512xf32, #tpu.memory_space<vmem>>, vector<1x1x512xf32>
    %178 = vector.shape_cast %177 : vector<1x1x512xf32> to vector<1x512xf32>
    %c2_238 = arith.constant 2 : index
    %c17_239 = arith.constant 17 : index
    %c0_240 = arith.constant 0 : index
    %179 = vector.load %arg20[%c2_238, %c17_239, %c0_240] : memref<3x32x512xf32, #tpu.memory_space<vmem>>, vector<1x1x512xf32>
    %180 = vector.shape_cast %179 : vector<1x1x512xf32> to vector<1x512xf32>
    %181 = tpu.concatenate %170, %172, %174, %176, %178, %180 in 0 : vector<1x512xf32>, vector<1x512xf32>, vector<1x512xf32>, vector<1x512xf32>, vector<1x512xf32>, vector<1x512xf32> -> vector<6x512xf32>
    %182 = arith.truncf %181 : vector<6x512xf32> to vector<6x512xbf16>
    %c1_241 = arith.constant 1 : index
    %c0_242 = arith.constant 0 : index
    %c0_243 = arith.constant 0 : index
    %183 = vector.load %arg4[%c1_241, %c0_242, %c0_243] : memref<16x512x32xbf16, #tpu.memory_space<vmem>>, vector<1x512x32xbf16>
    %184 = vector.shape_cast %183 : vector<1x512x32xbf16> to vector<512x32xbf16>
    %cst_244 = arith.constant dense<0.000000e+00> : vector<6x32xf32>
    %185 = tpu.matmul %182, %184, %cst_244 {dimension_numbers = #tpu.dot_dimension_numbers<[1], [0], [0], [1], [0, 0, 1, 1], [], []>} : vector<6x512xbf16>, vector<512x32xbf16>, vector<6x32xf32> -> vector<6x32xf32>
    %186 = arith.addf %168, %185 : vector<6x32xf32>
    %c0_245 = arith.constant 0 : index
    %c2_246 = arith.constant 2 : index
    %c0_247 = arith.constant 0 : index
    %187 = vector.load %arg20[%c0_245, %c2_246, %c0_247] : memref<3x32x512xf32, #tpu.memory_space<vmem>>, vector<1x1x512xf32>
    %188 = vector.shape_cast %187 : vector<1x1x512xf32> to vector<1x512xf32>
    %c0_248 = arith.constant 0 : index
    %c18 = arith.constant 18 : index
    %c0_249 = arith.constant 0 : index
    %189 = vector.load %arg20[%c0_248, %c18, %c0_249] : memref<3x32x512xf32, #tpu.memory_space<vmem>>, vector<1x1x512xf32>
    %190 = vector.shape_cast %189 : vector<1x1x512xf32> to vector<1x512xf32>
    %c1_250 = arith.constant 1 : index
    %c2_251 = arith.constant 2 : index
    %c0_252 = arith.constant 0 : index
    %191 = vector.load %arg20[%c1_250, %c2_251, %c0_252] : memref<3x32x512xf32, #tpu.memory_space<vmem>>, vector<1x1x512xf32>
    %192 = vector.shape_cast %191 : vector<1x1x512xf32> to vector<1x512xf32>
    %c1_253 = arith.constant 1 : index
    %c18_254 = arith.constant 18 : index
    %c0_255 = arith.constant 0 : index
    %193 = vector.load %arg20[%c1_253, %c18_254, %c0_255] : memref<3x32x512xf32, #tpu.memory_space<vmem>>, vector<1x1x512xf32>
    %194 = vector.shape_cast %193 : vector<1x1x512xf32> to vector<1x512xf32>
    %c2_256 = arith.constant 2 : index
    %c2_257 = arith.constant 2 : index
    %c0_258 = arith.constant 0 : index
    %195 = vector.load %arg20[%c2_256, %c2_257, %c0_258] : memref<3x32x512xf32, #tpu.memory_space<vmem>>, vector<1x1x512xf32>
    %196 = vector.shape_cast %195 : vector<1x1x512xf32> to vector<1x512xf32>
    %c2_259 = arith.constant 2 : index
    %c18_260 = arith.constant 18 : index
    %c0_261 = arith.constant 0 : index
    %197 = vector.load %arg20[%c2_259, %c18_260, %c0_261] : memref<3x32x512xf32, #tpu.memory_space<vmem>>, vector<1x1x512xf32>
    %198 = vector.shape_cast %197 : vector<1x1x512xf32> to vector<1x512xf32>
    %199 = tpu.concatenate %188, %190, %192, %194, %196, %198 in 0 : vector<1x512xf32>, vector<1x512xf32>, vector<1x512xf32>, vector<1x512xf32>, vector<1x512xf32>, vector<1x512xf32> -> vector<6x512xf32>
    %200 = arith.truncf %199 : vector<6x512xf32> to vector<6x512xbf16>
    %c2_262 = arith.constant 2 : index
    %c0_263 = arith.constant 0 : index
    %c0_264 = arith.constant 0 : index
    %201 = vector.load %arg4[%c2_262, %c0_263, %c0_264] : memref<16x512x32xbf16, #tpu.memory_space<vmem>>, vector<1x512x32xbf16>
    %202 = vector.shape_cast %201 : vector<1x512x32xbf16> to vector<512x32xbf16>
    %cst_265 = arith.constant dense<0.000000e+00> : vector<6x32xf32>
    %203 = tpu.matmul %200, %202, %cst_265 {dimension_numbers = #tpu.dot_dimension_numbers<[1], [0], [0], [1], [0, 0, 1, 1], [], []>} : vector<6x512xbf16>, vector<512x32xbf16>, vector<6x32xf32> -> vector<6x32xf32>
    %204 = arith.addf %186, %203 : vector<6x32xf32>
    %c0_266 = arith.constant 0 : index
    %c3_267 = arith.constant 3 : index
    %c0_268 = arith.constant 0 : index
    %205 = vector.load %arg20[%c0_266, %c3_267, %c0_268] : memref<3x32x512xf32, #tpu.memory_space<vmem>>, vector<1x1x512xf32>
    %206 = vector.shape_cast %205 : vector<1x1x512xf32> to vector<1x512xf32>
    %c0_269 = arith.constant 0 : index
    %c19 = arith.constant 19 : index
    %c0_270 = arith.constant 0 : index
    %207 = vector.load %arg20[%c0_269, %c19, %c0_270] : memref<3x32x512xf32, #tpu.memory_space<vmem>>, vector<1x1x512xf32>
    %208 = vector.shape_cast %207 : vector<1x1x512xf32> to vector<1x512xf32>
    %c1_271 = arith.constant 1 : index
    %c3_272 = arith.constant 3 : index
    %c0_273 = arith.constant 0 : index
    %209 = vector.load %arg20[%c1_271, %c3_272, %c0_273] : memref<3x32x512xf32, #tpu.memory_space<vmem>>, vector<1x1x512xf32>
    %210 = vector.shape_cast %209 : vector<1x1x512xf32> to vector<1x512xf32>
    %c1_274 = arith.constant 1 : index
    %c19_275 = arith.constant 19 : index
    %c0_276 = arith.constant 0 : index
    %211 = vector.load %arg20[%c1_274, %c19_275, %c0_276] : memref<3x32x512xf32, #tpu.memory_space<vmem>>, vector<1x1x512xf32>
    %212 = vector.shape_cast %211 : vector<1x1x512xf32> to vector<1x512xf32>
    %c2_277 = arith.constant 2 : index
    %c3_278 = arith.constant 3 : index
    %c0_279 = arith.constant 0 : index
    %213 = vector.load %arg20[%c2_277, %c3_278, %c0_279] : memref<3x32x512xf32, #tpu.memory_space<vmem>>, vector<1x1x512xf32>
    %214 = vector.shape_cast %213 : vector<1x1x512xf32> to vector<1x512xf32>
    %c2_280 = arith.constant 2 : index
    %c19_281 = arith.constant 19 : index
    %c0_282 = arith.constant 0 : index
    %215 = vector.load %arg20[%c2_280, %c19_281, %c0_282] : memref<3x32x512xf32, #tpu.memory_space<vmem>>, vector<1x1x512xf32>
    %216 = vector.shape_cast %215 : vector<1x1x512xf32> to vector<1x512xf32>
    %217 = tpu.concatenate %206, %208, %210, %212, %214, %216 in 0 : vector<1x512xf32>, vector<1x512xf32>, vector<1x512xf32>, vector<1x512xf32>, vector<1x512xf32>, vector<1x512xf32> -> vector<6x512xf32>
    %218 = arith.truncf %217 : vector<6x512xf32> to vector<6x512xbf16>
    %c3_283 = arith.constant 3 : index
    %c0_284 = arith.constant 0 : index
    %c0_285 = arith.constant 0 : index
    %219 = vector.load %arg4[%c3_283, %c0_284, %c0_285] : memref<16x512x32xbf16, #tpu.memory_space<vmem>>, vector<1x512x32xbf16>
    %220 = vector.shape_cast %219 : vector<1x512x32xbf16> to vector<512x32xbf16>
    %cst_286 = arith.constant dense<0.000000e+00> : vector<6x32xf32>
    %221 = tpu.matmul %218, %220, %cst_286 {dimension_numbers = #tpu.dot_dimension_numbers<[1], [0], [0], [1], [0, 0, 1, 1], [], []>} : vector<6x512xbf16>, vector<512x32xbf16>, vector<6x32xf32> -> vector<6x32xf32>
    %222 = arith.addf %204, %221 : vector<6x32xf32>
    %c0_287 = arith.constant 0 : index
    %c4_288 = arith.constant 4 : index
    %c0_289 = arith.constant 0 : index
    %223 = vector.load %arg20[%c0_287, %c4_288, %c0_289] : memref<3x32x512xf32, #tpu.memory_space<vmem>>, vector<1x1x512xf32>
    %224 = vector.shape_cast %223 : vector<1x1x512xf32> to vector<1x512xf32>
    %c0_290 = arith.constant 0 : index
    %c20 = arith.constant 20 : index
    %c0_291 = arith.constant 0 : index
    %225 = vector.load %arg20[%c0_290, %c20, %c0_291] : memref<3x32x512xf32, #tpu.memory_space<vmem>>, vector<1x1x512xf32>
    %226 = vector.shape_cast %225 : vector<1x1x512xf32> to vector<1x512xf32>
    %c1_292 = arith.constant 1 : index
    %c4_293 = arith.constant 4 : index
    %c0_294 = arith.constant 0 : index
    %227 = vector.load %arg20[%c1_292, %c4_293, %c0_294] : memref<3x32x512xf32, #tpu.memory_space<vmem>>, vector<1x1x512xf32>
    %228 = vector.shape_cast %227 : vector<1x1x512xf32> to vector<1x512xf32>
    %c1_295 = arith.constant 1 : index
    %c20_296 = arith.constant 20 : index
    %c0_297 = arith.constant 0 : index
    %229 = vector.load %arg20[%c1_295, %c20_296, %c0_297] : memref<3x32x512xf32, #tpu.memory_space<vmem>>, vector<1x1x512xf32>
    %230 = vector.shape_cast %229 : vector<1x1x512xf32> to vector<1x512xf32>
    %c2_298 = arith.constant 2 : index
    %c4_299 = arith.constant 4 : index
    %c0_300 = arith.constant 0 : index
    %231 = vector.load %arg20[%c2_298, %c4_299, %c0_300] : memref<3x32x512xf32, #tpu.memory_space<vmem>>, vector<1x1x512xf32>
    %232 = vector.shape_cast %231 : vector<1x1x512xf32> to vector<1x512xf32>
    %c2_301 = arith.constant 2 : index
    %c20_302 = arith.constant 20 : index
    %c0_303 = arith.constant 0 : index
    %233 = vector.load %arg20[%c2_301, %c20_302, %c0_303] : memref<3x32x512xf32, #tpu.memory_space<vmem>>, vector<1x1x512xf32>
    %234 = vector.shape_cast %233 : vector<1x1x512xf32> to vector<1x512xf32>
    %235 = tpu.concatenate %224, %226, %228, %230, %232, %234 in 0 : vector<1x512xf32>, vector<1x512xf32>, vector<1x512xf32>, vector<1x512xf32>, vector<1x512xf32>, vector<1x512xf32> -> vector<6x512xf32>
    %236 = arith.truncf %235 : vector<6x512xf32> to vector<6x512xbf16>
    %c4_304 = arith.constant 4 : index
    %c0_305 = arith.constant 0 : index
    %c0_306 = arith.constant 0 : index
    %237 = vector.load %arg4[%c4_304, %c0_305, %c0_306] : memref<16x512x32xbf16, #tpu.memory_space<vmem>>, vector<1x512x32xbf16>
    %238 = vector.shape_cast %237 : vector<1x512x32xbf16> to vector<512x32xbf16>
    %cst_307 = arith.constant dense<0.000000e+00> : vector<6x32xf32>
    %239 = tpu.matmul %236, %238, %cst_307 {dimension_numbers = #tpu.dot_dimension_numbers<[1], [0], [0], [1], [0, 0, 1, 1], [], []>} : vector<6x512xbf16>, vector<512x32xbf16>, vector<6x32xf32> -> vector<6x32xf32>
    %240 = arith.addf %222, %239 : vector<6x32xf32>
    %c0_308 = arith.constant 0 : index
    %c5_309 = arith.constant 5 : index
    %c0_310 = arith.constant 0 : index
    %241 = vector.load %arg20[%c0_308, %c5_309, %c0_310] : memref<3x32x512xf32, #tpu.memory_space<vmem>>, vector<1x1x512xf32>
    %242 = vector.shape_cast %241 : vector<1x1x512xf32> to vector<1x512xf32>
    %c0_311 = arith.constant 0 : index
    %c21 = arith.constant 21 : index
    %c0_312 = arith.constant 0 : index
    %243 = vector.load %arg20[%c0_311, %c21, %c0_312] : memref<3x32x512xf32, #tpu.memory_space<vmem>>, vector<1x1x512xf32>
    %244 = vector.shape_cast %243 : vector<1x1x512xf32> to vector<1x512xf32>
    %c1_313 = arith.constant 1 : index
    %c5_314 = arith.constant 5 : index
    %c0_315 = arith.constant 0 : index
    %245 = vector.load %arg20[%c1_313, %c5_314, %c0_315] : memref<3x32x512xf32, #tpu.memory_space<vmem>>, vector<1x1x512xf32>
    %246 = vector.shape_cast %245 : vector<1x1x512xf32> to vector<1x512xf32>
    %c1_316 = arith.constant 1 : index
    %c21_317 = arith.constant 21 : index
    %c0_318 = arith.constant 0 : index
    %247 = vector.load %arg20[%c1_316, %c21_317, %c0_318] : memref<3x32x512xf32, #tpu.memory_space<vmem>>, vector<1x1x512xf32>
    %248 = vector.shape_cast %247 : vector<1x1x512xf32> to vector<1x512xf32>
    %c2_319 = arith.constant 2 : index
    %c5_320 = arith.constant 5 : index
    %c0_321 = arith.constant 0 : index
    %249 = vector.load %arg20[%c2_319, %c5_320, %c0_321] : memref<3x32x512xf32, #tpu.memory_space<vmem>>, vector<1x1x512xf32>
    %250 = vector.shape_cast %249 : vector<1x1x512xf32> to vector<1x512xf32>
    %c2_322 = arith.constant 2 : index
    %c21_323 = arith.constant 21 : index
    %c0_324 = arith.constant 0 : index
    %251 = vector.load %arg20[%c2_322, %c21_323, %c0_324] : memref<3x32x512xf32, #tpu.memory_space<vmem>>, vector<1x1x512xf32>
    %252 = vector.shape_cast %251 : vector<1x1x512xf32> to vector<1x512xf32>
    %253 = tpu.concatenate %242, %244, %246, %248, %250, %252 in 0 : vector<1x512xf32>, vector<1x512xf32>, vector<1x512xf32>, vector<1x512xf32>, vector<1x512xf32>, vector<1x512xf32> -> vector<6x512xf32>
    %254 = arith.truncf %253 : vector<6x512xf32> to vector<6x512xbf16>
    %c5_325 = arith.constant 5 : index
    %c0_326 = arith.constant 0 : index
    %c0_327 = arith.constant 0 : index
    %255 = vector.load %arg4[%c5_325, %c0_326, %c0_327] : memref<16x512x32xbf16, #tpu.memory_space<vmem>>, vector<1x512x32xbf16>
    %256 = vector.shape_cast %255 : vector<1x512x32xbf16> to vector<512x32xbf16>
    %cst_328 = arith.constant dense<0.000000e+00> : vector<6x32xf32>
    %257 = tpu.matmul %254, %256, %cst_328 {dimension_numbers = #tpu.dot_dimension_numbers<[1], [0], [0], [1], [0, 0, 1, 1], [], []>} : vector<6x512xbf16>, vector<512x32xbf16>, vector<6x32xf32> -> vector<6x32xf32>
    %258 = arith.addf %240, %257 : vector<6x32xf32>
    %c0_329 = arith.constant 0 : index
    %c6_330 = arith.constant 6 : index
    %c0_331 = arith.constant 0 : index
    %259 = vector.load %arg20[%c0_329, %c6_330, %c0_331] : memref<3x32x512xf32, #tpu.memory_space<vmem>>, vector<1x1x512xf32>
    %260 = vector.shape_cast %259 : vector<1x1x512xf32> to vector<1x512xf32>
    %c0_332 = arith.constant 0 : index
    %c22 = arith.constant 22 : index
    %c0_333 = arith.constant 0 : index
    %261 = vector.load %arg20[%c0_332, %c22, %c0_333] : memref<3x32x512xf32, #tpu.memory_space<vmem>>, vector<1x1x512xf32>
    %262 = vector.shape_cast %261 : vector<1x1x512xf32> to vector<1x512xf32>
    %c1_334 = arith.constant 1 : index
    %c6_335 = arith.constant 6 : index
    %c0_336 = arith.constant 0 : index
    %263 = vector.load %arg20[%c1_334, %c6_335, %c0_336] : memref<3x32x512xf32, #tpu.memory_space<vmem>>, vector<1x1x512xf32>
    %264 = vector.shape_cast %263 : vector<1x1x512xf32> to vector<1x512xf32>
    %c1_337 = arith.constant 1 : index
    %c22_338 = arith.constant 22 : index
    %c0_339 = arith.constant 0 : index
    %265 = vector.load %arg20[%c1_337, %c22_338, %c0_339] : memref<3x32x512xf32, #tpu.memory_space<vmem>>, vector<1x1x512xf32>
    %266 = vector.shape_cast %265 : vector<1x1x512xf32> to vector<1x512xf32>
    %c2_340 = arith.constant 2 : index
    %c6_341 = arith.constant 6 : index
    %c0_342 = arith.constant 0 : index
    %267 = vector.load %arg20[%c2_340, %c6_341, %c0_342] : memref<3x32x512xf32, #tpu.memory_space<vmem>>, vector<1x1x512xf32>
    %268 = vector.shape_cast %267 : vector<1x1x512xf32> to vector<1x512xf32>
    %c2_343 = arith.constant 2 : index
    %c22_344 = arith.constant 22 : index
    %c0_345 = arith.constant 0 : index
    %269 = vector.load %arg20[%c2_343, %c22_344, %c0_345] : memref<3x32x512xf32, #tpu.memory_space<vmem>>, vector<1x1x512xf32>
    %270 = vector.shape_cast %269 : vector<1x1x512xf32> to vector<1x512xf32>
    %271 = tpu.concatenate %260, %262, %264, %266, %268, %270 in 0 : vector<1x512xf32>, vector<1x512xf32>, vector<1x512xf32>, vector<1x512xf32>, vector<1x512xf32>, vector<1x512xf32> -> vector<6x512xf32>
    %272 = arith.truncf %271 : vector<6x512xf32> to vector<6x512xbf16>
    %c6_346 = arith.constant 6 : index
    %c0_347 = arith.constant 0 : index
    %c0_348 = arith.constant 0 : index
    %273 = vector.load %arg4[%c6_346, %c0_347, %c0_348] : memref<16x512x32xbf16, #tpu.memory_space<vmem>>, vector<1x512x32xbf16>
    %274 = vector.shape_cast %273 : vector<1x512x32xbf16> to vector<512x32xbf16>
    %cst_349 = arith.constant dense<0.000000e+00> : vector<6x32xf32>
    %275 = tpu.matmul %272, %274, %cst_349 {dimension_numbers = #tpu.dot_dimension_numbers<[1], [0], [0], [1], [0, 0, 1, 1], [], []>} : vector<6x512xbf16>, vector<512x32xbf16>, vector<6x32xf32> -> vector<6x32xf32>
    %276 = arith.addf %258, %275 : vector<6x32xf32>
    %c0_350 = arith.constant 0 : index
    %c7 = arith.constant 7 : index
    %c0_351 = arith.constant 0 : index
    %277 = vector.load %arg20[%c0_350, %c7, %c0_351] : memref<3x32x512xf32, #tpu.memory_space<vmem>>, vector<1x1x512xf32>
    %278 = vector.shape_cast %277 : vector<1x1x512xf32> to vector<1x512xf32>
    %c0_352 = arith.constant 0 : index
    %c23 = arith.constant 23 : index
    %c0_353 = arith.constant 0 : index
    %279 = vector.load %arg20[%c0_352, %c23, %c0_353] : memref<3x32x512xf32, #tpu.memory_space<vmem>>, vector<1x1x512xf32>
    %280 = vector.shape_cast %279 : vector<1x1x512xf32> to vector<1x512xf32>
    %c1_354 = arith.constant 1 : index
    %c7_355 = arith.constant 7 : index
    %c0_356 = arith.constant 0 : index
    %281 = vector.load %arg20[%c1_354, %c7_355, %c0_356] : memref<3x32x512xf32, #tpu.memory_space<vmem>>, vector<1x1x512xf32>
    %282 = vector.shape_cast %281 : vector<1x1x512xf32> to vector<1x512xf32>
    %c1_357 = arith.constant 1 : index
    %c23_358 = arith.constant 23 : index
    %c0_359 = arith.constant 0 : index
    %283 = vector.load %arg20[%c1_357, %c23_358, %c0_359] : memref<3x32x512xf32, #tpu.memory_space<vmem>>, vector<1x1x512xf32>
    %284 = vector.shape_cast %283 : vector<1x1x512xf32> to vector<1x512xf32>
    %c2_360 = arith.constant 2 : index
    %c7_361 = arith.constant 7 : index
    %c0_362 = arith.constant 0 : index
    %285 = vector.load %arg20[%c2_360, %c7_361, %c0_362] : memref<3x32x512xf32, #tpu.memory_space<vmem>>, vector<1x1x512xf32>
    %286 = vector.shape_cast %285 : vector<1x1x512xf32> to vector<1x512xf32>
    %c2_363 = arith.constant 2 : index
    %c23_364 = arith.constant 23 : index
    %c0_365 = arith.constant 0 : index
    %287 = vector.load %arg20[%c2_363, %c23_364, %c0_365] : memref<3x32x512xf32, #tpu.memory_space<vmem>>, vector<1x1x512xf32>
    %288 = vector.shape_cast %287 : vector<1x1x512xf32> to vector<1x512xf32>
    %289 = tpu.concatenate %278, %280, %282, %284, %286, %288 in 0 : vector<1x512xf32>, vector<1x512xf32>, vector<1x512xf32>, vector<1x512xf32>, vector<1x512xf32>, vector<1x512xf32> -> vector<6x512xf32>
    %290 = arith.truncf %289 : vector<6x512xf32> to vector<6x512xbf16>
    %c7_366 = arith.constant 7 : index
    %c0_367 = arith.constant 0 : index
    %c0_368 = arith.constant 0 : index
    %291 = vector.load %arg4[%c7_366, %c0_367, %c0_368] : memref<16x512x32xbf16, #tpu.memory_space<vmem>>, vector<1x512x32xbf16>
    %292 = vector.shape_cast %291 : vector<1x512x32xbf16> to vector<512x32xbf16>
    %cst_369 = arith.constant dense<0.000000e+00> : vector<6x32xf32>
    %293 = tpu.matmul %290, %292, %cst_369 {dimension_numbers = #tpu.dot_dimension_numbers<[1], [0], [0], [1], [0, 0, 1, 1], [], []>} : vector<6x512xbf16>, vector<512x32xbf16>, vector<6x32xf32> -> vector<6x32xf32>
    %294 = arith.addf %276, %293 : vector<6x32xf32>
    %c0_370 = arith.constant 0 : index
    %c8 = arith.constant 8 : index
    %c0_371 = arith.constant 0 : index
    %295 = vector.load %arg20[%c0_370, %c8, %c0_371] : memref<3x32x512xf32, #tpu.memory_space<vmem>>, vector<1x1x512xf32>
    %296 = vector.shape_cast %295 : vector<1x1x512xf32> to vector<1x512xf32>
    %c0_372 = arith.constant 0 : index
    %c24 = arith.constant 24 : index
    %c0_373 = arith.constant 0 : index
    %297 = vector.load %arg20[%c0_372, %c24, %c0_373] : memref<3x32x512xf32, #tpu.memory_space<vmem>>, vector<1x1x512xf32>
    %298 = vector.shape_cast %297 : vector<1x1x512xf32> to vector<1x512xf32>
    %c1_374 = arith.constant 1 : index
    %c8_375 = arith.constant 8 : index
    %c0_376 = arith.constant 0 : index
    %299 = vector.load %arg20[%c1_374, %c8_375, %c0_376] : memref<3x32x512xf32, #tpu.memory_space<vmem>>, vector<1x1x512xf32>
    %300 = vector.shape_cast %299 : vector<1x1x512xf32> to vector<1x512xf32>
    %c1_377 = arith.constant 1 : index
    %c24_378 = arith.constant 24 : index
    %c0_379 = arith.constant 0 : index
    %301 = vector.load %arg20[%c1_377, %c24_378, %c0_379] : memref<3x32x512xf32, #tpu.memory_space<vmem>>, vector<1x1x512xf32>
    %302 = vector.shape_cast %301 : vector<1x1x512xf32> to vector<1x512xf32>
    %c2_380 = arith.constant 2 : index
    %c8_381 = arith.constant 8 : index
    %c0_382 = arith.constant 0 : index
    %303 = vector.load %arg20[%c2_380, %c8_381, %c0_382] : memref<3x32x512xf32, #tpu.memory_space<vmem>>, vector<1x1x512xf32>
    %304 = vector.shape_cast %303 : vector<1x1x512xf32> to vector<1x512xf32>
    %c2_383 = arith.constant 2 : index
    %c24_384 = arith.constant 24 : index
    %c0_385 = arith.constant 0 : index
    %305 = vector.load %arg20[%c2_383, %c24_384, %c0_385] : memref<3x32x512xf32, #tpu.memory_space<vmem>>, vector<1x1x512xf32>
    %306 = vector.shape_cast %305 : vector<1x1x512xf32> to vector<1x512xf32>
    %307 = tpu.concatenate %296, %298, %300, %302, %304, %306 in 0 : vector<1x512xf32>, vector<1x512xf32>, vector<1x512xf32>, vector<1x512xf32>, vector<1x512xf32>, vector<1x512xf32> -> vector<6x512xf32>
    %308 = arith.truncf %307 : vector<6x512xf32> to vector<6x512xbf16>
    %c8_386 = arith.constant 8 : index
    %c0_387 = arith.constant 0 : index
    %c0_388 = arith.constant 0 : index
    %309 = vector.load %arg4[%c8_386, %c0_387, %c0_388] : memref<16x512x32xbf16, #tpu.memory_space<vmem>>, vector<1x512x32xbf16>
    %310 = vector.shape_cast %309 : vector<1x512x32xbf16> to vector<512x32xbf16>
    %cst_389 = arith.constant dense<0.000000e+00> : vector<6x32xf32>
    %311 = tpu.matmul %308, %310, %cst_389 {dimension_numbers = #tpu.dot_dimension_numbers<[1], [0], [0], [1], [0, 0, 1, 1], [], []>} : vector<6x512xbf16>, vector<512x32xbf16>, vector<6x32xf32> -> vector<6x32xf32>
    %312 = arith.addf %294, %311 : vector<6x32xf32>
    %c0_390 = arith.constant 0 : index
    %c9 = arith.constant 9 : index
    %c0_391 = arith.constant 0 : index
    %313 = vector.load %arg20[%c0_390, %c9, %c0_391] : memref<3x32x512xf32, #tpu.memory_space<vmem>>, vector<1x1x512xf32>
    %314 = vector.shape_cast %313 : vector<1x1x512xf32> to vector<1x512xf32>
    %c0_392 = arith.constant 0 : index
    %c25 = arith.constant 25 : index
    %c0_393 = arith.constant 0 : index
    %315 = vector.load %arg20[%c0_392, %c25, %c0_393] : memref<3x32x512xf32, #tpu.memory_space<vmem>>, vector<1x1x512xf32>
    %316 = vector.shape_cast %315 : vector<1x1x512xf32> to vector<1x512xf32>
    %c1_394 = arith.constant 1 : index
    %c9_395 = arith.constant 9 : index
    %c0_396 = arith.constant 0 : index
    %317 = vector.load %arg20[%c1_394, %c9_395, %c0_396] : memref<3x32x512xf32, #tpu.memory_space<vmem>>, vector<1x1x512xf32>
    %318 = vector.shape_cast %317 : vector<1x1x512xf32> to vector<1x512xf32>
    %c1_397 = arith.constant 1 : index
    %c25_398 = arith.constant 25 : index
    %c0_399 = arith.constant 0 : index
    %319 = vector.load %arg20[%c1_397, %c25_398, %c0_399] : memref<3x32x512xf32, #tpu.memory_space<vmem>>, vector<1x1x512xf32>
    %320 = vector.shape_cast %319 : vector<1x1x512xf32> to vector<1x512xf32>
    %c2_400 = arith.constant 2 : index
    %c9_401 = arith.constant 9 : index
    %c0_402 = arith.constant 0 : index
    %321 = vector.load %arg20[%c2_400, %c9_401, %c0_402] : memref<3x32x512xf32, #tpu.memory_space<vmem>>, vector<1x1x512xf32>
    %322 = vector.shape_cast %321 : vector<1x1x512xf32> to vector<1x512xf32>
    %c2_403 = arith.constant 2 : index
    %c25_404 = arith.constant 25 : index
    %c0_405 = arith.constant 0 : index
    %323 = vector.load %arg20[%c2_403, %c25_404, %c0_405] : memref<3x32x512xf32, #tpu.memory_space<vmem>>, vector<1x1x512xf32>
    %324 = vector.shape_cast %323 : vector<1x1x512xf32> to vector<1x512xf32>
    %325 = tpu.concatenate %314, %316, %318, %320, %322, %324 in 0 : vector<1x512xf32>, vector<1x512xf32>, vector<1x512xf32>, vector<1x512xf32>, vector<1x512xf32>, vector<1x512xf32> -> vector<6x512xf32>
    %326 = arith.truncf %325 : vector<6x512xf32> to vector<6x512xbf16>
    %c9_406 = arith.constant 9 : index
    %c0_407 = arith.constant 0 : index
    %c0_408 = arith.constant 0 : index
    %327 = vector.load %arg4[%c9_406, %c0_407, %c0_408] : memref<16x512x32xbf16, #tpu.memory_space<vmem>>, vector<1x512x32xbf16>
    %328 = vector.shape_cast %327 : vector<1x512x32xbf16> to vector<512x32xbf16>
    %cst_409 = arith.constant dense<0.000000e+00> : vector<6x32xf32>
    %329 = tpu.matmul %326, %328, %cst_409 {dimension_numbers = #tpu.dot_dimension_numbers<[1], [0], [0], [1], [0, 0, 1, 1], [], []>} : vector<6x512xbf16>, vector<512x32xbf16>, vector<6x32xf32> -> vector<6x32xf32>
    %330 = arith.addf %312, %329 : vector<6x32xf32>
    %c0_410 = arith.constant 0 : index
    %c10 = arith.constant 10 : index
    %c0_411 = arith.constant 0 : index
    %331 = vector.load %arg20[%c0_410, %c10, %c0_411] : memref<3x32x512xf32, #tpu.memory_space<vmem>>, vector<1x1x512xf32>
    %332 = vector.shape_cast %331 : vector<1x1x512xf32> to vector<1x512xf32>
    %c0_412 = arith.constant 0 : index
    %c26 = arith.constant 26 : index
    %c0_413 = arith.constant 0 : index
    %333 = vector.load %arg20[%c0_412, %c26, %c0_413] : memref<3x32x512xf32, #tpu.memory_space<vmem>>, vector<1x1x512xf32>
    %334 = vector.shape_cast %333 : vector<1x1x512xf32> to vector<1x512xf32>
    %c1_414 = arith.constant 1 : index
    %c10_415 = arith.constant 10 : index
    %c0_416 = arith.constant 0 : index
    %335 = vector.load %arg20[%c1_414, %c10_415, %c0_416] : memref<3x32x512xf32, #tpu.memory_space<vmem>>, vector<1x1x512xf32>
    %336 = vector.shape_cast %335 : vector<1x1x512xf32> to vector<1x512xf32>
    %c1_417 = arith.constant 1 : index
    %c26_418 = arith.constant 26 : index
    %c0_419 = arith.constant 0 : index
    %337 = vector.load %arg20[%c1_417, %c26_418, %c0_419] : memref<3x32x512xf32, #tpu.memory_space<vmem>>, vector<1x1x512xf32>
    %338 = vector.shape_cast %337 : vector<1x1x512xf32> to vector<1x512xf32>
    %c2_420 = arith.constant 2 : index
    %c10_421 = arith.constant 10 : index
    %c0_422 = arith.constant 0 : index
    %339 = vector.load %arg20[%c2_420, %c10_421, %c0_422] : memref<3x32x512xf32, #tpu.memory_space<vmem>>, vector<1x1x512xf32>
    %340 = vector.shape_cast %339 : vector<1x1x512xf32> to vector<1x512xf32>
    %c2_423 = arith.constant 2 : index
    %c26_424 = arith.constant 26 : index
    %c0_425 = arith.constant 0 : index
    %341 = vector.load %arg20[%c2_423, %c26_424, %c0_425] : memref<3x32x512xf32, #tpu.memory_space<vmem>>, vector<1x1x512xf32>
    %342 = vector.shape_cast %341 : vector<1x1x512xf32> to vector<1x512xf32>
    %343 = tpu.concatenate %332, %334, %336, %338, %340, %342 in 0 : vector<1x512xf32>, vector<1x512xf32>, vector<1x512xf32>, vector<1x512xf32>, vector<1x512xf32>, vector<1x512xf32> -> vector<6x512xf32>
    %344 = arith.truncf %343 : vector<6x512xf32> to vector<6x512xbf16>
    %c10_426 = arith.constant 10 : index
    %c0_427 = arith.constant 0 : index
    %c0_428 = arith.constant 0 : index
    %345 = vector.load %arg4[%c10_426, %c0_427, %c0_428] : memref<16x512x32xbf16, #tpu.memory_space<vmem>>, vector<1x512x32xbf16>
    %346 = vector.shape_cast %345 : vector<1x512x32xbf16> to vector<512x32xbf16>
    %cst_429 = arith.constant dense<0.000000e+00> : vector<6x32xf32>
    %347 = tpu.matmul %344, %346, %cst_429 {dimension_numbers = #tpu.dot_dimension_numbers<[1], [0], [0], [1], [0, 0, 1, 1], [], []>} : vector<6x512xbf16>, vector<512x32xbf16>, vector<6x32xf32> -> vector<6x32xf32>
    %348 = arith.addf %330, %347 : vector<6x32xf32>
    %c0_430 = arith.constant 0 : index
    %c11 = arith.constant 11 : index
    %c0_431 = arith.constant 0 : index
    %349 = vector.load %arg20[%c0_430, %c11, %c0_431] : memref<3x32x512xf32, #tpu.memory_space<vmem>>, vector<1x1x512xf32>
    %350 = vector.shape_cast %349 : vector<1x1x512xf32> to vector<1x512xf32>
    %c0_432 = arith.constant 0 : index
    %c27 = arith.constant 27 : index
    %c0_433 = arith.constant 0 : index
    %351 = vector.load %arg20[%c0_432, %c27, %c0_433] : memref<3x32x512xf32, #tpu.memory_space<vmem>>, vector<1x1x512xf32>
    %352 = vector.shape_cast %351 : vector<1x1x512xf32> to vector<1x512xf32>
    %c1_434 = arith.constant 1 : index
    %c11_435 = arith.constant 11 : index
    %c0_436 = arith.constant 0 : index
    %353 = vector.load %arg20[%c1_434, %c11_435, %c0_436] : memref<3x32x512xf32, #tpu.memory_space<vmem>>, vector<1x1x512xf32>
    %354 = vector.shape_cast %353 : vector<1x1x512xf32> to vector<1x512xf32>
    %c1_437 = arith.constant 1 : index
    %c27_438 = arith.constant 27 : index
    %c0_439 = arith.constant 0 : index
    %355 = vector.load %arg20[%c1_437, %c27_438, %c0_439] : memref<3x32x512xf32, #tpu.memory_space<vmem>>, vector<1x1x512xf32>
    %356 = vector.shape_cast %355 : vector<1x1x512xf32> to vector<1x512xf32>
    %c2_440 = arith.constant 2 : index
    %c11_441 = arith.constant 11 : index
    %c0_442 = arith.constant 0 : index
    %357 = vector.load %arg20[%c2_440, %c11_441, %c0_442] : memref<3x32x512xf32, #tpu.memory_space<vmem>>, vector<1x1x512xf32>
    %358 = vector.shape_cast %357 : vector<1x1x512xf32> to vector<1x512xf32>
    %c2_443 = arith.constant 2 : index
    %c27_444 = arith.constant 27 : index
    %c0_445 = arith.constant 0 : index
    %359 = vector.load %arg20[%c2_443, %c27_444, %c0_445] : memref<3x32x512xf32, #tpu.memory_space<vmem>>, vector<1x1x512xf32>
    %360 = vector.shape_cast %359 : vector<1x1x512xf32> to vector<1x512xf32>
    %361 = tpu.concatenate %350, %352, %354, %356, %358, %360 in 0 : vector<1x512xf32>, vector<1x512xf32>, vector<1x512xf32>, vector<1x512xf32>, vector<1x512xf32>, vector<1x512xf32> -> vector<6x512xf32>
    %362 = arith.truncf %361 : vector<6x512xf32> to vector<6x512xbf16>
    %c11_446 = arith.constant 11 : index
    %c0_447 = arith.constant 0 : index
    %c0_448 = arith.constant 0 : index
    %363 = vector.load %arg4[%c11_446, %c0_447, %c0_448] : memref<16x512x32xbf16, #tpu.memory_space<vmem>>, vector<1x512x32xbf16>
    %364 = vector.shape_cast %363 : vector<1x512x32xbf16> to vector<512x32xbf16>
    %cst_449 = arith.constant dense<0.000000e+00> : vector<6x32xf32>
    %365 = tpu.matmul %362, %364, %cst_449 {dimension_numbers = #tpu.dot_dimension_numbers<[1], [0], [0], [1], [0, 0, 1, 1], [], []>} : vector<6x512xbf16>, vector<512x32xbf16>, vector<6x32xf32> -> vector<6x32xf32>
    %366 = arith.addf %348, %365 : vector<6x32xf32>
    %c0_450 = arith.constant 0 : index
    %c12 = arith.constant 12 : index
    %c0_451 = arith.constant 0 : index
    %367 = vector.load %arg20[%c0_450, %c12, %c0_451] : memref<3x32x512xf32, #tpu.memory_space<vmem>>, vector<1x1x512xf32>
    %368 = vector.shape_cast %367 : vector<1x1x512xf32> to vector<1x512xf32>
    %c0_452 = arith.constant 0 : index
    %c28 = arith.constant 28 : index
    %c0_453 = arith.constant 0 : index
    %369 = vector.load %arg20[%c0_452, %c28, %c0_453] : memref<3x32x512xf32, #tpu.memory_space<vmem>>, vector<1x1x512xf32>
    %370 = vector.shape_cast %369 : vector<1x1x512xf32> to vector<1x512xf32>
    %c1_454 = arith.constant 1 : index
    %c12_455 = arith.constant 12 : index
    %c0_456 = arith.constant 0 : index
    %371 = vector.load %arg20[%c1_454, %c12_455, %c0_456] : memref<3x32x512xf32, #tpu.memory_space<vmem>>, vector<1x1x512xf32>
    %372 = vector.shape_cast %371 : vector<1x1x512xf32> to vector<1x512xf32>
    %c1_457 = arith.constant 1 : index
    %c28_458 = arith.constant 28 : index
    %c0_459 = arith.constant 0 : index
    %373 = vector.load %arg20[%c1_457, %c28_458, %c0_459] : memref<3x32x512xf32, #tpu.memory_space<vmem>>, vector<1x1x512xf32>
    %374 = vector.shape_cast %373 : vector<1x1x512xf32> to vector<1x512xf32>
    %c2_460 = arith.constant 2 : index
    %c12_461 = arith.constant 12 : index
    %c0_462 = arith.constant 0 : index
    %375 = vector.load %arg20[%c2_460, %c12_461, %c0_462] : memref<3x32x512xf32, #tpu.memory_space<vmem>>, vector<1x1x512xf32>
    %376 = vector.shape_cast %375 : vector<1x1x512xf32> to vector<1x512xf32>
    %c2_463 = arith.constant 2 : index
    %c28_464 = arith.constant 28 : index
    %c0_465 = arith.constant 0 : index
    %377 = vector.load %arg20[%c2_463, %c28_464, %c0_465] : memref<3x32x512xf32, #tpu.memory_space<vmem>>, vector<1x1x512xf32>
    %378 = vector.shape_cast %377 : vector<1x1x512xf32> to vector<1x512xf32>
    %379 = tpu.concatenate %368, %370, %372, %374, %376, %378 in 0 : vector<1x512xf32>, vector<1x512xf32>, vector<1x512xf32>, vector<1x512xf32>, vector<1x512xf32>, vector<1x512xf32> -> vector<6x512xf32>
    %380 = arith.truncf %379 : vector<6x512xf32> to vector<6x512xbf16>
    %c12_466 = arith.constant 12 : index
    %c0_467 = arith.constant 0 : index
    %c0_468 = arith.constant 0 : index
    %381 = vector.load %arg4[%c12_466, %c0_467, %c0_468] : memref<16x512x32xbf16, #tpu.memory_space<vmem>>, vector<1x512x32xbf16>
    %382 = vector.shape_cast %381 : vector<1x512x32xbf16> to vector<512x32xbf16>
    %cst_469 = arith.constant dense<0.000000e+00> : vector<6x32xf32>
    %383 = tpu.matmul %380, %382, %cst_469 {dimension_numbers = #tpu.dot_dimension_numbers<[1], [0], [0], [1], [0, 0, 1, 1], [], []>} : vector<6x512xbf16>, vector<512x32xbf16>, vector<6x32xf32> -> vector<6x32xf32>
    %384 = arith.addf %366, %383 : vector<6x32xf32>
    %c0_470 = arith.constant 0 : index
    %c13 = arith.constant 13 : index
    %c0_471 = arith.constant 0 : index
    %385 = vector.load %arg20[%c0_470, %c13, %c0_471] : memref<3x32x512xf32, #tpu.memory_space<vmem>>, vector<1x1x512xf32>
    %386 = vector.shape_cast %385 : vector<1x1x512xf32> to vector<1x512xf32>
    %c0_472 = arith.constant 0 : index
    %c29 = arith.constant 29 : index
    %c0_473 = arith.constant 0 : index
    %387 = vector.load %arg20[%c0_472, %c29, %c0_473] : memref<3x32x512xf32, #tpu.memory_space<vmem>>, vector<1x1x512xf32>
    %388 = vector.shape_cast %387 : vector<1x1x512xf32> to vector<1x512xf32>
    %c1_474 = arith.constant 1 : index
    %c13_475 = arith.constant 13 : index
    %c0_476 = arith.constant 0 : index
    %389 = vector.load %arg20[%c1_474, %c13_475, %c0_476] : memref<3x32x512xf32, #tpu.memory_space<vmem>>, vector<1x1x512xf32>
    %390 = vector.shape_cast %389 : vector<1x1x512xf32> to vector<1x512xf32>
    %c1_477 = arith.constant 1 : index
    %c29_478 = arith.constant 29 : index
    %c0_479 = arith.constant 0 : index
    %391 = vector.load %arg20[%c1_477, %c29_478, %c0_479] : memref<3x32x512xf32, #tpu.memory_space<vmem>>, vector<1x1x512xf32>
    %392 = vector.shape_cast %391 : vector<1x1x512xf32> to vector<1x512xf32>
    %c2_480 = arith.constant 2 : index
    %c13_481 = arith.constant 13 : index
    %c0_482 = arith.constant 0 : index
    %393 = vector.load %arg20[%c2_480, %c13_481, %c0_482] : memref<3x32x512xf32, #tpu.memory_space<vmem>>, vector<1x1x512xf32>
    %394 = vector.shape_cast %393 : vector<1x1x512xf32> to vector<1x512xf32>
    %c2_483 = arith.constant 2 : index
    %c29_484 = arith.constant 29 : index
    %c0_485 = arith.constant 0 : index
    %395 = vector.load %arg20[%c2_483, %c29_484, %c0_485] : memref<3x32x512xf32, #tpu.memory_space<vmem>>, vector<1x1x512xf32>
    %396 = vector.shape_cast %395 : vector<1x1x512xf32> to vector<1x512xf32>
    %397 = tpu.concatenate %386, %388, %390, %392, %394, %396 in 0 : vector<1x512xf32>, vector<1x512xf32>, vector<1x512xf32>, vector<1x512xf32>, vector<1x512xf32>, vector<1x512xf32> -> vector<6x512xf32>
    %398 = arith.truncf %397 : vector<6x512xf32> to vector<6x512xbf16>
    %c13_486 = arith.constant 13 : index
    %c0_487 = arith.constant 0 : index
    %c0_488 = arith.constant 0 : index
    %399 = vector.load %arg4[%c13_486, %c0_487, %c0_488] : memref<16x512x32xbf16, #tpu.memory_space<vmem>>, vector<1x512x32xbf16>
    %400 = vector.shape_cast %399 : vector<1x512x32xbf16> to vector<512x32xbf16>
    %cst_489 = arith.constant dense<0.000000e+00> : vector<6x32xf32>
    %401 = tpu.matmul %398, %400, %cst_489 {dimension_numbers = #tpu.dot_dimension_numbers<[1], [0], [0], [1], [0, 0, 1, 1], [], []>} : vector<6x512xbf16>, vector<512x32xbf16>, vector<6x32xf32> -> vector<6x32xf32>
    %402 = arith.addf %384, %401 : vector<6x32xf32>
    %c0_490 = arith.constant 0 : index
    %c14 = arith.constant 14 : index
    %c0_491 = arith.constant 0 : index
    %403 = vector.load %arg20[%c0_490, %c14, %c0_491] : memref<3x32x512xf32, #tpu.memory_space<vmem>>, vector<1x1x512xf32>
    %404 = vector.shape_cast %403 : vector<1x1x512xf32> to vector<1x512xf32>
    %c0_492 = arith.constant 0 : index
    %c30 = arith.constant 30 : index
    %c0_493 = arith.constant 0 : index
    %405 = vector.load %arg20[%c0_492, %c30, %c0_493] : memref<3x32x512xf32, #tpu.memory_space<vmem>>, vector<1x1x512xf32>
    %406 = vector.shape_cast %405 : vector<1x1x512xf32> to vector<1x512xf32>
    %c1_494 = arith.constant 1 : index
    %c14_495 = arith.constant 14 : index
    %c0_496 = arith.constant 0 : index
    %407 = vector.load %arg20[%c1_494, %c14_495, %c0_496] : memref<3x32x512xf32, #tpu.memory_space<vmem>>, vector<1x1x512xf32>
    %408 = vector.shape_cast %407 : vector<1x1x512xf32> to vector<1x512xf32>
    %c1_497 = arith.constant 1 : index
    %c30_498 = arith.constant 30 : index
    %c0_499 = arith.constant 0 : index
    %409 = vector.load %arg20[%c1_497, %c30_498, %c0_499] : memref<3x32x512xf32, #tpu.memory_space<vmem>>, vector<1x1x512xf32>
    %410 = vector.shape_cast %409 : vector<1x1x512xf32> to vector<1x512xf32>
    %c2_500 = arith.constant 2 : index
    %c14_501 = arith.constant 14 : index
    %c0_502 = arith.constant 0 : index
    %411 = vector.load %arg20[%c2_500, %c14_501, %c0_502] : memref<3x32x512xf32, #tpu.memory_space<vmem>>, vector<1x1x512xf32>
    %412 = vector.shape_cast %411 : vector<1x1x512xf32> to vector<1x512xf32>
    %c2_503 = arith.constant 2 : index
    %c30_504 = arith.constant 30 : index
    %c0_505 = arith.constant 0 : index
    %413 = vector.load %arg20[%c2_503, %c30_504, %c0_505] : memref<3x32x512xf32, #tpu.memory_space<vmem>>, vector<1x1x512xf32>
    %414 = vector.shape_cast %413 : vector<1x1x512xf32> to vector<1x512xf32>
    %415 = tpu.concatenate %404, %406, %408, %410, %412, %414 in 0 : vector<1x512xf32>, vector<1x512xf32>, vector<1x512xf32>, vector<1x512xf32>, vector<1x512xf32>, vector<1x512xf32> -> vector<6x512xf32>
    %416 = arith.truncf %415 : vector<6x512xf32> to vector<6x512xbf16>
    %c14_506 = arith.constant 14 : index
    %c0_507 = arith.constant 0 : index
    %c0_508 = arith.constant 0 : index
    %417 = vector.load %arg4[%c14_506, %c0_507, %c0_508] : memref<16x512x32xbf16, #tpu.memory_space<vmem>>, vector<1x512x32xbf16>
    %418 = vector.shape_cast %417 : vector<1x512x32xbf16> to vector<512x32xbf16>
    %cst_509 = arith.constant dense<0.000000e+00> : vector<6x32xf32>
    %419 = tpu.matmul %416, %418, %cst_509 {dimension_numbers = #tpu.dot_dimension_numbers<[1], [0], [0], [1], [0, 0, 1, 1], [], []>} : vector<6x512xbf16>, vector<512x32xbf16>, vector<6x32xf32> -> vector<6x32xf32>
    %420 = arith.addf %402, %419 : vector<6x32xf32>
    %c0_510 = arith.constant 0 : index
    %c15 = arith.constant 15 : index
    %c0_511 = arith.constant 0 : index
    %421 = vector.load %arg20[%c0_510, %c15, %c0_511] : memref<3x32x512xf32, #tpu.memory_space<vmem>>, vector<1x1x512xf32>
    %422 = vector.shape_cast %421 : vector<1x1x512xf32> to vector<1x512xf32>
    %c0_512 = arith.constant 0 : index
    %c31 = arith.constant 31 : index
    %c0_513 = arith.constant 0 : index
    %423 = vector.load %arg20[%c0_512, %c31, %c0_513] : memref<3x32x512xf32, #tpu.memory_space<vmem>>, vector<1x1x512xf32>
    %424 = vector.shape_cast %423 : vector<1x1x512xf32> to vector<1x512xf32>
    %c1_514 = arith.constant 1 : index
    %c15_515 = arith.constant 15 : index
    %c0_516 = arith.constant 0 : index
    %425 = vector.load %arg20[%c1_514, %c15_515, %c0_516] : memref<3x32x512xf32, #tpu.memory_space<vmem>>, vector<1x1x512xf32>
    %426 = vector.shape_cast %425 : vector<1x1x512xf32> to vector<1x512xf32>
    %c1_517 = arith.constant 1 : index
    %c31_518 = arith.constant 31 : index
    %c0_519 = arith.constant 0 : index
    %427 = vector.load %arg20[%c1_517, %c31_518, %c0_519] : memref<3x32x512xf32, #tpu.memory_space<vmem>>, vector<1x1x512xf32>
    %428 = vector.shape_cast %427 : vector<1x1x512xf32> to vector<1x512xf32>
    %c2_520 = arith.constant 2 : index
    %c15_521 = arith.constant 15 : index
    %c0_522 = arith.constant 0 : index
    %429 = vector.load %arg20[%c2_520, %c15_521, %c0_522] : memref<3x32x512xf32, #tpu.memory_space<vmem>>, vector<1x1x512xf32>
    %430 = vector.shape_cast %429 : vector<1x1x512xf32> to vector<1x512xf32>
    %c2_523 = arith.constant 2 : index
    %c31_524 = arith.constant 31 : index
    %c0_525 = arith.constant 0 : index
    %431 = vector.load %arg20[%c2_523, %c31_524, %c0_525] : memref<3x32x512xf32, #tpu.memory_space<vmem>>, vector<1x1x512xf32>
    %432 = vector.shape_cast %431 : vector<1x1x512xf32> to vector<1x512xf32>
    %433 = tpu.concatenate %422, %424, %426, %428, %430, %432 in 0 : vector<1x512xf32>, vector<1x512xf32>, vector<1x512xf32>, vector<1x512xf32>, vector<1x512xf32>, vector<1x512xf32> -> vector<6x512xf32>
    %434 = arith.truncf %433 : vector<6x512xf32> to vector<6x512xbf16>
    %c15_526 = arith.constant 15 : index
    %c0_527 = arith.constant 0 : index
    %c0_528 = arith.constant 0 : index
    %435 = vector.load %arg4[%c15_526, %c0_527, %c0_528] : memref<16x512x32xbf16, #tpu.memory_space<vmem>>, vector<1x512x32xbf16>
    %436 = vector.shape_cast %435 : vector<1x512x32xbf16> to vector<512x32xbf16>
    %cst_529 = arith.constant dense<0.000000e+00> : vector<6x32xf32>
    %437 = tpu.matmul %434, %436, %cst_529 {dimension_numbers = #tpu.dot_dimension_numbers<[1], [0], [0], [1], [0, 0, 1, 1], [], []>} : vector<6x512xbf16>, vector<512x32xbf16>, vector<6x32xf32> -> vector<6x32xf32>
    %438 = arith.addf %420, %437 : vector<6x32xf32>
    %c0_530 = arith.constant 0 : index
    %c0_531 = arith.constant 0 : index
    %439 = vector.load %arg5[%c0_530, %c0_531] : memref<1x32xf32, #tpu.memory_space<vmem>>, vector<1x32xf32>
    %440 = vector.broadcast %439 : vector<1x32xf32> to vector<6x32xf32>
    %441 = arith.addf %438, %440 : vector<6x32xf32>
    %442 = vector.extract_strided_slice %441 {offsets = [0, 0], sizes = [2, 32], strides = [1, 1]} : vector<6x32xf32> to vector<2x32xf32>
    %443 = vector.extract_strided_slice %442 {offsets = [0, 0], sizes = [2, 16], strides = [1, 1]} : vector<2x32xf32> to vector<2x16xf32>
    %444 = vector.extract_strided_slice %442 {offsets = [0, 16], sizes = [2, 16], strides = [1, 1]} : vector<2x32xf32> to vector<2x16xf32>
    %445 = tpu.concatenate %443, %444 in 0 : vector<2x16xf32>, vector<2x16xf32> -> vector<4x16xf32>
    %446 = vector.extract_strided_slice %441 {offsets = [2, 0], sizes = [2, 32], strides = [1, 1]} : vector<6x32xf32> to vector<2x32xf32>
    %447 = vector.extract_strided_slice %446 {offsets = [0, 0], sizes = [2, 16], strides = [1, 1]} : vector<2x32xf32> to vector<2x16xf32>
    %448 = vector.extract_strided_slice %446 {offsets = [0, 16], sizes = [2, 16], strides = [1, 1]} : vector<2x32xf32> to vector<2x16xf32>
    %449 = tpu.concatenate %447, %448 in 0 : vector<2x16xf32>, vector<2x16xf32> -> vector<4x16xf32>
    %450 = vector.extract_strided_slice %441 {offsets = [4, 0], sizes = [2, 32], strides = [1, 1]} : vector<6x32xf32> to vector<2x32xf32>
    %451 = vector.extract_strided_slice %450 {offsets = [0, 0], sizes = [2, 16], strides = [1, 1]} : vector<2x32xf32> to vector<2x16xf32>
    %452 = vector.extract_strided_slice %450 {offsets = [0, 16], sizes = [2, 16], strides = [1, 1]} : vector<2x32xf32> to vector<2x16xf32>
    %453 = tpu.concatenate %451, %452 in 0 : vector<2x16xf32>, vector<2x16xf32> -> vector<4x16xf32>
    %c0_532 = arith.constant 0 : index
    %c0_533 = arith.constant 0 : index
    %454 = vector.load %arg6[%c0_532, %c0_533] : memref<4x16xf32, #tpu.memory_space<vmem>>, vector<4x16xf32>
    %455 = arith.addf %449, %453 : vector<4x16xf32>
    %456 = arith.addf %445, %454 : vector<4x16xf32>
    %457 = arith.addf %455, %454 : vector<4x16xf32>
    %c0_534 = arith.constant 0 : index
    %c0_535 = arith.constant 0 : index
    %c0_536 = arith.constant 0 : index
    %458 = vector.load %arg7[%c0_534, %c0_535, %c0_536] : memref<3x16x16xf32, #tpu.memory_space<vmem>>, vector<1x16x16xf32>
    %459 = vector.shape_cast %458 : vector<1x16x16xf32> to vector<16x16xf32>
    %cst_537 = arith.constant dense<0.000000e+00> : vector<4x16xf32>
    %460 = tpu.matmul %456, %459, %cst_537 {dimension_numbers = #tpu.dot_dimension_numbers<[1], [0], [0], [1], [0, 0, 1, 1], [], []>} : vector<4x16xf32>, vector<16x16xf32>, vector<4x16xf32> -> vector<4x16xf32>
    %c0_538 = arith.constant 0 : index
    %c0_539 = arith.constant 0 : index
    %c0_540 = arith.constant 0 : index
    %461 = vector.load %arg8[%c0_538, %c0_539, %c0_540] : memref<3x1x16xf32, #tpu.memory_space<vmem>>, vector<1x1x16xf32>
    %462 = vector.shape_cast %461 : vector<1x1x16xf32> to vector<1x16xf32>
    %463 = vector.broadcast %462 : vector<1x16xf32> to vector<4x16xf32>
    %464 = arith.addf %460, %463 : vector<4x16xf32>
    %c1_541 = arith.constant 1 : index
    %c0_542 = arith.constant 0 : index
    %c0_543 = arith.constant 0 : index
    %465 = vector.load %arg7[%c1_541, %c0_542, %c0_543] : memref<3x16x16xf32, #tpu.memory_space<vmem>>, vector<1x16x16xf32>
    %466 = vector.shape_cast %465 : vector<1x16x16xf32> to vector<16x16xf32>
    %cst_544 = arith.constant dense<0.000000e+00> : vector<4x16xf32>
    %467 = tpu.matmul %457, %466, %cst_544 {dimension_numbers = #tpu.dot_dimension_numbers<[1], [0], [0], [1], [0, 0, 1, 1], [], []>} : vector<4x16xf32>, vector<16x16xf32>, vector<4x16xf32> -> vector<4x16xf32>
    %c1_545 = arith.constant 1 : index
    %c0_546 = arith.constant 0 : index
    %c0_547 = arith.constant 0 : index
    %468 = vector.load %arg8[%c1_545, %c0_546, %c0_547] : memref<3x1x16xf32, #tpu.memory_space<vmem>>, vector<1x1x16xf32>
    %469 = vector.shape_cast %468 : vector<1x1x16xf32> to vector<1x16xf32>
    %470 = vector.broadcast %469 : vector<1x16xf32> to vector<4x16xf32>
    %471 = arith.addf %467, %470 : vector<4x16xf32>
    %c2_548 = arith.constant 2 : index
    %c0_549 = arith.constant 0 : index
    %c0_550 = arith.constant 0 : index
    %472 = vector.load %arg7[%c2_548, %c0_549, %c0_550] : memref<3x16x16xf32, #tpu.memory_space<vmem>>, vector<1x16x16xf32>
    %473 = vector.shape_cast %472 : vector<1x16x16xf32> to vector<16x16xf32>
    %cst_551 = arith.constant dense<0.000000e+00> : vector<4x16xf32>
    %474 = tpu.matmul %455, %473, %cst_551 {dimension_numbers = #tpu.dot_dimension_numbers<[1], [0], [0], [1], [0, 0, 1, 1], [], []>} : vector<4x16xf32>, vector<16x16xf32>, vector<4x16xf32> -> vector<4x16xf32>
    %c2_552 = arith.constant 2 : index
    %c0_553 = arith.constant 0 : index
    %c0_554 = arith.constant 0 : index
    %475 = vector.load %arg8[%c2_552, %c0_553, %c0_554] : memref<3x1x16xf32, #tpu.memory_space<vmem>>, vector<1x1x16xf32>
    %476 = vector.shape_cast %475 : vector<1x1x16xf32> to vector<1x16xf32>
    %477 = vector.broadcast %476 : vector<1x16xf32> to vector<4x16xf32>
    %478 = arith.addf %474, %477 : vector<4x16xf32>
    %479 = vector.extract_strided_slice %464 {offsets = [0, 0], sizes = [4, 4], strides = [1, 1]} : vector<4x16xf32> to vector<4x4xf32>
    %480 = vector.extract_strided_slice %471 {offsets = [0, 0], sizes = [4, 4], strides = [1, 1]} : vector<4x16xf32> to vector<4x4xf32>
    %481 = vector.extract_strided_slice %478 {offsets = [0, 0], sizes = [4, 4], strides = [1, 1]} : vector<4x16xf32> to vector<4x4xf32>
    %cst_555 = arith.constant dense<0.000000e+00> : vector<4x4xf32>
    %482 = tpu.matmul %479, %480, %cst_555 {dimension_numbers = #tpu.dot_dimension_numbers<[1], [1], [0], [0], [0, 0, 1, 0], [], []>} : vector<4x4xf32>, vector<4x4xf32>, vector<4x4xf32> -> vector<4x4xf32>
    %cst_556 = arith.constant 5.000000e-01 : f32
    %483 = vector.broadcast %cst_556 : f32 to vector<4x4xf32>
    %484 = arith.mulf %482, %483 : vector<4x4xf32>
    %cst_557 = arith.constant dense<0xFF800000> : vector<4xf32>
    %485 = vector.multi_reduction <maximumf>, %484, %cst_557 [1] : vector<4x4xf32> to vector<4xf32>
    %486 = vector.shape_cast %485 : vector<4xf32> to vector<4x1xf32>
    %487 = vector.broadcast %486 : vector<4x1xf32> to vector<4x4xf32>
    %488 = arith.subf %484, %487 : vector<4x4xf32>
    %489 = math.exp %488 : vector<4x4xf32>
    %cst_558 = arith.constant dense<0.000000e+00> : vector<4xf32>
    %490 = vector.multi_reduction <add>, %489, %cst_558 [1] : vector<4x4xf32> to vector<4xf32>
    %491 = vector.shape_cast %490 : vector<4xf32> to vector<4x1xf32>
    %492 = vector.broadcast %491 : vector<4x1xf32> to vector<4x4xf32>
    %493 = arith.divf %489, %492 : vector<4x4xf32>
    %cst_559 = arith.constant dense<0.000000e+00> : vector<4x4xf32>
    %494 = tpu.matmul %493, %481, %cst_559 {dimension_numbers = #tpu.dot_dimension_numbers<[1], [0], [0], [1], [0, 0, 1, 1], [], []>} : vector<4x4xf32>, vector<4x4xf32>, vector<4x4xf32> -> vector<4x4xf32>
    %495 = vector.extract_strided_slice %464 {offsets = [0, 4], sizes = [4, 4], strides = [1, 1]} : vector<4x16xf32> to vector<4x4xf32>
    %496 = vector.extract_strided_slice %471 {offsets = [0, 4], sizes = [4, 4], strides = [1, 1]} : vector<4x16xf32> to vector<4x4xf32>
    %497 = vector.extract_strided_slice %478 {offsets = [0, 4], sizes = [4, 4], strides = [1, 1]} : vector<4x16xf32> to vector<4x4xf32>
    %cst_560 = arith.constant dense<0.000000e+00> : vector<4x4xf32>
    %498 = tpu.matmul %495, %496, %cst_560 {dimension_numbers = #tpu.dot_dimension_numbers<[1], [1], [0], [0], [0, 0, 1, 0], [], []>} : vector<4x4xf32>, vector<4x4xf32>, vector<4x4xf32> -> vector<4x4xf32>
    %cst_561 = arith.constant 5.000000e-01 : f32
    %499 = vector.broadcast %cst_561 : f32 to vector<4x4xf32>
    %500 = arith.mulf %498, %499 : vector<4x4xf32>
    %cst_562 = arith.constant dense<0xFF800000> : vector<4xf32>
    %501 = vector.multi_reduction <maximumf>, %500, %cst_562 [1] : vector<4x4xf32> to vector<4xf32>
    %502 = vector.shape_cast %501 : vector<4xf32> to vector<4x1xf32>
    %503 = vector.broadcast %502 : vector<4x1xf32> to vector<4x4xf32>
    %504 = arith.subf %500, %503 : vector<4x4xf32>
    %505 = math.exp %504 : vector<4x4xf32>
    %cst_563 = arith.constant dense<0.000000e+00> : vector<4xf32>
    %506 = vector.multi_reduction <add>, %505, %cst_563 [1] : vector<4x4xf32> to vector<4xf32>
    %507 = vector.shape_cast %506 : vector<4xf32> to vector<4x1xf32>
    %508 = vector.broadcast %507 : vector<4x1xf32> to vector<4x4xf32>
    %509 = arith.divf %505, %508 : vector<4x4xf32>
    %cst_564 = arith.constant dense<0.000000e+00> : vector<4x4xf32>
    %510 = tpu.matmul %509, %497, %cst_564 {dimension_numbers = #tpu.dot_dimension_numbers<[1], [0], [0], [1], [0, 0, 1, 1], [], []>} : vector<4x4xf32>, vector<4x4xf32>, vector<4x4xf32> -> vector<4x4xf32>
    %511 = vector.extract_strided_slice %464 {offsets = [0, 8], sizes = [4, 4], strides = [1, 1]} : vector<4x16xf32> to vector<4x4xf32>
    %512 = vector.extract_strided_slice %471 {offsets = [0, 8], sizes = [4, 4], strides = [1, 1]} : vector<4x16xf32> to vector<4x4xf32>
    %513 = vector.extract_strided_slice %478 {offsets = [0, 8], sizes = [4, 4], strides = [1, 1]} : vector<4x16xf32> to vector<4x4xf32>
    %cst_565 = arith.constant dense<0.000000e+00> : vector<4x4xf32>
    %514 = tpu.matmul %511, %512, %cst_565 {dimension_numbers = #tpu.dot_dimension_numbers<[1], [1], [0], [0], [0, 0, 1, 0], [], []>} : vector<4x4xf32>, vector<4x4xf32>, vector<4x4xf32> -> vector<4x4xf32>
    %cst_566 = arith.constant 5.000000e-01 : f32
    %515 = vector.broadcast %cst_566 : f32 to vector<4x4xf32>
    %516 = arith.mulf %514, %515 : vector<4x4xf32>
    %cst_567 = arith.constant dense<0xFF800000> : vector<4xf32>
    %517 = vector.multi_reduction <maximumf>, %516, %cst_567 [1] : vector<4x4xf32> to vector<4xf32>
    %518 = vector.shape_cast %517 : vector<4xf32> to vector<4x1xf32>
    %519 = vector.broadcast %518 : vector<4x1xf32> to vector<4x4xf32>
    %520 = arith.subf %516, %519 : vector<4x4xf32>
    %521 = math.exp %520 : vector<4x4xf32>
    %cst_568 = arith.constant dense<0.000000e+00> : vector<4xf32>
    %522 = vector.multi_reduction <add>, %521, %cst_568 [1] : vector<4x4xf32> to vector<4xf32>
    %523 = vector.shape_cast %522 : vector<4xf32> to vector<4x1xf32>
    %524 = vector.broadcast %523 : vector<4x1xf32> to vector<4x4xf32>
    %525 = arith.divf %521, %524 : vector<4x4xf32>
    %cst_569 = arith.constant dense<0.000000e+00> : vector<4x4xf32>
    %526 = tpu.matmul %525, %513, %cst_569 {dimension_numbers = #tpu.dot_dimension_numbers<[1], [0], [0], [1], [0, 0, 1, 1], [], []>} : vector<4x4xf32>, vector<4x4xf32>, vector<4x4xf32> -> vector<4x4xf32>
    %527 = vector.extract_strided_slice %464 {offsets = [0, 12], sizes = [4, 4], strides = [1, 1]} : vector<4x16xf32> to vector<4x4xf32>
    %528 = vector.extract_strided_slice %471 {offsets = [0, 12], sizes = [4, 4], strides = [1, 1]} : vector<4x16xf32> to vector<4x4xf32>
    %529 = vector.extract_strided_slice %478 {offsets = [0, 12], sizes = [4, 4], strides = [1, 1]} : vector<4x16xf32> to vector<4x4xf32>
    %cst_570 = arith.constant dense<0.000000e+00> : vector<4x4xf32>
    %530 = tpu.matmul %527, %528, %cst_570 {dimension_numbers = #tpu.dot_dimension_numbers<[1], [1], [0], [0], [0, 0, 1, 0], [], []>} : vector<4x4xf32>, vector<4x4xf32>, vector<4x4xf32> -> vector<4x4xf32>
    %cst_571 = arith.constant 5.000000e-01 : f32
    %531 = vector.broadcast %cst_571 : f32 to vector<4x4xf32>
    %532 = arith.mulf %530, %531 : vector<4x4xf32>
    %cst_572 = arith.constant dense<0xFF800000> : vector<4xf32>
    %533 = vector.multi_reduction <maximumf>, %532, %cst_572 [1] : vector<4x4xf32> to vector<4xf32>
    %534 = vector.shape_cast %533 : vector<4xf32> to vector<4x1xf32>
    %535 = vector.broadcast %534 : vector<4x1xf32> to vector<4x4xf32>
    %536 = arith.subf %532, %535 : vector<4x4xf32>
    %537 = math.exp %536 : vector<4x4xf32>
    %cst_573 = arith.constant dense<0.000000e+00> : vector<4xf32>
    %538 = vector.multi_reduction <add>, %537, %cst_573 [1] : vector<4x4xf32> to vector<4xf32>
    %539 = vector.shape_cast %538 : vector<4xf32> to vector<4x1xf32>
    %540 = vector.broadcast %539 : vector<4x1xf32> to vector<4x4xf32>
    %541 = arith.divf %537, %540 : vector<4x4xf32>
    %cst_574 = arith.constant dense<0.000000e+00> : vector<4x4xf32>
    %542 = tpu.matmul %541, %529, %cst_574 {dimension_numbers = #tpu.dot_dimension_numbers<[1], [0], [0], [1], [0, 0, 1, 1], [], []>} : vector<4x4xf32>, vector<4x4xf32>, vector<4x4xf32> -> vector<4x4xf32>
    %543 = tpu.concatenate %494, %510, %526, %542 in 1 : vector<4x4xf32>, vector<4x4xf32>, vector<4x4xf32>, vector<4x4xf32> -> vector<4x16xf32>
    %c0_575 = arith.constant 0 : index
    %c0_576 = arith.constant 0 : index
    %544 = vector.load %arg9[%c0_575, %c0_576] : memref<16x16xf32, #tpu.memory_space<vmem>>, vector<16x16xf32>
    %cst_577 = arith.constant dense<0.000000e+00> : vector<4x16xf32>
    %545 = tpu.matmul %543, %544, %cst_577 {dimension_numbers = #tpu.dot_dimension_numbers<[1], [0], [0], [1], [0, 0, 1, 1], [], []>} : vector<4x16xf32>, vector<16x16xf32>, vector<4x16xf32> -> vector<4x16xf32>
    %c0_578 = arith.constant 0 : index
    %c0_579 = arith.constant 0 : index
    %546 = vector.load %arg10[%c0_578, %c0_579] : memref<1x16xf32, #tpu.memory_space<vmem>>, vector<1x16xf32>
    %547 = vector.broadcast %546 : vector<1x16xf32> to vector<4x16xf32>
    %548 = arith.addf %545, %547 : vector<4x16xf32>
    %549 = arith.addf %445, %548 : vector<4x16xf32>
    %c0_580 = arith.constant 0 : index
    %c0_581 = arith.constant 0 : index
    %550 = vector.load %arg15[%c0_580, %c0_581] : memref<2x16xf32, #tpu.memory_space<vmem>>, vector<1x16xf32>
    %c0_582 = arith.constant 0 : index
    %c0_583 = arith.constant 0 : index
    %551 = vector.load %arg16[%c0_582, %c0_583] : memref<2x16xf32, #tpu.memory_space<vmem>>, vector<1x16xf32>
    %cst_584 = arith.constant dense<0.000000e+00> : vector<4xf32>
    %552 = vector.multi_reduction <add>, %549, %cst_584 [1] : vector<4x16xf32> to vector<4xf32>
    %553 = vector.shape_cast %552 : vector<4xf32> to vector<4x1xf32>
    %cst_585 = arith.constant 1.600000e+01 : f32
    %554 = vector.broadcast %cst_585 : f32 to vector<4x1xf32>
    %555 = arith.divf %553, %554 : vector<4x1xf32>
    %556 = vector.broadcast %555 : vector<4x1xf32> to vector<4x16xf32>
    %557 = arith.subf %549, %556 : vector<4x16xf32>
    %558 = arith.mulf %557, %557 : vector<4x16xf32>
    %cst_586 = arith.constant dense<0.000000e+00> : vector<4xf32>
    %559 = vector.multi_reduction <add>, %558, %cst_586 [1] : vector<4x16xf32> to vector<4xf32>
    %560 = vector.shape_cast %559 : vector<4xf32> to vector<4x1xf32>
    %cst_587 = arith.constant 1.600000e+01 : f32
    %561 = vector.broadcast %cst_587 : f32 to vector<4x1xf32>
    %562 = arith.divf %560, %561 : vector<4x1xf32>
    %563 = vector.broadcast %555 : vector<4x1xf32> to vector<4x16xf32>
    %564 = arith.subf %549, %563 : vector<4x16xf32>
    %cst_588 = arith.constant 9.99999974E-6 : f32
    %565 = vector.broadcast %cst_588 : f32 to vector<4x1xf32>
    %566 = arith.addf %562, %565 : vector<4x1xf32>
    %567 = math.rsqrt %566 : vector<4x1xf32>
    %568 = vector.broadcast %567 : vector<4x1xf32> to vector<4x16xf32>
    %569 = arith.mulf %564, %568 : vector<4x16xf32>
    %570 = vector.broadcast %550 : vector<1x16xf32> to vector<4x16xf32>
    %571 = arith.mulf %569, %570 : vector<4x16xf32>
    %572 = vector.broadcast %551 : vector<1x16xf32> to vector<4x16xf32>
    %573 = arith.addf %571, %572 : vector<4x16xf32>
    %c0_589 = arith.constant 0 : index
    %c0_590 = arith.constant 0 : index
    %574 = vector.load %arg11[%c0_589, %c0_590] : memref<16x64xf32, #tpu.memory_space<vmem>>, vector<16x64xf32>
    %cst_591 = arith.constant dense<0.000000e+00> : vector<4x64xf32>
    %575 = tpu.matmul %573, %574, %cst_591 {dimension_numbers = #tpu.dot_dimension_numbers<[1], [0], [0], [1], [0, 0, 1, 1], [], []>} : vector<4x16xf32>, vector<16x64xf32>, vector<4x64xf32> -> vector<4x64xf32>
    %c0_592 = arith.constant 0 : index
    %c0_593 = arith.constant 0 : index
    %576 = vector.load %arg12[%c0_592, %c0_593] : memref<1x64xf32, #tpu.memory_space<vmem>>, vector<1x64xf32>
    %577 = vector.broadcast %576 : vector<1x64xf32> to vector<4x64xf32>
    %578 = arith.addf %575, %577 : vector<4x64xf32>
    %cst_594 = arith.constant 0.000000e+00 : f32
    %579 = vector.broadcast %cst_594 : f32 to vector<4x64xf32>
    %580 = arith.maximumf %578, %579 : vector<4x64xf32>
    %c0_595 = arith.constant 0 : index
    %c0_596 = arith.constant 0 : index
    %581 = vector.load %arg13[%c0_595, %c0_596] : memref<64x16xf32, #tpu.memory_space<vmem>>, vector<64x16xf32>
    %cst_597 = arith.constant dense<0.000000e+00> : vector<4x16xf32>
    %582 = tpu.matmul %580, %581, %cst_597 {dimension_numbers = #tpu.dot_dimension_numbers<[1], [0], [0], [1], [0, 0, 1, 1], [], []>} : vector<4x64xf32>, vector<64x16xf32>, vector<4x16xf32> -> vector<4x16xf32>
    %c0_598 = arith.constant 0 : index
    %c0_599 = arith.constant 0 : index
    %583 = vector.load %arg14[%c0_598, %c0_599] : memref<1x16xf32, #tpu.memory_space<vmem>>, vector<1x16xf32>
    %584 = vector.broadcast %583 : vector<1x16xf32> to vector<4x16xf32>
    %585 = arith.addf %582, %584 : vector<4x16xf32>
    %586 = arith.addf %573, %585 : vector<4x16xf32>
    %c1_600 = arith.constant 1 : index
    %c0_601 = arith.constant 0 : index
    %587 = vector.load %arg15[%c1_600, %c0_601] : memref<2x16xf32, #tpu.memory_space<vmem>>, vector<1x16xf32>
    %c1_602 = arith.constant 1 : index
    %c0_603 = arith.constant 0 : index
    %588 = vector.load %arg16[%c1_602, %c0_603] : memref<2x16xf32, #tpu.memory_space<vmem>>, vector<1x16xf32>
    %cst_604 = arith.constant dense<0.000000e+00> : vector<4xf32>
    %589 = vector.multi_reduction <add>, %586, %cst_604 [1] : vector<4x16xf32> to vector<4xf32>
    %590 = vector.shape_cast %589 : vector<4xf32> to vector<4x1xf32>
    %cst_605 = arith.constant 1.600000e+01 : f32
    %591 = vector.broadcast %cst_605 : f32 to vector<4x1xf32>
    %592 = arith.divf %590, %591 : vector<4x1xf32>
    %593 = vector.broadcast %592 : vector<4x1xf32> to vector<4x16xf32>
    %594 = arith.subf %586, %593 : vector<4x16xf32>
    %595 = arith.mulf %594, %594 : vector<4x16xf32>
    %cst_606 = arith.constant dense<0.000000e+00> : vector<4xf32>
    %596 = vector.multi_reduction <add>, %595, %cst_606 [1] : vector<4x16xf32> to vector<4xf32>
    %597 = vector.shape_cast %596 : vector<4xf32> to vector<4x1xf32>
    %cst_607 = arith.constant 1.600000e+01 : f32
    %598 = vector.broadcast %cst_607 : f32 to vector<4x1xf32>
    %599 = arith.divf %597, %598 : vector<4x1xf32>
    %600 = vector.broadcast %592 : vector<4x1xf32> to vector<4x16xf32>
    %601 = arith.subf %586, %600 : vector<4x16xf32>
    %cst_608 = arith.constant 9.99999974E-6 : f32
    %602 = vector.broadcast %cst_608 : f32 to vector<4x1xf32>
    %603 = arith.addf %599, %602 : vector<4x1xf32>
    %604 = math.rsqrt %603 : vector<4x1xf32>
    %605 = vector.broadcast %604 : vector<4x1xf32> to vector<4x16xf32>
    %606 = arith.mulf %601, %605 : vector<4x16xf32>
    %607 = vector.broadcast %587 : vector<1x16xf32> to vector<4x16xf32>
    %608 = arith.mulf %606, %607 : vector<4x16xf32>
    %609 = vector.broadcast %588 : vector<1x16xf32> to vector<4x16xf32>
    %610 = arith.addf %608, %609 : vector<4x16xf32>
    %611 = vector.extract_strided_slice %610 {offsets = [0, 0], sizes = [2, 16], strides = [1, 1]} : vector<4x16xf32> to vector<2x16xf32>
    %612 = vector.extract_strided_slice %610 {offsets = [2, 0], sizes = [2, 16], strides = [1, 1]} : vector<4x16xf32> to vector<2x16xf32>
    %613 = tpu.concatenate %611, %612 in 1 : vector<2x16xf32>, vector<2x16xf32> -> vector<2x32xf32>
    %c0_609 = arith.constant 0 : index
    %c0_610 = arith.constant 0 : index
    %614 = vector.load %arg17[%c0_609, %c0_610] : memref<32x2xf32, #tpu.memory_space<vmem>>, vector<32x2xf32>
    %cst_611 = arith.constant dense<0.000000e+00> : vector<32x32xf32>
    %615 = tpu.matmul %614, %613, %cst_611 {dimension_numbers = #tpu.dot_dimension_numbers<[1], [0], [0], [1], [0, 0, 1, 1], [], []>} : vector<32x2xf32>, vector<2x32xf32>, vector<32x32xf32> -> vector<32x32xf32>
    %c0_612 = arith.constant 0 : index
    %c0_613 = arith.constant 0 : index
    %616 = vector.load %arg18[%c0_612, %c0_613] : memref<32x512xf32, #tpu.memory_space<vmem>>, vector<32x512xf32>
    %cst_614 = arith.constant dense<0.000000e+00> : vector<32x512xf32>
    %617 = tpu.matmul %615, %616, %cst_614 {dimension_numbers = #tpu.dot_dimension_numbers<[1], [0], [0], [1], [0, 0, 1, 1], [], []>} : vector<32x32xf32>, vector<32x512xf32>, vector<32x512xf32> -> vector<32x512xf32>
    %c0_615 = arith.constant 0 : index
    %c0_616 = arith.constant 0 : index
    %c0_617 = arith.constant 0 : index
    %618 = vector.load %arg20[%c0_615, %c0_616, %c0_617] : memref<3x32x512xf32, #tpu.memory_space<vmem>>, vector<1x32x512xf32>
    %619 = vector.shape_cast %618 : vector<1x32x512xf32> to vector<32x512xf32>
    %620 = arith.addf %617, %619 : vector<32x512xf32>
    %c0_618 = arith.constant 0 : index
    %c0_619 = arith.constant 0 : index
    %c0_620 = arith.constant 0 : index
    %621 = vector.load %arg19[%c0_618, %c0_619, %c0_620] : memref<1x32x512xf32, #tpu.memory_space<vmem>>, vector<1x32x512xf32>
    %622 = vector.shape_cast %621 : vector<1x32x512xf32> to vector<32x512xf32>
    %623 = vector.shape_cast %620 : vector<32x512xf32> to vector<1x32x512xf32>
    tpu.vector_store %arg19[%c0_618, %c0_619, %c0_620], %623 {strides = array<i32>} : memref<1x32x512xf32, #tpu.memory_space<vmem>>, vector<1x32x512xf32>,
    return
  }
  func.func @transform_0(%arg0: i32) -> (i32, i32, i32, i32) {
    %c0_i32 = arith.constant 0 : i32
    %c0_i32_0 = arith.constant 0 : i32
    %c0_i32_1 = arith.constant 0 : i32
    %c0_i32_2 = arith.constant 0 : i32
    return %arg0, %c0_i32, %c0_i32_0, %c0_i32_1 : i32, i32, i32, i32
  }
  func.func @transform_1(%arg0: i32) -> (i32, i32, i32, i32) {
    %c0_i32 = arith.constant 0 : i32
    %c0_i32_0 = arith.constant 0 : i32
    %c0_i32_1 = arith.constant 0 : i32
    %c0_i32_2 = arith.constant 0 : i32
    %c0_i32_3 = arith.constant 0 : i32
    return %c0_i32, %c0_i32_0, %c0_i32_1, %c0_i32_2 : i32, i32, i32, i32
  }
  func.func @transform_2(%arg0: i32) -> (i32, i32, i32) {
    %c0_i32 = arith.constant 0 : i32
    %c0_i32_0 = arith.constant 0 : i32
    %c0_i32_1 = arith.constant 0 : i32
    %c0_i32_2 = arith.constant 0 : i32
    return %c0_i32, %c0_i32_0, %c0_i32_1 : i32, i32, i32
  }
  func.func @transform_3(%arg0: i32) -> (i32, i32, i32) {
    %c0_i32 = arith.constant 0 : i32
    %c0_i32_0 = arith.constant 0 : i32
    %c0_i32_1 = arith.constant 0 : i32
    %c0_i32_2 = arith.constant 0 : i32
    return %c0_i32, %c0_i32_0, %c0_i32_1 : i32, i32, i32
  }
  func.func @transform_4(%arg0: i32) -> (i32, i32) {
    %c0_i32 = arith.constant 0 : i32
    %c0_i32_0 = arith.constant 0 : i32
    %c0_i32_1 = arith.constant 0 : i32
    return %c0_i32, %c0_i32_0 : i32, i32
  }
  func.func @transform_5(%arg0: i32) -> (i32, i32) {
    %c0_i32 = arith.constant 0 : i32
    %c0_i32_0 = arith.constant 0 : i32
    %c0_i32_1 = arith.constant 0 : i32
    return %c0_i32, %c0_i32_0 : i32, i32
  }
  func.func @transform_6(%arg0: i32) -> (i32, i32, i32) {
    %c0_i32 = arith.constant 0 : i32
    %c0_i32_0 = arith.constant 0 : i32
    %c0_i32_1 = arith.constant 0 : i32
    %c0_i32_2 = arith.constant 0 : i32
    return %c0_i32, %c0_i32_0, %c0_i32_1 : i32, i32, i32
  }
  func.func @transform_7(%arg0: i32) -> (i32, i32, i32) {
    %c0_i32 = arith.constant 0 : i32
    %c0_i32_0 = arith.constant 0 : i32
    %c0_i32_1 = arith.constant 0 : i32
    %c0_i32_2 = arith.constant 0 : i32
    return %c0_i32, %c0_i32_0, %c0_i32_1 : i32, i32, i32
  }
  func.func @transform_8(%arg0: i32) -> (i32, i32) {
    %c0_i32 = arith.constant 0 : i32
    %c0_i32_0 = arith.constant 0 : i32
    %c0_i32_1 = arith.constant 0 : i32
    return %c0_i32, %c0_i32_0 : i32, i32
  }
  func.func @transform_9(%arg0: i32) -> (i32, i32) {
    %c0_i32 = arith.constant 0 : i32
    %c0_i32_0 = arith.constant 0 : i32
    %c0_i32_1 = arith.constant 0 : i32
    return %c0_i32, %c0_i32_0 : i32, i32
  }
  func.func @transform_10(%arg0: i32) -> (i32, i32) {
    %c0_i32 = arith.constant 0 : i32
    %c0_i32_0 = arith.constant 0 : i32
    %c0_i32_1 = arith.constant 0 : i32
    return %c0_i32, %c0_i32_0 : i32, i32
  }
  func.func @transform_11(%arg0: i32) -> (i32, i32) {
    %c0_i32 = arith.constant 0 : i32
    %c0_i32_0 = arith.constant 0 : i32
    %c0_i32_1 = arith.constant 0 : i32
    return %c0_i32, %c0_i32_0 : i32, i32
  }
  func.func @transform_12(%arg0: i32) -> (i32, i32) {
    %c0_i32 = arith.constant 0 : i32
    %c0_i32_0 = arith.constant 0 : i32
    %c0_i32_1 = arith.constant 0 : i32
    return %c0_i32, %c0_i32_0 : i32, i32
  }
  func.func @transform_13(%arg0: i32) -> (i32, i32) {
    %c0_i32 = arith.constant 0 : i32
    %c0_i32_0 = arith.constant 0 : i32
    %c0_i32_1 = arith.constant 0 : i32
    return %c0_i32, %c0_i32_0 : i32, i32
  }
  func.func @transform_14(%arg0: i32) -> (i32, i32) {
    %c0_i32 = arith.constant 0 : i32
    %c0_i32_0 = arith.constant 0 : i32
    %c0_i32_1 = arith.constant 0 : i32
    return %c0_i32, %c0_i32_0 : i32, i32
  }
  func.func @transform_15(%arg0: i32) -> (i32, i32) {
    %c0_i32 = arith.constant 0 : i32
    %c0_i32_0 = arith.constant 0 : i32
    %c0_i32_1 = arith.constant 0 : i32
    return %c0_i32, %c0_i32_0 : i32, i32
  }
  func.func @transform_16(%arg0: i32) -> (i32, i32) {
    %c0_i32 = arith.constant 0 : i32
    %c0_i32_0 = arith.constant 0 : i32
    %c0_i32_1 = arith.constant 0 : i32
    return %c0_i32, %c0_i32_0 : i32, i32
  }
  func.func @transform_17(%arg0: i32) -> (i32, i32) {
    %c0_i32 = arith.constant 0 : i32
    %c0_i32_0 = arith.constant 0 : i32
    %c0_i32_1 = arith.constant 0 : i32
    return %c0_i32, %c0_i32_0 : i32, i32
  }
  func.func @transform_18(%arg0: i32) -> (i32, i32, i32) {
    %c0_i32 = arith.constant 0 : i32
    %c0_i32_0 = arith.constant 0 : i32
    %c0_i32_1 = arith.constant 0 : i32
    return %arg0, %c0_i32, %c0_i32_0 : i32, i32, i32
  }
}

</mosaic_0001>

<bundles_post_ra>
// kernel: forward.1
= control target key start
LH: loop header
LB: loop body
LE: loop exit
PB: predicated region body
PF: predicated region fallthrough
CT: control target
= control target key end

     0   :  { %s16963_s27 = smov 0   ;;  %s22161_s0 = inlined_call_operand.vmem [shape: bf16[2,3,38,38], index: 0, kind: input, shape index: {}]   ;;  %s22162_s1 = inlined_call_operand.vmem [shape: bf16[3,7,38,512], index: 1, kind: input, shape index: {}]   ;;  %s22163_s2 = inlined_call_operand.vmem [shape: f32[3,1,512], index: 2, kind: input, shape index: {}]   ;;  %s22164_s3 = inlined_call_operand.vmem [shape: bf16[16,512,32], index: 3, kind: input, shape index: {}]   ;;  %s22165_s4 = inlined_call_operand.vmem [shape: f32[1,32], index: 4, kind: input, shape index: {}]   ;;  %s22166_s5 = inlined_call_operand.vmem [shape: f32[4,16], index: 5, kind: input, shape index: {}]   ;;  %s22167_s6 = inlined_call_operand.vmem [shape: f32[3,16,16], index: 6, kind: input, shape index: {}]   ;;  %s22168_s7 = inlined_call_operand.vmem [shape: f32[3,1,16], index: 7, kind: input, shape index: {}]   ;;  %s22169_s8 = inlined_call_operand.vmem [shape: f32[16,16], index: 8, kind: input, shape index: {}]   ;;  %s22170_s9 = inlined_call_operand.vmem [shape: f32[1,16], index: 9, kind: input, shape index: {}]   ;;  %s22171_s10 = inlined_call_operand.vmem [shape: f32[16,64], index: 10, kind: input, shape index: {}]   ;;  %s22172_s11 = inlined_call_operand.vmem [shape: f32[1,64], index: 11, kind: input, shape index: {}]   ;;  %s22173_s12 = inlined_call_operand.vmem [shape: f32[64,16], index: 12, kind: input, shape index: {}]   ;;  %s22174_s13 = inlined_call_operand.vmem [shape: f32[1,16], index: 13, kind: input, shape index: {}]   ;;  %s22175_s14 = inlined_call_operand.vmem [shape: f32[2,16], index: 14, kind: input, shape index: {}]   ;;  %s22176_s15 = inlined_call_operand.vmem [shape: f32[2,16], index: 15, kind: input, shape index: {}]   ;;  %s22177_s16 = inlined_call_operand.vmem [shape: f32[32,2], index: 16, kind: input, shape index: {}]   ;;  %s22178_s17 = inlined_call_operand.vmem [shape: f32[32,512], index: 17, kind: input, shape index: {}]   ;;  %s22179_s18 = inlined_call_operand.vmem [shape: f32[2,32,512], index: 18, kind: output, shape index: {}]  }
   0x1   :  { %22186 = sst [smem:[#allocation17_spill]] %s22161_s0 }
   0x2   :  { %22187 = sst [smem:[#allocation18_spill]] %s22162_s1 }
   0x3   :  { %22188 = sst [smem:[#allocation19_spill]] %s22163_s2 }
   0x4 LB: > { %s11961_s28 = sadd.s32 4294967295, %s16857_s27   ;;  %p11965_p0 = scmp.ge.s32.totalorder %s16857_s27, 1  ;;  %s16857_s27 = sphi %s16963_s27, %s28_s27  }
   0x5   : > { %p512_p1 = scmp.lt.s32.totalorder %s16857_s27, 3 }
   0x7   : > { %p513_p2 = pnand %p11965_p0, %p512_p1 }
   0x9   : > { %516 = sbr.rel (%p513_p2) target bundleno = 3823 (0xeef), region = 92 }
   0xe   : > { %s22189_s0 = sld [smem:[#allocation18_spill]]  ;;  %p16977_p3 = scmp.lt.s32.totalorder %s11961_s28, 1  ;;  %vm694_vm0 = vcmask 1042432   ;;  %vm616_vm1 = vsmask.f32 7424  ;;  %vm687_vm2 = vcmask 310272  }
   0xf   : > { %s22191_s26 = sld [smem:[#allocation17_spill]]  ;;  %vm940_vm3 = vcmask 1046528   ;;  %vm1121_vm4 = vsmask.f32 6400  ;;  %vm1318_vm5 = vcmask 1045504   ;;  %vm1696_vm7 = vcmask 1044480  }
  0x10   : > { %s22242_s28 = smov (!%p16977_p3, %s11961_s28), 1  ;;  %vm1499_vm6 = vsmask.f32 5376  ;;  %s22197_s21 = sld [smem:[#allocation19_spill]]  ;;  %vm4661_vm8 = vcmask 1040384   ;;  %vm4666_vm9 = vcmask 1041408  }
  0x11   : > { %s16798_s23 = smul.u32 60, %s22242_s28  ;;  %vm4675_vm10 = vcmask 1043456   ;;  %s16859_s30 = smov 112   ;;  %vm11029_vm11 = vcmask 130048   ;;  %vm11115_vm12 = vcmask 31744   ;;  %vm11143_vm13 = vcmask 27648  }
  0x12   : > { %s16862_s20 = smov 120   ;;  %s16863_s19 = smov 4  }
  0x13   : > { %s16864_s1 = smov 12   ;;  %s16865_s22 = smov 8  }
  0x14   : > { %v11977_v0 = vld [vmem:[%s22189_s0 + $0x90] sm:$0x77]  ;;  %v11978_v1 = vld [vmem:[%s22189_s0 + $0x98] sm:$0x77]  ;;  %v16118_v9 = vld [vmem:[%s22189_s0 + $0x7c] sm:$0xf0] }
  0x15   : > { %v663_v2 = vunpack.c.l.b16 %v11977_v0  ;;  %v664_v3 = vunpack.c.h.b16 %v11977_v0  ;;  %v665_v4 = vunpack.c.l.b16 %v11978_v1  ;;  %v12001_v5 = vld [vmem:[%s22189_s0 + $0x70] sm:$0xf]  ;;  %v16116_v10 = vld [vmem:[%s22189_s0 + $0x74] sm:$0xf]  ;;  %v12003_v11 = vld [vmem:[%s22189_s0 + $0x80] sm:$0xf0]  ;;  %v666_v12 = vunpack.c.h.b16 %v11978_v1  ;;  %s17034_s29 = scalar_lea.vmem %s22191_s26, %s16798_s23 }
  0x16   : > { %v12009_v13 = vld [vmem:[%s22189_s0 + $0x78] sm:$0xf]  ;;  %v16119_v14 = vld [vmem:[%s22189_s0 + $0x84] sm:$0xf0]  ;;  %v11985_v15 = vld [vmem:[%s22189_s0 + $0x50] sm:$0xf]  ;;  %v12002_v20 = vor.u32 %v16118_v9, %v12001_v5  ;;  %v12006_v21 = vor.u32 %v16116_v10, %v12003_v11 }
  0x17   : > { %v675_v6 = vpack.c.b16 %v663_v2, %v663_v2  ;;  %v676_v7 = vpack.c.b16 %v664_v3, %v664_v3  ;;  %v677_v8 = vpack.c.b16 %v665_v4, %v665_v4  ;;  %v17012_v19 = vld [vmem:[%s22189_s0 + $0x48] sm:$0x77]  ;;  %v16114_v22 = vld [vmem:[%s22189_s0 + $0x5c] sm:$0xf0]  ;;  %v16112_v23 = vld [vmem:[%s22189_s0 + $0x54] sm:$0xf]  ;;  %v12010_v25 = vor.u32 %v16119_v14, %v12009_v13 }
  0x18   : > { %v11987_v24 = vld [vmem:[%s22189_s0 + $0x60] sm:$0xf0]  ;;  %v11993_v26 = vld [vmem:[%s22189_s0 + $0x58] sm:$0xf]  ;;  %v16115_v27 = vld [vmem:[%s22189_s0 + $0x64] sm:$0xf0]  ;;  %v678_v28 = vpack.c.b16 %v666_v12, %v666_v12  ;;  %v811_v29 = vunpack.c.l.b16 %v17012_v19  ;;  %v11986_v30 = vor.u32 %v16114_v22, %v11985_v15  ;;  %v812_v3 = vunpack.c.h.b16 %v17012_v19 }
  0x19   : > { %v696_v16 = vsel %vm694_vm0, %v675_v6, 0  ;;  %v699_v17 = vsel %vm694_vm0, %v676_v7, 0  ;;  %v702_v18 = vsel %vm694_vm0, %v677_v8, 0  ;;  %v11990_v31 = vor.u32 %v16112_v23, %v11987_v24  ;;  %v589_v33 = vld [vmem:[%s22189_s0 + $0x40] sm:$0x77]  ;;  %v17043_v36 = vld [vmem:[%s17034_s29 + $0x8] sm:$0xff] }
  0x1a   : > { %712 = vmatpush.bf16.msra.mxu0 %v696_v16  ;;  %731 = vmatpush.bf16.msra.mxu1 %v699_v17  ;;  %v823_v32 = vpack.c.b16 %v811_v29, %v811_v29  ;;  %v11994_v34 = vor.u32 %v16115_v27, %v11993_v26  ;;  %v17040_v35 = vld [vmem:[%s17034_s29] sm:$0xff]   ;;  %v591_v37 = vld [vmem:[%s17034_s29 + $0x10] sm:$0x1]  ;;  %v809_v38 = vunpack.c.l.b16 %v589_v33  ;;  %v810_v39 = vunpack.c.h.b16 %v589_v33  ;;  %v16117_v46 = vld [vmem:[%s22189_s0 + $0x7c] sm:$0xf]  ;;  %s16867_s26 = smov 16  }
  0x1b   : > { %750 = vmatpush.bf16.msra.mxu2 %v702_v18  ;;  %16795 = vmatpush.bf16.msra.mxu3 %v702_v18  ;;  %v618_v40 = vshrl.u32 %v17040_v35, 16  ;;  %v620_v41 = vshll.u32 %v17040_v35, 16  ;;  %v612_v42 = vunpack.c.l.b16 %v591_v37  ;;  %v705_v43 = vsel %vm694_vm0, %v678_v28, 0  ;;  %v12011_v47 = vld [vmem:[%s22189_s0 + $0x88] sm:$0xf0]  ;;  %s16102_s23 = sshll.u32 %s22242_s28, 7 }
  0x1c   : > { %v17050_v44 = vshll.u32 %v17043_v36, 16  ;;  %v17053_v45 = vshrl.u32 %v17043_v36, 16  ;;  %v12049_v48 = vld [vmem:[%s22189_s0 + $0x28] sm:$0xf]  ;;  %v821_v49 = vpack.c.b16 %v809_v38, %v809_v38  ;;  %v822_v50 = vpack.c.b16 %v810_v39, %v810_v39  ;;  %v16111_v54 = vld [vmem:[%s22189_s0 + $0x34] sm:$0xf0] }
  0x1d   : > { %v622_v51 = vrot.slane %v620_v41, 1  ;;  %v17064_v52 = vpack.c.b16 %v612_v42, %v612_v42  ;;  %v844_v53 = vsel %vm694_vm0, %v823_v32, 0  ;;  %v12041_v55 = vld [vmem:[%s22189_s0 + $0x20] sm:$0xf]  ;;  %v16110_v59 = vld [vmem:[%s22189_s0 + $0x2c] sm:$0xf0]  ;;  %v12050_v4 = vor.u32 %v16111_v54, %v12049_v48 }
  0x1e   : > { %713 = vmatpush.bf16.msra.mxu0 %v12002_v20  ;;  %732 = vmatpush.bf16.msra.mxu1 %v12006_v21  ;;  %v627_v56 = vrot.slane %v17050_v44, 1  ;;  %v838_v57 = vsel %vm694_vm0, %v821_v49, 0  ;;  %v841_v58 = vsel %vm694_vm0, %v822_v50, 0  ;;  %v12033_v62 = vld [vmem:[%s22189_s0 + $0x8] sm:$0xf]  ;;  %v12014_v11 = vor.u32 %v16117_v46, %v12011_v47 }
  0x1f   : > { %751 = vmatpush.bf16.msra.mxu2 %v12010_v25  ;;  %16796 = vmatpush.bf16.msra.mxu3 %v12010_v25  ;;  %v623_v60 = vor.u32 %v622_v51, %v618_v40  ;;  %v633_v61 = vshll.u32 %v17064_v52, 16  ;;  %v16107_v63 = vld [vmem:[%s22189_s0 + $0x14] sm:$0xf0]  ;;  %v16108_v0 = vld [vmem:[%s22189_s0 + $0x24] sm:$0xf]  ;;  %v12042_v12 = vor.u32 %v16110_v59, %v12041_v55  ;;  %v824_v19 = vpack.c.b16 %v812_v3, %v812_v3 }
  0x20   : > { %v12043_v1 = vld [vmem:[%s22189_s0 + $0x30] sm:$0xf0]  ;;  %v631_v2 = vor.u32 %v17053_v45, %v627_v56  ;;  %v16113_v5 = vld [vmem:[%s22189_s0 + $0x5c] sm:$0xf]  ;;  %v11995_v6 = vld [vmem:[%s22189_s0 + $0x68] sm:$0xf0]  ;;  %v12034_v18 = vor.u32 %v16107_v63, %v12033_v62 }
  0x21   : > { %v12025_v7 = vld [vmem:[%s22189_s0] sm:$0xf]  ;;  %v16106_v8 = vld [vmem:[%s22189_s0 + $0xc] sm:$0xf0]  ;;  %v628_v9 = vsel %vm616_vm1, %v623_v60, %v627_v56  ;;  %v635_v10 = vrot.slane %v633_v61, 1  ;;  %v12046_v15 = vor.u32 %v16108_v0, %v12043_v1  ;;  %v11998_v21 = vor.u32 %v16113_v5, %v11995_v6 }
  0x22   : > { %714 = vmatpush.bf16.msra.mxu0 %v11986_v30  ;;  %733 = vmatpush.bf16.msra.mxu1 %v11990_v31  ;;  %v16104_v13 = vld [vmem:[%s22189_s0 + $0x4] sm:$0xf]  ;;  %v12027_v14 = vld [vmem:[%s22189_s0 + $0x10] sm:$0xf0]  ;;  %v17122_v17 = vld [vmem:[%s22189_s0 + $0xe8] sm:$0x77]  ;;  %v12026_v22 = vor.u32 %v16106_v8, %v12025_v7  ;;  %v17204_v1 = vunpack.c.h.b16 %v17040_v35 }
  0x23   : > { %752 = vmatpush.bf16.msra.mxu2 %v11994_v34  ;;  %16797 = vmatpush.bf16.msra.mxu3 %v11994_v34  ;;  %v17117_v16 = vsel %vm616_vm1, %v631_v2, %v635_v10  ;;  %v974_v20 = vunpack.c.l.b16 %v17122_v17  ;;  %v12030_v23 = vor.u32 %v16104_v13, %v12027_v14  ;;  %v16109_v25 = vld [vmem:[%s22189_s0 + $0x2c] sm:$0xf]  ;;  %v847_v26 = vsel %vm694_vm0, %v824_v19, 0  ;;  %v12051_v27 = vld [vmem:[%s22189_s0 + $0x38] sm:$0xf0] }
  0x24   : > { %v12099_v29 = vld [vmem:[%s22189_s0 + $0xc8] sm:$0xf]  ;;  %v16127_v30 = vld [vmem:[%s22189_s0 + $0xd4] sm:$0xf0]  ;;  %v12054_v31 = vor.u32 %v16109_v25, %v12051_v27  ;;  %v16105_v33 = vld [vmem:[%s22189_s0 + $0xc] sm:$0xf]  ;;  %v975_v3 = vunpack.c.h.b16 %v17122_v17 }
  0x25   : > { %12015 = vmatmul.msk.bf16.vlgmr.msra.gmra.mxu0 %vm687_vm2, %v628_v9  ;;  %12017 = vmatmul.msk.bf16.vlgmr.msra.gmra.mxu1 %vm687_vm2, %v628_v9  ;;  %v986_v24 = vpack.c.b16 %v974_v20, %v974_v20  ;;  %v12100_v32 = vor.u32 %v16127_v30, %v12099_v29  ;;  %v12035_v34 = vld [vmem:[%s22189_s0 + $0x18] sm:$0xf0]  ;;  %v12083_v37 = vld [vmem:[%s22189_s0 + $0xa8] sm:$0xf]  ;;  %v16123_v38 = vld [vmem:[%s22189_s0 + $0xb4] sm:$0xf0] }
  0x26   : > { %854 = vmatpush.bf16.msrb.mxu0 %v838_v57  ;;  %873 = vmatpush.bf16.msrb.mxu1 %v841_v58  ;;  %v12038_v39 = vor.u32 %v16105_v33, %v12035_v34  ;;  %v12084_v40 = vor.u32 %v16123_v38, %v12083_v37  ;;  %v12071_v41 = vld [vmem:[%s22189_s0 + $0xe0] sm:$0x77]  ;;  %v16126_v49 = vld [vmem:[%s22189_s0 + $0xcc] sm:$0xf0]  ;;  %v12093_v51 = vld [vmem:[%s22189_s0 + $0xd0] sm:$0xf0]  ;;  %v987_v6 = vpack.c.b16 %v975_v3, %v975_v3 }
  0x27   : > { %769 = vmatpush.bf16.msrb.mxu3 %v705_v43  ;;  %892 = vmatpush.bf16.msrb.mxu2 %v844_v53  ;;  %v1009_v28 = vsel %vm694_vm0, %v986_v24, 0  ;;  %v972_v42 = vunpack.c.l.b16 %v12071_v41  ;;  %v973_v43 = vunpack.c.h.b16 %v12071_v41  ;;  %v12091_v46 = vld [vmem:[%s22189_s0 + $0xc0] sm:$0xf]  ;;  %v16124_v50 = vld [vmem:[%s22189_s0 + $0xc4] sm:$0xf] }
  0x28   : > { %12019 = vmatmul.msk.bf16.vlgmr.msra.gmra.mxu2 %vm687_vm2, %v628_v9  ;;  %12020 = vmatmul.msk.bf16.vlgmr.msra.gmra.mxu3 %vm687_vm2, %v17117_v16  ;;  %v12092_v55 = vor.u32 %v16126_v49, %v12091_v46  ;;  %v12096_v56 = vor.u32 %v16124_v50, %v12093_v51  ;;  %v12075_v57 = vld [vmem:[%s22189_s0 + $0xa0] sm:$0xf]  ;;  %v16122_v58 = vld [vmem:[%s22189_s0 + $0xac] sm:$0xf0]  ;;  %v16120_v59 = vld [vmem:[%s22189_s0 + $0xa4] sm:$0xf] }
  0x29   : > { %v984_v47 = vpack.c.b16 %v972_v42, %v972_v42  ;;  %v985_v48 = vpack.c.b16 %v973_v43, %v973_v43  ;;  %v12077_v60 = vld [vmem:[%s22189_s0 + $0xb0] sm:$0xf0]  ;;  %v12076_v61 = vor.u32 %v16122_v58, %v12075_v57  ;;  %v925_v63 = vld [vmem:[%s17034_s29] sm:$0xe]  ;;  %v17199_v0 = vld [vmem:[%s22189_s0 + $0x138] sm:$0x77] }
  0x2a   : > { %855 = vmatpush.bf16.msrb.mxu0 %v12042_v12  ;;  %874 = vmatpush.bf16.msrb.mxu1 %v12046_v15  ;;  %v12080_v62 = vor.u32 %v16120_v59, %v12077_v60  ;;  %v938_v2 = vunpack.c.l.b16 %v925_v63  ;;  %v16125_v5 = vld [vmem:[%s22189_s0 + $0xcc] sm:$0xf]  ;;  %v12101_v8 = vld [vmem:[%s22189_s0 + $0xd8] sm:$0xf0]  ;;  %v16135_v10 = vld [vmem:[%s22189_s0 + $0x124] sm:$0xf0]  ;;  %v1172_v51 = vunpack.c.h.b16 %v17199_v0 }
  0x2b   : > { %893 = vmatpush.bf16.msrb.mxu2 %v12050_v4  ;;  %770 = vmatpush.bf16.msrb.mxu3 %v12014_v11  ;;  %v1003_v53 = vsel %vm694_vm0, %v984_v47, 0  ;;  %v1006_v54 = vsel %vm694_vm0, %v985_v48, 0  ;;  %v1171_v4 = vunpack.c.l.b16 %v17199_v0  ;;  %v1012_v12 = vsel %vm694_vm0, %v987_v6, 0  ;;  %v12085_v17 = vld [vmem:[%s22189_s0 + $0xb8] sm:$0xf0] }
  0x2c   : > { %v17221_v11 = vpack.c.b16 %v17204_v1, %v938_v2  ;;  %v12104_v14 = vor.u32 %v16125_v5, %v12101_v8  ;;  %v16131_v19 = vld [vmem:[%s22189_s0 + $0x104] sm:$0xf0]  ;;  %v12121_v25 = vld [vmem:[%s22189_s0 + $0x130] sm:$0x77]  ;;  %v12127_v42 = vld [vmem:[%s22189_s0 + $0x100] sm:$0xf0] }
  0x2d   : > { %v1183_v7 = vpack.c.b16 %v1171_v4, %v1171_v4  ;;  %v1170_v27 = vunpack.c.h.b16 %v12121_v25  ;;  %v16128_v41 = vld [vmem:[%s22189_s0 + $0xf4] sm:$0xf]  ;;  %v944_v43 = vrot.slane %v17064_v52, 1  ;;  %v17294_v50 = vld [vmem:[%s22189_s0 + $0x188] sm:$0x77]  ;;  %v1131_v63 = vrot.slane %v17050_v44, 2 }
  0x2e   : > { %856 = vmatpush.bf16.msrb.mxu0 %v12026_v22  ;;  %875 = vmatpush.bf16.msrb.mxu1 %v12030_v23  ;;  %v941_v20 = vrot.slane %v17221_v11, 1  ;;  %v12130_v47 = vor.u32 %v16128_v41, %v12127_v42  ;;  %v1123_v52 = vshrl.u32 %v17221_v11, 16  ;;  %v1126_v49 = vshll.u32 %v17221_v11, 16  ;;  %v12151_v57 = vld [vmem:[%s22189_s0 + $0x128] sm:$0xf0] }
  0x2f   : > { %894 = vmatpush.bf16.msrb.mxu2 %v12034_v18  ;;  %771 = vmatpush.bf16.msrb.mxu3 %v11998_v21  ;;  %v1206_v13 = vsel %vm694_vm0, %v1183_v7, 0  ;;  %v12133_v18 = vld [vmem:[%s22189_s0 + $0xf8] sm:$0xf]  ;;  %v942_v21 = vrot.slane %v17043_v36, 1  ;;  %v1182_v30 = vpack.c.b16 %v1170_v27, %v1170_v27  ;;  %v12199_v58 = vld [vmem:[%s22189_s0 + $0x168] sm:$0xf] }
  0x30   : > { %v12134_v23 = vor.u32 %v16131_v19, %v12133_v18  ;;  %v16143_v59 = vld [vmem:[%s22189_s0 + $0x174] sm:$0xf0]  ;;  %v1125_v60 = vrot.slane %v1123_v52, 1  ;;  %v1106_v3 = vld [vmem:[%s17034_s29 + $0x10] sm:$0x3]  ;;  %v1353_v52 = vunpack.c.h.b16 %v17294_v50 }
  0x31   : > { %v17240_v24 = vsel %vm940_vm3, %v941_v20, %v942_v21  ;;  %v1203_v34 = vsel %vm694_vm0, %v1182_v30, 0  ;;  %v17281_v48 = vsel %vm940_vm3, %v942_v21, %v944_v43  ;;  %v12200_v5 = vor.u32 %v16143_v59, %v12199_v58  ;;  %v16129_v6 = vld [vmem:[%s22189_s0 + $0xfc] sm:$0xf]  ;;  %v12135_v7 = vld [vmem:[%s22189_s0 + $0x108] sm:$0xf0] }
  0x32   : > { %1019 = vmatpush.bf16.msra.mxu0 %v1003_v53  ;;  %1038 = vmatpush.bf16.msra.mxu1 %v1006_v54  ;;  %v1352_v53 = vunpack.c.l.b16 %v17294_v50  ;;  %v16133_v54 = vld [vmem:[%s22189_s0 + $0x11c] sm:$0xf]  ;;  %v12183_v8 = vld [vmem:[%s22189_s0 + $0x148] sm:$0xf]  ;;  %v12193_v27 = vld [vmem:[%s22189_s0 + $0x170] sm:$0xf0] }
  0x33   : > { %911 = vmatpush.bf16.msra.mxu3 %v847_v26  ;;  %1057 = vmatpush.bf16.msra.mxu2 %v1009_v28  ;;  %v1169_v26 = vunpack.c.l.b16 %v12121_v25  ;;  %v12141_v28 = vld [vmem:[%s22189_s0 + $0x110] sm:$0xf]  ;;  %v12154_v4 = vor.u32 %v16133_v54, %v12151_v57  ;;  %v1303_v43 = vld [vmem:[%s17034_s29] sm:$0xc]  ;;  %v16141_v57 = vld [vmem:[%s22189_s0 + $0x16c] sm:$0xf] }
  0x34   : > { %v12249_v58 = vld [vmem:[%s22189_s0 + $0x1b8] sm:$0xf]  ;;  %v16151_v59 = vld [vmem:[%s22189_s0 + $0x1c4] sm:$0xf0] }
  0x35   : > { %12016 = vmatmul.msk.bf16.gmra.mxu0 %vm687_vm2, %v17117_v16  ;;  %12018 = vmatmul.msk.bf16.gmra.mxu1 %vm687_vm2, %v17117_v16  ;;  %v1181_v29 = vpack.c.b16 %v1169_v26, %v1169_v26  ;;  %v16142_v26 = vld [vmem:[%s22189_s0 + $0x16c] sm:$0xf0] }
  0x36   : > { %1020 = vmatpush.bf16.msra.mxu0 %v12092_v55  ;;  %1039 = vmatpush.bf16.msra.mxu1 %v12096_v56  ;;  %v1184_v55 = vpack.c.b16 %v1172_v51, %v1172_v51  ;;  %v1364_v56 = vpack.c.b16 %v1352_v53, %v1352_v53  ;;  %v1365_v51 = vpack.c.b16 %v1353_v52, %v1353_v52  ;;  %v1508_v52 = vrot.slane %v17053_v45, 2 }
  0x37   : > { %912 = vmatpush.bf16.msra.mxu3 %v12054_v31  ;;  %1058 = vmatpush.bf16.msra.mxu2 %v12100_v32  ;;  %v16134_v31 = vld [vmem:[%s22189_s0 + $0x11c] sm:$0xf0]  ;;  %v16132_v32 = vld [vmem:[%s22189_s0 + $0x114] sm:$0xf]  ;;  %v1200_v33 = vsel %vm694_vm0, %v1181_v29, 0 }
  0x38   : > { %12059 = vmatmul.msk.bf16.vlgmr.msrb.gmra.mxu2 %vm687_vm2, %v17040_v35  ;;  %12021 = vmatmul.msk.bf16.vlgmr.msrb.gmra.mxu3 %vm687_vm2, %v628_v9  ;;  %v12149_v9 = vld [vmem:[%s22189_s0 + $0x118] sm:$0xf]  ;;  %v12142_v37 = vor.u32 %v16134_v31, %v12141_v28  ;;  %v1209_v0 = vsel %vm694_vm0, %v1184_v55, 0  ;;  %v1387_v2 = vsel %vm694_vm0, %v1364_v56, 0  ;;  %v1390_v55 = vsel %vm694_vm0, %v1365_v51, 0 }
  0x39   : > { %v12150_v15 = vor.u32 %v16135_v10, %v12149_v9  ;;  %v16139_v9 = vld [vmem:[%s22189_s0 + $0x154] sm:$0xf0] }
  0x3a   : > { %1021 = vmatpush.bf16.msra.mxu0 %v12076_v61  ;;  %1040 = vmatpush.bf16.msra.mxu1 %v12080_v62  ;;  %v1128_v61 = vrot.slane %v1126_v49, 2  ;;  %v1130_v62 = vrot.slane %v17053_v45, 1  ;;  %v12299_v45 = vld [vmem:[%s22189_s0 + $0x208] sm:$0xf] }
  0x3b   : > { %913 = vmatpush.bf16.msra.mxu3 %v12038_v39  ;;  %1059 = vmatpush.bf16.msra.mxu2 %v12084_v40  ;;  %v12125_v39 = vld [vmem:[%s22189_s0 + $0xf0] sm:$0xf]  ;;  %v16130_v40 = vld [vmem:[%s22189_s0 + $0xfc] sm:$0xf0] }
  0x3c   : > { %v12126_v46 = vor.u32 %v16130_v40, %v12125_v39  ;;  %v1129_v10 = vor.u32 %v1128_v61, %v1125_v60  ;;  %v1132_v11 = vor.u32 %v1131_v63, %v1130_v62  ;;  %v12177_v40 = vld [vmem:[%s22189_s0 + $0x150] sm:$0xf0]  ;;  %v12250_v60 = vor.u32 %v16151_v59, %v12249_v58  ;;  %v16137_v63 = vld [vmem:[%s22189_s0 + $0x14c] sm:$0xf]  ;;  %v16145_v59 = vld [vmem:[%s22189_s0 + $0x19c] sm:$0xf] }
  0x3d   : > { %v1320_v62 = vrot.slane %v17043_v36, 2 }
  0x3f   : > { %1076 = vmatpush.bf16.msrb.mxu3 %v1012_v12  ;;  %1254 = vmatpush.bf16.msrb.mxu2 %v1206_v13  ;;  %v1119_v12 = vunpack.c.l.b16 %v1106_v3  ;;  %v12138_v13 = vor.u32 %v16129_v6, %v12135_v7  ;;  %v12221_v7 = vld [vmem:[%s22189_s0 + $0x1d0] sm:$0x77] }
  0x43   : > { %1077 = vmatpush.bf16.msrb.mxu3 %v12104_v14  ;;  %1255 = vmatpush.bf16.msrb.mxu2 %v12150_v15  ;;  %v12184_v14 = vor.u32 %v16139_v9, %v12183_v8  ;;  %v17330_v15 = vsel %vm1121_vm4, %v1129_v10, %v1132_v11  ;;  %v1547_v8 = vunpack.c.l.b16 %v12221_v7  ;;  %v1548_v9 = vunpack.c.h.b16 %v12221_v7 }
  0x45   : > { %12055 = vmatmul.msk.bf16.vlgmr.msrb.gmra.mxu0 %vm687_vm2, %v17040_v35  ;;  %12057 = vmatmul.msk.bf16.vlgmr.msrb.gmra.mxu1 %vm687_vm2, %v17040_v35  ;;  %v1559_v10 = vpack.c.b16 %v1547_v8, %v1547_v8  ;;  %v12271_v8 = vld [vmem:[%s22189_s0 + $0x220] sm:$0x77] }
  0x46   : > { %1216 = vmatpush.bf16.msrb.mxu0 %v1200_v33  ;;  %1235 = vmatpush.bf16.msrb.mxu1 %v1203_v34  ;;  %v12175_v34 = vld [vmem:[%s22189_s0 + $0x140] sm:$0xf] }
  0x47   : > { %1256 = vmatpush.bf16.msrb.mxu2 %v12134_v23 }
  0x48   : > { %12060 = vmatmul.msk.bf16.gmra.mxu2 %vm687_vm2, %v17043_v36  ;;  %12022 = vmatmul.msk.bf16.gmra.mxu3 %vm687_vm2, %v17117_v16  ;;  %v16121_v16 = vld [vmem:[%s22189_s0 + $0xac] sm:$0xf] }
  0x49   : > { %v12088_v22 = vor.u32 %v16121_v16, %v12085_v17  ;;  %v17332_v16 = vpack.c.b16 %v1119_v12, %v1119_v12  ;;  %v12171_v17 = vld [vmem:[%s22189_s0 + $0x180] sm:$0x77]  ;;  %v1578_v12 = vsel %vm694_vm0, %v1559_v10, 0 }
  0x4a   : > { %1217 = vmatpush.bf16.msrb.mxu0 %v12142_v37  ;;  %v1350_v20 = vunpack.c.l.b16 %v12171_v17  ;;  %v1351_v21 = vunpack.c.h.b16 %v12171_v17  ;;  %v16138_v37 = vld [vmem:[%s22189_s0 + $0x14c] sm:$0xf0]  ;;  %v16150_v17 = vld [vmem:[%s22189_s0 + $0x1bc] sm:$0xf0] }
  0x4b   : > { %1078 = vmatpush.bf16.msrb.mxu3 %v12088_v22  ;;  %v1135_v18 = vshrl.u32 %v17332_v16, 16  ;;  %v1138_v19 = vshll.u32 %v17332_v16, 16  ;;  %v12191_v22 = vld [vmem:[%s22189_s0 + $0x160] sm:$0xf]  ;;  %v12176_v39 = vor.u32 %v16138_v37, %v12175_v34 }
  0x4c   : > { %v1362_v23 = vpack.c.b16 %v1350_v20, %v1350_v20  ;;  %v1363_v25 = vpack.c.b16 %v1351_v21, %v1351_v21  ;;  %v1322_v21 = vrot.slane %v17332_v16, 2  ;;  %v12227_v16 = vld [vmem:[%s22189_s0 + $0x1a0] sm:$0xf0] }
  0x4d   : > { %v1137_v28 = vrot.slane %v1135_v18, 1  ;;  %v1140_v29 = vrot.slane %v1138_v19, 2  ;;  %v16148_v18 = vld [vmem:[%s22189_s0 + $0x1b4] sm:$0xf]  ;;  %v12243_v19 = vld [vmem:[%s22189_s0 + $0x1c0] sm:$0xf0] }
  0x4e   : > { %1218 = vmatpush.bf16.msrb.mxu0 %v12126_v46  ;;  %v1381_v30 = vsel %vm694_vm0, %v1362_v23, 0  ;;  %v1384_v31 = vsel %vm694_vm0, %v1363_v25, 0  ;;  %v17386_v46 = vld [vmem:[%s22189_s0 + $0x1d8] sm:$0x77]  ;;  %v12246_v20 = vor.u32 %v16148_v18, %v12243_v19  ;;  %v16146_v23 = vld [vmem:[%s22189_s0 + $0x19c] sm:$0xf0] }
  0x4f   : > { %v1141_v33 = vor.u32 %v1140_v29, %v1137_v28  ;;  %v1549_v49 = vunpack.c.l.b16 %v17386_v46  ;;  %v16144_v25 = vld [vmem:[%s22189_s0 + $0x194] sm:$0xf]  ;;  %v17469_v28 = vsel %vm1318_vm5, %v1320_v62, %v1322_v21 }
  0x50   : > { %v12230_v29 = vor.u32 %v16144_v25, %v12227_v16  ;;  %v12291_v25 = vld [vmem:[%s22189_s0 + $0x200] sm:$0xf]  ;;  %v16156_v16 = vld [vmem:[%s22189_s0 + $0x204] sm:$0xf] }
  0x51   : > { %v17374_v41 = vsel %vm1121_vm4, %v1132_v11, %v1141_v33  ;;  %v1561_v53 = vpack.c.b16 %v1549_v49, %v1549_v49  ;;  %v1560_v11 = vpack.c.b16 %v1548_v9, %v1548_v9  ;;  %v1509_v49 = vrot.slane %v17050_v44, 3 }
  0x53   : > { %v1584_v56 = vsel %vm694_vm0, %v1561_v53, 0  ;;  %v16149_v53 = vld [vmem:[%s22189_s0 + $0x1bc] sm:$0xf] }
  0x55   : > { %12056 = vmatmul.msk.bf16.gmra.mxu0 %vm687_vm2, %v17043_v36  ;;  %12058 = vmatmul.msk.bf16.gmra.mxu1 %vm687_vm2, %v17043_v36 }
  0x58   : > { %12109 = vmatmul.msk.bf16.vlgmr.msra.gmra.mxu2 %vm687_vm2, %v17240_v24  ;;  %12061 = vmatmul.msk.bf16.vlgmr.msra.gmra.mxu3 %vm687_vm2, %v17040_v35  ;;  %v12143_v35 = vld [vmem:[%s22189_s0 + $0x120] sm:$0xf0] }
  0x59   : > { %v12146_v38 = vor.u32 %v16132_v32, %v12143_v35  ;;  %1273 = vmatpush.bf16.msra.mxu3 %v1209_v0  ;;  %1435 = vmatpush.bf16.msra.mxu2 %v1387_v2  ;;  %v12192_v32 = vor.u32 %v16142_v26, %v12191_v22  ;;  %v12185_v0 = vld [vmem:[%s22189_s0 + $0x158] sm:$0xf0]  ;;  %v12233_v2 = vld [vmem:[%s22189_s0 + $0x198] sm:$0xf]  ;;  %v12225_v22 = vld [vmem:[%s22189_s0 + $0x190] sm:$0xf] }
  0x5a   : > { %v12188_v3 = vor.u32 %v16137_v63, %v12185_v0 }
  0x5b   : > { %1236 = vmatpush.bf16.msrb.mxu1 %v12146_v38  ;;  %v16136_v38 = vld [vmem:[%s22189_s0 + $0x144] sm:$0xf] }
  0x5c   : > { %v12180_v42 = vor.u32 %v16136_v38, %v12177_v40 }
  0x5d   : > { %1274 = vmatpush.bf16.msra.mxu3 %v12154_v4  ;;  %1436 = vmatpush.bf16.msra.mxu2 %v12200_v5  ;;  %v16147_v4 = vld [vmem:[%s22189_s0 + $0x1a4] sm:$0xf0] }
  0x5e   : > { %v12234_v6 = vor.u32 %v16147_v4, %v12233_v2  ;;  %v16155_v2 = vld [vmem:[%s22189_s0 + $0x1f4] sm:$0xf0] }
  0x5f   : > { %1237 = vmatpush.bf16.msrb.mxu1 %v12130_v47  ;;  %v1316_v47 = vunpack.c.l.b16 %v1303_v43 }
  0x61   : > { %1275 = vmatpush.bf16.msra.mxu3 %v12138_v13  ;;  %1437 = vmatpush.bf16.msra.mxu2 %v12184_v14  ;;  %v17393_v54 = vpack.c.b16 %v17204_v1, %v1316_v47  ;;  %v1581_v13 = vsel %vm694_vm0, %v1560_v11, 0  ;;  %v12241_v14 = vld [vmem:[%s22189_s0 + $0x1b0] sm:$0xf]  ;;  %v1728_v11 = vunpack.c.l.b16 %v12271_v8 }
  0x63   : > { %v1319_v61 = vrot.slane %v17393_v54, 2 }
  0x65   : > { %12105 = vmatmul.msk.bf16.vlgmr.msra.gmra.mxu0 %vm687_vm2, %v17240_v24  ;;  %12107 = vmatmul.msk.bf16.vlgmr.msra.gmra.mxu1 %vm687_vm2, %v17240_v24  ;;  %v17424_v5 = vsel %vm1318_vm5, %v1319_v61, %v1320_v62  ;;  %v12283_v61 = vld [vmem:[%s22189_s0 + $0x1e8] sm:$0xf] }
  0x66   : > { %1397 = vmatpush.bf16.msra.mxu0 %v1381_v30  ;;  %1416 = vmatpush.bf16.msra.mxu1 %v1384_v31  ;;  %v1501_v30 = vshrl.u32 %v17393_v54, 16  ;;  %v1504_v31 = vshll.u32 %v17393_v54, 16  ;;  %v12251_v54 = vld [vmem:[%s22189_s0 + $0x1c8] sm:$0xf0]  ;;  %v12284_v7 = vor.u32 %v16155_v2, %v12283_v61 }
  0x67   : > { %v12254_v44 = vor.u32 %v16149_v53, %v12251_v54 }
  0x68   : > { %12110 = vmatmul.msk.bf16.gmra.mxu2 %vm687_vm2, %v17281_v48  ;;  %12062 = vmatmul.msk.bf16.gmra.mxu3 %vm687_vm2, %v17043_v36  ;;  %v1506_v43 = vrot.slane %v1504_v31, 3 }
  0x6a   : > { %1398 = vmatpush.bf16.msra.mxu0 %v12192_v32  ;;  %v17482_v32 = vld [vmem:[%s22189_s0 + $0x228] sm:$0x77] }
  0x6b   : > { %v1730_v33 = vunpack.c.l.b16 %v17482_v32 }
  0x6d   : > { %v1742_v38 = vpack.c.b16 %v1730_v33, %v1730_v33 }
  0x6e   : > { %1399 = vmatpush.bf16.msra.mxu0 %v12176_v39 }
  0x6f   : > { %v1765_v51 = vsel %vm694_vm0, %v1742_v38, 0  ;;  %v16152_v38 = vld [vmem:[%s22189_s0 + $0x1e4] sm:$0xf] }
  0x75   : > { %12106 = vmatmul.msk.bf16.gmra.mxu0 %vm687_vm2, %v17281_v48  ;;  %12108 = vmatmul.msk.bf16.gmra.mxu1 %vm687_vm2, %v17281_v48 }
  0x78   : > { %12159 = vmatmul.msk.bf16.vlgmr.msrb.gmra.mxu2 %vm687_vm2, %v17330_v15  ;;  %12111 = vmatmul.msk.bf16.vlgmr.msrb.gmra.mxu3 %vm687_vm2, %v17240_v24  ;;  %v16140_v24 = vld [vmem:[%s22189_s0 + $0x164] sm:$0xf] }
  0x79   : > { %v12196_v35 = vor.u32 %v16140_v24, %v12193_v27  ;;  %1454 = vmatpush.bf16.msrb.mxu3 %v1390_v55  ;;  %1632 = vmatpush.bf16.msrb.mxu2 %v1584_v56  ;;  %v12226_v27 = vor.u32 %v16146_v23, %v12225_v22  ;;  %v16159_v55 = vld [vmem:[%s22189_s0 + $0x214] sm:$0xf0] }
  0x7a   : > { %v12300_v56 = vor.u32 %v16159_v55, %v12299_v45  ;;  %v1731_v55 = vunpack.c.h.b16 %v17482_v32 }
  0x7b   : > { %1417 = vmatpush.bf16.msra.mxu1 %v12196_v35  ;;  %v1550_v35 = vunpack.c.h.b16 %v17386_v46 }
  0x7d   : > { %1633 = vmatpush.bf16.msrb.mxu2 %v12250_v60  ;;  %v1562_v37 = vpack.c.b16 %v1550_v35, %v1550_v35  ;;  %v12235_v60 = vld [vmem:[%s22189_s0 + $0x1a8] sm:$0xf0] }
  0x7e   : > { %v12238_v0 = vor.u32 %v16145_v59, %v12235_v60 }
  0x7f   : > { %1418 = vmatpush.bf16.msra.mxu1 %v12180_v42  ;;  %v1503_v42 = vrot.slane %v1501_v30, 2  ;;  %v1587_v46 = vsel %vm694_vm0, %v1562_v37, 0  ;;  %v12293_v30 = vld [vmem:[%s22189_s0 + $0x210] sm:$0xf0]  ;;  %v16154_v37 = vld [vmem:[%s22189_s0 + $0x1ec] sm:$0xf0] }
  0x80   : > { %v12296_v31 = vor.u32 %v16156_v16, %v12293_v30 }
  0x81   : > { %1634 = vmatpush.bf16.msrb.mxu2 %v12234_v6 }
  0x85   : > { %12155 = vmatmul.msk.bf16.vlgmr.msrb.gmra.mxu0 %vm687_vm2, %v17330_v15  ;;  %12157 = vmatmul.msk.bf16.vlgmr.msrb.gmra.mxu1 %vm687_vm2, %v17330_v15 }
  0x86   : > { %1594 = vmatpush.bf16.msrb.mxu0 %v1578_v12  ;;  %1613 = vmatpush.bf16.msrb.mxu1 %v1581_v13  ;;  %v1729_v12 = vunpack.c.h.b16 %v12271_v8 }
  0x88   : > { %12160 = vmatmul.msk.bf16.gmra.mxu2 %vm687_vm2, %v17374_v41  ;;  %12112 = vmatmul.msk.bf16.gmra.mxu3 %vm687_vm2, %v17281_v48  ;;  %v12201_v48 = vld [vmem:[%s22189_s0 + $0x178] sm:$0xf0] }
  0x89   : > { %v12204_v50 = vor.u32 %v16141_v57, %v12201_v48  ;;  %v1507_v57 = vor.u32 %v1506_v43, %v1503_v42  ;;  %v1510_v48 = vor.u32 %v1509_v49, %v1508_v52 }
  0x8a   : > { %1614 = vmatpush.bf16.msrb.mxu1 %v12246_v20 }
  0x8b   : > { %1455 = vmatpush.bf16.msrb.mxu3 %v12204_v50  ;;  %v17530_v4 = vsel %vm1499_vm6, %v1507_v57, %v1510_v48 }
  0x8e   : > { %1615 = vmatpush.bf16.msrb.mxu1 %v12230_v29 }
  0x8f   : > { %1456 = vmatpush.bf16.msrb.mxu3 %v12188_v3 }
  0x95   : > { %12156 = vmatmul.msk.bf16.gmra.mxu0 %vm687_vm2, %v17374_v41  ;;  %12158 = vmatmul.msk.bf16.gmra.mxu1 %vm687_vm2, %v17374_v41 }
  0x98   : > { %12209 = vmatmul.msk.bf16.vlgmr.msra.gmra.mxu2 %vm687_vm2, %v17424_v5  ;;  %12161 = vmatmul.msk.bf16.vlgmr.msra.gmra.mxu3 %vm687_vm2, %v17330_v15  ;;  %v12242_v15 = vor.u32 %v16150_v17, %v12241_v14  ;;  %v1740_v14 = vpack.c.b16 %v1728_v11, %v1728_v11  ;;  %v1741_v17 = vpack.c.b16 %v1729_v12, %v1729_v12  ;;  %v1698_v11 = vrot.slane %v17043_v36, 3 }
  0x99   : > { %1651 = vmatpush.bf16.msra.mxu3 %v1587_v46  ;;  %1813 = vmatpush.bf16.msra.mxu2 %v1765_v51 }
  0x9a   : > { %1595 = vmatpush.bf16.msrb.mxu0 %v12242_v15  ;;  %v1759_v22 = vsel %vm694_vm0, %v1740_v14, 0  ;;  %v1762_v23 = vsel %vm694_vm0, %v1741_v17, 0  ;;  %v12285_v14 = vld [vmem:[%s22189_s0 + $0x1f8] sm:$0xf0]  ;;  %v12352_v17 = vld [vmem:[%s22189_s0 + $0x288] sm:$0xf] }
  0x9d   : > { %1652 = vmatpush.bf16.msra.mxu3 %v12254_v44  ;;  %1814 = vmatpush.bf16.msra.mxu2 %v12300_v56  ;;  %v1681_v44 = vld [vmem:[%s17034_s29] sm:$0x8] }
  0x9e   : > { %1596 = vmatpush.bf16.msrb.mxu0 %v12226_v27  ;;  %v16158_v27 = vld [vmem:[%s22189_s0 + $0x20c] sm:$0xf0] }
  0x9f   : > { %v12292_v29 = vor.u32 %v16158_v27, %v12291_v25  ;;  %v16172_v25 = vld [vmem:[%s22189_s0 + $0x294] sm:$0xf0] }
  0xa0   : > { %v12353_v30 = vor.u32 %v16172_v25, %v12352_v17 }
  0xa1   : > { %1653 = vmatpush.bf16.msra.mxu3 %v12238_v0  ;;  %1815 = vmatpush.bf16.msra.mxu2 %v12284_v7 }
  0xa2   : > { %v17461_v26 = vpop.f32.mrf.mxu0  ;;  %v17463_v24 = vpop.f32.mrf.mxu1 }
  0xa5   : > { %12205 = vmatmul.msk.bf16.vlgmr.msra.gmra.mxu0 %vm687_vm2, %v17424_v5  ;;  %12207 = vmatmul.msk.bf16.vlgmr.msra.gmra.mxu1 %vm687_vm2, %v17424_v5 }
  0xa6   : > { %1775 = vmatpush.bf16.msra.mxu0 %v1759_v22  ;;  %1794 = vmatpush.bf16.msra.mxu1 %v1762_v23 }
  0xa8   : > { %12210 = vmatmul.msk.bf16.gmra.mxu2 %vm687_vm2, %v17469_v28  ;;  %12162 = vmatmul.msk.bf16.gmra.mxu3 %vm687_vm2, %v17374_v41  ;;  %v1484_v41 = vld [vmem:[%s17034_s29 + $0x10] sm:$0x7] }
  0xa9   : > { %v1497_v50 = vunpack.c.l.b16 %v1484_v41  ;;  %v12277_v41 = vld [vmem:[%s22189_s0 + $0x1f0] sm:$0xf0] }
  0xaa   : > { %v17490_v40 = vpop.f32.mrf.mxu0  ;;  %v17492_v47 = vpop.f32.mrf.mxu1  ;;  %1776 = vmatpush.bf16.msra.mxu0 %v12292_v29  ;;  %1795 = vmatpush.bf16.msra.mxu1 %v12296_v31  ;;  %v12280_v54 = vor.u32 %v16152_v38, %v12277_v41 }
  0xab   : > { %v754_v34 = vpop.f32.mrf.mxu2  ;;  %v17488_v39 = vpop.f32.mrf.mxu3  ;;  %v17532_v6 = vpack.c.b16 %v1497_v50, %v1497_v50 }
  0xad   : > { %v1513_v9 = vshrl.u32 %v17532_v6, 16  ;;  %v1516_v10 = vshll.u32 %v17532_v6, 16 }
  0xae   : > { %1796 = vmatpush.bf16.msra.mxu1 %v12280_v54  ;;  %v17686_v54 = vld [vmem:[%s17034_s29 + $0x14] sm:$0xff]  }
  0xaf   : > { %v1515_v21 = vrot.slane %v1513_v9, 2  ;;  %v1964_v36 = vshll.u32 %v17686_v54, 16  ;;  %v1962_v25 = vshrl.u32 %v17686_v54, 16 }
  0xb2   : > { %v17522_v63 = vpop.f32.mrf.mxu0  ;;  %v17527_v3 = vpop.f32.mrf.mxu1 }
  0xb3   : > { %v756_v58 = vpop.f32.mrf.mxu2  ;;  %v17520_v62 = vpop.f32.mrf.mxu3 }
  0xb5   : > { %12206 = vmatmul.msk.bf16.gmra.mxu0 %vm687_vm2, %v17469_v28  ;;  %12208 = vmatmul.msk.bf16.gmra.mxu1 %vm687_vm2, %v17469_v28 }
  0xb8   : > { %12259 = vmatmul.msk.bf16.vlgmr.msrb.gmra.mxu2 %vm687_vm2, %v17530_v4  ;;  %12211 = vmatmul.msk.bf16.vlgmr.msrb.gmra.mxu3 %vm687_vm2, %v17424_v5  ;;  %v1518_v5 = vrot.slane %v1516_v10, 3 }
  0xba   : > { %v17551_v19 = vpop.f32.mrf.mxu0  ;;  %v17553_v20 = vpop.f32.mrf.mxu1  ;;  %v1519_v35 = vor.u32 %v1518_v5, %v1515_v21 }
  0xbb   : > { %v896_v13 = vpop.f32.mrf.mxu2  ;;  %v17547_v15 = vpop.f32.mrf.mxu3 }
  0xbc   : > { %v17549_v18 = vadd.f32 %v896_v13, %v754_v34  ;;  %v12275_v34 = vld [vmem:[%s22189_s0 + $0x1e0] sm:$0xf]  ;;  %v17589_v53 = vsel %vm1499_vm6, %v1510_v48, %v1519_v35  ;;  %v1743_v48 = vpack.c.b16 %v1731_v55, %v1731_v55  ;;  %v16153_v13 = vld [vmem:[%s22189_s0 + $0x1ec] sm:$0xf] }
  0xbd   : > { %v12276_v49 = vor.u32 %v16154_v37, %v12275_v34  ;;  %v12288_v23 = vor.u32 %v16153_v13, %v12285_v14 }
  0xbe   : > { %v1768_v2 = vsel %vm694_vm0, %v1743_v48, 0  ;;  %v1700_v48 = vrot.slane %v17532_v6, 3 }
  0xbf   : > { %1777 = vmatpush.bf16.msra.mxu0 %v12276_v49  ;;  %1832 = vmatpush.bf16.msrb.mxu3 %v1768_v2 }
  0xc2   : > { %v858_v52 = vpop.f32.mrf.mxu0  ;;  %v877_v51 = vpop.f32.mrf.mxu1 }
  0xc3   : > { %v898_v33 = vpop.f32.mrf.mxu2  ;;  %v17578_v42 = vpop.f32.mrf.mxu3  ;;  %v17586_v46 = vadd.f32 %v858_v52, %v17461_v26  ;;  %v17592_v45 = vadd.f32 %v877_v51, %v17463_v24  ;;  %v17604_v26 = vld [vmem:[%s22189_s0 + $0x2c8] sm:$0x77]  ;;  %v1694_v24 = vunpack.c.l.b16 %v1681_v44 }
  0xc4   : > { %v17580_v43 = vadd.f32 %v898_v33, %v756_v58  ;;  %v2009_v56 = vunpack.c.l.b16 %v17604_v26 }
  0xc5   : > { %12255 = vmatmul.msk.bf16.vlgmr.msrb.gmra.mxu0 %vm687_vm2, %v17530_v4  ;;  %12257 = vmatmul.msk.bf16.vlgmr.msrb.gmra.mxu1 %vm687_vm2, %v17530_v4 }
  0xc6   : > { %v2021_v50 = vpack.c.b16 %v2009_v56, %v2009_v56  ;;  %v17706_v56 = vunpack.c.h.b16 %v17686_v54 }
  0xc8   : > { %12260 = vmatmul.msk.bf16.gmra.mxu2 %vm687_vm2, %v17589_v53  ;;  %12212 = vmatmul.msk.bf16.gmra.mxu3 %vm687_vm2, %v17469_v28  ;;  %v1695_v28 = vpack.c.b16 %v17204_v1, %v1694_v24  ;;  %v2044_v32 = vsel %vm694_vm0, %v2021_v50, 0  ;;  %v12368_v1 = vld [vmem:[%s22189_s0 + $0x2a8] sm:$0xf] }
  0xc9   : > { %2092 = vmatpush.bf16.msrb.mxu2 %v2044_v32 }
  0xca   : > { %v860_v60 = vpop.f32.mrf.mxu0  ;;  %v879_v0 = vpop.f32.mrf.mxu1  ;;  %v1697_v10 = vrot.slane %v1695_v28, 3  ;;  %v16169_v28 = vld [vmem:[%s22189_s0 + $0x284] sm:$0xf] }
  0xcb   : > { %v901_v57 = vpop.f32.mrf.mxu2  ;;  %v17610_v58 = vpop.f32.mrf.mxu3  ;;  %v17616_v61 = vadd.f32 %v860_v60, %v17490_v40  ;;  %v17622_v7 = vadd.f32 %v879_v0, %v17492_v47  ;;  %v12301_v40 = vld [vmem:[%s22189_s0 + $0x218] sm:$0xf0]  ;;  %v16176_v47 = vld [vmem:[%s22189_s0 + $0x2b4] sm:$0xf0]  ;;  %v12344_v60 = vld [vmem:[%s22189_s0 + $0x280] sm:$0xf] }
  0xcc   : > { %v17613_v59 = vadd.f32 %v901_v57, %v17488_v39  ;;  %v16157_v39 = vld [vmem:[%s22189_s0 + $0x20c] sm:$0xf]  ;;  %v12369_v9 = vor.u32 %v16176_v47, %v12368_v1  ;;  %v17660_v29 = vsel %vm1696_vm7, %v1697_v10, %v1698_v11  ;;  %v16171_v0 = vld [vmem:[%s22189_s0 + $0x28c] sm:$0xf0] }
  0xcd   : > { %v12304_v8 = vor.u32 %v16157_v39, %v12301_v40  ;;  %v12345_v39 = vor.u32 %v16171_v0, %v12344_v60  ;;  %v12346_v40 = vld [vmem:[%s22189_s0 + $0x290] sm:$0xf0] }
  0xce   : > { %2093 = vmatpush.bf16.msrb.mxu2 %v12369_v9  ;;  %v17733_v9 = vsel %vm1696_vm7, %v1698_v11, %v1700_v48 }
  0xcf   : > { %1833 = vmatpush.bf16.msrb.mxu3 %v12304_v8 }
  0xd2   : > { %v863_v22 = vpop.f32.mrf.mxu0  ;;  %v882_v16 = vpop.f32.mrf.mxu1  ;;  %2094 = vmatpush.bf16.msrb.mxu2 %v12353_v30 }
  0xd3   : > { %v903_v12 = vpop.f32.mrf.mxu2  ;;  %v17646_v21 = vpop.f32.mrf.mxu3  ;;  %v17655_v27 = vadd.f32 %v863_v22, %v17522_v63  ;;  %v17663_v31 = vadd.f32 %v882_v16, %v17527_v3  ;;  %1834 = vmatpush.bf16.msrb.mxu3 %v12288_v23  ;;  %v1966_v16 = vrot.slane %v1964_v36, 1 }
  0xd4   : > { %v17649_v5 = vadd.f32 %v903_v12, %v17520_v62  ;;  %v12336_v62 = vld [vmem:[%s22189_s0 + $0x2c0] sm:$0x77] }
  0xd5   : > { %12256 = vmatmul.msk.bf16.gmra.mxu0 %vm687_vm2, %v17589_v53  ;;  %12258 = vmatmul.msk.bf16.gmra.mxu1 %vm687_vm2, %v17589_v53  ;;  %v2007_v63 = vunpack.c.l.b16 %v12336_v62  ;;  %v2008_v3 = vunpack.c.h.b16 %v12336_v62 }
  0xd7   : > { %v2019_v33 = vpack.c.b16 %v2007_v63, %v2007_v63  ;;  %v2020_v34 = vpack.c.b16 %v2008_v3, %v2008_v3 }
  0xd8   : > { %12309 = vmatmul.msk.bf16.vlgmr.msra.gmra.mxu2 %vm687_vm2, %v17660_v29  ;;  %12261 = vmatmul.msk.bf16.vlgmr.msra.gmra.mxu3 %vm687_vm2, %v17530_v4 }
  0xd9   : > { %v2038_v4 = vsel %vm694_vm0, %v2019_v33, 0  ;;  %v2041_v44 = vsel %vm694_vm0, %v2020_v34, 0 }
  0xda   : > { %v865_v52 = vpop.f32.mrf.mxu0  ;;  %v884_v51 = vpop.f32.mrf.mxu1  ;;  %2054 = vmatpush.bf16.msrb.mxu0 %v2038_v4  ;;  %2073 = vmatpush.bf16.msrb.mxu1 %v2041_v44  ;;  %v16170_v44 = vld [vmem:[%s22189_s0 + $0x28c] sm:$0xf] }
  0xdb   : > { %v1061_v35 = vpop.f32.mrf.mxu2  ;;  %v915_v37 = vpop.f32.mrf.mxu3  ;;  %v17683_v41 = vadd.f32 %v865_v52, %v17551_v19  ;;  %v17691_v24 = vadd.f32 %v884_v51, %v17553_v20  ;;  %v16173_v19 = vld [vmem:[%s22189_s0 + $0x2a4] sm:$0xf]  ;;  %v12362_v20 = vld [vmem:[%s22189_s0 + $0x2b0] sm:$0xf0] }
  0xdc   : > { %v17677_v38 = vadd.f32 %v1061_v35, %v17549_v18  ;;  %v17680_v49 = vadd.f32 %v915_v37, %v17547_v15  ;;  %v12360_v15 = vld [vmem:[%s22189_s0 + $0x2a0] sm:$0xf]  ;;  %v16175_v18 = vld [vmem:[%s22189_s0 + $0x2ac] sm:$0xf0]  ;;  %v12365_v57 = vor.u32 %v16173_v19, %v12362_v20  ;;  %v16174_v35 = vld [vmem:[%s22189_s0 + $0x2ac] sm:$0xf]  ;;  %v1967_v37 = vor.u32 %v1966_v16, %v1962_v25 }
  0xdd   : > { %v12361_v55 = vor.u32 %v16175_v18, %v12360_v15  ;;  %v12327_v51 = vld [vmem:[%s17034_s29 + $0x24] sm:$0x1]  ;;  %v12354_v15 = vld [vmem:[%s22189_s0 + $0x298] sm:$0xf0]  ;;  %v12392_v18 = vld [vmem:[%s22189_s0 + $0x238] sm:$0xf] }
  0xde   : > { %2074 = vmatpush.bf16.msrb.mxu1 %v12365_v57  ;;  %v1957_v57 = vunpack.c.l.b16 %v12327_v51  ;;  %v12357_v48 = vor.u32 %v16170_v44, %v12354_v15  ;;  %v12400_v16 = vld [vmem:[%s22189_s0 + $0x250] sm:$0xf] }
  0xdf   : > { %2055 = vmatpush.bf16.msrb.mxu0 %v12361_v55 }
  0xe2   : > { %v1023_v6 = vpop.f32.mrf.mxu0  ;;  %v1042_v47 = vpop.f32.mrf.mxu1 }
  0xe3   : > { %v1063_v50 = vpop.f32.mrf.mxu2  ;;  %v917_v2 = vpop.f32.mrf.mxu3  ;;  %v17728_v8 = vadd.f32 %v1023_v6, %v17586_v46  ;;  %v17736_v10 = vadd.f32 %v1042_v47, %v17592_v45  ;;  %2056 = vmatpush.bf16.msrb.mxu0 %v12345_v39  ;;  %v17751_v46 = vld [vmem:[%s22189_s0 + $0x278] sm:$0x77]  ;;  %v2010_v45 = vunpack.c.h.b16 %v17604_v26 }
  0xe4   : > { %v17719_v32 = vadd.f32 %v1063_v50, %v17580_v43  ;;  %v17725_v1 = vadd.f32 %v917_v2, %v17578_v42  ;;  %v12349_v43 = vor.u32 %v16169_v28, %v12346_v40  ;;  %v17745_v42 = vld [vmem:[%s17034_s29 + $0x1c] sm:$0xff]  ;;  %v2153_v11 = vunpack.c.l.b16 %v17751_v46  ;;  %v16164_v50 = vld [vmem:[%s22189_s0 + $0x244] sm:$0xf0] }
  0xe5   : > { %12305 = vmatmul.msk.bf16.vlgmr.msra.gmra.mxu0 %vm687_vm2, %v17660_v29  ;;  %12307 = vmatmul.msk.bf16.vlgmr.msra.gmra.mxu1 %vm687_vm2, %v17660_v29  ;;  %v2022_v13 = vpack.c.b16 %v2010_v45, %v2010_v45  ;;  %v17762_v30 = vshll.u32 %v17745_v42, 16  ;;  %v12393_v6 = vor.u32 %v16164_v50, %v12392_v18 }
  0xe6   : > { %2075 = vmatpush.bf16.msrb.mxu1 %v12349_v43  ;;  %v2165_v14 = vpack.c.b16 %v2153_v11, %v2153_v11 }
  0xe7   : > { %22192 = vst [vmem:[#allocation3_spill] sm:$0xff] %v17762_v30  ;;  %v2047_v63 = vsel %vm694_vm0, %v2022_v13, 0  ;;  %v1971_v52 = vrot.slane %v17762_v30, 1 }
  0xe8   : > { %12310 = vmatmul.msk.bf16.gmra.mxu2 %vm687_vm2, %v17733_v9  ;;  %12262 = vmatmul.msk.bf16.gmra.mxu3 %vm687_vm2, %v17589_v53 }
  0xe9   : > { %2111 = vmatpush.bf16.msra.mxu3 %v2047_v63  ;;  %v17811_v2 = vsel %vm616_vm1, %v1967_v37, %v1971_v52 }
  0xea   : > { %v1025_v23 = vpop.f32.mrf.mxu0  ;;  %v1044_v62 = vpop.f32.mrf.mxu1 }
  0xeb   : > { %v1066_v12 = vpop.f32.mrf.mxu2  ;;  %v920_v17 = vpop.f32.mrf.mxu3  ;;  %v17768_v26 = vadd.f32 %v1025_v23, %v17616_v61  ;;  %v17773_v3 = vadd.f32 %v1044_v62, %v17622_v7  ;;  %v12408_v61 = vld [vmem:[%s22189_s0 + $0x258] sm:$0xf]  ;;  %v16168_v7 = vld [vmem:[%s22189_s0 + $0x264] sm:$0xf0] }
  0xec   : > { %v17758_v22 = vadd.f32 %v1066_v12, %v17613_v59  ;;  %v17765_v53 = vadd.f32 %v920_v17, %v17610_v58  ;;  %v2186_v59 = vsel %vm694_vm0, %v2165_v14, 0  ;;  %v12370_v58 = vld [vmem:[%s22189_s0 + $0x2b8] sm:$0xf0]  ;;  %v12409_v34 = vor.u32 %v16168_v7, %v12408_v61  ;;  %v12384_v61 = vld [vmem:[%s22189_s0 + $0x230] sm:$0xf] }
  0xed   : > { %2234 = vmatpush.bf16.msra.mxu2 %v2186_v59  ;;  %v12373_v33 = vor.u32 %v16174_v35, %v12370_v58  ;;  %v17833_v12 = vshrl.u32 %v17745_v42, 16  ;;  %v16161_v7 = vld [vmem:[%s22189_s0 + $0x234] sm:$0xf] }
  0xef   : > { %2112 = vmatpush.bf16.msra.mxu3 %v12373_v33  ;;  %22193 = vst [vmem:[#allocation4_spill] sm:$0xff] %v17833_v12  ;;  %v1975_v59 = vor.u32 %v17833_v12, %v1971_v52  ;;  %v16163_v33 = vld [vmem:[%s22189_s0 + $0x23c] sm:$0xf0] }
  0xf0   : > { %v12385_v51 = vor.u32 %v16163_v33, %v12384_v61 }
  0xf1   : > { %2235 = vmatpush.bf16.msra.mxu2 %v12409_v34 }
  0xf2   : > { %v1028_v20 = vpop.f32.mrf.mxu0  ;;  %v1047_v28 = vpop.f32.mrf.mxu1 }
  0xf3   : > { %v1068_v4 = vpop.f32.mrf.mxu2  ;;  %v922_v19 = vpop.f32.mrf.mxu3  ;;  %v17808_v0 = vadd.f32 %v1028_v20, %v17655_v27  ;;  %2113 = vmatpush.bf16.msra.mxu3 %v12357_v48  ;;  %v12325_v27 = vld [vmem:[%s22189_s0 + $0x270] sm:$0x77] }
  0xf4   : > { %v17799_v55 = vadd.f32 %v1068_v4, %v17649_v5  ;;  %v17805_v60 = vadd.f32 %v922_v19, %v17646_v21  ;;  %v17814_v5 = vadd.f32 %v1047_v28, %v17663_v31  ;;  %v17822_v21 = vpack.c.b16 %v1957_v57, %v1957_v57  ;;  %v12386_v4 = vld [vmem:[%s22189_s0 + $0x240] sm:$0xf0] }
  0xf5   : > { %12306 = vmatmul.msk.bf16.gmra.mxu0 %vm687_vm2, %v17733_v9  ;;  %12308 = vmatmul.msk.bf16.gmra.mxu1 %vm687_vm2, %v17733_v9  ;;  %v2151_v31 = vunpack.c.l.b16 %v12325_v27  ;;  %v2152_v39 = vunpack.c.h.b16 %v12325_v27  ;;  %v12389_v20 = vor.u32 %v16161_v7, %v12386_v4 }
  0xf6   : > { %2236 = vmatpush.bf16.msra.mxu2 %v12393_v6  ;;  %v1977_v13 = vshll.u32 %v17822_v21, 16 }
  0xf7   : > { %v2163_v47 = vpack.c.b16 %v2151_v31, %v2151_v31  ;;  %v2164_v43 = vpack.c.b16 %v2152_v39, %v2152_v39 }
  0xf8   : > { %12378 = vmatmul.msk.bf16.vlgmr.msrb.gmra.mxu2 %vm687_vm2, %v17811_v2  ;;  %12311 = vmatmul.msk.bf16.vlgmr.msrb.gmra.mxu3 %vm687_vm2, %v17660_v29  ;;  %v1979_v35 = vrot.slane %v1977_v13, 1  ;;  %v16162_v13 = vld [vmem:[%s22189_s0 + $0x23c] sm:$0xf] }
  0xf9   : > { %v2180_v23 = vsel %vm694_vm0, %v2163_v47, 0  ;;  %v2183_v25 = vsel %vm694_vm0, %v2164_v43, 0 }
  0xfa   : > { %v1030_v11 = vpop.f32.mrf.mxu0  ;;  %v1049_v17 = vpop.f32.mrf.mxu1  ;;  %2196 = vmatpush.bf16.msra.mxu0 %v2180_v23  ;;  %2215 = vmatpush.bf16.msra.mxu1 %v2183_v25  ;;  %v17882_v19 = vsel %vm616_vm1, %v1975_v59, %v1979_v35  ;;  %v12443_v23 = vld [vmem:[%s22189_s0 + $0x2d8] sm:$0xf] }
  0xfb   : > { %v1258_v40 = vpop.f32.mrf.mxu2  ;;  %v1080_v36 = vpop.f32.mrf.mxu3  ;;  %v17840_v29 = vadd.f32 %v1030_v11, %v17683_v41  ;;  %v16165_v41 = vld [vmem:[%s22189_s0 + $0x254] sm:$0xf] }
  0xfc   : > { %v17830_v45 = vadd.f32 %v1258_v40, %v17677_v38  ;;  %v17837_v14 = vadd.f32 %v1080_v36, %v17680_v49  ;;  %v17845_v38 = vadd.f32 %v1049_v17, %v17691_v24  ;;  %v16167_v49 = vld [vmem:[%s22189_s0 + $0x25c] sm:$0xf0]  ;;  %v12402_v24 = vld [vmem:[%s22189_s0 + $0x260] sm:$0xf0]  ;;  %v12394_v17 = vld [vmem:[%s22189_s0 + $0x248] sm:$0xf0] }
  0xfd   : > { %v12401_v62 = vor.u32 %v16167_v49, %v12400_v16  ;;  %v12405_v63 = vor.u32 %v16165_v41, %v12402_v24  ;;  %v12397_v41 = vor.u32 %v16162_v13, %v12394_v17 }
  0xff   : > { %2197 = vmatpush.bf16.msra.mxu0 %v12401_v62  ;;  %2216 = vmatpush.bf16.msra.mxu1 %v12405_v63  ;;  %v16180_v62 = vld [vmem:[%s22189_s0 + $0x2e4] sm:$0xf0] }
 0x100   : > { %v12444_v35 = vor.u32 %v16180_v62, %v12443_v23 }
 0x102   : > { %v1220_v52 = vpop.f32.mrf.mxu0  ;;  %v1239_v18 = vpop.f32.mrf.mxu1 }
 0x103   : > { %v1260_v58 = vpop.f32.mrf.mxu2  ;;  %v1082_v34 = vpop.f32.mrf.mxu3  ;;  %v17879_v15 = vadd.f32 %v1220_v52, %v17728_v8  ;;  %2198 = vmatpush.bf16.msra.mxu0 %v12385_v51  ;;  %2217 = vmatpush.bf16.msra.mxu1 %v12389_v20  ;;  %v2154_v8 = vunpack.c.h.b16 %v17751_v46 }
 0x104   : > { %v17870_v37 = vadd.f32 %v1260_v58, %v17719_v32  ;;  %v17876_v44 = vadd.f32 %v1082_v34, %v17725_v1  ;;  %v17885_v32 = vadd.f32 %v1239_v18, %v17736_v10  ;;  %v17896_v1 = vld [vmem:[%s22189_s0 + $0x318] sm:$0x77] }
 0x105   : > { %12374 = vmatmul.msk.bf16.vlgmr.msrb.gmra.mxu0 %vm687_vm2, %v17811_v2  ;;  %12376 = vmatmul.msk.bf16.vlgmr.msrb.gmra.mxu1 %vm687_vm2, %v17811_v2  ;;  %v2315_v10 = vunpack.c.l.b16 %v17896_v1  ;;  %v2166_v48 = vpack.c.b16 %v2154_v8, %v2154_v8  ;;  %v12451_v8 = vld [vmem:[%s22189_s0 + $0x2f0] sm:$0xf] }
 0x107   : > { %v2327_v50 = vpack.c.b16 %v2315_v10, %v2315_v10 }
 0x108   : > { %12379 = vmatmul.msk.bf16.gmra.mxu2 %vm687_vm2, %v17882_v19  ;;  %12312 = vmatmul.msk.bf16.gmra.mxu3 %vm687_vm2, %v17733_v9  ;;  %v2189_v9 = vsel %vm694_vm0, %v2166_v48, 0 }
 0x109   : > { %v2350_v46 = vsel %vm694_vm0, %v2327_v50, 0  ;;  %2253 = vmatpush.bf16.msrb.mxu3 %v2189_v9  ;;  %v12435_v50 = vld [vmem:[%s22189_s0 + $0x2d0] sm:$0xf] }
 0x10a   : > { %v1222_v27 = vpop.f32.mrf.mxu0  ;;  %v1241_v40 = vpop.f32.mrf.mxu1  ;;  %2398 = vmatpush.bf16.msrb.mxu2 %v2350_v46 }
 0x10b   : > { %v1263_v57 = vpop.f32.mrf.mxu2  ;;  %v1085_v28 = vpop.f32.mrf.mxu3  ;;  %v17909_v39 = vadd.f32 %v1222_v27, %v17768_v26  ;;  %v17914_v47 = vadd.f32 %v1241_v40, %v17773_v3  ;;  %v12459_v26 = vld [vmem:[%s22189_s0 + $0x2f8] sm:$0xf]  ;;  %v16184_v3 = vld [vmem:[%s22189_s0 + $0x304] sm:$0xf0]  ;;  %v16177_v27 = vld [vmem:[%s22189_s0 + $0x2d4] sm:$0xf] }
 0x10c   : > { %v17903_v6 = vadd.f32 %v1263_v57, %v17758_v22  ;;  %v17906_v31 = vadd.f32 %v1085_v28, %v17765_v53  ;;  %v16166_v22 = vld [vmem:[%s22189_s0 + $0x25c] sm:$0xf]  ;;  %v12410_v53 = vld [vmem:[%s22189_s0 + $0x268] sm:$0xf0]  ;;  %v12460_v36 = vor.u32 %v16184_v3, %v12459_v26  ;;  %v16179_v28 = vld [vmem:[%s22189_s0 + $0x2dc] sm:$0xf0] }
 0x10d   : > { %v12413_v43 = vor.u32 %v16166_v22, %v12410_v53  ;;  %v12436_v46 = vor.u32 %v16179_v28, %v12435_v50  ;;  %v12437_v22 = vld [vmem:[%s22189_s0 + $0x2e0] sm:$0xf0]  ;;  %v12422_v3 = vld [vmem:[%s17034_s29 + $0x14] sm:$0xe] }
 0x10e   : > { %2399 = vmatpush.bf16.msrb.mxu2 %v12460_v36  ;;  %v2280_v36 = vunpack.c.l.b16 %v12422_v3 }
 0x10f   : > { %2254 = vmatpush.bf16.msrb.mxu3 %v12413_v43  ;;  %v12440_v43 = vor.u32 %v16177_v27, %v12437_v22 }
 0x112   : > { %v1225_v49 = vpop.f32.mrf.mxu0  ;;  %v1244_v59 = vpop.f32.mrf.mxu1  ;;  %2400 = vmatpush.bf16.msrb.mxu2 %v12444_v35  ;;  %v18035_v35 = vpack.c.b16 %v17706_v56, %v2280_v36 }
 0x113   : > { %v1265_v11 = vpop.f32.mrf.mxu2  ;;  %v1087_v25 = vpop.f32.mrf.mxu3  ;;  %v17947_v63 = vadd.f32 %v1225_v49, %v17808_v0  ;;  %v17950_v58 = vadd.f32 %v1244_v59, %v17814_v5  ;;  %2255 = vmatpush.bf16.msrb.mxu3 %v12397_v41 }
 0x114   : > { %v17938_v16 = vadd.f32 %v1265_v11, %v17799_v55  ;;  %v17944_v24 = vadd.f32 %v1087_v25, %v17805_v60  ;;  %v12431_v55 = vld [vmem:[%s22189_s0 + $0x310] sm:$0x77]  ;;  %v2316_v11 = vunpack.c.h.b16 %v17896_v1 }
 0x115   : > { %12375 = vmatmul.msk.bf16.gmra.mxu0 %vm687_vm2, %v17882_v19  ;;  %12377 = vmatmul.msk.bf16.gmra.mxu1 %vm687_vm2, %v17882_v19  ;;  %v2313_v60 = vunpack.c.l.b16 %v12431_v55  ;;  %v2314_v0 = vunpack.c.h.b16 %v12431_v55  ;;  %v16182_v55 = vld [vmem:[%s22189_s0 + $0x2fc] sm:$0xf] }
 0x116   : > { %v2328_v23 = vpack.c.b16 %v2316_v11, %v2316_v11 }
 0x117   : > { %v2325_v61 = vpack.c.b16 %v2313_v60, %v2313_v60  ;;  %v2326_v33 = vpack.c.b16 %v2314_v0, %v2314_v0  ;;  %v12510_v60 = vld [vmem:[%s22189_s0 + $0x348] sm:$0xf] }
 0x118   : > { %12418 = vmatmul.msk.bf16.vlgmr.msra.gmra.mxu2 %vm687_vm2, %v17686_v54  ;;  %12380 = vmatmul.msk.bf16.vlgmr.msra.gmra.mxu3 %vm687_vm2, %v17811_v2 }
 0x119   : > { %v2344_v18 = vsel %vm694_vm0, %v2325_v61, 0  ;;  %v2347_v2 = vsel %vm694_vm0, %v2326_v33, 0  ;;  %v16192_v61 = vld [vmem:[%s22189_s0 + $0x354] sm:$0xf0] }
 0x11a   : > { %v1227_v34 = vpop.f32.mrf.mxu0  ;;  %v1246_v4 = vpop.f32.mrf.mxu1  ;;  %2360 = vmatpush.bf16.msrb.mxu0 %v2344_v18  ;;  %2379 = vmatpush.bf16.msrb.mxu1 %v2347_v2  ;;  %v12511_v33 = vor.u32 %v16192_v61, %v12510_v60  ;;  %v16178_v18 = vld [vmem:[%s22189_s0 + $0x2dc] sm:$0xf]  ;;  %v12445_v2 = vld [vmem:[%s22189_s0 + $0x2e8] sm:$0xf0]  ;;  %v12486_v61 = vld [vmem:[%s22189_s0 + $0x320] sm:$0xf] }
 0x11b   : > { %v17963_v5 = vpop.f32.mrf.mxu2  ;;  %v1277_v7 = vpop.f32.mrf.mxu3  ;;  %v17969_v51 = vadd.f32 %v1227_v34, %v17840_v29  ;;  %v17974_v20 = vadd.f32 %v1246_v4, %v17845_v38  ;;  %v16181_v29 = vld [vmem:[%s22189_s0 + $0x2f4] sm:$0xf]  ;;  %v12453_v38 = vld [vmem:[%s22189_s0 + $0x300] sm:$0xf0]  ;;  %v2283_v34 = vrot.slane %v17745_v42, 1 }
 0x11c   : > { %v17966_v52 = vadd.f32 %v1277_v7, %v17837_v14  ;;  %v16183_v14 = vld [vmem:[%s22189_s0 + $0x2fc] sm:$0xf0]  ;;  %v12456_v57 = vor.u32 %v16181_v29, %v12453_v38  ;;  %v2282_v7 = vrot.slane %v18035_v35, 1  ;;  %v16188_v38 = vld [vmem:[%s22189_s0 + $0x334] sm:$0xf0] }
 0x11d   : > { %v12452_v10 = vor.u32 %v16183_v14, %v12451_v8  ;;  %v12494_v8 = vld [vmem:[%s22189_s0 + $0x328] sm:$0xf] }
 0x11e   : > { %2380 = vmatpush.bf16.msrb.mxu1 %v12456_v57  ;;  %v18075_v28 = vsel %vm940_vm3, %v2282_v7, %v2283_v34  ;;  %v12495_v27 = vor.u32 %v16188_v38, %v12494_v8  ;;  %v16185_v7 = vld [vmem:[%s22189_s0 + $0x324] sm:$0xf]  ;;  %v12488_v8 = vld [vmem:[%s22189_s0 + $0x330] sm:$0xf0] }
 0x11f   : > { %2361 = vmatpush.bf16.msrb.mxu0 %v12452_v10  ;;  %v12448_v10 = vor.u32 %v16178_v18, %v12445_v2  ;;  %v12491_v38 = vor.u32 %v16185_v7, %v12488_v8  ;;  %v12561_v7 = vld [vmem:[%s22189_s0 + $0x398] sm:$0xf]  ;;  %v16200_v8 = vld [vmem:[%s22189_s0 + $0x3a4] sm:$0xf0] }
 0x122   : > { %v17999_v9 = vpop.f32.mrf.mxu0  ;;  %v18007_v26 = vpop.f32.mrf.mxu1  ;;  %2381 = vmatpush.bf16.msrb.mxu1 %v12440_v43 }
 0x123   : > { %v17988_v48 = vpop.f32.mrf.mxu2  ;;  %v1279_v40 = vpop.f32.mrf.mxu3  ;;  %2362 = vmatpush.bf16.msrb.mxu0 %v12436_v46 }
 0x124   : > { %v18005_v53 = vadd.f32 %v1279_v40, %v17876_v44  ;;  %v18019_v44 = vld [vmem:[%s22189_s0 + $0x368] sm:$0x77] }
 0x125   : > { %12414 = vmatmul.msk.bf16.vlgmr.msra.gmra.mxu0 %vm687_vm2, %v17686_v54  ;;  %12416 = vmatmul.msk.bf16.vlgmr.msra.gmra.mxu1 %vm687_vm2, %v17686_v54  ;;  %v2511_v13 = vunpack.c.l.b16 %v18019_v44 }
 0x127   : > { %v2523_v25 = vpack.c.b16 %v2511_v13, %v2511_v13 }
 0x128   : > { %12419 = vmatmul.msk.bf16.gmra.mxu2 %vm687_vm2, %v17745_v42  ;;  %12381 = vmatmul.msk.bf16.gmra.mxu3 %vm687_vm2, %v17882_v19  ;;  %v2353_v19 = vsel %vm694_vm0, %v2328_v23, 0 }
 0x129   : > { %v2546_v1 = vsel %vm694_vm0, %v2523_v25, 0  ;;  %2417 = vmatpush.bf16.msra.mxu3 %v2353_v19  ;;  %v16189_v19 = vld [vmem:[%s22189_s0 + $0x344] sm:$0xf] }
 0x12a   : > { %v18027_v41 = vpop.f32.mrf.mxu0  ;;  %v18032_v59 = vpop.f32.mrf.mxu1  ;;  %2594 = vmatpush.bf16.msra.mxu2 %v2546_v1 }
 0x12b   : > { %v18025_v17 = vpop.f32.mrf.mxu2  ;;  %v1282_v49 = vpop.f32.mrf.mxu3 }
 0x12c   : > { %v18030_v62 = vadd.f32 %v1282_v49, %v17906_v31  ;;  %v12461_v31 = vld [vmem:[%s22189_s0 + $0x308] sm:$0xf0]  ;;  %v16191_v49 = vld [vmem:[%s22189_s0 + $0x34c] sm:$0xf0] }
 0x12d   : > { %v12464_v0 = vor.u32 %v16182_v55, %v12461_v31  ;;  %v12504_v55 = vld [vmem:[%s22189_s0 + $0x350] sm:$0xf0]  ;;  %v2285_v31 = vrot.slane %v17822_v21, 1 }
 0x12e   : > { %2595 = vmatpush.bf16.msra.mxu2 %v12511_v33  ;;  %v12507_v60 = vor.u32 %v16189_v19, %v12504_v55  ;;  %v16187_v33 = vld [vmem:[%s22189_s0 + $0x32c] sm:$0xf0]  ;;  %v2471_v55 = vrot.slane %v17762_v30, 2 }
 0x12f   : > { %2418 = vmatpush.bf16.msra.mxu3 %v12464_v0  ;;  %v12487_v2 = vor.u32 %v16187_v33, %v12486_v61  ;;  %v16190_v61 = vld [vmem:[%s22189_s0 + $0x34c] sm:$0xf]  ;;  %v12512_v33 = vld [vmem:[%s22189_s0 + $0x358] sm:$0xf0] }
 0x132   : > { %v18064_v29 = vpop.f32.mrf.mxu0  ;;  %v18072_v50 = vpop.f32.mrf.mxu1  ;;  %2596 = vmatpush.bf16.msra.mxu2 %v12495_v27  ;;  %v2463_v27 = vshrl.u32 %v18035_v35, 16 }
 0x133   : > { %v18053_v4 = vpop.f32.mrf.mxu2  ;;  %v1284_v14 = vpop.f32.mrf.mxu3  ;;  %2419 = vmatpush.bf16.msra.mxu3 %v12448_v10  ;;  %v18132_v10 = vsel %vm940_vm3, %v2283_v34, %v2285_v31  ;;  %v18145_v34 = vld [vmem:[%s22189_s0 + $0x3b8] sm:$0x77] }
 0x134   : > { %v18070_v57 = vadd.f32 %v1284_v14, %v17944_v24  ;;  %v12482_v24 = vld [vmem:[%s22189_s0 + $0x360] sm:$0x77] }
 0x135   : > { %12415 = vmatmul.msk.bf16.gmra.mxu0 %vm687_vm2, %v17745_v42  ;;  %12417 = vmatmul.msk.bf16.gmra.mxu1 %vm687_vm2, %v17745_v42  ;;  %v2509_v40 = vunpack.c.l.b16 %v12482_v24  ;;  %v2510_v46 = vunpack.c.h.b16 %v12482_v24  ;;  %v2466_v24 = vshll.u32 %v18035_v35, 16 }
 0x136   : > { %22194 = vst [vmem:[#allocation5_spill] sm:$0xff] %v18070_v57 }
 0x137   : > { %v2521_v43 = vpack.c.b16 %v2509_v40, %v2509_v40  ;;  %v2522_v3 = vpack.c.b16 %v2510_v46, %v2510_v46  ;;  %v2512_v40 = vunpack.c.h.b16 %v18019_v44  ;;  %v2691_v46 = vunpack.c.l.b16 %v18145_v34 }
 0x138   : > { %12469 = vmatmul.msk.bf16.vlgmr.msrb.gmra.mxu2 %vm687_vm2, %v18075_v28  ;;  %12420 = vmatmul.msk.bf16.vlgmr.msrb.gmra.mxu3 %vm687_vm2, %v17686_v54  ;;  %v12502_v54 = vld [vmem:[%s22189_s0 + $0x340] sm:$0xf] }
 0x139   : > { %v2540_v23 = vsel %vm694_vm0, %v2521_v43, 0  ;;  %v2543_v25 = vsel %vm694_vm0, %v2522_v3, 0  ;;  %v12503_v1 = vor.u32 %v16191_v49, %v12502_v54  ;;  %v2524_v3 = vpack.c.b16 %v2512_v40, %v2512_v40 }
 0x13a   : > { %v18092_v11 = vpop.f32.mrf.mxu0  ;;  %v18094_v13 = vpop.f32.mrf.mxu1  ;;  %2556 = vmatpush.bf16.msra.mxu0 %v2540_v23  ;;  %2575 = vmatpush.bf16.msra.mxu1 %v2543_v25  ;;  %v2703_v23 = vpack.c.b16 %v2691_v46, %v2691_v46  ;;  %v2465_v54 = vrot.slane %v2463_v27, 1  ;;  %v2468_v49 = vrot.slane %v2466_v24, 2  ;;  %v12562_v40 = vor.u32 %v16200_v8, %v12561_v7  ;;  %v18211_v7 = vld [vmem:[%s22197_s21] sm:$0xf]  ;;  %v12533_v8 = vld [vmem:[%s22189_s0 + $0x3b0] sm:$0x77] }
 0x13b   : > { %v18088_v22 = vpop.f32.mrf.mxu2  ;;  %v18090_v36 = vpop.f32.mrf.mxu3  ;;  %v2549_v44 = vsel %vm694_vm0, %v2524_v3, 0  ;;  %v16186_v3 = vld [vmem:[%s22189_s0 + $0x32c] sm:$0xf] }
 0x13c   : > { %v2726_v31 = vsel %vm694_vm0, %v2703_v23, 0  ;;  %2613 = vmatpush.bf16.msrb.mxu3 %v2549_v44  ;;  %v12496_v23 = vld [vmem:[%s22189_s0 + $0x338] sm:$0xf0]  ;;  %v16196_v44 = vld [vmem:[%s22189_s0 + $0x384] sm:$0xf0] }
 0x13d   : > { %2774 = vmatpush.bf16.msrb.mxu2 %v2726_v31 }
 0x13e   : > { %2557 = vmatpush.bf16.msra.mxu0 %v12503_v1  ;;  %2576 = vmatpush.bf16.msra.mxu1 %v12507_v60  ;;  %v2470_v1 = vrot.slane %v17833_v12, 1  ;;  %v12473_v60 = vld [vmem:[%s17034_s29 + $0x24] sm:$0x3] }
 0x13f   : > { %v2460_v24 = vunpack.c.l.b16 %v12473_v60 }
 0x140   : > { %v18176_v27 = vor.u32 %v2471_v55, %v2470_v1  ;;  %v12499_v55 = vor.u32 %v16186_v3, %v12496_v23  ;;  %v2690_v3 = vunpack.c.h.b16 %v12533_v8 }
 0x141   : > { %2775 = vmatpush.bf16.msrb.mxu2 %v12562_v40  ;;  %v2689_v40 = vunpack.c.l.b16 %v12533_v8 }
 0x142   : > { %v18124_v21 = vpop.f32.mrf.mxu0  ;;  %v18129_v14 = vpop.f32.mrf.mxu1  ;;  %2558 = vmatpush.bf16.msra.mxu0 %v12487_v2  ;;  %2577 = vmatpush.bf16.msra.mxu1 %v12491_v38  ;;  %v12515_v2 = vor.u32 %v16190_v61, %v12512_v33  ;;  %v2469_v38 = vor.u32 %v2468_v49, %v2465_v54  ;;  %v12545_v54 = vld [vmem:[%s22189_s0 + $0x378] sm:$0xf]  ;;  %v18202_v61 = vpack.c.b16 %v2460_v24, %v2460_v24 }
 0x143   : > { %v18111_v0 = vpop.f32.mrf.mxu2  ;;  %v18122_v18 = vpop.f32.mrf.mxu3  ;;  %v12546_v33 = vor.u32 %v16196_v44, %v12545_v54  ;;  %v2701_v54 = vpack.c.b16 %v2689_v40, %v2689_v40  ;;  %v16199_v40 = vld [vmem:[%s22189_s0 + $0x39c] sm:$0xf0] }
 0x144   : > { %2614 = vmatpush.bf16.msrb.mxu3 %v12515_v2  ;;  %v18200_v60 = vsel %vm1121_vm4, %v2469_v38, %v18176_v27  ;;  %v1470_v2 = vadd.f32 %v17963_v5, %v17830_v45  ;;  %v2475_v38 = vshrl.u32 %v18202_v61, 16  ;;  %v2478_v24 = vshll.u32 %v18202_v61, 16 }
 0x145   : > { %12465 = vmatmul.msk.bf16.vlgmr.msrb.gmra.mxu0 %vm687_vm2, %v18075_v28  ;;  %12467 = vmatmul.msk.bf16.vlgmr.msrb.gmra.mxu1 %vm687_vm2, %v18075_v28  ;;  %v18226_v45 = vperm.slane %v18211_v7, 2 }
 0x146   : > { %2776 = vmatpush.bf16.msrb.mxu2 %v12546_v33  ;;  %v1667_v23 = vadd.f32 %v18088_v22, %v1470_v2  ;;  %v2477_v30 = vrot.slane %v2475_v38, 1  ;;  %v2480_v12 = vrot.slane %v2478_v24, 2  ;;  %v2720_v33 = vsel %vm694_vm0, %v2701_v54, 0  ;;  %v12553_v2 = vld [vmem:[%s22189_s0 + $0x390] sm:$0xf] }
 0x147   : > { %2736 = vmatpush.bf16.msrb.mxu0 %v2720_v33  ;;  %v16197_v38 = vld [vmem:[%s22189_s0 + $0x394] sm:$0xf]  ;;  %v1474_v24 = vadd.f32 %v17988_v48, %v17870_v37  ;;  %v1469_v33 = vadd.f32 %v18007_v26, %v17885_v32 }
 0x148   : > { %12470 = vmatmul.msk.bf16.gmra.mxu2 %vm687_vm2, %v18132_v10  ;;  %12421 = vmatmul.msk.bf16.gmra.mxu3 %vm687_vm2, %v17745_v42  ;;  %v2481_v54 = vor.u32 %v2480_v12, %v2477_v30  ;;  %v16195_v30 = vld [vmem:[%s22189_s0 + $0x37c] sm:$0xf0]  ;;  %v16193_v12 = vld [vmem:[%s22189_s0 + $0x374] sm:$0xf] }
 0x149   : > { %2615 = vmatpush.bf16.msrb.mxu3 %v12499_v55  ;;  %v2702_v55 = vpack.c.b16 %v2690_v3, %v2690_v3  ;;  %v12554_v3 = vor.u32 %v16199_v40, %v12553_v2  ;;  %v1666_v32 = vadd.f32 %v18129_v14, %v1469_v33  ;;  %v12539_v2 = vld [vmem:[%s22189_s0 + $0x380] sm:$0xf0] }
 0x14a   : > { %v18155_v35 = vpop.f32.mrf.mxu0  ;;  %v18157_v19 = vpop.f32.mrf.mxu1 }
 0x14b   : > { %v18151_v43 = vpop.f32.mrf.mxu2  ;;  %v18153_v25 = vpop.f32.mrf.mxu3  ;;  %v2723_v22 = vsel %vm694_vm0, %v2702_v55, 0  ;;  %2737 = vmatpush.bf16.msrb.mxu0 %v12554_v3 }
 0x14c   : > { %22195 = vst [vmem:[#allocation6_spill] sm:$0xff] %v18153_v25  ;;  %2755 = vmatpush.bf16.msrb.mxu1 %v2723_v22  ;;  %v1671_v22 = vadd.f32 %v18111_v0, %v1474_v24  ;;  %v18257_v25 = vperm.slane %v18211_v7, 0  ;;  %v18280_v24 = vsel %vm1121_vm4, %v18176_v27, %v2481_v54  ;;  %v1472_v27 = vadd.f32 %v18027_v41, %v17909_v39 }
 0x14d   : > { %v1473_v41 = vadd.f32 %v18032_v59, %v17914_v47 }
 0x152   : > { %v18191_v1 = vpop.f32.mrf.mxu0  ;;  %v18196_v31 = vpop.f32.mrf.mxu1 }
 0x153   : > { %v18178_v46 = vpop.f32.mrf.mxu2  ;;  %v18189_v49 = vpop.f32.mrf.mxu3 }
 0x154   : > { %22196 = vst [vmem:[#allocation7_spill] sm:$0xff] %v18189_v49 }
 0x155   : > { %12466 = vmatmul.msk.bf16.gmra.mxu0 %vm687_vm2, %v18132_v10  ;;  %12468 = vmatmul.msk.bf16.gmra.mxu1 %vm687_vm2, %v18132_v10 }
 0x158   : > { %12520 = vmatmul.msk.bf16.vlgmr.msra.gmra.mxu2 %vm687_vm2, %v18200_v60  ;;  %12471 = vmatmul.msk.bf16.vlgmr.msra.gmra.mxu3 %vm687_vm2, %v18075_v28 }
 0x15a   : > { %v18230_v57 = vpop.f32.mrf.mxu0  ;;  %v18232_v28 = vpop.f32.mrf.mxu1 }
 0x15b   : > { %v1817_v5 = vpop.f32.mrf.mxu2  ;;  %v18228_v44 = vpop.f32.mrf.mxu3 }
 0x15c   : > { %v1848_v49 = vadd.f32 %v1817_v5, %v1667_v23  ;;  %v12555_v23 = vld [vmem:[%s22189_s0 + $0x3a0] sm:$0xf0]  ;;  %v1468_v5 = vadd.f32 %v17999_v9, %v17879_v15  ;;  %v12537_v15 = vld [vmem:[%s22189_s0 + $0x370] sm:$0xf] }
 0x15d   : > { %v12558_v55 = vor.u32 %v16197_v38, %v12555_v23  ;;  %v12524_v23 = vld [vmem:[%s17034_s29 + $0x14] sm:$0xc] }
 0x15e   : > { %v1874_v8 = vadd.f32 %v18226_v45, %v1848_v49  ;;  %v1665_v37 = vadd.f32 %v18124_v21, %v1468_v5  ;;  %v18273_v21 = vperm.slane %v18211_v7, 1 }
 0x15f   : > { %2756 = vmatpush.bf16.msrb.mxu1 %v12558_v55  ;;  %v1478_v55 = vadd.f32 %v18025_v17, %v17903_v6  ;;  %v2656_v6 = vunpack.c.l.b16 %v12524_v23  ;;  %v2692_v17 = vunpack.c.h.b16 %v18145_v34  ;;  %v12612_v23 = vld [vmem:[%s22189_s0 + $0x3e8] sm:$0xf] }
 0x160   : > { %v1890_v49 = vmax.f32 %v1874_v8, 0.0  ;;  %v12538_v8 = vor.u32 %v16195_v30, %v12537_v15  ;;  %v1669_v30 = vadd.f32 %v18155_v35, %v1472_v27  ;;  %v16208_v27 = vld [vmem:[%s22189_s0 + $0x3f4] sm:$0xf0] }
 0x161   : > { %v18313_v47 = vpack.c.b16 %v17706_v56, %v2656_v6  ;;  %v12613_v6 = vor.u32 %v16208_v27, %v12612_v23 }
 0x162   : > { %1906 = vst [vmem:[#allocation2 + $0x10] sm:$0xff] %v1890_v49  ;;  %v1779_v0 = vpop.f32.mrf.mxu0  ;;  %v1798_v38 = vpop.f32.mrf.mxu1  ;;  %v12542_v49 = vor.u32 %v16193_v12, %v12539_v2  ;;  %2738 = vmatpush.bf16.msrb.mxu0 %v12538_v8 }
 0x163   : > { %v1819_v48 = vpop.f32.mrf.mxu2  ;;  %v18270_v9 = vpop.f32.mrf.mxu3  ;;  %v1846_v40 = vadd.f32 %v1779_v0, %v1665_v37  ;;  %v1847_v3 = vadd.f32 %v1798_v38, %v1666_v32  ;;  %v2704_v32 = vpack.c.b16 %v2692_v17, %v2692_v17  ;;  %v1477_v17 = vadd.f32 %v18072_v50, %v17950_v58 }
 0x164   : > { %v1852_v26 = vadd.f32 %v1819_v48, %v1671_v22  ;;  %2757 = vmatpush.bf16.msrb.mxu1 %v12542_v49  ;;  %v18299_v22 = vld [vmem:[%s22189_s0 + $0x408] sm:$0x77]  ;;  %v1675_v48 = vadd.f32 %v18151_v43, %v1478_v55 }
 0x165   : > { %v1872_v5 = vadd.f32 %v18257_v25, %v1846_v40  ;;  %12516 = vmatmul.msk.bf16.vlgmr.msra.gmra.mxu0 %vm687_vm2, %v18200_v60  ;;  %12518 = vmatmul.msk.bf16.vlgmr.msra.gmra.mxu1 %vm687_vm2, %v18200_v60  ;;  %v1873_v33 = vadd.f32 %v18273_v21, %v1847_v3  ;;  %v2887_v39 = vunpack.c.l.b16 %v18299_v22  ;;  %v2729_v59 = vsel %vm694_vm0, %v2704_v32, 0  ;;  %v12563_v3 = vld [vmem:[%s22189_s0 + $0x3a8] sm:$0xf0]  ;;  %v16204_v32 = vld [vmem:[%s22189_s0 + $0x3d4] sm:$0xf0] }
 0x166   : > { %v1878_v14 = vadd.f32 %v18226_v45, %v1852_v26  ;;  %2793 = vmatpush.bf16.msra.mxu3 %v2729_v59  ;;  %v1674_v58 = vadd.f32 %v18196_v31, %v1477_v17  ;;  %v1471_v59 = vadd.f32 %v18090_v36, %v17966_v52  ;;  %v1481_v36 = vadd.f32 %v18094_v13, %v17974_v20  ;;  %v12606_v17 = vld [vmem:[%s22189_s0 + $0x3f0] sm:$0xf0] }
 0x167   : > { %v1888_v37 = vmax.f32 %v1872_v5, 0.0  ;;  %v1889_v15 = vmax.f32 %v1873_v33, 0.0  ;;  %v2899_v26 = vpack.c.b16 %v2887_v39, %v2887_v39  ;;  %v1476_v5 = vadd.f32 %v18064_v29, %v17947_v63 }
 0x168   : > { %v1894_v54 = vmax.f32 %v1878_v14, 0.0  ;;  %12521 = vmatmul.msk.bf16.gmra.mxu2 %vm687_vm2, %v18280_v24  ;;  %12472 = vmatmul.msk.bf16.gmra.mxu3 %vm687_vm2, %v18132_v10  ;;  %v1670_v10 = vadd.f32 %v18157_v19, %v1473_v41  ;;  %v1482_v19 = vadd.f32 %v18053_v4, %v17938_v16  ;;  %v16198_v14 = vld [vmem:[%s22189_s0 + $0x39c] sm:$0xf]  ;;  %v2658_v33 = vrot.slane %v18313_v47, 2 }
 0x169   : > { %1904 = vst [vmem:[#allocation2] sm:$0xff] %v1888_v37  ;;  %v2922_v43 = vsel %vm694_vm0, %v2899_v26, 0  ;;  %v12566_v4 = vor.u32 %v16198_v14, %v12563_v3  ;;  %v2659_v37 = vrot.slane %v17745_v42, 2  ;;  %v1673_v29 = vadd.f32 %v18191_v1, %v1476_v5  ;;  %v12596_v1 = vld [vmem:[%s22189_s0 + $0x3c8] sm:$0xf] }
 0x16a   : > { %1910 = vst [vmem:[#allocation2 + $0x30] sm:$0xff] %v1894_v54  ;;  %v1781_v8 = vpop.f32.mrf.mxu0  ;;  %v1800_v40 = vpop.f32.mrf.mxu1  ;;  %2970 = vmatpush.bf16.msra.mxu2 %v2922_v43  ;;  %v1679_v39 = vadd.f32 %v18178_v46, %v1482_v19  ;;  %v1668_v14 = vadd.f32 %v18228_v44, %v1471_v59  ;;  %v18385_v5 = vperm.slane %v18211_v7, 3  ;;  %v12604_v7 = vld [vmem:[%s22189_s0 + $0x3e0] sm:$0xf]  ;;  %v2842_v42 = vshll.u32 %v18313_v47, 16  ;;  %v22198_v59 = vld [vmem:[#allocation6_spill] sm:$0xff] }
 0x16b   : > { %v1822_v12 = vpop.f32.mrf.mxu2  ;;  %1905 = vst [vmem:[#allocation2 + $0x8] sm:$0xff] %v1889_v15  ;;  %v18310_v0 = vpop.f32.mrf.mxu3  ;;  %v1850_v2 = vadd.f32 %v1781_v8, %v1669_v30  ;;  %v1851_v38 = vadd.f32 %v1800_v40, %v1670_v10  ;;  %2794 = vmatpush.bf16.msra.mxu3 %v12566_v4  ;;  %v12547_v15 = vld [vmem:[%s22189_s0 + $0x388] sm:$0xf0]  ;;  %v18360_v31 = vsel %vm1318_vm5, %v2658_v33, %v2659_v37 }
 0x16c   : > { %v1856_v34 = vadd.f32 %v1822_v12, %v1675_v48  ;;  %v16194_v48 = vld [vmem:[%s22189_s0 + $0x37c] sm:$0xf] }
 0x16d   : > { %v1876_v49 = vadd.f32 %v18257_v25, %v1850_v2  ;;  %v1877_v16 = vadd.f32 %v18273_v21, %v1851_v38  ;;  %v12550_v12 = vor.u32 %v16194_v48, %v12547_v15  ;;  %v1480_v38 = vadd.f32 %v18092_v11, %v17969_v51 }
 0x16e   : > { %v1882_v35 = vadd.f32 %v18226_v45, %v1856_v34  ;;  %2971 = vmatpush.bf16.msra.mxu2 %v12613_v6  ;;  %v12597_v34 = vor.u32 %v16204_v32, %v12596_v1  ;;  %v16205_v6 = vld [vmem:[%s22189_s0 + $0x3e4] sm:$0xf]  ;;  %v1475_v48 = vadd.f32 %v18122_v18, %v18005_v53  ;;  %v16203_v53 = vld [vmem:[%s22189_s0 + $0x3cc] sm:$0xf0]  ;;  %v12590_v32 = vld [vmem:[%s22189_s0 + $0x3d0] sm:$0xf0] }
 0x16f   : > { %v1892_v54 = vmax.f32 %v1876_v49, 0.0  ;;  %v1893_v63 = vmax.f32 %v1877_v16, 0.0  ;;  %2795 = vmatpush.bf16.msra.mxu3 %v12550_v12  ;;  %v1677_v23 = vadd.f32 %v18230_v57, %v1480_v38 }
 0x170   : > { %v1898_v55 = vmax.f32 %v1882_v35, 0.0  ;;  %v1672_v12 = vadd.f32 %v18270_v9, %v1475_v48  ;;  %v16201_v9 = vld [vmem:[%s22189_s0 + $0x3c4] sm:$0xf] }
 0x171   : > { %1908 = vst [vmem:[#allocation2 + $0x20] sm:$0xff] %v1892_v54  ;;  %v16207_v54 = vld [vmem:[%s22189_s0 + $0x3ec] sm:$0xf0] }
 0x172   : > { %1914 = vst [vmem:[#allocation2 + $0x50] sm:$0xff] %v1898_v55  ;;  %v1784_v30 = vpop.f32.mrf.mxu0  ;;  %v1803_v10 = vpop.f32.mrf.mxu1  ;;  %2972 = vmatpush.bf16.msra.mxu2 %v12597_v34  ;;  %v1678_v55 = vadd.f32 %v18232_v28, %v1481_v36  ;;  %v12605_v28 = vor.u32 %v16207_v54, %v12604_v7  ;;  %v16216_v7 = vld [vmem:[%s22189_s0 + $0x444] sm:$0xf0] }
 0x173   : > { %v1824_v41 = vpop.f32.mrf.mxu2  ;;  %1909 = vst [vmem:[#allocation2 + $0x28] sm:$0xff] %v1893_v63  ;;  %v18349_v50 = vpop.f32.mrf.mxu3  ;;  %v1854_v26 = vadd.f32 %v1784_v30, %v1673_v29  ;;  %v1855_v2 = vadd.f32 %v1803_v10, %v1674_v58  ;;  %v12609_v29 = vor.u32 %v16205_v6, %v12606_v17  ;;  %v22202_v6 = vld [vmem:[#allocation7_spill] sm:$0xff] }
 0x174   : > { %v1860_v46 = vadd.f32 %v1824_v41, %v1679_v39 }
 0x175   : > { %v1880_v40 = vadd.f32 %v18257_v25, %v1854_v26  ;;  %12517 = vmatmul.msk.bf16.gmra.mxu0 %vm687_vm2, %v18280_v24  ;;  %12519 = vmatmul.msk.bf16.gmra.mxu1 %vm687_vm2, %v18280_v24  ;;  %v1881_v35 = vadd.f32 %v18273_v21, %v1855_v2 }
 0x176   : > { %v1886_v8 = vadd.f32 %v18226_v45, %v1860_v46  ;;  %v12584_v45 = vld [vmem:[%s22189_s0 + $0x400] sm:$0x77]  ;;  %v2661_v46 = vrot.slane %v18202_v61, 2 }
 0x177   : > { %v1896_v19 = vmax.f32 %v1880_v40, 0.0  ;;  %v2885_v49 = vunpack.c.l.b16 %v12584_v45  ;;  %v2886_v52 = vunpack.c.h.b16 %v12584_v45  ;;  %v1897_v3 = vmax.f32 %v1881_v35, 0.0 }
 0x178   : > { %v1902_v43 = vmax.f32 %v1886_v8, 0.0  ;;  %12571 = vmatmul.msk.bf16.vlgmr.msrb.gmra.mxu2 %vm687_vm2, %v18360_v31  ;;  %12522 = vmatmul.msk.bf16.vlgmr.msrb.gmra.mxu3 %vm687_vm2, %v18200_v60  ;;  %v18432_v34 = vsel %vm1318_vm5, %v2659_v37, %v2661_v46  ;;  %v12593_v8 = vor.u32 %v16201_v9, %v12590_v32  ;;  %v2839_v40 = vshrl.u32 %v18313_v47, 16  ;;  %v18446_v37 = vld [vmem:[%s22189_s0 + $0x458] sm:$0x77] }
 0x179   : > { %1912 = vst [vmem:[#allocation2 + $0x40] sm:$0xff] %v1896_v19  ;;  %v2897_v11 = vpack.c.b16 %v2885_v49, %v2885_v49  ;;  %v2898_v60 = vpack.c.b16 %v2886_v52, %v2886_v52  ;;  %v2888_v45 = vunpack.c.h.b16 %v18299_v22  ;;  %v3067_v38 = vunpack.c.l.b16 %v18446_v37  ;;  %v22200_v22 = vld [vmem:[#allocation3_spill] sm:$0xff] }
 0x17a   : > { %1918 = vst [vmem:[#allocation2 + $0x70] sm:$0xff] %v1902_v43  ;;  %v1786_v4 = vpop.f32.mrf.mxu0  ;;  %v1805_v44 = vpop.f32.mrf.mxu1  ;;  %v1479_v43 = vadd.f32 %v22198_v59, %v18030_v62  ;;  %v2841_v62 = vrot.slane %v2839_v40, 2 }
 0x17b   : > { %v18387_v51 = vpop.f32.mrf.mxu2  ;;  %1913 = vst [vmem:[#allocation2 + $0x48] sm:$0xff] %v1897_v3  ;;  %v1836_v16 = vpop.f32.mrf.mxu3  ;;  %v1858_v13 = vadd.f32 %v1786_v4, %v1677_v23  ;;  %v2916_v27 = vsel %vm694_vm0, %v2897_v11, 0  ;;  %v2919_v57 = vsel %vm694_vm0, %v2898_v60, 0  ;;  %v1859_v33 = vadd.f32 %v1805_v44, %v1678_v55  ;;  %v22199_v23 = vld [vmem:[#allocation4_spill] sm:$0xff]  ;;  %v12663_v44 = vld [vmem:[%s22189_s0 + $0x438] sm:$0xf] }
 0x17c   : > { %v1849_v20 = vadd.f32 %v1836_v16, %v1668_v14  ;;  %2932 = vmatpush.bf16.msra.mxu0 %v2916_v27  ;;  %2951 = vmatpush.bf16.msra.mxu1 %v2919_v57  ;;  %v1676_v47 = vadd.f32 %v18310_v0, %v1479_v43  ;;  %v2900_v49 = vpack.c.b16 %v2888_v45, %v2888_v45  ;;  %v2844_v3 = vrot.slane %v2842_v42, 3  ;;  %v12575_v16 = vld [vmem:[%s17034_s29 + $0x24] sm:$0x7] }
 0x17d   : > { %v1884_v63 = vadd.f32 %v18257_v25, %v1858_v13  ;;  %v1885_v41 = vadd.f32 %v18273_v21, %v1859_v33  ;;  %v12588_v25 = vld [vmem:[%s22189_s0 + $0x3c0] sm:$0xf]  ;;  %v3079_v52 = vpack.c.b16 %v3067_v38, %v3067_v38  ;;  %v2846_v11 = vrot.slane %v22199_v23, 2  ;;  %v12614_v13 = vld [vmem:[%s22189_s0 + $0x3f8] sm:$0xf0] }
 0x17e   : > { %v1875_v39 = vadd.f32 %v18385_v5, %v1849_v20  ;;  %v12589_v61 = vor.u32 %v16203_v53, %v12588_v25  ;;  %v2847_v55 = vrot.slane %v22200_v22, 3  ;;  %v2925_v0 = vsel %vm694_vm0, %v2900_v49, 0  ;;  %v16206_v20 = vld [vmem:[%s22189_s0 + $0x3ec] sm:$0xf]  ;;  %v16212_v53 = vld [vmem:[%s22189_s0 + $0x424] sm:$0xf0] }
 0x17f   : > { %v1900_v58 = vmax.f32 %v1884_v63, 0.0  ;;  %v1901_v30 = vmax.f32 %v1885_v41, 0.0  ;;  %v3102_v4 = vsel %vm694_vm0, %v3079_v52, 0  ;;  %2989 = vmatpush.bf16.msrb.mxu3 %v2925_v0  ;;  %v12617_v57 = vor.u32 %v16206_v20, %v12614_v13  ;;  %v12655_v23 = vld [vmem:[%s22189_s0 + $0x430] sm:$0xf] }
 0x180   : > { %v1891_v15 = vmax.f32 %v1875_v39, 0.0  ;;  %2933 = vmatpush.bf16.msra.mxu0 %v12605_v28  ;;  %2952 = vmatpush.bf16.msra.mxu1 %v12609_v29  ;;  %v2836_v54 = vunpack.c.l.b16 %v12575_v16  ;;  %v12664_v33 = vor.u32 %v16216_v7, %v12663_v44  ;;  %v22201_v28 = vld [vmem:[#allocation5_spill] sm:$0xff]  ;;  %v2845_v63 = vor.u32 %v2844_v3, %v2841_v62  ;;  %v12657_v22 = vld [vmem:[%s22189_s0 + $0x440] sm:$0xf0]  ;;  %v16211_v20 = vld [vmem:[%s22189_s0 + $0x41c] sm:$0xf0] }
 0x181   : > { %1916 = vst [vmem:[#allocation2 + $0x60] sm:$0xff] %v1900_v58  ;;  %3150 = vmatpush.bf16.msrb.mxu2 %v3102_v4  ;;  %v1483_v17 = vadd.f32 %v22202_v6, %v22201_v28  ;;  %v18481_v29 = vor.u32 %v2847_v55, %v2846_v11  ;;  %v12598_v58 = vld [vmem:[%s22189_s0 + $0x3d8] sm:$0xf0]  ;;  %v16213_v11 = vld [vmem:[%s22189_s0 + $0x434] sm:$0xf] }
 0x182   : > { %1907 = vst [vmem:[#allocation2 + $0x18] sm:$0xff] %v1891_v15  ;;  %v18419_v21 = vpop.f32.mrf.mxu0  ;;  %v18427_v10 = vpop.f32.mrf.mxu1  ;;  %v16202_v15 = vld [vmem:[%s22189_s0 + $0x3cc] sm:$0xf]  ;;  %v12660_v55 = vor.u32 %v16213_v11, %v12657_v22  ;;  %v12639_v4 = vld [vmem:[%s22189_s0 + $0x410] sm:$0xf] }
 0x183   : > { %v18411_v1 = vpop.f32.mrf.mxu2  ;;  %v1838_v18 = vpop.f32.mrf.mxu3  ;;  %1917 = vst [vmem:[#allocation2 + $0x68] sm:$0xff] %v1901_v30  ;;  %2990 = vmatpush.bf16.msrb.mxu3 %v12617_v57  ;;  %v1680_v41 = vadd.f32 %v18349_v50, %v1483_v17  ;;  %v12601_v25 = vor.u32 %v16202_v15, %v12598_v58  ;;  %v12647_v50 = vld [vmem:[%s22189_s0 + $0x418] sm:$0xf]  ;;  %v18506_v9 = vsel %vm1499_vm6, %v2845_v63, %v18481_v29  ;;  %v16209_v13 = vld [vmem:[%s22189_s0 + $0x414] sm:$0xf]  ;;  %v3068_v63 = vunpack.c.h.b16 %v18446_v37 }
 0x184   : > { %v1853_v26 = vadd.f32 %v1838_v18, %v1672_v12  ;;  %2934 = vmatpush.bf16.msra.mxu0 %v12589_v61  ;;  %2953 = vmatpush.bf16.msra.mxu1 %v12593_v8  ;;  %v18494_v12 = vpack.c.b16 %v2836_v54, %v2836_v54  ;;  %v12648_v32 = vor.u32 %v16212_v53, %v12647_v50  ;;  %v12641_v54 = vld [vmem:[%s22189_s0 + $0x420] sm:$0xf0] }
 0x185   : > { %12567 = vmatmul.msk.bf16.vlgmr.msrb.gmra.mxu0 %vm687_vm2, %v18360_v31  ;;  %12569 = vmatmul.msk.bf16.vlgmr.msrb.gmra.mxu1 %vm687_vm2, %v18360_v31  ;;  %v12640_v7 = vor.u32 %v16211_v20, %v12639_v4  ;;  %v12644_v17 = vor.u32 %v16209_v13, %v12641_v54  ;;  %v3080_v15 = vpack.c.b16 %v3068_v63, %v3068_v63 }
 0x186   : > { %v1879_v2 = vadd.f32 %v18385_v5, %v1853_v26  ;;  %3151 = vmatpush.bf16.msrb.mxu2 %v12664_v33  ;;  %v2851_v8 = vshrl.u32 %v18494_v12, 16 }
 0x187   : > { %2991 = vmatpush.bf16.msrb.mxu3 %v12601_v25  ;;  %v3105_v37 = vsel %vm694_vm0, %v3080_v15, 0  ;;  %v12709_v15 = vld [vmem:[%s22189_s0 + $0x4b0] sm:$0xf] }
 0x188   : > { %12572 = vmatmul.msk.bf16.gmra.mxu2 %vm687_vm2, %v18432_v34  ;;  %v1895_v35 = vmax.f32 %v1879_v2, 0.0  ;;  %12523 = vmatmul.msk.bf16.gmra.mxu3 %vm687_vm2, %v18280_v24  ;;  %v12635_v2 = vld [vmem:[%s22189_s0 + $0x450] sm:$0x77] }
 0x189   : > { %v3065_v42 = vunpack.c.l.b16 %v12635_v2  ;;  %v3066_v59 = vunpack.c.h.b16 %v12635_v2 }
 0x18a   : > { %1911 = vst [vmem:[#allocation2 + $0x38] sm:$0xff] %v1895_v35  ;;  %v18457_v14 = vpop.f32.mrf.mxu0  ;;  %v18460_v60 = vpop.f32.mrf.mxu1  ;;  %3152 = vmatpush.bf16.msrb.mxu2 %v12648_v32 }
 0x18b   : > { %v18455_v19 = vpop.f32.mrf.mxu2  ;;  %v1841_v36 = vpop.f32.mrf.mxu3  ;;  %v3077_v35 = vpack.c.b16 %v3065_v42, %v3065_v42  ;;  %v3078_v45 = vpack.c.b16 %v3066_v59, %v3066_v59 }
 0x18c   : > { %v1857_v24 = vadd.f32 %v1841_v36, %v1676_v47  ;;  %v2853_v36 = vrot.slane %v2851_v8, 2 }
 0x18d   : > { %v3096_v62 = vsel %vm694_vm0, %v3077_v35, 0  ;;  %v3099_v3 = vsel %vm694_vm0, %v3078_v45, 0  ;;  %v12649_v35 = vld [vmem:[%s22189_s0 + $0x428] sm:$0xf0]  ;;  %v12717_v45 = vld [vmem:[%s22189_s0 + $0x4b8] sm:$0xf] }
 0x18e   : > { %v1883_v27 = vadd.f32 %v18385_v5, %v1857_v24  ;;  %3112 = vmatpush.bf16.msrb.mxu0 %v3096_v62  ;;  %3131 = vmatpush.bf16.msrb.mxu1 %v3099_v3 }
 0x190   : > { %v1899_v39 = vmax.f32 %v1883_v27, 0.0 }
 0x192   : > { %1915 = vst [vmem:[#allocation2 + $0x58] sm:$0xff] %v1899_v39  ;;  %v18492_v30 = vpop.f32.mrf.mxu0  ;;  %v18502_v61 = vpop.f32.mrf.mxu1  ;;  %3132 = vmatpush.bf16.msrb.mxu1 %v12660_v55 }
 0x193   : > { %v18484_v48 = vpop.f32.mrf.mxu2  ;;  %v1843_v46 = vpop.f32.mrf.mxu3 }
 0x194   : > { %v1861_v18 = vadd.f32 %v1843_v46, %v1680_v41 }
 0x195   : > { %12568 = vmatmul.msk.bf16.gmra.mxu0 %vm687_vm2, %v18432_v34  ;;  %12570 = vmatmul.msk.bf16.gmra.mxu1 %vm687_vm2, %v18432_v34 }
 0x196   : > { %v1887_v26 = vadd.f32 %v18385_v5, %v1861_v18  ;;  %v2854_v5 = vshll.u32 %v18494_v12, 16  ;;  %3133 = vmatpush.bf16.msrb.mxu1 %v12644_v17 }
 0x198   : > { %12622 = vmatmul.msk.bf16.vlgmr.msra.gmra.mxu2 %vm687_vm2, %v18506_v9  ;;  %v1903_v40 = vmax.f32 %v1887_v26, 0.0  ;;  %12573 = vmatmul.msk.bf16.vlgmr.msra.gmra.mxu3 %vm687_vm2, %v18360_v31  ;;  %v2856_v31 = vrot.slane %v2854_v5, 3  ;;  %v18615_v5 = vld [vmem:[%s17034_s29 + $0x1c] sm:$0xff] }
 0x199   : > { %3169 = vmatpush.bf16.msra.mxu3 %v3105_v37  ;;  %v3035_v42 = vrot.slane %v18615_v5, 3 }
 0x19a   : > { %1919 = vst [vmem:[#allocation2 + $0x78] sm:$0xff] %v1903_v40  ;;  %v18527_v49 = vpop.f32.mrf.mxu0  ;;  %v18529_v52 = vpop.f32.mrf.mxu1  ;;  %v2857_v16 = vor.u32 %v2856_v31, %v2853_v36 }
 0x19b   : > { %v2238_v43 = vpop.f32.mrf.mxu2  ;;  %v18522_v38 = vpop.f32.mrf.mxu3 }
 0x19c   : > { %v18525_v47 = vadd.f32 %v2238_v43, %v18387_v51  ;;  %v16215_v51 = vld [vmem:[%s22189_s0 + $0x43c] sm:$0xf0]  ;;  %v18567_v6 = vsel %vm1499_vm6, %v18481_v29, %v2857_v16  ;;  %v16210_v43 = vld [vmem:[%s22189_s0 + $0x41c] sm:$0xf] }
 0x19d   : > { %v12656_v24 = vor.u32 %v16215_v51, %v12655_v23  ;;  %v12652_v3 = vor.u32 %v16210_v43, %v12649_v35  ;;  %v16229_v23 = vld [vmem:[%s22189_s0 + $0x4c4] sm:$0xf0] }
 0x19e   : > { %v12718_v22 = vor.u32 %v16229_v23, %v12717_v45 }
 0x19f   : > { %3113 = vmatpush.bf16.msrb.mxu0 %v12656_v24 }
 0x1a2   : > { %v2200_v57 = vpop.f32.mrf.mxu0  ;;  %v2219_v28 = vpop.f32.mrf.mxu1 }
 0x1a3   : > { %v2240_v0 = vpop.f32.mrf.mxu2  ;;  %v18554_v44 = vpop.f32.mrf.mxu3  ;;  %v18563_v33 = vadd.f32 %v2200_v57, %v18419_v21  ;;  %v18570_v39 = vadd.f32 %v2219_v28, %v18427_v10  ;;  %3114 = vmatpush.bf16.msrb.mxu0 %v12640_v7  ;;  %v18582_v21 = vld [vmem:[%s22189_s0 + $0x4f8] sm:$0x77] }
 0x1a4   : > { %v18557_v27 = vadd.f32 %v2240_v0, %v18411_v1  ;;  %v12626_v1 = vld [vmem:[%s17034_s29 + $0x14] sm:$0x8]  ;;  %v3348_v29 = vunpack.c.l.b16 %v18582_v21 }
 0x1a5   : > { %12618 = vmatmul.msk.bf16.vlgmr.msra.gmra.mxu0 %vm687_vm2, %v18506_v9  ;;  %12620 = vmatmul.msk.bf16.vlgmr.msra.gmra.mxu1 %vm687_vm2, %v18506_v9  ;;  %v3032_v10 = vunpack.c.l.b16 %v12626_v1 }
 0x1a6   : > { %v3360_v58 = vpack.c.b16 %v3348_v29, %v3348_v29  ;;  %v3037_v29 = vrot.slane %v18494_v12, 3 }
 0x1a8   : > { %12623 = vmatmul.msk.bf16.gmra.mxu2 %vm687_vm2, %v18567_v6  ;;  %12574 = vmatmul.msk.bf16.gmra.mxu3 %vm687_vm2, %v18432_v34  ;;  %v3033_v34 = vpack.c.b16 %v17706_v56, %v3032_v10  ;;  %v3383_v32 = vsel %vm694_vm0, %v3360_v58, 0  ;;  %v12733_v56 = vld [vmem:[%s22189_s0 + $0x4d8] sm:$0xf]  ;;  %v16228_v58 = vld [vmem:[%s22189_s0 + $0x4bc] sm:$0xf0] }
 0x1a9   : > { %3431 = vmatpush.bf16.msra.mxu2 %v3383_v32  ;;  %v12710_v37 = vor.u32 %v16228_v58, %v12709_v15  ;;  %v12711_v32 = vld [vmem:[%s22189_s0 + $0x4c0] sm:$0xf0] }
 0x1aa   : > { %v2202_v50 = vpop.f32.mrf.mxu0  ;;  %v2221_v18 = vpop.f32.mrf.mxu1  ;;  %v3034_v40 = vrot.slane %v3033_v34, 3 }
 0x1ab   : > { %v2243_v41 = vpop.f32.mrf.mxu2  ;;  %v18588_v46 = vpop.f32.mrf.mxu3  ;;  %v18594_v53 = vadd.f32 %v2202_v50, %v18457_v14  ;;  %v18600_v26 = vadd.f32 %v2221_v18, %v18460_v60  ;;  %v12665_v14 = vld [vmem:[%s22189_s0 + $0x448] sm:$0xf0]  ;;  %v16233_v60 = vld [vmem:[%s22189_s0 + $0x4e4] sm:$0xf0]  ;;  %v16226_v50 = vld [vmem:[%s22189_s0 + $0x4b4] sm:$0xf] }
 0x1ac   : > { %v18591_v25 = vadd.f32 %v2243_v41, %v18455_v19  ;;  %v16214_v19 = vld [vmem:[%s22189_s0 + $0x43c] sm:$0xf]  ;;  %v12734_v2 = vor.u32 %v16233_v60, %v12733_v56  ;;  %v18639_v24 = vsel %vm1696_vm7, %v3034_v40, %v3035_v42  ;;  %v18707_v60 = vld [vmem:[%s17034_s29 + $0x28] sm:$0xff]   ;;  %v3349_v40 = vunpack.c.h.b16 %v18582_v21 }
 0x1ad   : > { %v12668_v8 = vor.u32 %v16214_v19, %v12665_v14 }
 0x1ae   : > { %3432 = vmatpush.bf16.msra.mxu2 %v12734_v2 }
 0x1af   : > { %3170 = vmatpush.bf16.msra.mxu3 %v12668_v8  ;;  %v18704_v8 = vsel %vm1696_vm7, %v3035_v42, %v3037_v29  ;;  %v16221_v29 = vld [vmem:[%s22189_s0 + $0x474] sm:$0xf0] }
 0x1b2   : > { %v2205_v62 = vpop.f32.mrf.mxu0  ;;  %v2224_v11 = vpop.f32.mrf.mxu1  ;;  %3433 = vmatpush.bf16.msra.mxu2 %v12718_v22 }
 0x1b3   : > { %v2245_v59 = vpop.f32.mrf.mxu2  ;;  %v18627_v36 = vpop.f32.mrf.mxu3  ;;  %v18636_v51 = vadd.f32 %v2205_v62, %v18492_v30  ;;  %v18642_v55 = vadd.f32 %v2224_v11, %v18502_v61  ;;  %3171 = vmatpush.bf16.msra.mxu3 %v12652_v3  ;;  %v3301_v3 = vshrl.u32 %v18707_v60, 16 }
 0x1b4   : > { %v18630_v31 = vadd.f32 %v2245_v59, %v18484_v48  ;;  %v12701_v48 = vld [vmem:[%s22189_s0 + $0x4f0] sm:$0x77]  ;;  %v3361_v59 = vpack.c.b16 %v3349_v40, %v3349_v40 }
 0x1b5   : > { %12619 = vmatmul.msk.bf16.gmra.mxu0 %vm687_vm2, %v18567_v6  ;;  %12621 = vmatmul.msk.bf16.gmra.mxu1 %vm687_vm2, %v18567_v6  ;;  %v3346_v30 = vunpack.c.l.b16 %v12701_v48  ;;  %v3347_v61 = vunpack.c.h.b16 %v12701_v48 }
 0x1b6   : > { %v3386_v48 = vsel %vm694_vm0, %v3361_v59, 0 }
 0x1b7   : > { %v3358_v0 = vpack.c.b16 %v3346_v30, %v3346_v30  ;;  %v3359_v4 = vpack.c.b16 %v3347_v61, %v3347_v61  ;;  %v16231_v61 = vld [vmem:[%s22189_s0 + $0x4dc] sm:$0xf] }
 0x1b8   : > { %12673 = vmatmul.msk.bf16.vlgmr.msrb.gmra.mxu2 %vm687_vm2, %v18639_v24  ;;  %12624 = vmatmul.msk.bf16.vlgmr.msrb.gmra.mxu3 %vm687_vm2, %v18506_v9 }
 0x1b9   : > { %v3377_v9 = vsel %vm694_vm0, %v3358_v0, 0  ;;  %v3380_v17 = vsel %vm694_vm0, %v3359_v4, 0  ;;  %3450 = vmatpush.bf16.msrb.mxu3 %v3386_v48 }
 0x1ba   : > { %v2207_v57 = vpop.f32.mrf.mxu0  ;;  %v2226_v28 = vpop.f32.mrf.mxu1  ;;  %3393 = vmatpush.bf16.msra.mxu0 %v3377_v9  ;;  %3412 = vmatpush.bf16.msra.mxu1 %v3380_v17  ;;  %v16227_v9 = vld [vmem:[%s22189_s0 + $0x4bc] sm:$0xf]  ;;  %v12719_v17 = vld [vmem:[%s22189_s0 + $0x4c8] sm:$0xf0] }
 0x1bb   : > { %v2402_v16 = vpop.f32.mrf.mxu2  ;;  %v2257_v20 = vpop.f32.mrf.mxu3  ;;  %v18662_v54 = vadd.f32 %v2207_v57, %v18527_v49  ;;  %v18667_v1 = vadd.f32 %v2226_v28, %v18529_v52  ;;  %v16230_v49 = vld [vmem:[%s22189_s0 + $0x4d4] sm:$0xf]  ;;  %v12727_v52 = vld [vmem:[%s22189_s0 + $0x4e0] sm:$0xf0]  ;;  %v12692_v57 = vld [vmem:[%s17034_s29 + $0x38] sm:$0x1] }
 0x1bc   : > { %v18656_v13 = vadd.f32 %v2402_v16, %v18525_v47  ;;  %v18659_v7 = vadd.f32 %v2257_v20, %v18522_v38  ;;  %v12725_v47 = vld [vmem:[%s22189_s0 + $0x4d0] sm:$0xf]  ;;  %v16232_v38 = vld [vmem:[%s22189_s0 + $0x4dc] sm:$0xf0]  ;;  %v12730_v63 = vor.u32 %v16230_v49, %v12727_v52  ;;  %v3296_v52 = vunpack.c.l.b16 %v12692_v57  ;;  %v12751_v57 = vld [vmem:[%s22189_s0 + $0x470] sm:$0xf0] }
 0x1bd   : > { %v12726_v10 = vor.u32 %v16232_v38, %v12725_v47  ;;  %v12757_v47 = vld [vmem:[%s22189_s0 + $0x468] sm:$0xf] }
 0x1be   : > { %3413 = vmatpush.bf16.msra.mxu1 %v12730_v63  ;;  %v12722_v63 = vor.u32 %v16227_v9, %v12719_v17 }
 0x1bf   : > { %3394 = vmatpush.bf16.msra.mxu0 %v12726_v10 }
 0x1c2   : > { %v2364_v34 = vpop.f32.mrf.mxu0  ;;  %v2383_v56 = vpop.f32.mrf.mxu1 }
 0x1c3   : > { %v2404_v41 = vpop.f32.mrf.mxu2  ;;  %v2259_v18 = vpop.f32.mrf.mxu3  ;;  %v18701_v14 = vadd.f32 %v2364_v34, %v18563_v33  ;;  %v18710_v2 = vadd.f32 %v2383_v56, %v18570_v39  ;;  %3395 = vmatpush.bf16.msra.mxu0 %v12710_v37  ;;  %v3303_v33 = vshll.u32 %v18707_v60, 16  ;;  %v18725_v39 = vld [vmem:[%s22189_s0 + $0x4a8] sm:$0x77] }
 0x1c4   : > { %v18692_v12 = vadd.f32 %v2404_v41, %v18557_v27  ;;  %v18698_v19 = vadd.f32 %v2259_v18, %v18554_v44  ;;  %v12714_v27 = vor.u32 %v16226_v50, %v12711_v32  ;;  %v18719_v44 = vld [vmem:[%s17034_s29 + $0x30] sm:$0xff]  ;;  %v3492_v5 = vunpack.c.l.b16 %v18725_v39 }
 0x1c5   : > { %12669 = vmatmul.msk.bf16.vlgmr.msrb.gmra.mxu0 %vm687_vm2, %v18639_v24  ;;  %12671 = vmatmul.msk.bf16.vlgmr.msrb.gmra.mxu1 %vm687_vm2, %v18639_v24  ;;  %v3305_v23 = vrot.slane %v3303_v33, 1  ;;  %v18736_v11 = vshll.u32 %v18719_v44, 16  ;;  %v12758_v18 = vor.u32 %v16221_v29, %v12757_v47 }
 0x1c6   : > { %3414 = vmatpush.bf16.msra.mxu1 %v12714_v27  ;;  %v3504_v43 = vpack.c.b16 %v3492_v5, %v3492_v5  ;;  %v18807_v5 = vshrl.u32 %v18719_v44, 16 }
 0x1c7   : > { %22203 = vst [vmem:[#allocation6_spill] sm:$0xff] %v18736_v11  ;;  %v3306_v4 = vor.u32 %v3305_v23, %v3301_v3  ;;  %v3310_v20 = vrot.slane %v18736_v11, 1  ;;  %v12765_v3 = vld [vmem:[%s22189_s0 + $0x480] sm:$0xf] }
 0x1c8   : > { %12674 = vmatmul.msk.bf16.gmra.mxu2 %vm687_vm2, %v18704_v8  ;;  %12625 = vmatmul.msk.bf16.gmra.mxu3 %vm687_vm2, %v18567_v6  ;;  %22204 = vst [vmem:[#allocation4_spill] sm:$0xff] %v18807_v5 }
 0x1c9   : > { %v18785_v50 = vsel %vm616_vm1, %v3306_v4, %v3310_v20  ;;  %v3314_v48 = vor.u32 %v18807_v5, %v3310_v20 }
 0x1ca   : > { %v2366_v62 = vpop.f32.mrf.mxu0  ;;  %v2385_v22 = vpop.f32.mrf.mxu1 }
 0x1cb   : > { %v2407_v42 = vpop.f32.mrf.mxu2  ;;  %v2262_v35 = vpop.f32.mrf.mxu3  ;;  %v18742_v21 = vadd.f32 %v2366_v62, %v18594_v53  ;;  %v18747_v30 = vadd.f32 %v2385_v22, %v18600_v26  ;;  %v12773_v53 = vld [vmem:[%s22189_s0 + $0x488] sm:$0xf]  ;;  %v16225_v26 = vld [vmem:[%s22189_s0 + $0x494] sm:$0xf0] }
 0x1cc   : > { %v18732_v45 = vadd.f32 %v2407_v42, %v18591_v25  ;;  %v18739_v6 = vadd.f32 %v2262_v35, %v18588_v46  ;;  %v3525_v25 = vsel %vm694_vm0, %v3504_v43, 0  ;;  %v12735_v46 = vld [vmem:[%s22189_s0 + $0x4e8] sm:$0xf0]  ;;  %v12774_v0 = vor.u32 %v16225_v26, %v12773_v53  ;;  %v16220_v53 = vld [vmem:[%s22189_s0 + $0x46c] sm:$0xf0] }
 0x1cd   : > { %3573 = vmatpush.bf16.msrb.mxu2 %v3525_v25  ;;  %v12738_v16 = vor.u32 %v16231_v61, %v12735_v46  ;;  %v12749_v46 = vld [vmem:[%s22189_s0 + $0x460] sm:$0xf] }
 0x1ce   : > { %v12750_v20 = vor.u32 %v16220_v53, %v12749_v46 }
 0x1cf   : > { %3451 = vmatpush.bf16.msrb.mxu3 %v12738_v16  ;;  %v16218_v16 = vld [vmem:[%s22189_s0 + $0x464] sm:$0xf] }
 0x1d1   : > { %3574 = vmatpush.bf16.msrb.mxu2 %v12774_v0 }
 0x1d2   : > { %v2369_v10 = vpop.f32.mrf.mxu0  ;;  %v2388_v58 = vpop.f32.mrf.mxu1 }
 0x1d3   : > { %v2409_v28 = vpop.f32.mrf.mxu2  ;;  %v2264_v38 = vpop.f32.mrf.mxu3  ;;  %v18782_v15 = vadd.f32 %v2369_v10, %v18636_v51  ;;  %3452 = vmatpush.bf16.msrb.mxu3 %v12722_v63  ;;  %v12690_v51 = vld [vmem:[%s22189_s0 + $0x4a0] sm:$0x77] }
 0x1d4   : > { %v18773_v49 = vadd.f32 %v2409_v28, %v18630_v31  ;;  %v18779_v41 = vadd.f32 %v2264_v38, %v18627_v36  ;;  %v18788_v31 = vadd.f32 %v2388_v58, %v18642_v55  ;;  %v18796_v36 = vpack.c.b16 %v3296_v52, %v3296_v52 }
 0x1d5   : > { %12670 = vmatmul.msk.bf16.gmra.mxu0 %vm687_vm2, %v18704_v8  ;;  %12672 = vmatmul.msk.bf16.gmra.mxu1 %vm687_vm2, %v18704_v8  ;;  %v3490_v55 = vunpack.c.l.b16 %v12690_v51  ;;  %v3491_v34 = vunpack.c.h.b16 %v12690_v51  ;;  %v12754_v38 = vor.u32 %v16218_v16, %v12751_v57 }
 0x1d6   : > { %3575 = vmatpush.bf16.msrb.mxu2 %v12758_v18  ;;  %v3316_v42 = vshll.u32 %v18796_v36, 16 }
 0x1d7   : > { %v3502_v32 = vpack.c.b16 %v3490_v55, %v3490_v55  ;;  %v3503_v56 = vpack.c.b16 %v3491_v34, %v3491_v34 }
 0x1d8   : > { %12743 = vmatmul.msk.bf16.vlgmr.msra.gmra.mxu2 %vm687_vm2, %v18785_v50  ;;  %12675 = vmatmul.msk.bf16.vlgmr.msra.gmra.mxu3 %vm687_vm2, %v18639_v24  ;;  %v3318_v25 = vrot.slane %v3316_v42, 1  ;;  %v12759_v42 = vld [vmem:[%s22189_s0 + $0x478] sm:$0xf0] }
 0x1d9   : > { %v3519_v35 = vsel %vm694_vm0, %v3502_v32, 0  ;;  %v3522_v62 = vsel %vm694_vm0, %v3503_v56, 0 }
 0x1da   : > { %v2371_v40 = vpop.f32.mrf.mxu0  ;;  %v2390_v43 = vpop.f32.mrf.mxu1  ;;  %3535 = vmatpush.bf16.msrb.mxu0 %v3519_v35  ;;  %3554 = vmatpush.bf16.msrb.mxu1 %v3522_v62  ;;  %v18856_v47 = vsel %vm616_vm1, %v3314_v48, %v3318_v25 }
 0x1db   : > { %v2598_v37 = vpop.f32.mrf.mxu2  ;;  %v2421_v27 = vpop.f32.mrf.mxu3  ;;  %v18814_v24 = vadd.f32 %v2371_v40, %v18662_v54  ;;  %v16222_v54 = vld [vmem:[%s22189_s0 + $0x484] sm:$0xf]  ;;  %v16219_v40 = vld [vmem:[%s22189_s0 + $0x46c] sm:$0xf] }
 0x1dc   : > { %v18804_v33 = vadd.f32 %v2598_v37, %v18656_v13  ;;  %v18811_v59 = vadd.f32 %v2421_v27, %v18659_v7  ;;  %v18819_v13 = vadd.f32 %v2390_v43, %v18667_v1  ;;  %v16224_v7 = vld [vmem:[%s22189_s0 + $0x48c] sm:$0xf0]  ;;  %v12767_v1 = vld [vmem:[%s22189_s0 + $0x490] sm:$0xf0]  ;;  %v12808_v43 = vld [vmem:[%s22189_s0 + $0x508] sm:$0xf] }
 0x1dd   : > { %v12766_v23 = vor.u32 %v16224_v7, %v12765_v3  ;;  %v12770_v22 = vor.u32 %v16222_v54, %v12767_v1  ;;  %v12762_v7 = vor.u32 %v16219_v40, %v12759_v42  ;;  %v16237_v54 = vld [vmem:[%s22189_s0 + $0x514] sm:$0xf0] }
 0x1de   : > { %v12809_v48 = vor.u32 %v16237_v54, %v12808_v43 }
 0x1df   : > { %3536 = vmatpush.bf16.msrb.mxu0 %v12766_v23  ;;  %3555 = vmatpush.bf16.msrb.mxu1 %v12770_v22 }
 0x1e2   : > { %v2560_v4 = vpop.f32.mrf.mxu0  ;;  %v2579_v17 = vpop.f32.mrf.mxu1 }
 0x1e3   : > { %v2600_v61 = vpop.f32.mrf.mxu2  ;;  %v2423_v26 = vpop.f32.mrf.mxu3  ;;  %v18853_v9 = vadd.f32 %v2560_v4, %v18701_v14  ;;  %3537 = vmatpush.bf16.msrb.mxu0 %v12750_v20  ;;  %3556 = vmatpush.bf16.msrb.mxu1 %v12754_v38  ;;  %v3493_v14 = vunpack.c.h.b16 %v18725_v39  ;;  %v12816_v38 = vld [vmem:[%s22189_s0 + $0x520] sm:$0xf] }
 0x1e4   : > { %v18844_v0 = vadd.f32 %v2600_v61, %v18692_v12  ;;  %v18850_v28 = vadd.f32 %v2423_v26, %v18698_v19  ;;  %v18859_v12 = vadd.f32 %v2579_v17, %v18710_v2  ;;  %v18870_v19 = vld [vmem:[%s22189_s0 + $0x548] sm:$0x77] }
 0x1e5   : > { %12739 = vmatmul.msk.bf16.vlgmr.msra.gmra.mxu0 %vm687_vm2, %v18785_v50  ;;  %12741 = vmatmul.msk.bf16.vlgmr.msra.gmra.mxu1 %vm687_vm2, %v18785_v50  ;;  %v3654_v2 = vunpack.c.l.b16 %v18870_v19  ;;  %v3505_v52 = vpack.c.b16 %v3493_v14, %v3493_v14 }
 0x1e7   : > { %v3666_v63 = vpack.c.b16 %v3654_v2, %v3654_v2 }
 0x1e8   : > { %12744 = vmatmul.msk.bf16.gmra.mxu2 %vm687_vm2, %v18856_v47  ;;  %12676 = vmatmul.msk.bf16.gmra.mxu3 %vm687_vm2, %v18704_v8  ;;  %v3528_v8 = vsel %vm694_vm0, %v3505_v52, 0  ;;  %v12800_v52 = vld [vmem:[%s22189_s0 + $0x500] sm:$0xf] }
 0x1e9   : > { %v3689_v39 = vsel %vm694_vm0, %v3666_v63, 0  ;;  %3592 = vmatpush.bf16.msra.mxu3 %v3528_v8  ;;  %v16236_v63 = vld [vmem:[%s22189_s0 + $0x50c] sm:$0xf0] }
 0x1ea   : > { %v2562_v18 = vpop.f32.mrf.mxu0  ;;  %v2581_v34 = vpop.f32.mrf.mxu1  ;;  %3737 = vmatpush.bf16.msra.mxu2 %v3689_v39  ;;  %v12801_v8 = vor.u32 %v16236_v63, %v12800_v52  ;;  %v12802_v39 = vld [vmem:[%s22189_s0 + $0x510] sm:$0xf0] }
 0x1eb   : > { %v2603_v10 = vpop.f32.mrf.mxu2  ;;  %v2426_v29 = vpop.f32.mrf.mxu3  ;;  %v18883_v55 = vadd.f32 %v2562_v18, %v18742_v21  ;;  %v18888_v37 = vadd.f32 %v2581_v34, %v18747_v30  ;;  %v12824_v21 = vld [vmem:[%s22189_s0 + $0x528] sm:$0xf]  ;;  %v16241_v30 = vld [vmem:[%s22189_s0 + $0x534] sm:$0xf0] }
 0x1ec   : > { %v18877_v58 = vadd.f32 %v2603_v10, %v18732_v45  ;;  %v18880_v51 = vadd.f32 %v2426_v29, %v18739_v6  ;;  %v16223_v45 = vld [vmem:[%s22189_s0 + $0x48c] sm:$0xf]  ;;  %v12775_v6 = vld [vmem:[%s22189_s0 + $0x498] sm:$0xf0]  ;;  %v12825_v56 = vor.u32 %v16241_v30, %v12824_v21  ;;  %v16234_v29 = vld [vmem:[%s22189_s0 + $0x504] sm:$0xf]  ;;  %v18998_v30 = vunpack.c.h.b16 %v18707_v60 }
 0x1ed   : > { %v12778_v32 = vor.u32 %v16223_v45, %v12775_v6  ;;  %v12805_v21 = vor.u32 %v16234_v29, %v12802_v39 }
 0x1ee   : > { %3738 = vmatpush.bf16.msra.mxu2 %v12825_v56 }
 0x1ef   : > { %3593 = vmatpush.bf16.msra.mxu3 %v12778_v32  ;;  %v12787_v32 = vld [vmem:[%s17034_s29 + $0x28] sm:$0xe] }
 0x1f0   : > { %v3619_v56 = vunpack.c.l.b16 %v12787_v32 }
 0x1f2   : > { %v2565_v3 = vpop.f32.mrf.mxu0  ;;  %v2584_v22 = vpop.f32.mrf.mxu1  ;;  %3739 = vmatpush.bf16.msra.mxu2 %v12809_v48 }
 0x1f3   : > { %v2605_v27 = vpop.f32.mrf.mxu2  ;;  %v2428_v35 = vpop.f32.mrf.mxu3  ;;  %v18921_v1 = vadd.f32 %v2565_v3, %v18782_v15  ;;  %v18924_v25 = vadd.f32 %v2584_v22, %v18788_v31  ;;  %3594 = vmatpush.bf16.msra.mxu3 %v12762_v7 }
 0x1f4   : > { %v18912_v62 = vadd.f32 %v2605_v27, %v18773_v49  ;;  %v18918_v23 = vadd.f32 %v2428_v35, %v18779_v41  ;;  %v12796_v49 = vld [vmem:[%s22189_s0 + $0x540] sm:$0x77]  ;;  %v3655_v27 = vunpack.c.h.b16 %v18870_v19 }
 0x1f5   : > { %12740 = vmatmul.msk.bf16.gmra.mxu0 %vm687_vm2, %v18856_v47  ;;  %12742 = vmatmul.msk.bf16.gmra.mxu1 %vm687_vm2, %v18856_v47  ;;  %v3652_v41 = vunpack.c.l.b16 %v12796_v49  ;;  %v3653_v15 = vunpack.c.h.b16 %v12796_v49  ;;  %v16239_v49 = vld [vmem:[%s22189_s0 + $0x52c] sm:$0xf] }
 0x1f6   : > { %v3667_v43 = vpack.c.b16 %v3655_v27, %v3655_v27 }
 0x1f7   : > { %v3664_v61 = vpack.c.b16 %v3652_v41, %v3652_v41  ;;  %v3665_v46 = vpack.c.b16 %v3653_v15, %v3653_v15  ;;  %v12875_v41 = vld [vmem:[%s22189_s0 + $0x578] sm:$0xf] }
 0x1f8   : > { %12783 = vmatmul.msk.bf16.vlgmr.msrb.gmra.mxu2 %vm687_vm2, %v18707_v60  ;;  %12745 = vmatmul.msk.bf16.vlgmr.msrb.gmra.mxu3 %vm687_vm2, %v18785_v50  ;;  %v3692_v48 = vsel %vm694_vm0, %v3667_v43, 0 }
 0x1f9   : > { %v3683_v57 = vsel %vm694_vm0, %v3664_v61, 0  ;;  %v3686_v50 = vsel %vm694_vm0, %v3665_v46, 0  ;;  %3756 = vmatpush.bf16.msrb.mxu3 %v3692_v48  ;;  %v16249_v61 = vld [vmem:[%s22189_s0 + $0x584] sm:$0xf0]  ;;  %v16246_v48 = vld [vmem:[%s22189_s0 + $0x574] sm:$0xf] }
 0x1fa   : > { %v2567_v16 = vpop.f32.mrf.mxu0  ;;  %v2586_v20 = vpop.f32.mrf.mxu1  ;;  %3699 = vmatpush.bf16.msra.mxu0 %v3683_v57  ;;  %3718 = vmatpush.bf16.msra.mxu1 %v3686_v50  ;;  %v12876_v46 = vor.u32 %v16249_v61, %v12875_v41  ;;  %v16235_v57 = vld [vmem:[%s22189_s0 + $0x50c] sm:$0xf]  ;;  %v12810_v50 = vld [vmem:[%s22189_s0 + $0x518] sm:$0xf0]  ;;  %v12851_v61 = vld [vmem:[%s22189_s0 + $0x550] sm:$0xf] }
 0x1fb   : > { %v18937_v31 = vpop.f32.mrf.mxu2  ;;  %v2617_v53 = vpop.f32.mrf.mxu3  ;;  %v18943_v4 = vadd.f32 %v2567_v16, %v18814_v24  ;;  %v18948_v17 = vadd.f32 %v2586_v20, %v18819_v13  ;;  %v16238_v24 = vld [vmem:[%s22189_s0 + $0x524] sm:$0xf]  ;;  %v12818_v13 = vld [vmem:[%s22189_s0 + $0x530] sm:$0xf0]  ;;  %v3622_v16 = vrot.slane %v18719_v44, 1 }
 0x1fc   : > { %v18940_v26 = vadd.f32 %v2617_v53, %v18811_v59  ;;  %v16240_v59 = vld [vmem:[%s22189_s0 + $0x52c] sm:$0xf0]  ;;  %v12821_v2 = vor.u32 %v16238_v24, %v12818_v13  ;;  %v16245_v13 = vld [vmem:[%s22189_s0 + $0x564] sm:$0xf0] }
 0x1fd   : > { %v12817_v14 = vor.u32 %v16240_v59, %v12816_v38  ;;  %v12859_v38 = vld [vmem:[%s22189_s0 + $0x558] sm:$0xf] }
 0x1fe   : > { %3719 = vmatpush.bf16.msra.mxu1 %v12821_v2  ;;  %v12860_v29 = vor.u32 %v16245_v13, %v12859_v38  ;;  %v12853_v38 = vld [vmem:[%s22189_s0 + $0x560] sm:$0xf0] }
 0x1ff   : > { %3700 = vmatpush.bf16.msra.mxu0 %v12817_v14  ;;  %v12813_v14 = vor.u32 %v16235_v57, %v12810_v50 }
 0x202   : > { %v18973_v34 = vpop.f32.mrf.mxu0  ;;  %v18981_v6 = vpop.f32.mrf.mxu1  ;;  %3720 = vmatpush.bf16.msra.mxu1 %v12805_v21 }
 0x203   : > { %v18962_v10 = vpop.f32.mrf.mxu2  ;;  %v2619_v18 = vpop.f32.mrf.mxu3  ;;  %3701 = vmatpush.bf16.msra.mxu0 %v12801_v8 }
 0x204   : > { %v18979_v45 = vadd.f32 %v2619_v18, %v18850_v28  ;;  %v18993_v28 = vld [vmem:[%s22189_s0 + $0x598] sm:$0x77] }
 0x205   : > { %12779 = vmatmul.msk.bf16.vlgmr.msrb.gmra.mxu0 %vm687_vm2, %v18707_v60  ;;  %12781 = vmatmul.msk.bf16.vlgmr.msrb.gmra.mxu1 %vm687_vm2, %v18707_v60  ;;  %v3850_v40 = vunpack.c.l.b16 %v18993_v28 }
 0x207   : > { %v3862_v35 = vpack.c.b16 %v3850_v40, %v3850_v40 }
 0x208   : > { %12784 = vmatmul.msk.bf16.gmra.mxu2 %vm687_vm2, %v18719_v44  ;;  %12746 = vmatmul.msk.bf16.gmra.mxu3 %vm687_vm2, %v18856_v47  ;;  %v19012_v47 = vpack.c.b16 %v18998_v30, %v3619_v56 }
 0x209   : > { %v3885_v19 = vsel %vm694_vm0, %v3862_v35, 0 }
 0x20a   : > { %v19004_v7 = vpop.f32.mrf.mxu0  ;;  %v19009_v22 = vpop.f32.mrf.mxu1  ;;  %3933 = vmatpush.bf16.msrb.mxu2 %v3885_v19  ;;  %v3621_v53 = vrot.slane %v19012_v47, 1 }
 0x20b   : > { %v19002_v42 = vpop.f32.mrf.mxu2  ;;  %v2622_v3 = vpop.f32.mrf.mxu3 }
 0x20c   : > { %v19007_v54 = vadd.f32 %v2622_v3, %v18880_v51  ;;  %v12826_v51 = vld [vmem:[%s22189_s0 + $0x538] sm:$0xf0]  ;;  %v19052_v63 = vsel %vm940_vm3, %v3621_v53, %v3622_v16  ;;  %v16248_v3 = vld [vmem:[%s22189_s0 + $0x57c] sm:$0xf0]  ;;  %v16242_v53 = vld [vmem:[%s22189_s0 + $0x554] sm:$0xf] }
 0x20d   : > { %v12829_v15 = vor.u32 %v16239_v49, %v12826_v51  ;;  %v12869_v49 = vld [vmem:[%s22189_s0 + $0x580] sm:$0xf0]  ;;  %v3624_v51 = vrot.slane %v18796_v36, 1  ;;  %v12856_v13 = vor.u32 %v16242_v53, %v12853_v38  ;;  %v12926_v53 = vld [vmem:[%s22189_s0 + $0x5c8] sm:$0xf] }
 0x20e   : > { %3934 = vmatpush.bf16.msrb.mxu2 %v12876_v46  ;;  %v12872_v41 = vor.u32 %v16246_v48, %v12869_v49  ;;  %v16244_v46 = vld [vmem:[%s22189_s0 + $0x55c] sm:$0xf0]  ;;  %v3810_v49 = vrot.slane %v18736_v11, 2  ;;  %v16257_v38 = vld [vmem:[%s22189_s0 + $0x5d4] sm:$0xf0] }
 0x20f   : > { %3757 = vmatpush.bf16.msrb.mxu3 %v12829_v15  ;;  %v12852_v50 = vor.u32 %v16244_v46, %v12851_v61  ;;  %v16247_v61 = vld [vmem:[%s22189_s0 + $0x57c] sm:$0xf]  ;;  %v12877_v46 = vld [vmem:[%s22189_s0 + $0x588] sm:$0xf0] }
 0x212   : > { %v19041_v24 = vpop.f32.mrf.mxu0  ;;  %v19049_v52 = vpop.f32.mrf.mxu1  ;;  %3935 = vmatpush.bf16.msrb.mxu2 %v12860_v29  ;;  %v3802_v29 = vshrl.u32 %v19012_v47, 16 }
 0x213   : > { %v19030_v20 = vpop.f32.mrf.mxu2  ;;  %v2624_v59 = vpop.f32.mrf.mxu3  ;;  %3758 = vmatpush.bf16.msrb.mxu3 %v12813_v14  ;;  %v19109_v14 = vsel %vm940_vm3, %v3622_v16, %v3624_v51  ;;  %v19122_v16 = vld [vmem:[%s22189_s0 + $0x5e8] sm:$0x77] }
 0x214   : > { %v19047_v2 = vadd.f32 %v2624_v59, %v18918_v23  ;;  %v12847_v23 = vld [vmem:[%s22189_s0 + $0x590] sm:$0x77] }
 0x215   : > { %12780 = vmatmul.msk.bf16.gmra.mxu0 %vm687_vm2, %v18719_v44  ;;  %12782 = vmatmul.msk.bf16.gmra.mxu1 %vm687_vm2, %v18719_v44  ;;  %v3848_v18 = vunpack.c.l.b16 %v12847_v23  ;;  %v3849_v8 = vunpack.c.h.b16 %v12847_v23  ;;  %v3805_v23 = vshll.u32 %v19012_v47, 16 }
 0x216   : > { %22205 = vst [vmem:[#allocation3_spill] sm:$0xff] %v19047_v2 }
 0x217   : > { %v3860_v21 = vpack.c.b16 %v3848_v18, %v3848_v18  ;;  %v3861_v32 = vpack.c.b16 %v3849_v8, %v3849_v8  ;;  %v3851_v18 = vunpack.c.h.b16 %v18993_v28  ;;  %v4030_v8 = vunpack.c.l.b16 %v19122_v16 }
 0x218   : > { %12834 = vmatmul.msk.bf16.vlgmr.msra.gmra.mxu2 %vm687_vm2, %v19052_v63  ;;  %12785 = vmatmul.msk.bf16.vlgmr.msra.gmra.mxu3 %vm687_vm2, %v18707_v60  ;;  %v12867_v60 = vld [vmem:[%s22189_s0 + $0x570] sm:$0xf] }
 0x219   : > { %v3879_v43 = vsel %vm694_vm0, %v3860_v21, 0  ;;  %v3882_v35 = vsel %vm694_vm0, %v3861_v32, 0  ;;  %v12868_v19 = vor.u32 %v16248_v3, %v12867_v60  ;;  %v3863_v32 = vpack.c.b16 %v3851_v18, %v3851_v18 }
 0x21a   : > { %v19069_v27 = vpop.f32.mrf.mxu0  ;;  %v19071_v40 = vpop.f32.mrf.mxu1  ;;  %3895 = vmatpush.bf16.msrb.mxu0 %v3879_v43  ;;  %3914 = vmatpush.bf16.msrb.mxu1 %v3882_v35  ;;  %v4042_v43 = vpack.c.b16 %v4030_v8, %v4030_v8  ;;  %v3804_v60 = vrot.slane %v3802_v29, 1  ;;  %v3807_v3 = vrot.slane %v3805_v23, 2  ;;  %v12927_v18 = vor.u32 %v16257_v38, %v12926_v53  ;;  %v19188_v53 = vld [vmem:[%s22197_s21 + $0x4] sm:$0xf] }
 0x21b   : > { %v19065_v39 = vpop.f32.mrf.mxu2  ;;  %v19067_v56 = vpop.f32.mrf.mxu3  ;;  %v3888_v28 = vsel %vm694_vm0, %v3863_v32, 0  ;;  %v16243_v32 = vld [vmem:[%s22189_s0 + $0x55c] sm:$0xf]  ;;  %v12898_v38 = vld [vmem:[%s22189_s0 + $0x5e0] sm:$0x77] }
 0x21c   : > { %v4065_v51 = vsel %vm694_vm0, %v4042_v43, 0  ;;  %3952 = vmatpush.bf16.msra.mxu3 %v3888_v28  ;;  %v12861_v43 = vld [vmem:[%s22189_s0 + $0x568] sm:$0xf0]  ;;  %v16253_v28 = vld [vmem:[%s22189_s0 + $0x5b4] sm:$0xf0] }
 0x21d   : > { %4113 = vmatpush.bf16.msra.mxu2 %v4065_v51 }
 0x21e   : > { %3896 = vmatpush.bf16.msrb.mxu0 %v12868_v19  ;;  %3915 = vmatpush.bf16.msrb.mxu1 %v12872_v41  ;;  %v3809_v19 = vrot.slane %v18807_v5, 1  ;;  %v12838_v41 = vld [vmem:[%s17034_s29 + $0x38] sm:$0x3] }
 0x21f   : > { %v3799_v23 = vunpack.c.l.b16 %v12838_v41 }
 0x220   : > { %v19153_v29 = vor.u32 %v3810_v49, %v3809_v19  ;;  %v12864_v49 = vor.u32 %v16243_v32, %v12861_v43  ;;  %v4029_v32 = vunpack.c.h.b16 %v12898_v38 }
 0x221   : > { %4114 = vmatpush.bf16.msra.mxu2 %v12927_v18  ;;  %v4028_v18 = vunpack.c.l.b16 %v12898_v38 }
 0x222   : > { %v19101_v36 = vpop.f32.mrf.mxu0  ;;  %v19106_v59 = vpop.f32.mrf.mxu1  ;;  %3897 = vmatpush.bf16.msrb.mxu0 %v12852_v50  ;;  %3916 = vmatpush.bf16.msrb.mxu1 %v12856_v13  ;;  %v12880_v50 = vor.u32 %v16247_v61, %v12877_v46  ;;  %v3808_v13 = vor.u32 %v3807_v3, %v3804_v60  ;;  %v12910_v60 = vld [vmem:[%s22189_s0 + $0x5a8] sm:$0xf]  ;;  %v19179_v61 = vpack.c.b16 %v3799_v23, %v3799_v23 }
 0x223   : > { %v19088_v15 = vpop.f32.mrf.mxu2  ;;  %v19099_v57 = vpop.f32.mrf.mxu3  ;;  %v12911_v46 = vor.u32 %v16253_v28, %v12910_v60  ;;  %v4040_v60 = vpack.c.b16 %v4028_v18, %v4028_v18  ;;  %v16256_v18 = vld [vmem:[%s22189_s0 + $0x5cc] sm:$0xf0] }
 0x224   : > { %3953 = vmatpush.bf16.msra.mxu3 %v12880_v50  ;;  %v19177_v41 = vsel %vm1121_vm4, %v3808_v13, %v19153_v29  ;;  %v2809_v50 = vadd.f32 %v18937_v31, %v18804_v33  ;;  %v3814_v13 = vshrl.u32 %v19179_v61, 16  ;;  %v3817_v23 = vshll.u32 %v19179_v61, 16 }
 0x225   : > { %12830 = vmatmul.msk.bf16.vlgmr.msra.gmra.mxu0 %vm687_vm2, %v19052_v63  ;;  %12832 = vmatmul.msk.bf16.vlgmr.msra.gmra.mxu1 %vm687_vm2, %v19052_v63  ;;  %v19203_v33 = vperm.slane %v19188_v53, 2 }
 0x226   : > { %4115 = vmatpush.bf16.msra.mxu2 %v12911_v46  ;;  %v3005_v43 = vadd.f32 %v19065_v39, %v2809_v50  ;;  %v3816_v11 = vrot.slane %v3814_v13, 1  ;;  %v3819_v5 = vrot.slane %v3817_v23, 2  ;;  %v4059_v46 = vsel %vm694_vm0, %v4040_v60, 0  ;;  %v12918_v50 = vld [vmem:[%s22189_s0 + $0x5c0] sm:$0xf] }
 0x227   : > { %4075 = vmatpush.bf16.msra.mxu0 %v4059_v46  ;;  %v16254_v13 = vld [vmem:[%s22189_s0 + $0x5c4] sm:$0xf]  ;;  %v2813_v23 = vadd.f32 %v18962_v10, %v18844_v0  ;;  %v2808_v46 = vadd.f32 %v18981_v6, %v18859_v12 }
 0x228   : > { %12835 = vmatmul.msk.bf16.gmra.mxu2 %vm687_vm2, %v19109_v14  ;;  %12786 = vmatmul.msk.bf16.gmra.mxu3 %vm687_vm2, %v18719_v44  ;;  %v3820_v60 = vor.u32 %v3819_v5, %v3816_v11  ;;  %v16252_v11 = vld [vmem:[%s22189_s0 + $0x5ac] sm:$0xf0]  ;;  %v16250_v5 = vld [vmem:[%s22189_s0 + $0x5a4] sm:$0xf] }
 0x229   : > { %3954 = vmatpush.bf16.msra.mxu3 %v12864_v49  ;;  %v4041_v49 = vpack.c.b16 %v4029_v32, %v4029_v32  ;;  %v12919_v32 = vor.u32 %v16256_v18, %v12918_v50  ;;  %v3004_v12 = vadd.f32 %v19106_v59, %v2808_v46  ;;  %v12904_v50 = vld [vmem:[%s22189_s0 + $0x5b0] sm:$0xf0] }
 0x22a   : > { %v19132_v47 = vpop.f32.mrf.mxu0  ;;  %v19134_v48 = vpop.f32.mrf.mxu1 }
 0x22b   : > { %v19128_v21 = vpop.f32.mrf.mxu2  ;;  %v19130_v35 = vpop.f32.mrf.mxu3  ;;  %v4062_v39 = vsel %vm694_vm0, %v4041_v49, 0  ;;  %4076 = vmatpush.bf16.msra.mxu0 %v12919_v32 }
 0x22c   : > { %22206 = vst [vmem:[#allocation5_spill] sm:$0xff] %v19130_v35  ;;  %4094 = vmatpush.bf16.msra.mxu1 %v4062_v39  ;;  %v3009_v39 = vadd.f32 %v19088_v15, %v2813_v23  ;;  %v19234_v35 = vperm.slane %v19188_v53, 0  ;;  %v19257_v23 = vsel %vm1121_vm4, %v19153_v29, %v3820_v60  ;;  %v2811_v29 = vadd.f32 %v19004_v7, %v18883_v55 }
 0x22d   : > { %v2812_v7 = vadd.f32 %v19009_v22, %v18888_v37 }
 0x232   : > { %v19168_v19 = vpop.f32.mrf.mxu0  ;;  %v19173_v51 = vpop.f32.mrf.mxu1 }
 0x233   : > { %v19155_v8 = vpop.f32.mrf.mxu2  ;;  %v19166_v3 = vpop.f32.mrf.mxu3 }
 0x234   : > { %22207 = vst [vmem:[#allocation7_spill] sm:$0xff] %v19166_v3 }
 0x235   : > { %12831 = vmatmul.msk.bf16.gmra.mxu0 %vm687_vm2, %v19109_v14  ;;  %12833 = vmatmul.msk.bf16.gmra.mxu1 %vm687_vm2, %v19109_v14 }
 0x238   : > { %12885 = vmatmul.msk.bf16.vlgmr.msrb.gmra.mxu2 %vm687_vm2, %v19177_v41  ;;  %12836 = vmatmul.msk.bf16.vlgmr.msrb.gmra.mxu3 %vm687_vm2, %v19052_v63 }
 0x23a   : > { %v19207_v2 = vpop.f32.mrf.mxu0  ;;  %v19209_v63 = vpop.f32.mrf.mxu1 }
 0x23b   : > { %v3154_v31 = vpop.f32.mrf.mxu2  ;;  %v19205_v28 = vpop.f32.mrf.mxu3 }
 0x23c   : > { %v3185_v3 = vadd.f32 %v3154_v31, %v3005_v43  ;;  %v12920_v43 = vld [vmem:[%s22189_s0 + $0x5d0] sm:$0xf0]  ;;  %v2807_v31 = vadd.f32 %v18973_v34, %v18853_v9  ;;  %v12902_v9 = vld [vmem:[%s22189_s0 + $0x5a0] sm:$0xf] }
 0x23d   : > { %v12923_v49 = vor.u32 %v16254_v13, %v12920_v43  ;;  %v12889_v43 = vld [vmem:[%s17034_s29 + $0x28] sm:$0xc] }
 0x23e   : > { %v3212_v38 = vadd.f32 %v19203_v33, %v3185_v3  ;;  %v3003_v0 = vadd.f32 %v19101_v36, %v2807_v31  ;;  %v19250_v36 = vperm.slane %v19188_v53, 1 }
 0x23f   : > { %4095 = vmatpush.bf16.msra.mxu1 %v12923_v49  ;;  %v2817_v49 = vadd.f32 %v19002_v42, %v18877_v58  ;;  %v3995_v58 = vunpack.c.l.b16 %v12889_v43  ;;  %v4031_v42 = vunpack.c.h.b16 %v19122_v16  ;;  %v12977_v43 = vld [vmem:[%s22189_s0 + $0x618] sm:$0xf] }
 0x240   : > { %v3228_v3 = vmax.f32 %v3212_v38, 0.0  ;;  %v12903_v38 = vor.u32 %v16252_v11, %v12902_v9  ;;  %v3007_v11 = vadd.f32 %v19132_v47, %v2811_v29  ;;  %v16265_v29 = vld [vmem:[%s22189_s0 + $0x624] sm:$0xf0] }
 0x241   : > { %v19290_v37 = vpack.c.b16 %v18998_v30, %v3995_v58  ;;  %v12978_v58 = vor.u32 %v16265_v29, %v12977_v43 }
 0x242   : > { %3245 = vst [vmem:[#allocation2 + $0x90] sm:$0xff] %v3228_v3  ;;  %v3116_v15 = vpop.f32.mrf.mxu0  ;;  %v3135_v13 = vpop.f32.mrf.mxu1  ;;  %v12907_v3 = vor.u32 %v16250_v5, %v12904_v50  ;;  %4077 = vmatpush.bf16.msra.mxu0 %v12903_v38 }
 0x243   : > { %v3156_v10 = vpop.f32.mrf.mxu2  ;;  %v19247_v34 = vpop.f32.mrf.mxu3  ;;  %v3183_v18 = vadd.f32 %v3116_v15, %v3003_v0  ;;  %v3184_v32 = vadd.f32 %v3135_v13, %v3004_v12  ;;  %v4043_v12 = vpack.c.b16 %v4031_v42, %v4031_v42  ;;  %v2816_v42 = vadd.f32 %v19049_v52, %v18924_v25 }
 0x244   : > { %v3189_v6 = vadd.f32 %v3156_v10, %v3009_v39  ;;  %4096 = vmatpush.bf16.msra.mxu1 %v12907_v3  ;;  %v19276_v39 = vld [vmem:[%s22189_s0 + $0x638] sm:$0x77]  ;;  %v3013_v10 = vadd.f32 %v19128_v21, %v2817_v49 }
 0x245   : > { %v3210_v31 = vadd.f32 %v19234_v35, %v3183_v18  ;;  %12881 = vmatmul.msk.bf16.vlgmr.msrb.gmra.mxu0 %vm687_vm2, %v19177_v41  ;;  %12883 = vmatmul.msk.bf16.vlgmr.msrb.gmra.mxu1 %vm687_vm2, %v19177_v41  ;;  %v3211_v46 = vadd.f32 %v19250_v36, %v3184_v32  ;;  %v4226_v55 = vunpack.c.l.b16 %v19276_v39  ;;  %v4068_v22 = vsel %vm694_vm0, %v4043_v12, 0  ;;  %v12928_v32 = vld [vmem:[%s22189_s0 + $0x5d8] sm:$0xf0]  ;;  %v16261_v12 = vld [vmem:[%s22189_s0 + $0x604] sm:$0xf0] }
 0x246   : > { %v3216_v59 = vadd.f32 %v19203_v33, %v3189_v6  ;;  %4132 = vmatpush.bf16.msrb.mxu3 %v4068_v22  ;;  %v3012_v25 = vadd.f32 %v19173_v51, %v2816_v42  ;;  %v2810_v22 = vadd.f32 %v19067_v56, %v18940_v26  ;;  %v2820_v56 = vadd.f32 %v19071_v40, %v18948_v17  ;;  %v12971_v42 = vld [vmem:[%s22189_s0 + $0x620] sm:$0xf0] }
 0x247   : > { %v3226_v0 = vmax.f32 %v3210_v31, 0.0  ;;  %v3227_v9 = vmax.f32 %v3211_v46, 0.0  ;;  %v4238_v6 = vpack.c.b16 %v4226_v55, %v4226_v55  ;;  %v2815_v31 = vadd.f32 %v19041_v24, %v18921_v1 }
 0x248   : > { %v3232_v60 = vmax.f32 %v3216_v59, 0.0  ;;  %12886 = vmatmul.msk.bf16.gmra.mxu2 %vm687_vm2, %v19257_v23  ;;  %12837 = vmatmul.msk.bf16.gmra.mxu3 %vm687_vm2, %v19109_v14  ;;  %v3008_v14 = vadd.f32 %v19134_v48, %v2812_v7  ;;  %v2821_v48 = vadd.f32 %v19030_v20, %v18912_v62  ;;  %v16255_v59 = vld [vmem:[%s22189_s0 + $0x5cc] sm:$0xf]  ;;  %v3997_v46 = vrot.slane %v19290_v37, 2 }
 0x249   : > { %3243 = vst [vmem:[#allocation2 + $0x80] sm:$0xff] %v3226_v0  ;;  %v4261_v21 = vsel %vm694_vm0, %v4238_v6, 0  ;;  %v12931_v20 = vor.u32 %v16255_v59, %v12928_v32  ;;  %v3998_v0 = vrot.slane %v18719_v44, 2  ;;  %v3011_v24 = vadd.f32 %v19168_v19, %v2815_v31  ;;  %v12961_v19 = vld [vmem:[%s22189_s0 + $0x5f8] sm:$0xf] }
 0x24a   : > { %3249 = vst [vmem:[#allocation2 + $0xb0] sm:$0xff] %v3232_v60  ;;  %v3118_v38 = vpop.f32.mrf.mxu0  ;;  %v3137_v18 = vpop.f32.mrf.mxu1  ;;  %4309 = vmatpush.bf16.msrb.mxu2 %v4261_v21  ;;  %v3017_v55 = vadd.f32 %v19155_v8, %v2821_v48  ;;  %v3006_v59 = vadd.f32 %v19205_v28, %v2810_v22  ;;  %v19362_v31 = vperm.slane %v19188_v53, 3  ;;  %v12969_v53 = vld [vmem:[%s22189_s0 + $0x610] sm:$0xf]  ;;  %v4181_v44 = vshll.u32 %v19290_v37, 16 }
 0x24b   : > { %v3159_v5 = vpop.f32.mrf.mxu2  ;;  %3244 = vst [vmem:[#allocation2 + $0x88] sm:$0xff] %v3227_v9  ;;  %v19287_v15 = vpop.f32.mrf.mxu3  ;;  %v3187_v50 = vadd.f32 %v3118_v38, %v3007_v11  ;;  %v3188_v13 = vadd.f32 %v3137_v18, %v3008_v14  ;;  %4133 = vmatpush.bf16.msrb.mxu3 %v12931_v20  ;;  %v12912_v9 = vld [vmem:[%s22189_s0 + $0x5b8] sm:$0xf0]  ;;  %v19337_v51 = vsel %vm1318_vm5, %v3997_v46, %v3998_v0  ;;  %v22208_v22 = vld [vmem:[#allocation5_spill] sm:$0xff] }
 0x24c   : > { %v3193_v16 = vadd.f32 %v3159_v5, %v3013_v10  ;;  %v16251_v10 = vld [vmem:[%s22189_s0 + $0x5ac] sm:$0xf] }
 0x24d   : > { %v3214_v3 = vadd.f32 %v19234_v35, %v3187_v50  ;;  %v3215_v62 = vadd.f32 %v19250_v36, %v3188_v13  ;;  %v12915_v5 = vor.u32 %v16251_v10, %v12912_v9  ;;  %v2819_v13 = vadd.f32 %v19069_v27, %v18943_v4 }
 0x24e   : > { %v3220_v47 = vadd.f32 %v19203_v33, %v3193_v16  ;;  %4310 = vmatpush.bf16.msrb.mxu2 %v12978_v58  ;;  %v12962_v16 = vor.u32 %v16261_v12, %v12961_v19  ;;  %v16262_v58 = vld [vmem:[%s22189_s0 + $0x614] sm:$0xf]  ;;  %v2814_v10 = vadd.f32 %v19099_v57, %v18979_v45  ;;  %v16260_v45 = vld [vmem:[%s22189_s0 + $0x5fc] sm:$0xf0]  ;;  %v12955_v12 = vld [vmem:[%s22189_s0 + $0x600] sm:$0xf0] }
 0x24f   : > { %v3230_v60 = vmax.f32 %v3214_v3, 0.0  ;;  %v3231_v1 = vmax.f32 %v3215_v62, 0.0  ;;  %4134 = vmatpush.bf16.msrb.mxu3 %v12915_v5  ;;  %v3015_v43 = vadd.f32 %v19207_v2, %v2819_v13 }
 0x250   : > { %v3236_v49 = vmax.f32 %v3220_v47, 0.0  ;;  %v3010_v5 = vadd.f32 %v19247_v34, %v2814_v10  ;;  %v16258_v34 = vld [vmem:[%s22189_s0 + $0x5f4] sm:$0xf] }
 0x251   : > { %3247 = vst [vmem:[#allocation2 + $0xa0] sm:$0xff] %v3230_v60  ;;  %v16264_v60 = vld [vmem:[%s22189_s0 + $0x61c] sm:$0xf0] }
 0x252   : > { %3253 = vst [vmem:[#allocation2 + $0xd0] sm:$0xff] %v3236_v49  ;;  %v3121_v11 = vpop.f32.mrf.mxu0  ;;  %v3140_v14 = vpop.f32.mrf.mxu1  ;;  %4311 = vmatpush.bf16.msrb.mxu2 %v12962_v16  ;;  %v3016_v49 = vadd.f32 %v19209_v63, %v2820_v56  ;;  %v12970_v63 = vor.u32 %v16264_v60, %v12969_v53  ;;  %v16273_v53 = vld [vmem:[%s22189_s0 + $0x674] sm:$0xf0] }
 0x253   : > { %v3161_v7 = vpop.f32.mrf.mxu2  ;;  %3248 = vst [vmem:[#allocation2 + $0xa8] sm:$0xff] %v3231_v1  ;;  %v19326_v52 = vpop.f32.mrf.mxu3  ;;  %v3191_v6 = vadd.f32 %v3121_v11, %v3011_v24  ;;  %v3192_v50 = vadd.f32 %v3140_v14, %v3012_v25  ;;  %v12974_v24 = vor.u32 %v16262_v58, %v12971_v42  ;;  %v22212_v58 = vld [vmem:[#allocation7_spill] sm:$0xff] }
 0x254   : > { %v3197_v8 = vadd.f32 %v3161_v7, %v3017_v55 }
 0x255   : > { %v3218_v18 = vadd.f32 %v19234_v35, %v3191_v6  ;;  %12882 = vmatmul.msk.bf16.gmra.mxu0 %vm687_vm2, %v19257_v23  ;;  %12884 = vmatmul.msk.bf16.gmra.mxu1 %vm687_vm2, %v19257_v23  ;;  %v3219_v47 = vadd.f32 %v19250_v36, %v3192_v50 }
 0x256   : > { %v3224_v38 = vadd.f32 %v19203_v33, %v3197_v8  ;;  %v12949_v33 = vld [vmem:[%s22189_s0 + $0x630] sm:$0x77]  ;;  %v4000_v8 = vrot.slane %v19179_v61, 2 }
 0x257   : > { %v3234_v48 = vmax.f32 %v3218_v18, 0.0  ;;  %v4224_v3 = vunpack.c.l.b16 %v12949_v33  ;;  %v4225_v26 = vunpack.c.h.b16 %v12949_v33  ;;  %v3235_v32 = vmax.f32 %v3219_v47, 0.0 }
 0x258   : > { %v3240_v21 = vmax.f32 %v3224_v38, 0.0  ;;  %12936 = vmatmul.msk.bf16.vlgmr.msra.gmra.mxu2 %vm687_vm2, %v19337_v51  ;;  %12887 = vmatmul.msk.bf16.vlgmr.msra.gmra.mxu3 %vm687_vm2, %v19177_v41  ;;  %v19409_v16 = vsel %vm1318_vm5, %v3998_v0, %v4000_v8  ;;  %v12958_v38 = vor.u32 %v16258_v34, %v12955_v12  ;;  %v4178_v18 = vshrl.u32 %v19290_v37, 16  ;;  %v19423_v0 = vld [vmem:[%s22189_s0 + $0x688] sm:$0x77] }
 0x259   : > { %3251 = vst [vmem:[#allocation2 + $0xc0] sm:$0xff] %v3234_v48  ;;  %v4236_v27 = vpack.c.b16 %v4224_v3, %v4224_v3  ;;  %v4237_v41 = vpack.c.b16 %v4225_v26, %v4225_v26  ;;  %v4227_v33 = vunpack.c.h.b16 %v19276_v39  ;;  %v4406_v13 = vunpack.c.l.b16 %v19423_v0  ;;  %v22210_v39 = vld [vmem:[#allocation6_spill] sm:$0xff] }
 0x25a   : > { %3257 = vst [vmem:[#allocation2 + $0xf0] sm:$0xff] %v3240_v21  ;;  %v3123_v20 = vpop.f32.mrf.mxu0  ;;  %v3142_v28 = vpop.f32.mrf.mxu1  ;;  %v2818_v21 = vadd.f32 %v22208_v22, %v19007_v54  ;;  %v4180_v54 = vrot.slane %v4178_v18, 2 }
 0x25b   : > { %v19364_v4 = vpop.f32.mrf.mxu2  ;;  %3252 = vst [vmem:[#allocation2 + $0xc8] sm:$0xff] %v3235_v32  ;;  %v3173_v62 = vpop.f32.mrf.mxu3  ;;  %v3195_v40 = vadd.f32 %v3123_v20, %v3015_v43  ;;  %v4255_v29 = vsel %vm694_vm0, %v4236_v27, 0  ;;  %v4258_v2 = vsel %vm694_vm0, %v4237_v41, 0  ;;  %v3196_v46 = vadd.f32 %v3142_v28, %v3016_v49  ;;  %v22209_v43 = vld [vmem:[#allocation4_spill] sm:$0xff] }
 0x25c   : > { %v3186_v17 = vadd.f32 %v3173_v62, %v3006_v59  ;;  %4271 = vmatpush.bf16.msrb.mxu0 %v4255_v29  ;;  %4290 = vmatpush.bf16.msrb.mxu1 %v4258_v2  ;;  %v3014_v37 = vadd.f32 %v19287_v15, %v2818_v21  ;;  %v4239_v3 = vpack.c.b16 %v4227_v33, %v4227_v33  ;;  %v4183_v32 = vrot.slane %v4181_v44, 3  ;;  %v12940_v62 = vld [vmem:[%s17034_s29 + $0x38] sm:$0x7]  ;;  %v13028_v28 = vld [vmem:[%s22189_s0 + $0x668] sm:$0xf] }
 0x25d   : > { %v3222_v1 = vadd.f32 %v19234_v35, %v3195_v40  ;;  %v3223_v7 = vadd.f32 %v19250_v36, %v3196_v46  ;;  %v12953_v35 = vld [vmem:[%s22189_s0 + $0x5f0] sm:$0xf]  ;;  %v4418_v26 = vpack.c.b16 %v4406_v13, %v4406_v13  ;;  %v4185_v27 = vrot.slane %v22209_v43, 2  ;;  %v12979_v40 = vld [vmem:[%s22189_s0 + $0x628] sm:$0xf0] }
 0x25e   : > { %v3213_v55 = vadd.f32 %v19362_v31, %v3186_v17  ;;  %v12954_v61 = vor.u32 %v16260_v45, %v12953_v35  ;;  %v4186_v49 = vrot.slane %v22210_v39, 3  ;;  %v4264_v15 = vsel %vm694_vm0, %v4239_v3, 0  ;;  %v16263_v17 = vld [vmem:[%s22189_s0 + $0x61c] sm:$0xf]  ;;  %v16269_v45 = vld [vmem:[%s22189_s0 + $0x654] sm:$0xf0] }
 0x25f   : > { %v3238_v25 = vmax.f32 %v3222_v1, 0.0  ;;  %v3239_v11 = vmax.f32 %v3223_v7, 0.0  ;;  %v4441_v20 = vsel %vm694_vm0, %v4418_v26, 0  ;;  %4328 = vmatpush.bf16.msra.mxu3 %v4264_v15  ;;  %v12982_v2 = vor.u32 %v16263_v17, %v12979_v40  ;;  %v13020_v43 = vld [vmem:[%s22189_s0 + $0x660] sm:$0xf] }
 0x260   : > { %v3229_v9 = vmax.f32 %v3213_v55, 0.0  ;;  %4272 = vmatpush.bf16.msrb.mxu0 %v12970_v63  ;;  %4291 = vmatpush.bf16.msrb.mxu1 %v12974_v24  ;;  %v4175_v60 = vunpack.c.l.b16 %v12940_v62  ;;  %v13029_v46 = vor.u32 %v16273_v53, %v13028_v28  ;;  %v22211_v63 = vld [vmem:[#allocation3_spill] sm:$0xff]  ;;  %v4184_v1 = vor.u32 %v4183_v32, %v4180_v54  ;;  %v13022_v39 = vld [vmem:[%s22189_s0 + $0x670] sm:$0xf0]  ;;  %v16268_v17 = vld [vmem:[%s22189_s0 + $0x64c] sm:$0xf0] }
 0x261   : > { %3255 = vst [vmem:[#allocation2 + $0xe0] sm:$0xff] %v3238_v25  ;;  %4489 = vmatpush.bf16.msra.mxu2 %v4441_v20  ;;  %v2822_v42 = vadd.f32 %v22212_v58, %v22211_v63  ;;  %v19458_v24 = vor.u32 %v4186_v49, %v4185_v27  ;;  %v12963_v25 = vld [vmem:[%s22189_s0 + $0x608] sm:$0xf0]  ;;  %v16270_v27 = vld [vmem:[%s22189_s0 + $0x664] sm:$0xf] }
 0x262   : > { %3246 = vst [vmem:[#allocation2 + $0x98] sm:$0xff] %v3229_v9  ;;  %v19396_v36 = vpop.f32.mrf.mxu0  ;;  %v19404_v14 = vpop.f32.mrf.mxu1  ;;  %v16259_v9 = vld [vmem:[%s22189_s0 + $0x5fc] sm:$0xf]  ;;  %v13025_v49 = vor.u32 %v16270_v27, %v13022_v39  ;;  %v13004_v20 = vld [vmem:[%s22189_s0 + $0x640] sm:$0xf] }
 0x263   : > { %v19388_v19 = vpop.f32.mrf.mxu2  ;;  %v3175_v57 = vpop.f32.mrf.mxu3  ;;  %3256 = vst [vmem:[#allocation2 + $0xe8] sm:$0xff] %v3239_v11  ;;  %4329 = vmatpush.bf16.msra.mxu3 %v12982_v2  ;;  %v3018_v7 = vadd.f32 %v19326_v52, %v2822_v42  ;;  %v12966_v35 = vor.u32 %v16259_v9, %v12963_v25  ;;  %v13012_v52 = vld [vmem:[%s22189_s0 + $0x648] sm:$0xf]  ;;  %v19483_v34 = vsel %vm1499_vm6, %v4184_v1, %v19458_v24  ;;  %v16266_v40 = vld [vmem:[%s22189_s0 + $0x644] sm:$0xf]  ;;  %v4407_v1 = vunpack.c.h.b16 %v19423_v0 }
 0x264   : > { %v3190_v6 = vadd.f32 %v3175_v57, %v3010_v5  ;;  %4273 = vmatpush.bf16.msrb.mxu0 %v12954_v61  ;;  %4292 = vmatpush.bf16.msrb.mxu1 %v12958_v38  ;;  %v19471_v5 = vpack.c.b16 %v4175_v60, %v4175_v60  ;;  %v13013_v12 = vor.u32 %v16269_v45, %v13012_v52  ;;  %v13006_v53 = vld [vmem:[%s22189_s0 + $0x650] sm:$0xf0]  ;;  %v13030_v0 = vld [vmem:[%s22189_s0 + $0x678] sm:$0xf0] }
 0x265   : > { %12932 = vmatmul.msk.bf16.vlgmr.msra.gmra.mxu0 %vm687_vm2, %v19337_v51  ;;  %12934 = vmatmul.msk.bf16.vlgmr.msra.gmra.mxu1 %vm687_vm2, %v19337_v51  ;;  %v13005_v2 = vor.u32 %v16268_v17, %v13004_v20  ;;  %v13009_v58 = vor.u32 %v16266_v40, %v13006_v53 }
 0x266   : > { %v3217_v50 = vadd.f32 %v19362_v31, %v3190_v6  ;;  %4490 = vmatpush.bf16.msra.mxu2 %v13029_v46  ;;  %v4190_v38 = vshrl.u32 %v19471_v5, 16 }
 0x267   : > { %4330 = vmatpush.bf16.msra.mxu3 %v12966_v35 }
 0x268   : > { %12937 = vmatmul.msk.bf16.gmra.mxu2 %vm687_vm2, %v19409_v16  ;;  %v3233_v47 = vmax.f32 %v3217_v50, 0.0  ;;  %12888 = vmatmul.msk.bf16.gmra.mxu3 %vm687_vm2, %v19257_v23  ;;  %v13000_v50 = vld [vmem:[%s22189_s0 + $0x680] sm:$0x77] }
 0x269   : > { %v4404_v44 = vunpack.c.l.b16 %v13000_v50  ;;  %v4405_v22 = vunpack.c.h.b16 %v13000_v50 }
 0x26a   : > { %3250 = vst [vmem:[#allocation2 + $0xb8] sm:$0xff] %v3233_v47  ;;  %v19434_v59 = vpop.f32.mrf.mxu0  ;;  %v19437_v41 = vpop.f32.mrf.mxu1  ;;  %4491 = vmatpush.bf16.msra.mxu2 %v13013_v12 }
 0x26b   : > { %v19432_v48 = vpop.f32.mrf.mxu2  ;;  %v3178_v56 = vpop.f32.mrf.mxu3  ;;  %v4416_v47 = vpack.c.b16 %v4404_v44, %v4404_v44  ;;  %v4417_v33 = vpack.c.b16 %v4405_v22, %v4405_v22 }
 0x26c   : > { %v3194_v23 = vadd.f32 %v3178_v56, %v3014_v37  ;;  %v4192_v56 = vrot.slane %v4190_v38, 2  ;;  %v13014_v38 = vld [vmem:[%s22189_s0 + $0x658] sm:$0xf0] }
 0x26d   : > { %v4435_v54 = vsel %vm694_vm0, %v4416_v47, 0  ;;  %v4438_v32 = vsel %vm694_vm0, %v4417_v33, 0 }
 0x26e   : > { %v3221_v29 = vadd.f32 %v19362_v31, %v3194_v23  ;;  %4451 = vmatpush.bf16.msra.mxu0 %v4435_v54  ;;  %4470 = vmatpush.bf16.msra.mxu1 %v4438_v32 }
 0x270   : > { %v3237_v55 = vmax.f32 %v3221_v29, 0.0 }
 0x272   : > { %3254 = vst [vmem:[#allocation2 + $0xd8] sm:$0xff] %v3237_v55  ;;  %v19469_v11 = vpop.f32.mrf.mxu0  ;;  %v19479_v61 = vpop.f32.mrf.mxu1  ;;  %4471 = vmatpush.bf16.msra.mxu1 %v13025_v49  ;;  %v12991_v55 = vld [vmem:[%s17034_s29 + $0x28] sm:$0x8] }
 0x273   : > { %v19461_v10 = vpop.f32.mrf.mxu2  ;;  %v3180_v8 = vpop.f32.mrf.mxu3 }
 0x274   : > { %v3198_v57 = vadd.f32 %v3180_v8, %v3018_v7 }
 0x275   : > { %12933 = vmatmul.msk.bf16.gmra.mxu0 %vm687_vm2, %v19409_v16  ;;  %12935 = vmatmul.msk.bf16.gmra.mxu1 %vm687_vm2, %v19409_v16 }
 0x276   : > { %v3225_v6 = vadd.f32 %v19362_v31, %v3198_v57  ;;  %v4193_v31 = vshll.u32 %v19471_v5, 16  ;;  %4472 = vmatpush.bf16.msra.mxu1 %v13009_v58 }
 0x278   : > { %12987 = vmatmul.msk.bf16.vlgmr.msrb.gmra.mxu2 %vm687_vm2, %v19483_v34  ;;  %v3241_v18 = vmax.f32 %v3225_v6, 0.0  ;;  %12938 = vmatmul.msk.bf16.vlgmr.msrb.gmra.mxu3 %vm687_vm2, %v19337_v51  ;;  %v4195_v51 = vrot.slane %v4193_v31, 3 }
 0x27a   : > { %3258 = vst [vmem:[#allocation2 + $0xf8] sm:$0xff] %v3241_v18  ;;  %v19504_v3 = vpop.f32.mrf.mxu0  ;;  %v19506_v26 = vpop.f32.mrf.mxu1  ;;  %v4196_v62 = vor.u32 %v4195_v51, %v4192_v56 }
 0x27b   : > { %v3577_v21 = vpop.f32.mrf.mxu2  ;;  %v19499_v13 = vpop.f32.mrf.mxu3 }
 0x27c   : > { %v19502_v37 = vadd.f32 %v3577_v21, %v19364_v4  ;;  %v16272_v4 = vld [vmem:[%s22189_s0 + $0x66c] sm:$0xf0]  ;;  %v4197_v63 = vsel %vm1499_vm6, %v19458_v24, %v4196_v62 }
 0x27d   : > { %v13021_v23 = vor.u32 %v16272_v4, %v13020_v43 }
 0x27f   : > { %4452 = vmatpush.bf16.msra.mxu0 %v13021_v23 }
 0x282   : > { %v3539_v29 = vpop.f32.mrf.mxu0  ;;  %v3558_v46 = vpop.f32.mrf.mxu1 }
 0x283   : > { %v19522_v15 = vpop.f32.mrf.mxu2  ;;  %v19533_v28 = vpop.f32.mrf.mxu3  ;;  %v3540_v60 = vadd.f32 %v3539_v29, %v19396_v36  ;;  %v3559_v42 = vadd.f32 %v3558_v46, %v19404_v14  ;;  %4453 = vmatpush.bf16.msra.mxu0 %v13005_v2  ;;  %v4371_v36 = vunpack.c.l.b16 %v12991_v55  ;;  %v4419_v14 = vpack.c.b16 %v4407_v1, %v4407_v1 }
 0x284   : > { %22213 = vst [vmem:[#allocation5_spill] sm:$0xff] %v19533_v28 }
 0x285   : > { %12983 = vmatmul.msk.bf16.vlgmr.msrb.gmra.mxu0 %vm687_vm2, %v19483_v34  ;;  %12985 = vmatmul.msk.bf16.vlgmr.msrb.gmra.mxu1 %vm687_vm2, %v19483_v34  ;;  %v4372_v35 = vpack.c.b16 %v18998_v30, %v4371_v36  ;;  %v4444_v52 = vsel %vm694_vm0, %v4419_v14, 0  ;;  %v16267_v30 = vld [vmem:[%s22189_s0 + $0x64c] sm:$0xf] }
 0x286   : > { %4508 = vmatpush.bf16.msrb.mxu3 %v4444_v52  ;;  %v13017_v31 = vor.u32 %v16267_v30, %v13014_v38 }
 0x287   : > { %v4373_v57 = vrot.slane %v4372_v35, 3 }
 0x288   : > { %12988 = vmatmul.msk.bf16.gmra.mxu2 %vm687_vm2, %v4197_v63  ;;  %12939 = vmatmul.msk.bf16.gmra.mxu3 %vm687_vm2, %v19409_v16  ;;  %v16271_v16 = vld [vmem:[%s22189_s0 + $0x66c] sm:$0xf] }
 0x289   : > { %v13033_v45 = vor.u32 %v16271_v16, %v13030_v0 }
 0x28a   : > { %v19552_v25 = vpop.f32.mrf.mxu0  ;;  %v19554_v8 = vpop.f32.mrf.mxu1 }
 0x28b   : > { %v3582_v24 = vpop.f32.mrf.mxu2  ;;  %v3459_v7 = vpop.f32.mrf.mxu3  ;;  %4509 = vmatpush.bf16.msrb.mxu3 %v13033_v45 }
 0x28c   : > { %v3583_v9 = vadd.f32 %v3582_v24, %v19432_v48  ;;  %v16850_v48 = vld [vmem:[%s17034_s29 + $0x30] sm:$0xff]  ;;  %s16860_s29 = smov 124  }
 0x28d   : > { %v4374_v12 = vrot.slane %v16850_v48, 3 }
 0x28f   : > { %v4375_v21 = vsel %vm1696_vm7, %v4373_v57, %v4374_v12  ;;  %4510 = vmatpush.bf16.msrb.mxu3 %v13017_v31 }
 0x292   : > { %v3544_v18 = vpop.f32.mrf.mxu0  ;;  %v3563_v22 = vpop.f32.mrf.mxu1 }
 0x293   : > { %v19565_v6 = vpop.f32.mrf.mxu2  ;;  %v19573_v50 = vpop.f32.mrf.mxu3  ;;  %v3545_v44 = vadd.f32 %v3544_v18, %v19469_v11  ;;  %v3564_v47 = vadd.f32 %v3563_v22, %v19479_v61  ;;  %v4376_v61 = vrot.slane %v19471_v5, 3 }
 0x294   : > { %22214 = vst [vmem:[#allocation4_spill] sm:$0xff] %v19573_v50  ;;  %v16318_v50 = vld [vmem:[%s22164_s3 + $0x160] sm:$0xff] }
 0x295   : > { %12984 = vmatmul.msk.bf16.gmra.mxu0 %vm687_vm2, %v4197_v63  ;;  %12986 = vmatmul.msk.bf16.gmra.mxu1 %vm687_vm2, %v4197_v63 }
 0x298   : > { %13038 = vmatmul.msk.bf16.vlgmr.msra.gmra.mxu2 %vm687_vm2, %v4375_v21  ;;  %12989 = vmatmul.msk.bf16.vlgmr.msra.gmra.mxu3 %vm687_vm2, %v19483_v34  ;;  %v4377_v34 = vsel %vm1696_vm7, %v4374_v12, %v4376_v61 }
 0x29a   : > { %v19584_v11 = vpop.f32.mrf.mxu0  ;;  %v19587_v32 = vpop.f32.mrf.mxu1 }
 0x29b   : > { %v3741_v33 = vpop.f32.mrf.mxu2  ;;  %v3596_v56 = vpop.f32.mrf.mxu3 }
 0x29c   : > { %v3772_v51 = vadd.f32 %v3741_v33, %v19502_v37  ;;  %v3597_v54 = vadd.f32 %v3596_v56, %v19499_v13 }
 0x2a2   : > { %v3703_v27 = vpop.f32.mrf.mxu0  ;;  %v3722_v39 = vpop.f32.mrf.mxu1 }
 0x2a3   : > { %v19590_v43 = vpop.f32.mrf.mxu2  ;;  %v19592_v4 = vpop.f32.mrf.mxu3  ;;  %v3770_v23 = vadd.f32 %v3703_v27, %v3540_v60  ;;  %v3771_v49 = vadd.f32 %v3722_v39, %v3559_v42 }
 0x2a4   : > { %22215 = vst [vmem:[#allocation6_spill] sm:$0xff] %v19592_v4 }
 0x2a5   : > { %13034 = vmatmul.msk.bf16.vlgmr.msra.gmra.mxu0 %vm687_vm2, %v4375_v21  ;;  %13036 = vmatmul.msk.bf16.vlgmr.msra.gmra.mxu1 %vm687_vm2, %v4375_v21 }
 0x2a8   : > { %13039 = vmatmul.msk.bf16.gmra.mxu2 %vm687_vm2, %v4377_v34  ;;  %12990 = vmatmul.msk.bf16.gmra.mxu3 %vm687_vm2, %v4197_v63 }
 0x2aa   : > { %v19599_v62 = vpop.f32.mrf.mxu0  ;;  %v19601_v17 = vpop.f32.mrf.mxu1 }
 0x2ab   : > { %v3746_v13 = vpop.f32.mrf.mxu2  ;;  %v3601_v5 = vpop.f32.mrf.mxu3 }
 0x2ac   : > { %v3780_v37 = vadd.f32 %v3746_v13, %v3583_v9  ;;  %v3602_v20 = vadd.f32 %v3601_v5, %v3459_v7 }
 0x2b2   : > { %v3708_v2 = vpop.f32.mrf.mxu0  ;;  %v3727_v60 = vpop.f32.mrf.mxu1 }
 0x2b3   : > { %v19603_v40 = vpop.f32.mrf.mxu2  ;;  %v19605_v29 = vpop.f32.mrf.mxu3  ;;  %v3778_v53 = vadd.f32 %v3708_v2, %v3545_v44  ;;  %v3779_v46 = vadd.f32 %v3727_v60, %v3564_v47 }
 0x2b4   : > { %22216 = vst [vmem:[#allocation3_spill] sm:$0xff] %v19605_v29  ;;  %v16319_v29 = vld [vmem:[%s22164_s3 + $0x168] sm:$0xff] }
 0x2b5   : > { %13035 = vmatmul.msk.bf16.gmra.mxu0 %vm687_vm2, %v4377_v34  ;;  %13037 = vmatmul.msk.bf16.gmra.mxu1 %vm687_vm2, %v4377_v34 }
 0x2b8   : > { %13040 = vmatmul.msk.bf16.vlgmr.msrb.gmra.mxu3 %vm687_vm2, %v4375_v21 }
 0x2ba   : > { %v19612_v55 = vpop.f32.mrf.mxu0  ;;  %v19614_v1 = vpop.f32.mrf.mxu1 }
 0x2bb   : > { %v3937_v63 = vpop.f32.mrf.mxu2  ;;  %v3760_v58 = vpop.f32.mrf.mxu3 }
 0x2bc   : > { %v19610_v42 = vadd.f32 %v3937_v63, %v3772_v51  ;;  %v3773_v36 = vadd.f32 %v3760_v58, %v3597_v54 }
 0x2c2   : > { %v3899_v7 = vpop.f32.mrf.mxu0  ;;  %v3918_v35 = vpop.f32.mrf.mxu1 }
 0x2c3   : > { %v19616_v24 = vpop.f32.mrf.mxu2  ;;  %v19618_v14 = vpop.f32.mrf.mxu3  ;;  %v19620_v9 = vadd.f32 %v3899_v7, %v3770_v23  ;;  %v19622_v52 = vadd.f32 %v3918_v35, %v3771_v49 }
 0x2c4   : > { %22217 = vst [vmem:[#allocation7_spill] sm:$0xff] %v19618_v14  ;;  %v16316_v14 = vld [vmem:[%s22164_s3 + $0x150] sm:$0xff] }
 0x2c8   : > { %13041 = vmatmul.msk.bf16.gmra.mxu3 %vm687_vm2, %v4377_v34 }
 0x2ca   : > { %v19627_v57 = vpop.f32.mrf.mxu0  ;;  %v19629_v12 = vpop.f32.mrf.mxu1 }
 0x2cb   : > { %v3942_v16 = vpop.f32.mrf.mxu2  ;;  %v3765_v0 = vpop.f32.mrf.mxu3 }
 0x2cc   : > { %v19625_v45 = vadd.f32 %v3942_v16, %v3780_v37  ;;  %v3781_v48 = vadd.f32 %v3765_v0, %v3602_v20  ;;  %v16313_v16 = vld [vmem:[%s22164_s3 + $0x138] sm:$0xff] }
 0x2cd   : > { %v16321_v0 = vld [vmem:[%s22164_s3 + $0x178] sm:$0xff]  ;;  %5100 = vmatpush.bf16.msrb.mxu0 %v16313_v16 }
 0x2ce   : > { %5113 = vmatpush.bf16.msrb.mxu1 %v16321_v0 }
 0x2d2   : > { %v3904_v18 = vpop.f32.mrf.mxu0  ;;  %v3923_v44 = vpop.f32.mrf.mxu1 }
 0x2d3   : > { %v19631_v30 = vpop.f32.mrf.mxu2  ;;  %v19633_v38 = vpop.f32.mrf.mxu3  ;;  %v19635_v31 = vadd.f32 %v3904_v18, %v3778_v53  ;;  %v19637_v22 = vadd.f32 %v3923_v44, %v3779_v46  ;;  %v16337_v44 = vld [vmem:[%s22164_s3 + $0x1f8] sm:$0xff] }
 0x2d4   : > { %22218 = vst [vmem:[#allocation8_spill] sm:$0xff] %v19633_v38  ;;  %5139 = vmatpush.bf16.msra.mxu3 %v16337_v44  ;;  %v16336_v38 = vld [vmem:[%s22164_s3 + $0x1f0] sm:$0xff]  ;;  %v16311_v44 = vld [vmem:[%s22164_s3 + $0x128] sm:$0xff] }
 0x2d8   : > { %5140 = vmatpush.bf16.msra.mxu3 %v16336_v38  ;;  %v16335_v38 = vld [vmem:[%s22164_s3 + $0x1e8] sm:$0xff] }
 0x2da   : > { %v19641_v33 = vpop.f32.mrf.mxu0  ;;  %v19645_v51 = vpop.f32.mrf.mxu1 }
 0x2db   : > { %v19639_v21 = vpop.f32.mrf.mxu2  ;;  %v3956_v47 = vpop.f32.mrf.mxu3 }
 0x2dc   : > { %v19643_v56 = vadd.f32 %v3956_v47, %v3773_v36  ;;  %v16312_v47 = vld [vmem:[%s22164_s3 + $0x130] sm:$0xff]  ;;  %5141 = vmatpush.bf16.msra.mxu3 %v16335_v38  ;;  %v16309_v38 = vld [vmem:[%s22164_s3 + $0x118] sm:$0xff] }
 0x2dd   : > { %5101 = vmatpush.bf16.msrb.mxu0 %v16312_v47  ;;  %v16327_v47 = vld [vmem:[%s22164_s3 + $0x1a8] sm:$0xff] }
 0x2e1   : > { %5102 = vmatpush.bf16.msrb.mxu0 %v16311_v44 }
 0x2e2   : > { %v19651_v27 = vpop.f32.mrf.mxu0  ;;  %v19653_v23 = vpop.f32.mrf.mxu1 }
 0x2e3   : > { %v19647_v54 = vpop.f32.mrf.mxu2  ;;  %v19649_v61 = vpop.f32.mrf.mxu3 }
 0x2e4   : > { %22219 = vst [vmem:[#allocation9_spill] sm:$0xff] %v19649_v61  ;;  %v16308_v61 = vld [vmem:[%s22164_s3 + $0x110] sm:$0xff] }
 0x2ea   : > { %v19657_v49 = vpop.f32.mrf.mxu0  ;;  %v19661_v5 = vpop.f32.mrf.mxu1 }
 0x2eb   : > { %v19655_v39 = vpop.f32.mrf.mxu2  ;;  %v3961_v34 = vpop.f32.mrf.mxu3 }
 0x2ec   : > { %v19659_v13 = vadd.f32 %v3961_v34, %v3781_v48  ;;  %v16329_v48 = vld [vmem:[%s22164_s3 + $0x1b8] sm:$0xff]  ;;  %v16320_v34 = vld [vmem:[%s22164_s3 + $0x170] sm:$0xff] }
 0x2ed   : > { %5126 = vmatpush.bf16.msrb.mxu2 %v16329_v48  ;;  %5114 = vmatpush.bf16.msrb.mxu1 %v16320_v34 }
 0x2ee   : > { %22220 = vst [vmem:[#allocation10_spill] sm:$0xff] %v19659_v13  ;;  %v16334_v13 = vld [vmem:[%s22164_s3 + $0x1e0] sm:$0xff] }
 0x2ef   : > { %5142 = vmatpush.bf16.msra.mxu3 %v16334_v13  ;;  %v16333_v13 = vld [vmem:[%s22164_s3 + $0x1d8] sm:$0xff] }
 0x2f1   : > { %5115 = vmatpush.bf16.msrb.mxu1 %v16319_v29 }
 0x2f2   : > { %v19667_v2 = vpop.f32.mrf.mxu0  ;;  %v19669_v53 = vpop.f32.mrf.mxu1 }
 0x2f3   : > { %v19663_v37 = vpop.f32.mrf.mxu2  ;;  %v19665_v20 = vpop.f32.mrf.mxu3  ;;  %5143 = vmatpush.bf16.msra.mxu3 %v16333_v13 }
 0x2f4   : > { %22221 = vst [vmem:[#allocation11_spill] sm:$0xff] %v19665_v20  ;;  %v16328_v20 = vld [vmem:[%s22164_s3 + $0x1b0] sm:$0xff] }
 0x2f5   : > { %5127 = vmatpush.bf16.msrb.mxu2 %v16328_v20  ;;  %v16310_v20 = vld [vmem:[%s22164_s3 + $0x120] sm:$0xff]  ;;  %5116 = vmatpush.bf16.msrb.mxu1 %v16318_v50  ;;  %v16325_v50 = vld [vmem:[%s22164_s3 + $0x198] sm:$0xff] }
 0x2f6   : > { %5103 = vmatpush.bf16.msrb.mxu0 %v16310_v20 }
 0x2f9   : > { %5128 = vmatpush.bf16.msrb.mxu2 %v16327_v47 }
 0x2fa   : > { %v19675_v63 = vpop.f32.mrf.mxu0  ;;  %v19677_v58 = vpop.f32.mrf.mxu1  ;;  %5104 = vmatpush.bf16.msrb.mxu0 %v16309_v38  ;;  %v16332_v38 = vld [vmem:[%s22164_s3 + $0x1d0] sm:$0xff] }
 0x2fb   : > { %v19671_v60 = vpop.f32.mrf.mxu2  ;;  %v19673_v46 = vpop.f32.mrf.mxu3  ;;  %22222 = vst [vmem:[#allocation12_spill] sm:$0xff] %v19675_v63  ;;  %5144 = vmatpush.bf16.msra.mxu3 %v16332_v38 }
 0x2fc   : > { %22223 = vst [vmem:[#allocation13_spill] sm:$0xff] %v19677_v58 }
 0x2fe   : > { %5105 = vmatpush.bf16.msrb.mxu0 %v16308_v61 }
 0x302   : > { %v19683_v35 = vpop.f32.mrf.mxu0  ;;  %v19694_v18 = vpop.f32.mrf.mxu1 }
 0x303   : > { %v19679_v36 = vpop.f32.mrf.mxu2  ;;  %v19681_v7 = vpop.f32.mrf.mxu3 }
 0x304   : > { %22224 = vst [vmem:[#allocation14_spill] sm:$0xff] %v19681_v7  ;;  %v16317_v7 = vld [vmem:[%s22164_s3 + $0x158] sm:$0xff] }
 0x305   : > { %5117 = vmatpush.bf16.msrb.mxu1 %v16317_v7  ;;  %v16324_v7 = vld [vmem:[%s22164_s3 + $0x190] sm:$0xff] }
 0x309   : > { %5118 = vmatpush.bf16.msrb.mxu1 %v16316_v14  ;;  %v16323_v14 = vld [vmem:[%s22164_s3 + $0x188] sm:$0xff] }
 0x30a   : > { %v19715_v48 = vpop.f32.mrf.mxu0  ;;  %v19726_v34 = vpop.f32.mrf.mxu1 }
 0x30b   : > { %v19711_v16 = vpop.f32.mrf.mxu2  ;;  %v19713_v0 = vpop.f32.mrf.mxu3 }
 0x30c   : > { %22225 = vst [vmem:[#allocation15_spill] sm:$0xff] %v19713_v0  ;;  %v16326_v0 = vld [vmem:[%s22164_s3 + $0x1a0] sm:$0xff] }
 0x30d   : > { %5129 = vmatpush.bf16.msrb.mxu2 %v16326_v0  ;;  %v19766_v0 = vld [vmem:[%s22197_s21 + $0x8] sm:$0xf] }
 0x311   : > { %5130 = vmatpush.bf16.msrb.mxu2 %v16325_v50  ;;  %v3580_v50 = vadd.f32 %v19522_v15, %v19388_v19  ;;  %v16307_v19 = vld [vmem:[%s22164_s3 + $0x108] sm:$0xff] }
 0x312   : > { %v19747_v47 = vpop.f32.mrf.mxu0  ;;  %v19758_v20 = vpop.f32.mrf.mxu1  ;;  %v16315_v15 = vld [vmem:[%s22164_s3 + $0x148] sm:$0xff]  ;;  %5106 = vmatpush.bf16.msrb.mxu0 %v16307_v19  ;;  %v4147_v19 = vadd.f32 %v19653_v23, %v19622_v52  ;;  %v19843_v52 = vperm.slane %v19766_v0, 0  ;;  %v3561_v23 = vadd.f32 %v19554_v8, %v19437_v41  ;;  %v16280_v41 = vld [vmem:[%s22164_s3 + $0x30] sm:$0xff] }
 0x313   : > { %v19743_v29 = vpop.f32.mrf.mxu2  ;;  %v19745_v44 = vpop.f32.mrf.mxu3  ;;  %v3776_v4 = vadd.f32 %v19590_v43, %v3580_v50  ;;  %v16331_v43 = vld [vmem:[%s22164_s3 + $0x1c8] sm:$0xff]  ;;  %5119 = vmatpush.bf16.msrb.mxu1 %v16315_v15  ;;  %v16306_v50 = vld [vmem:[%s22164_s3 + $0x100] sm:$0xff]  ;;  %v16288_v8 = vld [vmem:[%s22164_s3 + $0x70] sm:$0xff] }
 0x314   : > { %22226 = vst [vmem:[#allocation16_spill] sm:$0xff] %v19745_v44  ;;  %v4148_v44 = vadd.f32 %v19639_v21, %v19610_v42  ;;  %v19786_v21 = vperm.slane %v19766_v0, 2  ;;  %5145 = vmatpush.bf16.msra.mxu3 %v16331_v43 }
 0x315   : > { %5131 = vmatpush.bf16.msrb.mxu2 %v16324_v7 }
 0x316   : > { %v4344_v42 = vadd.f32 %v19671_v60, %v4148_v44  ;;  %v3972_v60 = vadd.f32 %v19616_v24, %v3776_v4  ;;  %v16322_v4 = vld [vmem:[%s22164_s3 + $0x180] sm:$0xff]  ;;  %v4146_v24 = vadd.f32 %v19651_v27, %v19620_v9  ;;  %5107 = vmatpush.bf16.msrb.mxu0 %v16306_v50  ;;  %v16297_v9 = vld [vmem:[%s22164_s3 + $0xb8] sm:$0xff]  ;;  %v19851_v50 = vperm.slane %v19766_v0, 1 }
 0x317   : > { %v16305_v27 = vld [vmem:[%s22164_s3 + $0xf8] sm:$0xff] }
 0x318   : > { %v4152_v7 = vadd.f32 %v19647_v54, %v3972_v60  ;;  %v16330_v54 = vld [vmem:[%s22164_s3 + $0x1c0] sm:$0xff]  ;;  %v4342_v43 = vadd.f32 %v19683_v35, %v4146_v24  ;;  %v16304_v24 = vld [vmem:[%s22164_s3 + $0xf0] sm:$0xff] }
 0x319   : > { %5132 = vmatpush.bf16.msrb.mxu2 %v16323_v14  ;;  %v3542_v14 = vadd.f32 %v19552_v25, %v19434_v59  ;;  %5146 = vmatpush.bf16.msra.mxu3 %v16330_v54 }
 0x31a   : > { %v19791_v63 = vpop.f32.mrf.mxu0  ;;  %v19802_v61 = vpop.f32.mrf.mxu1  ;;  %v4348_v15 = vadd.f32 %v19679_v36, %v4152_v7  ;;  %v4343_v36 = vadd.f32 %v19694_v18, %v4147_v19  ;;  %v16296_v18 = vld [vmem:[%s22164_s3 + $0xb0] sm:$0xff]  ;;  %v4156_v19 = vadd.f32 %v19655_v39, %v19625_v45  ;;  %v16295_v45 = vld [vmem:[%s22164_s3 + $0xa8] sm:$0xff]  ;;  %v3585_v39 = vadd.f32 %v19565_v6, %v19461_v10 }
 0x31b   : > { %v4493_v13 = vpop.f32.mrf.mxu2  ;;  %v19789_v28 = vpop.f32.mrf.mxu3  ;;  %v3774_v59 = vadd.f32 %v19599_v62, %v3542_v14 }
 0x31c   : > { %v4524_v58 = vadd.f32 %v4493_v13, %v4344_v42  ;;  %v16314_v42 = vld [vmem:[%s22164_s3 + $0x140] sm:$0xff]  ;;  %v16289_v13 = vld [vmem:[%s22164_s3 + $0x78] sm:$0xff]  ;;  %v4352_v14 = vadd.f32 %v19711_v16, %v4156_v19 }
 0x31d   : > { %5120 = vmatpush.bf16.msrb.mxu1 %v16314_v42  ;;  %5133 = vmatpush.bf16.msrb.mxu2 %v16322_v4  ;;  %v3775_v42 = vadd.f32 %v19601_v17, %v3561_v23  ;;  %v3970_v54 = vadd.f32 %v19627_v57, %v3774_v59  ;;  %v16279_v57 = vld [vmem:[%s22164_s3 + $0x28] sm:$0xff]  ;;  %v16301_v19 = vld [vmem:[%s22164_s3 + $0xd8] sm:$0xff] }
 0x31e   : > { %v4551_v44 = vadd.f32 %v19786_v21, %v4524_v58  ;;  %v16281_v58 = vld [vmem:[%s22164_s3 + $0x38] sm:$0xff]  ;;  %5383 = vmatpush.bf16.msrb.mxu3 %v16305_v27 }
 0x31f   : > { %5344 = vmatpush.bf16.msra.mxu0 %v16281_v58  ;;  %v4150_v17 = vadd.f32 %v19657_v49, %v3970_v54  ;;  %v16277_v54 = vld [vmem:[%s22164_s3 + $0x18] sm:$0xff] }
 0x320   : > { %v4567_v38 = vmax.f32 %v4551_v44, 0.0 }
 0x321   : > { %5357 = vmatpush.bf16.msra.mxu1 %v16289_v13  ;;  %5370 = vmatpush.bf16.msra.mxu2 %v16297_v9  ;;  %v3971_v13 = vadd.f32 %v19629_v12, %v3775_v42  ;;  %v16287_v12 = vld [vmem:[%s22164_s3 + $0x68] sm:$0xff]  ;;  %v4346_v23 = vadd.f32 %v19715_v48, %v4150_v17  ;;  %v16278_v48 = vld [vmem:[%s22164_s3 + $0x20] sm:$0xff] }
 0x322   : > { %4584 = vst [vmem:[#allocation2 + $0x110] sm:$0xff] %v4567_v38  ;;  %v4455_v38 = vpop.f32.mrf.mxu0  ;;  %v4474_v35 = vpop.f32.mrf.mxu1  ;;  %5384 = vmatpush.bf16.msrb.mxu3 %v16304_v24  ;;  %v4154_v24 = vadd.f32 %v19667_v2, %v19635_v31 }
 0x323   : > { %v4495_v60 = vpop.f32.mrf.mxu2  ;;  %v19848_v44 = vpop.f32.mrf.mxu3  ;;  %v4522_v25 = vadd.f32 %v4455_v38, %v4342_v43  ;;  %v4523_v4 = vadd.f32 %v4474_v35, %v4343_v36  ;;  %5345 = vmatpush.bf16.msra.mxu0 %v16280_v41  ;;  %v4151_v49 = vadd.f32 %v19661_v5, %v3971_v13  ;;  %v4155_v13 = vadd.f32 %v19669_v53, %v19637_v22 }
 0x324   : > { %v4528_v7 = vadd.f32 %v4495_v60, %v4348_v15  ;;  %v16303_v60 = vld [vmem:[%s22164_s3 + $0xe8] sm:$0xff] }
 0x325   : > { %v4549_v58 = vadd.f32 %v19843_v52, %v4522_v25  ;;  %v4550_v9 = vadd.f32 %v19851_v50, %v4523_v4  ;;  %5358 = vmatpush.bf16.msra.mxu1 %v16288_v8  ;;  %5371 = vmatpush.bf16.msra.mxu2 %v16296_v18  ;;  %v4347_v38 = vadd.f32 %v19726_v34, %v4151_v49  ;;  %v16294_v34 = vld [vmem:[%s22164_s3 + $0xa0] sm:$0xff] }
 0x326   : > { %v4555_v62 = vadd.f32 %v19786_v21, %v4528_v7  ;;  %v3784_v7 = vadd.f32 %v19603_v40, %v3585_v39  ;;  %5385 = vmatpush.bf16.msrb.mxu3 %v16303_v60  ;;  %v16286_v40 = vld [vmem:[%s22164_s3 + $0x60] sm:$0xff]  ;;  %v4351_v22 = vadd.f32 %v19758_v20, %v4155_v13  ;;  %v16300_v39 = vld [vmem:[%s22164_s3 + $0xd0] sm:$0xff] }
 0x327   : > { %v4565_v27 = vmax.f32 %v4549_v58, 0.0  ;;  %v4566_v43 = vmax.f32 %v4550_v9, 0.0  ;;  %5346 = vmatpush.bf16.msra.mxu0 %v16279_v57  ;;  %v16302_v8 = vld [vmem:[%s22164_s3 + $0xe0] sm:$0xff]  ;;  %v16285_v58 = vld [vmem:[%s22164_s3 + $0x58] sm:$0xff]  ;;  %v4350_v9 = vadd.f32 %v19747_v47, %v4154_v24 }
 0x328   : > { %v4571_v15 = vmax.f32 %v4555_v62, 0.0  ;;  %v3980_v25 = vadd.f32 %v19631_v30, %v3784_v7  ;;  %v16298_v24 = vld [vmem:[%s22164_s3 + $0xc0] sm:$0xff] }
 0x329   : > { %4582 = vst [vmem:[#allocation2 + $0x100] sm:$0xff] %v4565_v27  ;;  %5359 = vmatpush.bf16.msra.mxu1 %v16287_v12  ;;  %5372 = vmatpush.bf16.msra.mxu2 %v16295_v45  ;;  %v3566_v27 = vadd.f32 %v19587_v32, %v19506_v26  ;;  %v16284_v26 = vld [vmem:[%s22164_s3 + $0x50] sm:$0xff] }
 0x32a   : > { %4588 = vst [vmem:[#allocation2 + $0x130] sm:$0xff] %v4571_v15  ;;  %v4457_v5 = vpop.f32.mrf.mxu0  ;;  %v4476_v59 = vpop.f32.mrf.mxu1  ;;  %v4160_v42 = vadd.f32 %v19663_v37, %v3980_v25  ;;  %5386 = vmatpush.bf16.msrb.mxu3 %v16302_v8  ;;  %v16293_v37 = vld [vmem:[%s22164_s3 + $0x98] sm:$0xff]  ;;  %v3547_v15 = vadd.f32 %v19584_v11, %v19504_v3  ;;  %v16276_v11 = vld [vmem:[%s22164_s3 + $0x10] sm:$0xff]  ;;  %v19978_v25 = vperm.slane %v19766_v0, 3 }
 0x32b   : > { %v4498_v36 = vpop.f32.mrf.mxu2  ;;  %4583 = vst [vmem:[#allocation2 + $0x108] sm:$0xff] %v4566_v43  ;;  %v19894_v10 = vpop.f32.mrf.mxu3  ;;  %v4526_v16 = vadd.f32 %v4457_v5, %v4346_v23  ;;  %v4527_v41 = vadd.f32 %v4476_v59, %v4347_v38  ;;  %5347 = vmatpush.bf16.msra.mxu0 %v16278_v48  ;;  %v16292_v32 = vld [vmem:[%s22164_s3 + $0x90] sm:$0xff]  ;;  %v3783_v47 = vadd.f32 %v19614_v1, %v3566_v27  ;;  %v16291_v38 = vld [vmem:[%s22164_s3 + $0x88] sm:$0xff]  ;;  %v22230_v59 = vld [vmem:[#allocation6_spill] sm:$0xff] }
 0x32c   : > { %v4532_v6 = vadd.f32 %v4498_v36, %v4352_v14  ;;  %v4356_v31 = vadd.f32 %v19743_v29, %v4160_v42  ;;  %v3782_v12 = vadd.f32 %v19612_v55, %v3547_v15  ;;  %v4149_v1 = vadd.f32 %v19673_v46, %v19643_v56  ;;  %v16299_v46 = vld [vmem:[%s22164_s3 + $0xc8] sm:$0xff] }
 0x32d   : > { %v4553_v18 = vadd.f32 %v19843_v52, %v4526_v16  ;;  %v4554_v4 = vadd.f32 %v19851_v50, %v4527_v41  ;;  %5360 = vmatpush.bf16.msra.mxu1 %v16286_v40  ;;  %5373 = vmatpush.bf16.msra.mxu2 %v16294_v34  ;;  %v3979_v43 = vadd.f32 %v19645_v51, %v3783_v47  ;;  %v16283_v51 = vld [vmem:[%s22164_s3 + $0x48] sm:$0xff]  ;;  %v22229_v16 = vld [vmem:[#allocation5_spill] sm:$0xff] }
 0x32e   : > { %v4559_v35 = vadd.f32 %v19786_v21, %v4532_v6  ;;  %5387 = vmatpush.bf16.msrb.mxu3 %v16301_v19  ;;  %v3978_v49 = vadd.f32 %v19641_v33, %v3782_v12  ;;  %v16275_v33 = vld [vmem:[%s22164_s3 + $0x8] sm:$0xff]  ;;  %v22228_v6 = vld [vmem:[#allocation13_spill] sm:$0xff]  ;;  %v3599_v48 = vadd.f32 %v22230_v59, %v22229_v16  ;;  %v4345_v40 = vadd.f32 %v19789_v28, %v4149_v1  ;;  %v16282_v28 = vld [vmem:[%s22164_s3 + $0x40] sm:$0xff] }
 0x32f   : > { %v4569_v30 = vmax.f32 %v4553_v18, 0.0  ;;  %v4570_v2 = vmax.f32 %v4554_v4, 0.0  ;;  %5348 = vmatpush.bf16.msra.mxu0 %v16277_v54  ;;  %v4159_v5 = vadd.f32 %v22228_v6, %v3979_v43  ;;  %v16274_v18 = vld [vmem:[%s22164_s3] sm:$0xff]  ;;  %v22232_v54 = vld [vmem:[#allocation9_spill] sm:$0xff] }
 0x330   : > { %v4575_v62 = vmax.f32 %v4559_v35, 0.0  ;;  %v4760_v59 = vld [vmem:[#allocation2 + $0xc1] ss:$8 sm:$0xf] }
 0x331   : > { %4586 = vst [vmem:[#allocation2 + $0x120] sm:$0xff] %v4569_v30  ;;  %5361 = vmatpush.bf16.msra.mxu1 %v16285_v58  ;;  %5374 = vmatpush.bf16.msra.mxu2 %v16293_v37  ;;  %v4355_v35 = vadd.f32 %v19802_v61, %v4159_v5  ;;  %v16290_v61 = vld [vmem:[%s22164_s3 + $0x80] sm:$0xff] }
 0x332   : > { %4592 = vst [vmem:[#allocation2 + $0x150] sm:$0xff] %v4575_v62  ;;  %v4460_v57 = vpop.f32.mrf.mxu0  ;;  %v4479_v3 = vpop.f32.mrf.mxu1  ;;  %5388 = vmatpush.bf16.msrb.mxu3 %v16300_v39  ;;  %v4756_v39 = vld [vmem:[#allocation2 + $0x41] ss:$8 sm:$0xf] }
 0x333   : > { %v4500_v17 = vpop.f32.mrf.mxu2  ;;  %4587 = vst [vmem:[#allocation2 + $0x128] sm:$0xff] %v4570_v2  ;;  %v19936_v53 = vpop.f32.mrf.mxu3  ;;  %v4530_v45 = vadd.f32 %v4460_v57, %v4350_v9  ;;  %v4531_v20 = vadd.f32 %v4479_v3, %v4351_v22  ;;  %5349 = vmatpush.bf16.msra.mxu0 %v16276_v11  ;;  %v22233_v2 = vld [vmem:[#allocation14_spill] sm:$0xff]  ;;  %v22236_v3 = vld [vmem:[#allocation4_spill] sm:$0xff]  ;;  %v22237_v11 = vld [vmem:[#allocation3_spill] sm:$0xff]  ;;  %v4775_v1 = vperm.slane %v4756_v39, 0 }
 0x334   : > { %v4536_v29 = vadd.f32 %v4500_v17, %v4356_v31  ;;  %v22234_v57 = vld [vmem:[#allocation10_spill] sm:$0xff] }
 0x335   : > { %v4557_v14 = vadd.f32 %v19843_v52, %v4530_v45  ;;  %v4558_v23 = vadd.f32 %v19851_v50, %v4531_v20  ;;  %5362 = vmatpush.bf16.msra.mxu1 %v16284_v26  ;;  %5375 = vmatpush.bf16.msra.mxu2 %v16292_v32  ;;  %v3604_v26 = vadd.f32 %v22237_v11, %v22236_v3 }
 0x336   : > { %v4563_v55 = vadd.f32 %v19786_v21, %v4536_v29  ;;  %v22227_v21 = vld [vmem:[#allocation12_spill] sm:$0xff]  ;;  %5389 = vmatpush.bf16.msrb.mxu3 %v16299_v46  ;;  %v4778_v46 = vperm.slane %v4756_v39, 3 }
 0x337   : > { %v4158_v36 = vadd.f32 %v22227_v21, %v3978_v49  ;;  %v4573_v7 = vmax.f32 %v4557_v14, 0.0  ;;  %v4574_v56 = vmax.f32 %v4558_v23, 0.0  ;;  %5350 = vmatpush.bf16.msra.mxu0 %v16275_v33  ;;  %v4754_v49 = vld [vmem:[#allocation2 + $0x1] ss:$8 sm:$0xf]  ;;  %v4776_v21 = vperm.slane %v4756_v39, 1 }
 0x338   : > { %v4579_v60 = vmax.f32 %v4563_v55, 0.0  ;;  %v22238_v55 = vld [vmem:[#allocation8_spill] sm:$0xff]  ;;  %v22239_v14 = vld [vmem:[#allocation11_spill] sm:$0xff]  ;;  %v4767_v6 = vperm.slane %v4754_v49, 1  ;;  %v4768_v5 = vperm.slane %v4754_v49, 2 }
 0x339   : > { %v4354_v34 = vadd.f32 %v19791_v63, %v4158_v36  ;;  %4590 = vst [vmem:[#allocation2 + $0x140] sm:$0xff] %v4573_v7  ;;  %5363 = vmatpush.bf16.msra.mxu1 %v16283_v51  ;;  %v22231_v63 = vld [vmem:[#allocation7_spill] sm:$0xff]  ;;  %5376 = vmatpush.bf16.msra.mxu2 %v16291_v38  ;;  %v22240_v36 = vld [vmem:[#allocation16_spill] sm:$0xff]  ;;  %v4766_v51 = vperm.slane %v4754_v49, 0 }
 0x33a   : > { %4596 = vst [vmem:[#allocation2 + $0x170] sm:$0xff] %v4579_v60  ;;  %v4462_v8 = vpop.f32.mrf.mxu0  ;;  %v3777_v42 = vadd.f32 %v22231_v63, %v3599_v48  ;;  %v4481_v4 = vpop.f32.mrf.mxu1  ;;  %5390 = vmatpush.bf16.msrb.mxu3 %v16298_v24  ;;  %v4758_v23 = vld [vmem:[#allocation2 + $0x81] ss:$8 sm:$0xf] }
 0x33b   : > { %4591 = vst [vmem:[#allocation2 + $0x148] sm:$0xff] %v4574_v56  ;;  %v4512_v41 = vpop.f32.mrf.mxu3  ;;  %v4534_v0 = vadd.f32 %v4462_v8, %v4354_v34  ;;  %v4535_v30 = vadd.f32 %v4481_v4, %v4355_v35  ;;  %5351 = vmatpush.bf16.msra.mxu0 %v16274_v18  ;;  %v20010_v38 = vld [vmem:[#allocation2 + $0x40] ss:$8 sm:$0xf]  ;;  %v4769_v56 = vperm.slane %v4754_v49, 3  ;;  %v4784_v48 = vperm.slane %v4758_v23, 0 }
 0x33c   : > { %v4525_v62 = vadd.f32 %v4512_v41, %v4345_v40  ;;  %v3973_v58 = vadd.f32 %v22232_v54, %v3777_v42  ;;  %v4785_v40 = vperm.slane %v4758_v23, 1  ;;  %v4819_v35 = vsel %vm4661_vm8, %v4766_v51, %v4775_v1  ;;  %v16361_v1 = vld [vmem:[%s22164_s3 + $0x2b8] sm:$0xff] }
 0x33d   : > { %v4561_v13 = vadd.f32 %v19843_v52, %v4534_v0  ;;  %v4562_v31 = vadd.f32 %v19851_v50, %v4535_v30  ;;  %5364 = vmatpush.bf16.msra.mxu1 %v16282_v28  ;;  %5377 = vmatpush.bf16.msra.mxu2 %v16290_v61  ;;  %v22235_v50 = vld [vmem:[#allocation15_spill] sm:$0xff]  ;;  %v4820_v41 = vsel %vm4661_vm8, %v4767_v6, %v4776_v21  ;;  %v4617_v8 = vperm.slane %v20010_v38, 0  ;;  %v16369_v21 = vld [vmem:[%s22164_s3 + $0x2f8] sm:$0xff] }
 0x33e   : > { %v4552_v37 = vadd.f32 %v19978_v25, %v4525_v62  ;;  %v4153_v19 = vadd.f32 %v22233_v2, %v3973_v58  ;;  %v4157_v12 = vadd.f32 %v22235_v50, %v22234_v57  ;;  %v4786_v63 = vperm.slane %v4758_v23, 2 }
 0x33f   : > { %v4577_v9 = vmax.f32 %v4561_v13, 0.0  ;;  %v4578_v17 = vmax.f32 %v4562_v31, 0.0  ;;  %v4787_v62 = vperm.slane %v4758_v23, 3  ;;  %v4793_v0 = vperm.slane %v4760_v59, 0 }
 0x340   : > { %v4568_v15 = vmax.f32 %v4552_v37, 0.0  ;;  %v4349_v27 = vadd.f32 %v19848_v44, %v4153_v19  ;;  %v4353_v32 = vadd.f32 %v19894_v10, %v4157_v12  ;;  %v3785_v44 = vadd.f32 %v22238_v55, %v3604_v26  ;;  %v4598_v23 = vld [vmem:[#allocation2] ss:$8 sm:$0xf] }
 0x341   : > { %4594 = vst [vmem:[#allocation2 + $0x160] sm:$0xff] %v4577_v9  ;;  %v4777_v10 = vperm.slane %v4756_v39, 2  ;;  %v4795_v4 = vperm.slane %v4760_v59, 2  ;;  %v4796_v61 = vperm.slane %v4760_v59, 3  ;;  %v4823_v30 = vsel %vm4666_vm9, %v4819_v35, %v4784_v48 }
 0x342   : > { %4585 = vst [vmem:[#allocation2 + $0x118] sm:$0xff] %v4568_v15  ;;  %v3981_v43 = vadd.f32 %v22239_v14, %v3785_v44  ;;  %v4824_v54 = vsel %vm4666_vm9, %v4820_v41, %v4785_v40  ;;  %v4822_v58 = vsel %vm4661_vm8, %v4769_v56, %v4778_v46  ;;  %v4620_v51 = vperm.slane %v20010_v38, 3  ;;  %v16344_v46 = vld [vmem:[%s22164_s3 + $0x230] sm:$0xff] }
 0x343   : > { %v4514_v22 = vpop.f32.mrf.mxu3  ;;  %4595 = vst [vmem:[#allocation2 + $0x168] sm:$0xff] %v4578_v17  ;;  %v4821_v42 = vsel %vm4661_vm8, %v4768_v5, %v4777_v10  ;;  %v4826_v9 = vsel %vm4666_vm9, %v4822_v58, %v4787_v62  ;;  %v4608_v10 = vperm.slane %v4598_v23, 0  ;;  %v4609_v6 = vperm.slane %v4598_v23, 1  ;;  %v16360_v40 = vld [vmem:[%s22164_s3 + $0x2b0] sm:$0xff] }
 0x344   : > { %v4529_v29 = vadd.f32 %v4514_v22, %v4349_v27  ;;  %v4161_v7 = vadd.f32 %v22240_v36, %v3981_v43  ;;  %v4825_v15 = vsel %vm4666_vm9, %v4821_v42, %v4786_v63  ;;  %v4827_v27 = vsel %vm694_vm0, %v4823_v30, %v4793_v0  ;;  %v16345_v43 = vld [vmem:[%s22164_s3 + $0x238] sm:$0xff] }
 0x345   : > { %v4829_v22 = vsel %vm694_vm0, %v4825_v15, %v4795_v4  ;;  %v4601_v36 = vld [vmem:[#allocation2 + $0x80] ss:$8 sm:$0xf]  ;;  %v4610_v5 = vperm.slane %v4598_v23, 2  ;;  %v4611_v56 = vperm.slane %v4598_v23, 3  ;;  %v4662_v41 = vsel %vm4661_vm8, %v4608_v10, %v4617_v8 }
 0x346   : > { %v4556_v52 = vadd.f32 %v19978_v25, %v4529_v29  ;;  %v4357_v16 = vadd.f32 %v19936_v53, %v4161_v7  ;;  %v4794_v53 = vperm.slane %v4760_v59, 1  ;;  %v4830_v29 = vsel %vm694_vm0, %v4826_v9, %v4796_v61  ;;  %v4603_v59 = vld [vmem:[#allocation2 + $0xc0] ss:$8 sm:$0xf] }
 0x347   : > { %v4618_v7 = vperm.slane %v20010_v38, 1  ;;  %v4626_v48 = vperm.slane %v4601_v36, 0  ;;  %v4628_v42 = vperm.slane %v4601_v36, 2  ;;  %v4629_v0 = vperm.slane %v4601_v36, 3  ;;  %v16351_v8 = vld [vmem:[%s22164_s3 + $0x268] sm:$0xff]  ;;  %v16341_v23 = vld [vmem:[%s22164_s3 + $0x218] sm:$0xff] }
 0x348   : > { %v4572_v45 = vmax.f32 %v4556_v52, 0.0  ;;  %v4635_v4 = vperm.slane %v4603_v59, 0  ;;  %v4636_v61 = vperm.slane %v4603_v59, 1  ;;  %v4638_v30 = vperm.slane %v4603_v59, 3 }
 0x349   : > { %v4762_v28 = vld [vmem:[#allocation2 + $0x101] ss:$8 sm:$0xf]  ;;  %v4604_v35 = vld [vmem:[#allocation2 + $0x100] ss:$8 sm:$0xf]  ;;  %v4667_v58 = vsel %vm4666_vm9, %v4662_v41, %v4626_v48 }
 0x34a   : > { %4589 = vst [vmem:[#allocation2 + $0x138] sm:$0xff] %v4572_v45  ;;  %v4802_v37 = vperm.slane %v4762_v28, 0  ;;  %v4803_v13 = vperm.slane %v4762_v28, 1  ;;  %v4804_v31 = vperm.slane %v4762_v28, 2  ;;  %v4805_v2 = vperm.slane %v4762_v28, 3 }
 0x34b   : > { %v4517_v47 = vpop.f32.mrf.mxu3  ;;  %v4663_v28 = vsel %vm4661_vm8, %v4609_v6, %v4618_v7  ;;  %v5397_v10 = vld [vmem:[#allocation2 + $0x2] ss:$8 sm:$0xf] }
 0x34c   : > { %v4533_v20 = vadd.f32 %v4517_v47, %v4353_v32  ;;  %v4831_v45 = vsel %vm4675_vm10, %v4827_v27, %v4802_v37  ;;  %v4833_v11 = vsel %vm4675_vm10, %v4829_v22, %v4804_v31  ;;  %v4834_v26 = vsel %vm4675_vm10, %v4830_v29, %v4805_v2  ;;  %v16359_v31 = vld [vmem:[%s22164_s3 + $0x2a8] sm:$0xff] }
 0x34d   : > { %v4645_v37 = vperm.slane %v4604_v35, 1  ;;  %v16367_v2 = vld [vmem:[%s22164_s3 + $0x2e8] sm:$0xff] }
 0x34e   : > { %v4560_v60 = vadd.f32 %v19978_v25, %v4533_v20  ;;  %v20120_v6 = vld [vmem:[#allocation2 + $0x82] ss:$8 sm:$0xf] }
 0x34f   : > { %v5427_v41 = vperm.slane %v20120_v6, 0 }
 0x350   : > { %v4576_v33 = vmax.f32 %v4560_v60, 0.0  ;;  %v16353_v60 = vld [vmem:[%s22164_s3 + $0x278] sm:$0xff] }
 0x352   : > { %4593 = vst [vmem:[#allocation2 + $0x158] sm:$0xff] %v4576_v33  ;;  %v4619_v33 = vperm.slane %v20010_v38, 2  ;;  %v16343_v38 = vld [vmem:[%s22164_s3 + $0x228] sm:$0xff] }
 0x353   : > { %v4519_v34 = vpop.f32.mrf.mxu3 }
 0x354   : > { %v4537_v18 = vadd.f32 %v4519_v34, %v4357_v16  ;;  %v16352_v16 = vld [vmem:[%s22164_s3 + $0x270] sm:$0xff]  ;;  %v4664_v62 = vsel %vm4661_vm8, %v4610_v5, %v4619_v33  ;;  %v16357_v33 = vld [vmem:[%s22164_s3 + $0x298] sm:$0xff] }
 0x355   : > { %v16368_v34 = vld [vmem:[%s22164_s3 + $0x2f0] sm:$0xff] }
 0x356   : > { %v4564_v24 = vadd.f32 %v19978_v25, %v4537_v18  ;;  %v4828_v25 = vsel %vm694_vm0, %v4824_v54, %v4794_v53  ;;  %v4627_v18 = vperm.slane %v4601_v36, 1  ;;  %v4665_v53 = vsel %vm4661_vm8, %v4611_v56, %v4620_v51  ;;  %v16365_v51 = vld [vmem:[%s22164_s3 + $0x2d8] sm:$0xff]  ;;  %v16340_v56 = vld [vmem:[%s22164_s3 + $0x210] sm:$0xff] }
 0x357   : > { %v4832_v3 = vsel %vm4675_vm10, %v4828_v25, %v4803_v13  ;;  %v4644_v54 = vperm.slane %v4604_v35, 0  ;;  %v4646_v13 = vperm.slane %v4604_v35, 2  ;;  %v4669_v25 = vsel %vm4666_vm9, %v4664_v62, %v4628_v42  ;;  %v5405_v62 = vld [vmem:[#allocation2 + $0x102] ss:$8 sm:$0xf] }
 0x358   : > { %v4580_v19 = vmax.f32 %v4564_v24, 0.0  ;;  %v4637_v24 = vperm.slane %v4603_v59, 2  ;;  %v4668_v9 = vsel %vm4666_vm9, %v4663_v28, %v4627_v18  ;;  %v4670_v29 = vsel %vm4666_vm9, %v4665_v53, %v4629_v0  ;;  %v5403_v18 = vld [vmem:[#allocation2 + $0xc2] ss:$8 sm:$0xf] }
 0x359   : > { %v4764_v17 = vld [vmem:[#allocation2 + $0x141] ss:$8 sm:$0xf]  ;;  %v4606_v63 = vld [vmem:[#allocation2 + $0x140] ss:$8 sm:$0xf] }
 0x35a   : > { %4597 = vst [vmem:[#allocation2 + $0x178] sm:$0xff] %v4580_v19  ;;  %v4811_v52 = vperm.slane %v4764_v17, 0  ;;  %v4812_v57 = vperm.slane %v4764_v17, 1  ;;  %v4813_v50 = vperm.slane %v4764_v17, 2  ;;  %v4814_v12 = vperm.slane %v4764_v17, 3 }
 0x35b   : > { %v4653_v19 = vperm.slane %v4606_v63, 0  ;;  %v4654_v15 = vperm.slane %v4606_v63, 1  ;;  %v4647_v17 = vperm.slane %v4604_v35, 3  ;;  %v4655_v27 = vperm.slane %v4606_v63, 2 }
 0x35c   : > { %v4835_v32 = vsel %vm1696_vm7, %v4831_v45, %v4811_v52  ;;  %v4836_v47 = vsel %vm1696_vm7, %v4832_v3, %v4812_v57  ;;  %v4837_v55 = vsel %vm1696_vm7, %v4833_v11, %v4813_v50  ;;  %v4838_v44 = vsel %vm1696_vm7, %v4834_v26, %v4814_v12  ;;  %v16342_v45 = vld [vmem:[%s22164_s3 + $0x220] sm:$0xff] }
 0x35d   : > { %v4839_v20 = vpack.c.bf16 %v4835_v32, %v4835_v32  ;;  %v4840_v39 = vpack.c.bf16 %v4836_v47, %v4836_v47  ;;  %v4841_v49 = vpack.c.bf16 %v4837_v55, %v4837_v55  ;;  %v4842_v14 = vpack.c.bf16 %v4838_v44, %v4838_v44  ;;  %v16350_v3 = vld [vmem:[%s22164_s3 + $0x260] sm:$0xff] }
 0x35e   : > { %v4656_v22 = vperm.slane %v4606_v63, 3  ;;  %v4671_v52 = vsel %vm694_vm0, %v4667_v58, %v4635_v4  ;;  %v4672_v57 = vsel %vm694_vm0, %v4668_v9, %v4636_v61  ;;  %v4673_v50 = vsel %vm694_vm0, %v4669_v25, %v4637_v24  ;;  %v16358_v47 = vld [vmem:[%s22164_s3 + $0x2a0] sm:$0xff]  ;;  %v16339_v4 = vld [vmem:[%s22164_s3 + $0x208] sm:$0xff] }
 0x35f   : > { %5108 = vmatmul.bf16.vlgmr.msrb.gmra.mxu0 %v4839_v20  ;;  %5121 = vmatmul.bf16.vlgmr.msrb.gmra.mxu1 %v4840_v39  ;;  %v4674_v12 = vsel %vm694_vm0, %v4670_v29, %v4638_v30  ;;  %v4676_v11 = vsel %vm4675_vm10, %v4671_v52, %v4644_v54  ;;  %v4677_v26 = vsel %vm4675_vm10, %v4672_v57, %v4645_v37  ;;  %v16366_v55 = vld [vmem:[%s22164_s3 + $0x2e0] sm:$0xff]  ;;  %v5409_v35 = vperm.slane %v5397_v10, 0  ;;  %v16347_v61 = vld [vmem:[%s22164_s3 + $0x248] sm:$0xff] }
 0x360   : > { %5134 = vmatmul.bf16.vlgmr.msrb.gmra.mxu2 %v4841_v49  ;;  %5147 = vmatmul.bf16.vlgmr.msra.gmra.mxu3 %v4842_v14  ;;  %v4678_v32 = vsel %vm4675_vm10, %v4673_v50, %v4646_v13  ;;  %v4681_v44 = vsel %vm1696_vm7, %v4676_v11, %v4653_v19  ;;  %v4682_v20 = vsel %vm1696_vm7, %v4677_v26, %v4654_v15  ;;  %v5410_v28 = vperm.slane %v5397_v10, 1  ;;  %v5407_v24 = vld [vmem:[#allocation2 + $0x142] ss:$8 sm:$0xf] }
 0x361   : > { %5743 = vmatpush.bf16.msrb.mxu0 %v16345_v43  ;;  %5756 = vmatpush.bf16.msrb.mxu1 %v16353_v60  ;;  %v4679_v39 = vsel %vm4675_vm10, %v4674_v12, %v4647_v17  ;;  %v4683_v49 = vsel %vm1696_vm7, %v4678_v32, %v4655_v27  ;;  %v4685_v43 = vpack.c.bf16 %v4681_v44, %v4681_v44  ;;  %v5411_v63 = vperm.slane %v5397_v10, 2  ;;  %v16355_v58 = vld [vmem:[%s22164_s3 + $0x288] sm:$0xff]  ;;  %v16338_v57 = vld [vmem:[%s22164_s3 + $0x200] sm:$0xff] }
 0x362   : > { %5769 = vmatpush.bf16.msrb.mxu2 %v16361_v1  ;;  %5782 = vmatpush.bf16.msra.mxu3 %v16369_v21  ;;  %v4684_v14 = vsel %vm1696_vm7, %v4679_v39, %v4656_v22  ;;  %v4686_v60 = vpack.c.bf16 %v4682_v20, %v4682_v20  ;;  %v16349_v1 = vld [vmem:[%s22164_s3 + $0x258] sm:$0xff]  ;;  %v4687_v36 = vpack.c.bf16 %v4683_v49, %v4683_v49  ;;  %v5412_v42 = vperm.slane %v5397_v10, 3  ;;  %v16363_v37 = vld [vmem:[%s22164_s3 + $0x2c8] sm:$0xff]  ;;  %v16346_v50 = vld [vmem:[%s22164_s3 + $0x240] sm:$0xff] }
 0x363   : > { %v5399_v21 = vld [vmem:[#allocation2 + $0x42] ss:$8 sm:$0xf]  ;;  %v4688_v7 = vpack.c.bf16 %v4684_v14, %v4684_v14  ;;  %v5428_v53 = vperm.slane %v20120_v6, 1  ;;  %v5436_v13 = vperm.slane %v5403_v18, 0  ;;  %v5430_v19 = vperm.slane %v20120_v6, 3 }
 0x364   : > { %v5418_v5 = vperm.slane %v5399_v21, 0  ;;  %v5420_v59 = vperm.slane %v5399_v21, 2  ;;  %v5421_v48 = vperm.slane %v5399_v21, 3  ;;  %v5445_v15 = vperm.slane %v5405_v62, 0  ;;  %v16354_v26 = vld [vmem:[%s22164_s3 + $0x280] sm:$0xff]  ;;  %v16377_v20 = vld [vmem:[%s22164_s3 + $0x338] sm:$0xff] }
 0x365   : > { %5744 = vmatpush.bf16.msrb.mxu0 %v16344_v46  ;;  %5757 = vmatpush.bf16.msrb.mxu1 %v16352_v16  ;;  %v16348_v46 = vld [vmem:[%s22164_s3 + $0x250] sm:$0xff]  ;;  %v5419_v16 = vperm.slane %v5399_v21, 1  ;;  %v5446_v9 = vperm.slane %v5405_v62, 1  ;;  %v5438_v17 = vperm.slane %v5403_v18, 2  ;;  %v5439_v27 = vperm.slane %v5403_v18, 3  ;;  %v16362_v32 = vld [vmem:[%s22164_s3 + $0x2c0] sm:$0xff] }
 0x366   : > { %5770 = vmatpush.bf16.msrb.mxu2 %v16360_v40  ;;  %5783 = vmatpush.bf16.msra.mxu3 %v16368_v34  ;;  %v16356_v40 = vld [vmem:[%s22164_s3 + $0x290] sm:$0xff]  ;;  %v5462_v0 = vsel %vm4661_vm8, %v5409_v35, %v5418_v5  ;;  %v5465_v54 = vsel %vm4661_vm8, %v5412_v42, %v5421_v48  ;;  %v5454_v25 = vperm.slane %v5407_v24, 0  ;;  %v5455_v22 = vperm.slane %v5407_v24, 1  ;;  %v16385_v39 = vld [vmem:[%s22164_s3 + $0x378] sm:$0xff]  ;;  %v16383_v35 = vld [vmem:[%s22164_s3 + $0x368] sm:$0xff] }
 0x367   : > { %v16364_v34 = vld [vmem:[%s22164_s3 + $0x2d0] sm:$0xff]  ;;  %v5463_v30 = vsel %vm4661_vm8, %v5410_v28, %v5419_v16  ;;  %v5447_v29 = vperm.slane %v5405_v62, 2  ;;  %v5448_v52 = vperm.slane %v5405_v62, 3  ;;  %v5457_v11 = vperm.slane %v5407_v24, 3  ;;  %v16374_v28 = vld [vmem:[%s22164_s3 + $0x320] sm:$0xff] }
 0x368   : > { %v5467_v12 = vsel %vm4666_vm9, %v5463_v30, %v5428_v53  ;;  %v5469_v44 = vsel %vm4666_vm9, %v5465_v54, %v5430_v19  ;;  %v16392_v48 = vld [vmem:[%s22164_s3 + $0x3b0] sm:$0xff]  ;;  %v16390_v42 = vld [vmem:[%s22164_s3 + $0x3a0] sm:$0xff]  ;;  %v16381_v53 = vld [vmem:[%s22164_s3 + $0x358] sm:$0xff] }
 0x369   : > { %5745 = vmatpush.bf16.msrb.mxu0 %v16343_v38  ;;  %5758 = vmatpush.bf16.msrb.mxu1 %v16351_v8  ;;  %v5429_v38 = vperm.slane %v20120_v6, 2  ;;  %v5464_v8 = vsel %vm4661_vm8, %v5411_v63, %v5420_v59  ;;  %v16382_v63 = vld [vmem:[%s22164_s3 + $0x360] sm:$0xff]  ;;  %v16372_v54 = vld [vmem:[%s22164_s3 + $0x310] sm:$0xff] }
 0x36a   : > { %5771 = vmatpush.bf16.msrb.mxu2 %v16359_v31  ;;  %5784 = vmatpush.bf16.msra.mxu3 %v16367_v2  ;;  %v5466_v31 = vsel %vm4666_vm9, %v5462_v0, %v5427_v41  ;;  %v5437_v2 = vperm.slane %v5403_v18, 1  ;;  %v16391_v41 = vld [vmem:[%s22164_s3 + $0x3a8] sm:$0xff]  ;;  %v16398_v62 = vld [vmem:[%s22164_s3 + $0x3e0] sm:$0xff]  ;;  %v16373_v0 = vld [vmem:[%s22164_s3 + $0x318] sm:$0xff] }
 0x36b   : > { %v16399_v18 = vld [vmem:[%s22164_s3 + $0x3e8] sm:$0xff]  ;;  %v16396_v19 = vld [vmem:[%s22164_s3 + $0x3d0] sm:$0xff] }
 0x36c   : > { %v5797_v30 = vld [vmem:[#allocation2 + $0x3] ss:$8 sm:$0xf] }
 0x36d   : > { %5746 = vmatpush.bf16.msrb.mxu0 %v16342_v45  ;;  %5759 = vmatpush.bf16.msrb.mxu1 %v16350_v3  ;;  %v5456_v45 = vperm.slane %v5407_v24, 2  ;;  %v5468_v3 = vsel %vm4666_vm9, %v5464_v8, %v5429_v38  ;;  %v16397_v24 = vld [vmem:[%s22164_s3 + $0x3d8] sm:$0xff] }
 0x36e   : > { %5772 = vmatpush.bf16.msrb.mxu2 %v16358_v47  ;;  %5785 = vmatpush.bf16.msra.mxu3 %v16366_v55  ;;  %v5470_v47 = vsel %vm694_vm0, %v5466_v31, %v5436_v13  ;;  %v5471_v55 = vsel %vm694_vm0, %v5467_v12, %v5437_v2  ;;  %v20242_v38 = vld [vmem:[#allocation2 + $0x83] ss:$8 sm:$0xf] }
 0x36f   : > { %5352 = vmatmul.bf16.vlgmr.msra.gmra.mxu0 %v4685_v43  ;;  %5365 = vmatmul.bf16.vlgmr.msra.gmra.mxu1 %v4686_v60  ;;  %v5474_v49 = vsel %vm4675_vm10, %v5470_v47, %v5445_v15  ;;  %v5475_v14 = vsel %vm4675_vm10, %v5471_v55, %v5446_v9  ;;  %v5472_v43 = vsel %vm694_vm0, %v5468_v3, %v5438_v17  ;;  %v16388_v2 = vld [vmem:[%s22164_s3 + $0x390] sm:$0xff]  ;;  %v5809_v15 = vperm.slane %v5797_v30, 0  ;;  %v16379_v12 = vld [vmem:[%s22164_s3 + $0x348] sm:$0xff] }
 0x370   : > { %5378 = vmatmul.bf16.vlgmr.msra.gmra.mxu2 %v4687_v36  ;;  %5391 = vmatmul.bf16.vlgmr.msrb.gmra.mxu3 %v4688_v7  ;;  %v5473_v60 = vsel %vm694_vm0, %v5469_v44, %v5439_v27  ;;  %v5478_v21 = vsel %vm1696_vm7, %v5474_v49, %v5454_v25  ;;  %v5479_v36 = vsel %vm1696_vm7, %v5475_v14, %v5455_v22  ;;  %v5827_v9 = vperm.slane %v20242_v38, 0  ;;  %v5803_v17 = vld [vmem:[#allocation2 + $0xc3] ss:$8 sm:$0xf] }
 0x371   : > { %5747 = vmatpush.bf16.msrb.mxu0 %v16341_v23  ;;  %5760 = vmatpush.bf16.msrb.mxu1 %v16349_v1  ;;  %v16393_v23 = vld [vmem:[%s22164_s3 + $0x3b8] sm:$0xff]  ;;  %v5476_v7 = vsel %vm4675_vm10, %v5472_v43, %v5447_v29  ;;  %v5482_v6 = vpack.c.bf16 %v5478_v21, %v5478_v21  ;;  %v5483_v5 = vpack.c.bf16 %v5479_v36, %v5479_v36  ;;  %v5810_v27 = vperm.slane %v5797_v30, 1  ;;  %v16387_v47 = vld [vmem:[%s22164_s3 + $0x388] sm:$0xff] }
 0x372   : > { %5773 = vmatpush.bf16.msrb.mxu2 %v16357_v33  ;;  %5786 = vmatpush.bf16.msra.mxu3 %v16365_v51  ;;  %v16401_v1 = vld [vmem:[%s22164_s3 + $0x3f8] sm:$0xff]  ;;  %v5477_v33 = vsel %vm4675_vm10, %v5473_v60, %v5448_v52  ;;  %v5480_v51 = vsel %vm1696_vm7, %v5476_v7, %v5456_v45  ;;  %v5811_v25 = vperm.slane %v5797_v30, 2  ;;  %v5812_v22 = vperm.slane %v5797_v30, 3  ;;  %v16395_v55 = vld [vmem:[%s22164_s3 + $0x3c8] sm:$0xff] }
 0x373   : > { %v5481_v10 = vsel %vm1696_vm7, %v5477_v33, %v5457_v11  ;;  %v5484_v16 = vpack.c.bf16 %v5480_v51, %v5480_v51  ;;  %v5805_v29 = vld [vmem:[#allocation2 + $0x103] ss:$8 sm:$0xf]  ;;  %v5829_v11 = vperm.slane %v20242_v38, 2  ;;  %v5836_v44 = vperm.slane %v5803_v17, 0 }
 0x374   : > { %v5485_v59 = vpack.c.bf16 %v5481_v10, %v5481_v10  ;;  %v5807_v45 = vld [vmem:[#allocation2 + $0x143] ss:$8 sm:$0xf]  ;;  %v5830_v49 = vperm.slane %v20242_v38, 3  ;;  %v5845_v14 = vperm.slane %v5805_v29, 0  ;;  %v5846_v43 = vperm.slane %v5805_v29, 1 }
 0x375   : > { %5748 = vmatpush.bf16.msrb.mxu0 %v16340_v56  ;;  %5761 = vmatpush.bf16.msrb.mxu1 %v16348_v46  ;;  %v16376_v56 = vld [vmem:[%s22164_s3 + $0x330] sm:$0xff]  ;;  %v5838_v60 = vperm.slane %v5803_v17, 2  ;;  %v5855_v21 = vperm.slane %v5807_v45, 1  ;;  %v5847_v36 = vperm.slane %v5805_v29, 2  ;;  %v5848_v7 = vperm.slane %v5805_v29, 3  ;;  %v16370_v33 = vld [vmem:[%s22164_s3 + $0x300] sm:$0xff] }
 0x376   : > { %5774 = vmatpush.bf16.msrb.mxu2 %v16356_v40  ;;  %5787 = vmatpush.bf16.msra.mxu3 %v16364_v34  ;;  %v16384_v46 = vld [vmem:[%s22164_s3 + $0x370] sm:$0xff]  ;;  %v16375_v34 = vld [vmem:[%s22164_s3 + $0x328] sm:$0xff]  ;;  %v16378_v51 = vld [vmem:[%s22164_s3 + $0x340] sm:$0xff] }
 0x377   : > { %v16400_v40 = vld [vmem:[%s22164_s3 + $0x3f0] sm:$0xff]  ;;  %v16430_v29 = vld [vmem:[%s22164_s3 + $0x4e0] sm:$0xff] }
 0x379   : > { %5749 = vmatpush.bf16.msrb.mxu0 %v16339_v4  ;;  %5762 = vmatpush.bf16.msrb.mxu1 %v16347_v61  ;;  %v5799_v4 = vld [vmem:[#allocation2 + $0x43] ss:$8 sm:$0xf] }
 0x37a   : > { %5775 = vmatpush.bf16.msrb.mxu2 %v16355_v58  ;;  %5788 = vmatpush.bf16.msra.mxu3 %v16363_v37  ;;  %v16389_v61 = vld [vmem:[%s22164_s3 + $0x398] sm:$0xff]  ;;  %v5818_v8 = vperm.slane %v5799_v4, 0  ;;  %v16380_v58 = vld [vmem:[%s22164_s3 + $0x350] sm:$0xff]  ;;  %v5819_v37 = vperm.slane %v5799_v4, 1  ;;  %v5820_v13 = vperm.slane %v5799_v4, 2  ;;  %v5821_v31 = vperm.slane %v5799_v4, 3 }
 0x37c   : > { %v5862_v52 = vsel %vm4661_vm8, %v5809_v15, %v5818_v8  ;;  %v5863_v3 = vsel %vm4661_vm8, %v5810_v27, %v5819_v37  ;;  %v16415_v15 = vld [vmem:[%s22164_s3 + $0x468] sm:$0xff]  ;;  %v16406_v27 = vld [vmem:[%s22164_s3 + $0x420] sm:$0xff] }
 0x37d   : > { %5750 = vmatpush.bf16.msrb.mxu0 %v16338_v57  ;;  %5763 = vmatpush.bf16.msrb.mxu1 %v16346_v50  ;;  %v5828_v57 = vperm.slane %v20242_v38, 1  ;;  %v16371_v50 = vld [vmem:[%s22164_s3 + $0x308] sm:$0xff] }
 0x37e   : > { %5776 = vmatpush.bf16.msrb.mxu2 %v16354_v26  ;;  %5789 = vmatpush.bf16.msra.mxu3 %v16362_v32  ;;  %v5864_v26 = vsel %vm4661_vm8, %v5811_v25, %v5820_v13  ;;  %v5865_v32 = vsel %vm4661_vm8, %v5812_v22, %v5821_v31  ;;  %v16424_v31 = vld [vmem:[%s22164_s3 + $0x4b0] sm:$0xff]  ;;  %v16414_v25 = vld [vmem:[%s22164_s3 + $0x460] sm:$0xff] }
 0x37f   : > { %v5867_v10 = vsel %vm4666_vm9, %v5863_v3, %v5828_v57  ;;  %v16422_v22 = vld [vmem:[%s22164_s3 + $0x4a0] sm:$0xff]  ;;  %v16413_v57 = vld [vmem:[%s22164_s3 + $0x458] sm:$0xff] }
 0x380   : > { %5751 = vmatmul.bf16.vlgmr.msrb.gmra.mxu0 %v5482_v6  ;;  %5764 = vmatmul.bf16.vlgmr.msrb.gmra.mxu1 %v5483_v5  ;;  %v5856_v6 = vperm.slane %v5807_v45, 2  ;;  %v5868_v5 = vsel %vm4666_vm9, %v5864_v26, %v5829_v11  ;;  %v6197_v3 = vld [vmem:[#allocation2 + $0x4] ss:$8 sm:$0xf] }
 0x381   : > { %6143 = vmatpush.bf16.msra.mxu0 %v16377_v20  ;;  %6156 = vmatpush.bf16.msra.mxu1 %v16385_v39  ;;  %v5866_v20 = vsel %vm4666_vm9, %v5862_v52, %v5827_v9  ;;  %v5837_v39 = vperm.slane %v5803_v17, 1  ;;  %v16423_v9 = vld [vmem:[%s22164_s3 + $0x4a8] sm:$0xff]  ;;  %v16405_v52 = vld [vmem:[%s22164_s3 + $0x418] sm:$0xff] }
 0x382   : > { %6169 = vmatpush.bf16.msra.mxu2 %v16393_v23  ;;  %6182 = vmatpush.bf16.msrb.mxu3 %v16401_v1  ;;  %v5839_v23 = vperm.slane %v5803_v17, 3  ;;  %v5854_v1 = vperm.slane %v5807_v45, 0  ;;  %v16431_v17 = vld [vmem:[%s22164_s3 + $0x4e8] sm:$0xff] }
 0x383   : > { %5777 = vmatmul.bf16.vlgmr.msrb.gmra.mxu2 %v5484_v16  ;;  %5790 = vmatmul.bf16.vlgmr.msra.gmra.mxu3 %v5485_v59  ;;  %v16394_v16 = vld [vmem:[%s22164_s3 + $0x3c0] sm:$0xff]  ;;  %v5870_v59 = vsel %vm694_vm0, %v5866_v20, %v5836_v44 }
 0x384   : > { %v20364_v11 = vld [vmem:[#allocation2 + $0x84] ss:$8 sm:$0xf] }
 0x385   : > { %6144 = vmatpush.bf16.msra.mxu0 %v16376_v56  ;;  %6157 = vmatpush.bf16.msra.mxu1 %v16384_v46  ;;  %v5857_v56 = vperm.slane %v5807_v45, 3  ;;  %v16386_v46 = vld [vmem:[%s22164_s3 + $0x380] sm:$0xff]  ;;  %v16429_v45 = vld [vmem:[%s22164_s3 + $0x4d8] sm:$0xff] }
 0x386   : > { %6170 = vmatpush.bf16.msra.mxu2 %v16392_v48  ;;  %6183 = vmatpush.bf16.msrb.mxu3 %v16400_v40  ;;  %v5871_v48 = vsel %vm694_vm0, %v5867_v10, %v5837_v39  ;;  %v5869_v40 = vsel %vm4666_vm9, %v5865_v32, %v5830_v49  ;;  %v16404_v32 = vld [vmem:[%s22164_s3 + $0x410] sm:$0xff]  ;;  %v16411_v10 = vld [vmem:[%s22164_s3 + $0x448] sm:$0xff] }
 0x387   : > { %v16420_v39 = vld [vmem:[%s22164_s3 + $0x490] sm:$0xff] }
 0x388   : > { %v16428_v49 = vld [vmem:[%s22164_s3 + $0x4d0] sm:$0xff] }
 0x389   : > { %6145 = vmatpush.bf16.msra.mxu0 %v16375_v34  ;;  %6158 = vmatpush.bf16.msra.mxu1 %v16383_v35  ;;  %v16409_v34 = vld [vmem:[%s22164_s3 + $0x438] sm:$0xff] }
 0x38a   : > { %6171 = vmatpush.bf16.msra.mxu2 %v16391_v41  ;;  %6184 = vmatpush.bf16.msrb.mxu3 %v16399_v18  ;;  %v16417_v35 = vld [vmem:[%s22164_s3 + $0x478] sm:$0xff]  ;;  %v5874_v41 = vsel %vm4675_vm10, %v5870_v59, %v5845_v14  ;;  %v5875_v18 = vsel %vm4675_vm10, %v5871_v48, %v5846_v43  ;;  %v6209_v14 = vperm.slane %v6197_v3, 0  ;;  %v6227_v43 = vperm.slane %v20364_v11, 0  ;;  %v16419_v59 = vld [vmem:[%s22164_s3 + $0x488] sm:$0xff] }
 0x38b   : > { %v16427_v48 = vld [vmem:[%s22164_s3 + $0x4c8] sm:$0xff] }
 0x38d   : > { %6146 = vmatpush.bf16.msra.mxu0 %v16374_v28  ;;  %6159 = vmatpush.bf16.msra.mxu1 %v16382_v63  ;;  %v5872_v28 = vsel %vm694_vm0, %v5868_v5, %v5838_v60  ;;  %v5873_v63 = vsel %vm694_vm0, %v5869_v40, %v5839_v23  ;;  %v6203_v60 = vld [vmem:[#allocation2 + $0xc4] ss:$8 sm:$0xf]  ;;  %v6210_v23 = vperm.slane %v6197_v3, 1 }
 0x38e   : > { %6172 = vmatpush.bf16.msra.mxu2 %v16390_v42  ;;  %6185 = vmatpush.bf16.msrb.mxu3 %v16398_v62  ;;  %v16425_v42 = vld [vmem:[%s22164_s3 + $0x4b8] sm:$0xff]  ;;  %v5876_v4 = vsel %vm4675_vm10, %v5872_v28, %v5847_v36  ;;  %v6236_v40 = vperm.slane %v6203_v60, 0 }
 0x38f   : > { %v16433_v62 = vld [vmem:[%s22164_s3 + $0x4f8] sm:$0xff] }
 0x390   : > { %v6205_v36 = vld [vmem:[#allocation2 + $0x104] ss:$8 sm:$0xf] }
 0x391   : > { %6147 = vmatpush.bf16.msra.mxu0 %v16373_v0  ;;  %6160 = vmatpush.bf16.msra.mxu1 %v16381_v53  ;;  %v5878_v0 = vsel %vm1696_vm7, %v5874_v41, %v5854_v1  ;;  %v5879_v53 = vsel %vm1696_vm7, %v5875_v18, %v5855_v21  ;;  %v6211_v1 = vperm.slane %v6197_v3, 2  ;;  %v6212_v21 = vperm.slane %v6197_v3, 3 }
 0x392   : > { %6173 = vmatpush.bf16.msra.mxu2 %v16389_v61  ;;  %6186 = vmatpush.bf16.msrb.mxu3 %v16397_v24  ;;  %v5877_v61 = vsel %vm4675_vm10, %v5873_v63, %v5848_v7  ;;  %v5880_v24 = vsel %vm1696_vm7, %v5876_v4, %v5856_v6  ;;  %v5882_v38 = vpack.c.bf16 %v5878_v0, %v5878_v0  ;;  %v6207_v6 = vld [vmem:[#allocation2 + $0x144] ss:$8 sm:$0xf]  ;;  %v6230_v41 = vperm.slane %v20364_v11, 3 }
 0x393   : > { %v5881_v30 = vsel %vm1696_vm7, %v5877_v61, %v5857_v56  ;;  %v5883_v8 = vpack.c.bf16 %v5879_v53, %v5879_v53  ;;  %v5884_v37 = vpack.c.bf16 %v5880_v24, %v5880_v24  ;;  %v6229_v56 = vperm.slane %v20364_v11, 2  ;;  %v16402_v61 = vld [vmem:[%s22164_s3 + $0x400] sm:$0xff] }
 0x394   : > { %v5885_v13 = vpack.c.bf16 %v5881_v30, %v5881_v30  ;;  %v6245_v18 = vperm.slane %v6205_v36, 0  ;;  %v6246_v28 = vperm.slane %v6205_v36, 1  ;;  %v6238_v63 = vperm.slane %v6203_v60, 2  ;;  %v16410_v24 = vld [vmem:[%s22164_s3 + $0x440] sm:$0xff] }
 0x395   : > { %6148 = vmatpush.bf16.msra.mxu0 %v16372_v54  ;;  %6161 = vmatpush.bf16.msra.mxu1 %v16380_v58  ;;  %v16408_v54 = vld [vmem:[%s22164_s3 + $0x430] sm:$0xff]  ;;  %v6255_v0 = vperm.slane %v6207_v6, 1  ;;  %v6247_v53 = vperm.slane %v6205_v36, 2  ;;  %v6248_v4 = vperm.slane %v6205_v36, 3  ;;  %v16462_v36 = vld [vmem:[%s22164_s3 + $0x5e0] sm:$0xff] }
 0x396   : > { %6174 = vmatpush.bf16.msra.mxu2 %v16388_v2  ;;  %6187 = vmatpush.bf16.msrb.mxu3 %v16396_v19  ;;  %v16416_v58 = vld [vmem:[%s22164_s3 + $0x470] sm:$0xff]  ;;  %v16407_v19 = vld [vmem:[%s22164_s3 + $0x428] sm:$0xff] }
 0x397   : > { %v16432_v2 = vld [vmem:[%s22164_s3 + $0x4f0] sm:$0xff] }
 0x399   : > { %6149 = vmatpush.bf16.msra.mxu0 %v16371_v50  ;;  %6162 = vmatpush.bf16.msra.mxu1 %v16379_v12  ;;  %v6199_v50 = vld [vmem:[#allocation2 + $0x44] ss:$8 sm:$0xf] }
 0x39a   : > { %6175 = vmatpush.bf16.msra.mxu2 %v16387_v47  ;;  %6188 = vmatpush.bf16.msrb.mxu3 %v16395_v55  ;;  %v16421_v12 = vld [vmem:[%s22164_s3 + $0x498] sm:$0xff]  ;;  %v6218_v26 = vperm.slane %v6199_v50, 0  ;;  %v16412_v47 = vld [vmem:[%s22164_s3 + $0x450] sm:$0xff]  ;;  %v6219_v55 = vperm.slane %v6199_v50, 1  ;;  %v6220_v44 = vperm.slane %v6199_v50, 2  ;;  %v6221_v20 = vperm.slane %v6199_v50, 3 }
 0x39c   : > { %v6262_v7 = vsel %vm4661_vm8, %v6209_v14, %v6218_v26  ;;  %v6263_v5 = vsel %vm4661_vm8, %v6210_v23, %v6219_v55  ;;  %v16447_v14 = vld [vmem:[%s22164_s3 + $0x568] sm:$0xff]  ;;  %v16438_v23 = vld [vmem:[%s22164_s3 + $0x520] sm:$0xff] }
 0x39d   : > { %6150 = vmatpush.bf16.msra.mxu0 %v16370_v33  ;;  %6163 = vmatpush.bf16.msra.mxu1 %v16378_v51  ;;  %v6228_v33 = vperm.slane %v20364_v11, 1  ;;  %v16403_v51 = vld [vmem:[%s22164_s3 + $0x408] sm:$0xff] }
 0x39e   : > { %6176 = vmatpush.bf16.msra.mxu2 %v16386_v46  ;;  %6189 = vmatpush.bf16.msrb.mxu3 %v16394_v16  ;;  %v6264_v46 = vsel %vm4661_vm8, %v6211_v1, %v6220_v44  ;;  %v6265_v16 = vsel %vm4661_vm8, %v6212_v21, %v6221_v20  ;;  %v16456_v20 = vld [vmem:[%s22164_s3 + $0x5b0] sm:$0xff]  ;;  %v16446_v1 = vld [vmem:[%s22164_s3 + $0x560] sm:$0xff] }
 0x39f   : > { %v6267_v30 = vsel %vm4666_vm9, %v6263_v5, %v6228_v33  ;;  %v16454_v21 = vld [vmem:[%s22164_s3 + $0x5a0] sm:$0xff]  ;;  %v16445_v33 = vld [vmem:[%s22164_s3 + $0x558] sm:$0xff] }
 0x3a0   : > { %6151 = vmatmul.bf16.vlgmr.msra.gmra.mxu0 %v5882_v38  ;;  %6164 = vmatmul.bf16.vlgmr.msra.gmra.mxu1 %v5883_v8  ;;  %v6256_v38 = vperm.slane %v6207_v6, 2  ;;  %v6268_v8 = vsel %vm4666_vm9, %v6264_v46, %v6229_v56  ;;  %v6597_v5 = vld [vmem:[#allocation2 + $0x5] ss:$8 sm:$0xf] }
 0x3a1   : > { %6543 = vmatpush.bf16.msrb.mxu0 %v16409_v34  ;;  %6556 = vmatpush.bf16.msrb.mxu1 %v16417_v35  ;;  %v6266_v34 = vsel %vm4666_vm9, %v6262_v7, %v6227_v43  ;;  %v6237_v35 = vperm.slane %v6203_v60, 1  ;;  %v16455_v43 = vld [vmem:[%s22164_s3 + $0x5a8] sm:$0xff]  ;;  %v16437_v7 = vld [vmem:[%s22164_s3 + $0x518] sm:$0xff] }
 0x3a2   : > { %6569 = vmatpush.bf16.msrb.mxu2 %v16425_v42  ;;  %6582 = vmatpush.bf16.msra.mxu3 %v16433_v62  ;;  %v6239_v42 = vperm.slane %v6203_v60, 3  ;;  %v6254_v62 = vperm.slane %v6207_v6, 0  ;;  %v16463_v60 = vld [vmem:[%s22164_s3 + $0x5e8] sm:$0xff] }
 0x3a3   : > { %6177 = vmatmul.bf16.vlgmr.msra.gmra.mxu2 %v5884_v37  ;;  %6190 = vmatmul.bf16.vlgmr.msrb.gmra.mxu3 %v5885_v13  ;;  %v16426_v37 = vld [vmem:[%s22164_s3 + $0x4c0] sm:$0xff]  ;;  %v6270_v13 = vsel %vm694_vm0, %v6266_v34, %v6236_v40  ;;  %v16444_v40 = vld [vmem:[%s22164_s3 + $0x550] sm:$0xff] }
 0x3a4   : > { %v20486_v56 = vld [vmem:[#allocation2 + $0x85] ss:$8 sm:$0xf] }
 0x3a5   : > { %6544 = vmatpush.bf16.msrb.mxu0 %v16408_v54  ;;  %6557 = vmatpush.bf16.msrb.mxu1 %v16416_v58  ;;  %v6257_v54 = vperm.slane %v6207_v6, 3  ;;  %v16418_v58 = vld [vmem:[%s22164_s3 + $0x480] sm:$0xff]  ;;  %v16461_v6 = vld [vmem:[%s22164_s3 + $0x5d8] sm:$0xff] }
 0x3a6   : > { %6570 = vmatpush.bf16.msrb.mxu2 %v16424_v31  ;;  %6583 = vmatpush.bf16.msra.mxu3 %v16432_v2  ;;  %v6271_v31 = vsel %vm694_vm0, %v6267_v30, %v6237_v35  ;;  %v6269_v2 = vsel %vm4666_vm9, %v6265_v16, %v6230_v41  ;;  %v6603_v34 = vld [vmem:[#allocation2 + $0xc5] ss:$8 sm:$0xf] }
 0x3a7   : > { %v16452_v41 = vld [vmem:[%s22164_s3 + $0x590] sm:$0xff]  ;;  %v16443_v30 = vld [vmem:[%s22164_s3 + $0x548] sm:$0xff] }
 0x3a9   : > { %6545 = vmatpush.bf16.msrb.mxu0 %v16407_v19  ;;  %6558 = vmatpush.bf16.msrb.mxu1 %v16415_v15  ;;  %v16441_v19 = vld [vmem:[%s22164_s3 + $0x538] sm:$0xff] }
 0x3aa   : > { %6571 = vmatpush.bf16.msrb.mxu2 %v16423_v9  ;;  %6584 = vmatpush.bf16.msra.mxu3 %v16431_v17  ;;  %v16449_v15 = vld [vmem:[%s22164_s3 + $0x578] sm:$0xff]  ;;  %v6274_v9 = vsel %vm4675_vm10, %v6270_v13, %v6245_v18  ;;  %v6275_v17 = vsel %vm4675_vm10, %v6271_v31, %v6246_v28  ;;  %v16460_v18 = vld [vmem:[%s22164_s3 + $0x5d0] sm:$0xff]  ;;  %v6609_v28 = vperm.slane %v6597_v5, 0  ;;  %v16451_v13 = vld [vmem:[%s22164_s3 + $0x588] sm:$0xff] }
 0x3ab   : > { %v16459_v31 = vld [vmem:[%s22164_s3 + $0x5c8] sm:$0xff] }
 0x3ad   : > { %6546 = vmatpush.bf16.msrb.mxu0 %v16406_v27  ;;  %6559 = vmatpush.bf16.msrb.mxu1 %v16414_v25  ;;  %v6272_v27 = vsel %vm694_vm0, %v6268_v8, %v6238_v63  ;;  %v6273_v25 = vsel %vm694_vm0, %v6269_v2, %v6239_v42  ;;  %v6627_v63 = vperm.slane %v20486_v56, 0  ;;  %v6610_v42 = vperm.slane %v6597_v5, 1 }
 0x3ae   : > { %6572 = vmatpush.bf16.msrb.mxu2 %v16422_v22  ;;  %6585 = vmatpush.bf16.msra.mxu3 %v16430_v29  ;;  %v16457_v22 = vld [vmem:[%s22164_s3 + $0x5b8] sm:$0xff]  ;;  %v6276_v50 = vsel %vm4675_vm10, %v6272_v27, %v6247_v53  ;;  %v6628_v8 = vperm.slane %v20486_v56, 1 }
 0x3af   : > { %v16465_v29 = vld [vmem:[%s22164_s3 + $0x5f8] sm:$0xff] }
 0x3b0   : > { %v6605_v53 = vld [vmem:[#allocation2 + $0x105] ss:$8 sm:$0xf] }
 0x3b1   : > { %6547 = vmatpush.bf16.msrb.mxu0 %v16405_v52  ;;  %6560 = vmatpush.bf16.msrb.mxu1 %v16413_v57  ;;  %v6278_v52 = vsel %vm1696_vm7, %v6274_v9, %v6254_v62  ;;  %v6279_v57 = vsel %vm1696_vm7, %v6275_v17, %v6255_v0  ;;  %v6611_v62 = vperm.slane %v6597_v5, 2  ;;  %v6612_v0 = vperm.slane %v6597_v5, 3 }
 0x3b2   : > { %6573 = vmatpush.bf16.msrb.mxu2 %v16421_v12  ;;  %6586 = vmatpush.bf16.msra.mxu3 %v16429_v45  ;;  %v6277_v12 = vsel %vm4675_vm10, %v6273_v25, %v6248_v4  ;;  %v6280_v45 = vsel %vm1696_vm7, %v6276_v50, %v6256_v38  ;;  %v6282_v11 = vpack.c.bf16 %v6278_v52, %v6278_v52  ;;  %v6636_v4 = vperm.slane %v6603_v34, 0  ;;  %v6607_v38 = vld [vmem:[#allocation2 + $0x145] ss:$8 sm:$0xf] }
 0x3b3   : > { %v6281_v3 = vsel %vm1696_vm7, %v6277_v12, %v6257_v54  ;;  %v6283_v26 = vpack.c.bf16 %v6279_v57, %v6279_v57  ;;  %v6284_v55 = vpack.c.bf16 %v6280_v45, %v6280_v45  ;;  %v6630_v9 = vperm.slane %v20486_v56, 3  ;;  %v16434_v12 = vld [vmem:[%s22164_s3 + $0x500] sm:$0xff] }
 0x3b4   : > { %v6285_v44 = vpack.c.bf16 %v6281_v3, %v6281_v3  ;;  %v6645_v17 = vperm.slane %v6605_v53, 0  ;;  %v6646_v27 = vperm.slane %v6605_v53, 1  ;;  %v6638_v25 = vperm.slane %v6603_v34, 2  ;;  %v16442_v45 = vld [vmem:[%s22164_s3 + $0x540] sm:$0xff] }
 0x3b5   : > { %6548 = vmatpush.bf16.msrb.mxu0 %v16404_v32  ;;  %6561 = vmatpush.bf16.msrb.mxu1 %v16412_v47  ;;  %v16440_v32 = vld [vmem:[%s22164_s3 + $0x530] sm:$0xff]  ;;  %v6655_v52 = vperm.slane %v6607_v38, 1  ;;  %v6647_v57 = vperm.slane %v6605_v53, 2  ;;  %v6648_v50 = vperm.slane %v6605_v53, 3  ;;  %v16470_v53 = vld [vmem:[%s22164_s3 + $0x620] sm:$0xff] }
 0x3b6   : > { %6574 = vmatpush.bf16.msrb.mxu2 %v16420_v39  ;;  %6587 = vmatpush.bf16.msra.mxu3 %v16428_v49  ;;  %v16448_v47 = vld [vmem:[%s22164_s3 + $0x570] sm:$0xff]  ;;  %v16439_v49 = vld [vmem:[%s22164_s3 + $0x528] sm:$0xff] }
 0x3b7   : > { %v16464_v39 = vld [vmem:[%s22164_s3 + $0x5f0] sm:$0xff] }
 0x3b9   : > { %6549 = vmatpush.bf16.msrb.mxu0 %v16403_v51  ;;  %6562 = vmatpush.bf16.msrb.mxu1 %v16411_v10  ;;  %v6599_v51 = vld [vmem:[#allocation2 + $0x45] ss:$8 sm:$0xf] }
 0x3ba   : > { %6575 = vmatpush.bf16.msrb.mxu2 %v16419_v59  ;;  %6588 = vmatpush.bf16.msra.mxu3 %v16427_v48  ;;  %v16453_v10 = vld [vmem:[%s22164_s3 + $0x598] sm:$0xff]  ;;  %v6618_v46 = vperm.slane %v6599_v51, 0  ;;  %v6619_v16 = vperm.slane %v6599_v51, 1  ;;  %v6620_v59 = vperm.slane %v6599_v51, 2  ;;  %v16436_v48 = vld [vmem:[%s22164_s3 + $0x510] sm:$0xff]  ;;  %v6621_v35 = vperm.slane %v6599_v51, 3 }
 0x3bc   : > { %v6663_v54 = vsel %vm4661_vm8, %v6610_v42, %v6619_v16  ;;  %v16472_v16 = vld [vmem:[%s22164_s3 + $0x630] sm:$0xff] }
 0x3bd   : > { %6550 = vmatpush.bf16.msrb.mxu0 %v16402_v61  ;;  %6563 = vmatpush.bf16.msrb.mxu1 %v16410_v24  ;;  %v6662_v61 = vsel %vm4661_vm8, %v6609_v28, %v6618_v46  ;;  %v16435_v24 = vld [vmem:[%s22164_s3 + $0x508] sm:$0xff] }
 0x3be   : > { %6576 = vmatpush.bf16.msrb.mxu2 %v16418_v58  ;;  %6589 = vmatpush.bf16.msra.mxu3 %v16426_v37  ;;  %v6664_v58 = vsel %vm4661_vm8, %v6611_v62, %v6620_v59  ;;  %v6665_v37 = vsel %vm4661_vm8, %v6612_v0, %v6621_v35  ;;  %v6666_v2 = vsel %vm4666_vm9, %v6662_v61, %v6627_v63  ;;  %v16480_v59 = vld [vmem:[%s22164_s3 + $0x670] sm:$0xff]  ;;  %v16471_v28 = vld [vmem:[%s22164_s3 + $0x628] sm:$0xff]  ;;  %v16486_v61 = vld [vmem:[%s22164_s3 + $0x6a0] sm:$0xff] }
 0x3bf   : > { %v6670_v3 = vsel %vm694_vm0, %v6666_v2, %v6636_v4  ;;  %v16496_v35 = vld [vmem:[%s22164_s3 + $0x6f0] sm:$0xff]  ;;  %v16479_v63 = vld [vmem:[%s22164_s3 + $0x668] sm:$0xff]  ;;  %v16478_v4 = vld [vmem:[%s22164_s3 + $0x660] sm:$0xff] }
 0x3c0   : > { %6551 = vmatmul.bf16.vlgmr.msrb.gmra.mxu0 %v6282_v11  ;;  %6564 = vmatmul.bf16.vlgmr.msrb.gmra.mxu1 %v6283_v26  ;;  %v6667_v11 = vsel %vm4666_vm9, %v6663_v54, %v6628_v8  ;;  %v6656_v26 = vperm.slane %v6607_v38, 2  ;;  %v16487_v62 = vld [vmem:[%s22164_s3 + $0x6a8] sm:$0xff] }
 0x3c1   : > { %6943 = vmatpush.bf16.msra.mxu0 %v16441_v19  ;;  %6956 = vmatpush.bf16.msra.mxu1 %v16449_v15  ;;  %v6637_v19 = vperm.slane %v6603_v34, 1  ;;  %v6629_v15 = vperm.slane %v20486_v56, 2  ;;  %v16495_v0 = vld [vmem:[%s22164_s3 + $0x6e8] sm:$0xff] }
 0x3c2   : > { %6969 = vmatpush.bf16.msra.mxu2 %v16457_v22  ;;  %6982 = vmatpush.bf16.msrb.mxu3 %v16465_v29  ;;  %v6639_v22 = vperm.slane %v6603_v34, 3  ;;  %v6654_v29 = vperm.slane %v6607_v38, 0  ;;  %v16488_v34 = vld [vmem:[%s22164_s3 + $0x6b0] sm:$0xff] }
 0x3c3   : > { %6577 = vmatmul.bf16.vlgmr.msrb.gmra.mxu2 %v6284_v55  ;;  %6590 = vmatmul.bf16.vlgmr.msra.gmra.mxu3 %v6285_v44  ;;  %v16458_v55 = vld [vmem:[%s22164_s3 + $0x5c0] sm:$0xff]  ;;  %v6671_v44 = vsel %vm694_vm0, %v6667_v11, %v6637_v19 }
 0x3c4   : > { %v6997_v2 = vld [vmem:[#allocation2 + $0x6] ss:$8 sm:$0xf] }
 0x3c5   : > { %6944 = vmatpush.bf16.msra.mxu0 %v16440_v32  ;;  %6957 = vmatpush.bf16.msra.mxu1 %v16448_v47  ;;  %v6657_v32 = vperm.slane %v6607_v38, 3  ;;  %v16450_v47 = vld [vmem:[%s22164_s3 + $0x580] sm:$0xff] }
 0x3c6   : > { %6970 = vmatpush.bf16.msra.mxu2 %v16456_v20  ;;  %6983 = vmatpush.bf16.msrb.mxu3 %v16464_v39  ;;  %v6668_v20 = vsel %vm4666_vm9, %v6664_v58, %v6629_v15  ;;  %v6669_v39 = vsel %vm4666_vm9, %v6665_v37, %v6630_v9  ;;  %v6999_v37 = vld [vmem:[#allocation2 + $0x46] ss:$8 sm:$0xf] }
 0x3c7   : > { %v16485_v15 = vld [vmem:[%s22164_s3 + $0x698] sm:$0xff] }
 0x3c8   : > { %v16493_v9 = vld [vmem:[%s22164_s3 + $0x6d8] sm:$0xff] }
 0x3c9   : > { %6945 = vmatpush.bf16.msra.mxu0 %v16439_v49  ;;  %6958 = vmatpush.bf16.msra.mxu1 %v16447_v14  ;;  %v16473_v49 = vld [vmem:[%s22164_s3 + $0x638] sm:$0xff] }
 0x3ca   : > { %6971 = vmatpush.bf16.msra.mxu2 %v16455_v43  ;;  %6984 = vmatpush.bf16.msrb.mxu3 %v16463_v60  ;;  %v16481_v14 = vld [vmem:[%s22164_s3 + $0x678] sm:$0xff]  ;;  %v6674_v43 = vsel %vm4675_vm10, %v6670_v3, %v6645_v17  ;;  %v6675_v60 = vsel %vm4675_vm10, %v6671_v44, %v6646_v27  ;;  %v7018_v27 = vperm.slane %v6999_v37, 0  ;;  %v16492_v3 = vld [vmem:[%s22164_s3 + $0x6d0] sm:$0xff]  ;;  %v7011_v44 = vperm.slane %v6997_v2, 2 }
 0x3cb   : > { %v20608_v17 = vld [vmem:[#allocation2 + $0x86] ss:$8 sm:$0xf] }
 0x3cc   : > { %v7027_v11 = vperm.slane %v20608_v17, 0 }
 0x3cd   : > { %6946 = vmatpush.bf16.msra.mxu0 %v16438_v23  ;;  %6959 = vmatpush.bf16.msra.mxu1 %v16446_v1  ;;  %v6672_v23 = vsel %vm694_vm0, %v6668_v20, %v6638_v25  ;;  %v6673_v1 = vsel %vm694_vm0, %v6669_v39, %v6639_v22  ;;  %v7009_v25 = vperm.slane %v6997_v2, 0  ;;  %v7019_v22 = vperm.slane %v6999_v37, 1 }
 0x3ce   : > { %6972 = vmatpush.bf16.msra.mxu2 %v16454_v21  ;;  %6985 = vmatpush.bf16.msrb.mxu3 %v16462_v36  ;;  %v16489_v21 = vld [vmem:[%s22164_s3 + $0x6b8] sm:$0xff]  ;;  %v6676_v51 = vsel %vm4675_vm10, %v6672_v23, %v6647_v57  ;;  %v16476_v57 = vld [vmem:[%s22164_s3 + $0x650] sm:$0xff]  ;;  %v7012_v20 = vperm.slane %v6997_v2, 3 }
 0x3cf   : > { %v16497_v36 = vld [vmem:[%s22164_s3 + $0x6f8] sm:$0xff] }
 0x3d1   : > { %6947 = vmatpush.bf16.msra.mxu0 %v16437_v7  ;;  %6960 = vmatpush.bf16.msra.mxu1 %v16445_v33  ;;  %v6678_v7 = vsel %vm1696_vm7, %v6674_v43, %v6654_v29  ;;  %v6679_v33 = vsel %vm1696_vm7, %v6675_v60, %v6655_v52  ;;  %v7020_v29 = vperm.slane %v6999_v37, 2  ;;  %v16468_v52 = vld [vmem:[%s22164_s3 + $0x610] sm:$0xff]  ;;  %v7028_v60 = vperm.slane %v20608_v17, 1 }
 0x3d2   : > { %6973 = vmatpush.bf16.msra.mxu2 %v16453_v10  ;;  %6986 = vmatpush.bf16.msrb.mxu3 %v16461_v6  ;;  %v6677_v10 = vsel %vm4675_vm10, %v6673_v1, %v6648_v50  ;;  %v6680_v6 = vsel %vm1696_vm7, %v6676_v51, %v6656_v26  ;;  %v6682_v56 = vpack.c.bf16 %v6678_v7, %v6678_v7  ;;  %v20616_v50 = vld [vmem:[#allocation2 + $0xc6] ss:$8 sm:$0xf]  ;;  %v7010_v26 = vperm.slane %v6997_v2, 1 }
 0x3d3   : > { %v6681_v5 = vsel %vm1696_vm7, %v6677_v10, %v6657_v32  ;;  %v6683_v46 = vpack.c.bf16 %v6679_v33, %v6679_v33  ;;  %v7036_v43 = vperm.slane %v20616_v50, 0  ;;  %v7037_v23 = vperm.slane %v20616_v50, 1  ;;  %v7007_v33 = vld [vmem:[#allocation2 + $0x146] ss:$8 sm:$0xf] }
 0x3d4   : > { %v7063_v1 = vsel %vm4661_vm8, %v7010_v26, %v7019_v22  ;;  %v7029_v51 = vperm.slane %v20608_v17, 2  ;;  %v7064_v10 = vsel %vm4661_vm8, %v7011_v44, %v7020_v29 }
 0x3d5   : > { %6948 = vmatpush.bf16.msra.mxu0 %v16436_v48  ;;  %6961 = vmatpush.bf16.msra.mxu1 %v16444_v40  ;;  %v6684_v48 = vpack.c.bf16 %v6680_v6, %v6680_v6  ;;  %v6685_v40 = vpack.c.bf16 %v6681_v5, %v6681_v5  ;;  %v16483_v5 = vld [vmem:[%s22164_s3 + $0x688] sm:$0xff] }
 0x3d6   : > { %6974 = vmatpush.bf16.msra.mxu2 %v16452_v41  ;;  %6987 = vmatpush.bf16.msrb.mxu3 %v16460_v18 }
 0x3d9   : > { %6949 = vmatpush.bf16.msra.mxu0 %v16435_v24  ;;  %6962 = vmatpush.bf16.msra.mxu1 %v16443_v30  ;;  %v16494_v24 = vld [vmem:[%s22164_s3 + $0x6e0] sm:$0xff] }
 0x3da   : > { %6975 = vmatpush.bf16.msra.mxu2 %v16451_v13  ;;  %6988 = vmatpush.bf16.msrb.mxu3 %v16459_v31  ;;  %v16469_v13 = vld [vmem:[%s22164_s3 + $0x618] sm:$0xff] }
 0x3db   : > { %v16477_v31 = vld [vmem:[%s22164_s3 + $0x658] sm:$0xff] }
 0x3dc   : > { %v5109_v41 = vpop.f32.mrf.mxu0  ;;  %v5122_v18 = vpop.f32.mrf.mxu1 }
 0x3dd   : > { %6950 = vmatpush.bf16.msra.mxu0 %v16434_v12  ;;  %6963 = vmatpush.bf16.msra.mxu1 %v16442_v45  ;;  %v5123_v42 = vadd.f32 %v5122_v18, %v5109_v41  ;;  %v7021_v12 = vperm.slane %v6999_v37, 3  ;;  %v16484_v45 = vld [vmem:[%s22164_s3 + $0x690] sm:$0xff]  ;;  %v7054_v18 = vperm.slane %v7007_v33, 0  ;;  %v16505_v37 = vld [vmem:[%s22164_s3 + $0x738] sm:$0xff] }
 0x3de   : > { %6976 = vmatpush.bf16.msra.mxu2 %v16450_v47  ;;  %6989 = vmatpush.bf16.msrb.mxu3 %v16458_v55  ;;  %v7062_v55 = vsel %vm4661_vm8, %v7009_v25, %v7018_v27  ;;  %v16521_v27 = vld [vmem:[%s22164_s3 + $0x7b8] sm:$0xff] }
 0x3df   : > { %v7065_v6 = vsel %vm4661_vm8, %v7012_v20, %v7021_v12  ;;  %v16529_v25 = vld [vmem:[%s22164_s3 + $0x7f8] sm:$0xff] }
 0x3e0   : > { %6951 = vmatmul.bf16.vlgmr.msra.gmra.mxu0 %v6682_v56  ;;  %6964 = vmatmul.bf16.vlgmr.msra.gmra.mxu1 %v6683_v46  ;;  %v16491_v56 = vld [vmem:[%s22164_s3 + $0x6c8] sm:$0xff]  ;;  %v7066_v46 = vsel %vm4666_vm9, %v7062_v55, %v7027_v11  ;;  %v16512_v55 = vld [vmem:[%s22164_s3 + $0x770] sm:$0xff] }
 0x3e1   : > { %7343 = vmatpush.bf16.msrb.mxu0 %v16473_v49  ;;  %7356 = vmatpush.bf16.msrb.mxu1 %v16481_v14  ;;  %v7005_v14 = vld [vmem:[#allocation2 + $0x106] ss:$8 sm:$0xf] }
 0x3e2   : > { %7369 = vmatpush.bf16.msrb.mxu2 %v16489_v21  ;;  %7382 = vmatpush.bf16.msra.mxu3 %v16497_v36  ;;  %v16467_v21 = vld [vmem:[%s22164_s3 + $0x608] sm:$0xff]  ;;  %v7047_v41 = vperm.slane %v7005_v14, 2 }
 0x3e3   : > { %6977 = vmatmul.bf16.vlgmr.msra.gmra.mxu2 %v6684_v48  ;;  %6990 = vmatmul.bf16.vlgmr.msrb.gmra.mxu3 %v6685_v40  ;;  %v5135_v30 = vpop.f32.mrf.mxu2  ;;  %v5148_v38 = vpop.f32.mrf.mxu3  ;;  %v16475_v36 = vld [vmem:[%s22164_s3 + $0x648] sm:$0xff]  ;;  %v7039_v48 = vperm.slane %v20616_v50, 3 }
 0x3e4   : > { %v5136_v8 = vadd.f32 %v5135_v30, %v5123_v42  ;;  %v5111_v54 = vpop.f32.mrf.mxu0  ;;  %v5124_v58 = vpop.f32.mrf.mxu1  ;;  %v7048_v42 = vperm.slane %v7005_v14, 3  ;;  %v16482_v30 = vld [vmem:[%s22164_s3 + $0x680] sm:$0xff] }
 0x3e5   : > { %7344 = vmatpush.bf16.msrb.mxu0 %v16472_v16  ;;  %7357 = vmatpush.bf16.msrb.mxu1 %v16480_v59  ;;  %v7038_v16 = vperm.slane %v20616_v50, 2  ;;  %v7030_v59 = vperm.slane %v20608_v17, 3 }
 0x3e6   : > { %7370 = vmatpush.bf16.msrb.mxu2 %v16488_v34  ;;  %7383 = vmatpush.bf16.msra.mxu3 %v16496_v35  ;;  %v5149_v19 = vadd.f32 %v5148_v38, %v5136_v8  ;;  %v7045_v34 = vperm.slane %v7005_v14, 0  ;;  %v7046_v35 = vperm.slane %v7005_v14, 1  ;;  %v16490_v38 = vld [vmem:[%s22164_s3 + $0x6c0] sm:$0xff]  ;;  %v16503_v14 = vld [vmem:[%s22164_s3 + $0x728] sm:$0xff] }
 0x3e7   : > { %v7069_v58 = vsel %vm4666_vm9, %v7065_v6, %v7030_v59  ;;  %v16518_v6 = vld [vmem:[%s22164_s3 + $0x7a0] sm:$0xff]  ;;  %v16517_v59 = vld [vmem:[%s22164_s3 + $0x798] sm:$0xff] }
 0x3e8   : > { %v7073_v17 = vsel %vm694_vm0, %v7069_v58, %v7039_v48  ;;  %v16525_v48 = vld [vmem:[%s22164_s3 + $0x7d8] sm:$0xff] }
 0x3e9   : > { %7345 = vmatpush.bf16.msrb.mxu0 %v16471_v28  ;;  %7358 = vmatpush.bf16.msrb.mxu1 %v16479_v63  ;;  %v7070_v28 = vsel %vm694_vm0, %v7066_v46, %v7036_v43  ;;  %v7055_v63 = vperm.slane %v7007_v33, 1  ;;  %v16511_v43 = vld [vmem:[%s22164_s3 + $0x768] sm:$0xff]  ;;  %v16509_v46 = vld [vmem:[%s22164_s3 + $0x758] sm:$0xff] }
 0x3ea   : > { %7371 = vmatpush.bf16.msrb.mxu2 %v16487_v62  ;;  %7384 = vmatpush.bf16.msra.mxu3 %v16495_v0  ;;  %v16466_v62 = vld [vmem:[%s22164_s3 + $0x600] sm:$0xff] }
 0x3eb   : > { %v5137_v32 = vpop.f32.mrf.mxu2  ;;  %v5150_v47 = vpop.f32.mrf.mxu3  ;;  %v16474_v0 = vld [vmem:[%s22164_s3 + $0x640] sm:$0xff] }
 0x3ec   : > { %v5353_v39 = vpop.f32.mrf.mxu0  ;;  %v5366_v49 = vpop.f32.mrf.mxu1  ;;  %v16504_v47 = vld [vmem:[%s22164_s3 + $0x730] sm:$0xff] }
 0x3ed   : > { %7346 = vmatpush.bf16.msrb.mxu0 %v16470_v53  ;;  %7359 = vmatpush.bf16.msrb.mxu1 %v16478_v4  ;;  %v5354_v7 = vadd.f32 %v5353_v39, %v5149_v19  ;;  %v7067_v53 = vsel %vm4666_vm9, %v7063_v1, %v7028_v60  ;;  %v7056_v4 = vperm.slane %v7007_v33, 2  ;;  %v7074_v19 = vsel %vm4675_vm10, %v7070_v28, %v7045_v34  ;;  %v16520_v39 = vld [vmem:[%s22164_s3 + $0x7b0] sm:$0xff]  ;;  %v16519_v1 = vld [vmem:[%s22164_s3 + $0x7a8] sm:$0xff] }
 0x3ee   : > { %7372 = vmatpush.bf16.msrb.mxu2 %v16486_v61  ;;  %7385 = vmatpush.bf16.msra.mxu3 %v16494_v24  ;;  %v7068_v61 = vsel %vm4666_vm9, %v7064_v10, %v7029_v51  ;;  %v7057_v24 = vperm.slane %v7007_v33, 3  ;;  %v7071_v8 = vsel %vm694_vm0, %v7067_v53, %v7037_v23  ;;  %v7078_v29 = vsel %vm1696_vm7, %v7074_v19, %v7054_v18  ;;  %v16502_v51 = vld [vmem:[%s22164_s3 + $0x720] sm:$0xff]  ;;  %v16500_v53 = vld [vmem:[%s22164_s3 + $0x710] sm:$0xff] }
 0x3ef   : > { %v5367_v40 = vadd.f32 %v5366_v49, %v5354_v7  ;;  %v7072_v54 = vsel %vm694_vm0, %v7068_v61, %v7038_v16  ;;  %v7082_v26 = vpack.c.bf16 %v7078_v29, %v7078_v29  ;;  %v16528_v49 = vld [vmem:[%s22164_s3 + $0x7f0] sm:$0xff]  ;;  %v16510_v10 = vld [vmem:[%s22164_s3 + $0x760] sm:$0xff] }
 0x3f0   : > { %v7399_v16 = vld [vmem:[#allocation2 + $0x47] ss:$8 sm:$0xf] }
 0x3f1   : > { %7347 = vmatpush.bf16.msrb.mxu0 %v16469_v13  ;;  %7360 = vmatpush.bf16.msrb.mxu1 %v16477_v31  ;;  %v16513_v13 = vld [vmem:[%s22164_s3 + $0x778] sm:$0xff] }
 0x3f2   : > { %7373 = vmatpush.bf16.msrb.mxu2 %v16485_v15  ;;  %7386 = vmatpush.bf16.msra.mxu3 %v16493_v9  ;;  %v7075_v15 = vsel %vm4675_vm10, %v7071_v8, %v7046_v35  ;;  %v7076_v9 = vsel %vm4675_vm10, %v7072_v54, %v7047_v41  ;;  %v7397_v35 = vld [vmem:[#allocation2 + $0x7] ss:$8 sm:$0xf] }
 0x3f3   : > { %v5379_v31 = vpop.f32.mrf.mxu2  ;;  %v5392_v2 = vpop.f32.mrf.mxu3  ;;  %v20738_v41 = vld [vmem:[#allocation2 + $0x87] ss:$8 sm:$0xf]  ;;  %v7409_v54 = vperm.slane %v7397_v35, 0 }
 0x3f4   : > { %v5380_v22 = vadd.f32 %v5379_v31, %v5367_v40  ;;  %v5355_v50 = vpop.f32.mrf.mxu0  ;;  %v5368_v12 = vpop.f32.mrf.mxu1  ;;  %v20746_v61 = vld [vmem:[#allocation2 + $0xc7] ss:$8 sm:$0xf]  ;;  %v7427_v58 = vperm.slane %v20738_v41, 0  ;;  %v7412_v31 = vperm.slane %v7397_v35, 3 }
 0x3f5   : > { %7348 = vmatpush.bf16.msrb.mxu0 %v16468_v52  ;;  %7361 = vmatpush.bf16.msrb.mxu1 %v16476_v57  ;;  %v7079_v52 = vsel %vm1696_vm7, %v7075_v15, %v7055_v63  ;;  %v7077_v57 = vsel %vm4675_vm10, %v7073_v17, %v7048_v42  ;;  %v7418_v42 = vperm.slane %v7399_v16, 0  ;;  %v16524_v8 = vld [vmem:[%s22164_s3 + $0x7d0] sm:$0xff]  ;;  %v7436_v15 = vperm.slane %v20746_v61, 0  ;;  %v16499_v17 = vld [vmem:[%s22164_s3 + $0x708] sm:$0xff] }
 0x3f6   : > { %7374 = vmatpush.bf16.msrb.mxu2 %v16484_v45  ;;  %7387 = vmatpush.bf16.msra.mxu3 %v16492_v3  ;;  %v7080_v45 = vsel %vm1696_vm7, %v7076_v9, %v7056_v4  ;;  %v7081_v3 = vsel %vm1696_vm7, %v7077_v57, %v7057_v24  ;;  %v20688_v11 = vadd.f32 %v5392_v2, %v5380_v22  ;;  %v16508_v4 = vld [vmem:[%s22164_s3 + $0x750] sm:$0xff]  ;;  %v7421_v24 = vperm.slane %v7399_v16, 3  ;;  %v16515_v50 = vld [vmem:[%s22164_s3 + $0x788] sm:$0xff] }
 0x3f7   : > { %v7083_v32 = vpack.c.bf16 %v7079_v52, %v7079_v52  ;;  %v7084_v44 = vpack.c.bf16 %v7080_v45, %v7080_v45  ;;  %v7085_v20 = vpack.c.bf16 %v7081_v3, %v7081_v3  ;;  %v7405_v19 = vld [vmem:[#allocation2 + $0x107] ss:$8 sm:$0xf]  ;;  %v7462_v9 = vsel %vm4661_vm8, %v7409_v54, %v7418_v42 }
 0x3f8   : > { %v7428_v22 = vperm.slane %v20738_v41, 1  ;;  %v7465_v57 = vsel %vm4661_vm8, %v7412_v31, %v7421_v24  ;;  %v16523_v12 = vld [vmem:[%s22164_s3 + $0x7c8] sm:$0xff]  ;;  %v7466_v45 = vsel %vm4666_vm9, %v7462_v9, %v7427_v58  ;;  %v7437_v3 = vperm.slane %v20746_v61, 1  ;;  %v16544_v24 = vld [vmem:[%s22164_s3 + $0x870] sm:$0xff] }
 0x3f9   : > { %7349 = vmatpush.bf16.msrb.mxu0 %v16467_v21  ;;  %7362 = vmatpush.bf16.msrb.mxu1 %v16475_v36  ;;  %v16527_v21 = vld [vmem:[%s22164_s3 + $0x7e8] sm:$0xff]  ;;  %v16560_v54 = vld [vmem:[%s22164_s3 + $0x8f0] sm:$0xff] }
 0x3fa   : > { %7375 = vmatpush.bf16.msrb.mxu2 %v16483_v5  ;;  %7388 = vmatpush.bf16.msra.mxu3 %v16491_v56  ;;  %v16526_v5 = vld [vmem:[%s22164_s3 + $0x7e0] sm:$0xff]  ;;  %v16501_v56 = vld [vmem:[%s22164_s3 + $0x718] sm:$0xff]  ;;  %v16535_v58 = vld [vmem:[%s22164_s3 + $0x828] sm:$0xff] }
 0x3fb   : > { %v5381_v60 = vpop.f32.mrf.mxu2  ;;  %v5394_v23 = vpop.f32.mrf.mxu3  ;;  %v16559_v31 = vld [vmem:[%s22164_s3 + $0x8e8] sm:$0xff] }
 0x3fc   : > { %v7448_v60 = vperm.slane %v7405_v19, 3  ;;  %v16498_v23 = vld [vmem:[%s22164_s3 + $0x700] sm:$0xff] }
 0x3fd   : > { %7350 = vmatpush.bf16.msrb.mxu0 %v16466_v62  ;;  %7363 = vmatpush.bf16.msrb.mxu1 %v16474_v0  ;;  %v5752_v36 = vpop.f32.mrf.mxu0  ;;  %v5765_v7 = vpop.f32.mrf.mxu1  ;;  %v7419_v62 = vperm.slane %v7399_v16, 1  ;;  %v7420_v0 = vperm.slane %v7399_v16, 2  ;;  %v16545_v16 = vld [vmem:[%s22164_s3 + $0x878] sm:$0xff] }
 0x3fe   : > { %7376 = vmatpush.bf16.msrb.mxu2 %v16482_v30  ;;  %7389 = vmatpush.bf16.msra.mxu3 %v16490_v38  ;;  %v5766_v33 = vadd.f32 %v5765_v7, %v5752_v36  ;;  %v16516_v38 = vld [vmem:[%s22164_s3 + $0x790] sm:$0xff] }
 0x400   : > { %7351 = vmatmul.bf16.vlgmr.msrb.gmra.mxu0 %v7082_v26  ;;  %7364 = vmatmul.bf16.vlgmr.msrb.gmra.mxu1 %v7083_v32  ;;  %v7430_v26 = vperm.slane %v20738_v41, 3 }
 0x401   : > { %7743 = vmatpush.bf16.msra.mxu0 %v16505_v37  ;;  %7756 = vmatpush.bf16.msra.mxu1 %v16513_v13  ;;  %v7410_v37 = vperm.slane %v7397_v35, 1  ;;  %v7411_v13 = vperm.slane %v7397_v35, 2  ;;  %v16553_v35 = vld [vmem:[%s22164_s3 + $0x8b8] sm:$0xff] }
 0x402   : > { %7769 = vmatpush.bf16.msra.mxu2 %v16521_v27  ;;  %7782 = vmatpush.bf16.msrb.mxu3 %v16529_v25  ;;  %v16507_v27 = vld [vmem:[%s22164_s3 + $0x748] sm:$0xff] }
 0x403   : > { %7377 = vmatmul.bf16.vlgmr.msrb.gmra.mxu2 %v7084_v44  ;;  %7390 = vmatmul.bf16.vlgmr.msra.gmra.mxu3 %v7085_v20  ;;  %v7407_v25 = vld [vmem:[#allocation2 + $0x147] ss:$8 sm:$0xf]  ;;  %v7463_v29 = vsel %vm4661_vm8, %v7410_v37, %v7419_v62  ;;  %v7464_v52 = vsel %vm4661_vm8, %v7411_v13, %v7420_v0  ;;  %v7446_v44 = vperm.slane %v7405_v19, 1  ;;  %v7438_v20 = vperm.slane %v20746_v61, 2 }
 0x404   : > { %v7467_v36 = vsel %vm4666_vm9, %v7463_v29, %v7428_v22  ;;  %v7456_v7 = vperm.slane %v7407_v25, 2  ;;  %v16543_v37 = vld [vmem:[%s22164_s3 + $0x868] sm:$0xff]  ;;  %v16558_v22 = vld [vmem:[%s22164_s3 + $0x8e0] sm:$0xff]  ;;  %v16533_v29 = vld [vmem:[%s22164_s3 + $0x818] sm:$0xff] }
 0x405   : > { %7744 = vmatpush.bf16.msra.mxu0 %v16504_v47  ;;  %7757 = vmatpush.bf16.msra.mxu1 %v16512_v55  ;;  %v5754_v28 = vpop.f32.mrf.mxu0  ;;  %v5767_v63 = vpop.f32.mrf.mxu1  ;;  %v7445_v55 = vperm.slane %v7405_v19, 0  ;;  %v16551_v13 = vld [vmem:[%s22164_s3 + $0x8a8] sm:$0xff] }
 0x406   : > { %7770 = vmatpush.bf16.msra.mxu2 %v16520_v39  ;;  %7783 = vmatpush.bf16.msrb.mxu3 %v16528_v49  ;;  %v5778_v40 = vpop.f32.mrf.mxu2  ;;  %v5791_v34 = vpop.f32.mrf.mxu3  ;;  %v7439_v39 = vperm.slane %v20746_v61, 3  ;;  %v7454_v49 = vperm.slane %v7407_v25, 0  ;;  %v16536_v61 = vld [vmem:[%s22164_s3 + $0x830] sm:$0xff] }
 0x407   : > { %v5779_v18 = vadd.f32 %v5778_v40, %v5766_v33  ;;  %v7457_v33 = vperm.slane %v7407_v25, 3 }
 0x409   : > { %7745 = vmatpush.bf16.msra.mxu0 %v16503_v14  ;;  %7758 = vmatpush.bf16.msra.mxu1 %v16511_v43  ;;  %v5792_v30 = vadd.f32 %v5791_v34, %v5779_v18  ;;  %v7455_v14 = vperm.slane %v7407_v25, 1  ;;  %v7447_v43 = vperm.slane %v7405_v19, 2  ;;  %v16550_v25 = vld [vmem:[%s22164_s3 + $0x8a0] sm:$0xff] }
 0x40a   : > { %7771 = vmatpush.bf16.msra.mxu2 %v16519_v1  ;;  %7784 = vmatpush.bf16.msrb.mxu3 %v16527_v21  ;;  %v16506_v1 = vld [vmem:[%s22164_s3 + $0x740] sm:$0xff]  ;;  %v7470_v21 = vsel %vm694_vm0, %v7466_v45, %v7436_v15 }
 0x40b   : > { %v20756_v2 = vadd.f32 %v5792_v30, %v20688_v11  ;;  %v7429_v11 = vperm.slane %v20738_v41, 2  ;;  %v16561_v41 = vld [vmem:[%s22164_s3 + $0x8f8] sm:$0xff] }
 0x40d   : > { %7746 = vmatpush.bf16.msra.mxu0 %v16502_v51  ;;  %7759 = vmatpush.bf16.msra.mxu1 %v16510_v10  ;;  %v16514_v51 = vld [vmem:[%s22164_s3 + $0x780] sm:$0xff] }
 0x40e   : > { %7772 = vmatpush.bf16.msra.mxu2 %v16518_v6  ;;  %7785 = vmatpush.bf16.msrb.mxu3 %v16526_v5  ;;  %v5780_v32 = vpop.f32.mrf.mxu2  ;;  %v5793_v47 = vpop.f32.mrf.mxu3  ;;  %v16522_v10 = vld [vmem:[%s22164_s3 + $0x7c0] sm:$0xff]  ;;  %v7471_v6 = vsel %vm694_vm0, %v7467_v36, %v7437_v3  ;;  %v7468_v5 = vsel %vm4666_vm9, %v7464_v52, %v7429_v11  ;;  %v16541_v52 = vld [vmem:[%s22164_s3 + $0x858] sm:$0xff] }
 0x40f   : > { %v7472_v40 = vsel %vm694_vm0, %v7468_v5, %v7438_v20  ;;  %v7797_v11 = vld [vmem:[#allocation2 + $0x20] ss:$8 sm:$0xf] }
 0x410   : > { %v7476_v63 = vsel %vm4675_vm10, %v7472_v40, %v7447_v43  ;;  %v20877_v43 = vld [vmem:[#allocation2 + $0xe0] ss:$8 sm:$0xf]  ;;  %v7809_v36 = vperm.slane %v7797_v11, 0 }
 0x411   : > { %7747 = vmatpush.bf16.msra.mxu0 %v16501_v56  ;;  %7760 = vmatpush.bf16.msra.mxu1 %v16509_v46  ;;  %v7469_v56 = vsel %vm4666_vm9, %v7465_v57, %v7430_v26  ;;  %v16537_v46 = vld [vmem:[%s22164_s3 + $0x838] sm:$0xff]  ;;  %v7480_v62 = vsel %vm1696_vm7, %v7476_v63, %v7456_v7  ;;  %v7837_v63 = vperm.slane %v20877_v43, 1 }
 0x412   : > { %7773 = vmatpush.bf16.msra.mxu2 %v16517_v59  ;;  %7786 = vmatpush.bf16.msrb.mxu3 %v16525_v48  ;;  %v7474_v59 = vsel %vm4675_vm10, %v7470_v21, %v7445_v55  ;;  %v7475_v48 = vsel %vm4675_vm10, %v7471_v6, %v7446_v44  ;;  %v7473_v34 = vsel %vm694_vm0, %v7469_v56, %v7439_v39  ;;  %v7799_v57 = vld [vmem:[#allocation2 + $0x60] ss:$8 sm:$0xf]  ;;  %v7836_v56 = vperm.slane %v20877_v43, 0 }
 0x413   : > { %v7478_v18 = vsel %vm1696_vm7, %v7474_v59, %v7454_v49  ;;  %v7479_v28 = vsel %vm1696_vm7, %v7475_v48, %v7455_v14  ;;  %v7477_v42 = vsel %vm4675_vm10, %v7473_v34, %v7448_v60  ;;  %v7484_v30 = vpack.c.bf16 %v7480_v62, %v7480_v62  ;;  %v20869_v26 = vld [vmem:[#allocation2 + $0xa0] ss:$8 sm:$0xf] }
 0x414   : > { %v7481_v0 = vsel %vm1696_vm7, %v7477_v42, %v7457_v33  ;;  %v7818_v44 = vperm.slane %v7799_v57, 0  ;;  %v7819_v20 = vperm.slane %v7799_v57, 1  ;;  %v7820_v39 = vperm.slane %v7799_v57, 2  ;;  %v16532_v49 = vld [vmem:[%s22164_s3 + $0x810] sm:$0xff]  ;;  %v16539_v59 = vld [vmem:[%s22164_s3 + $0x848] sm:$0xff] }
 0x415   : > { %7748 = vmatpush.bf16.msra.mxu0 %v16500_v53  ;;  %7761 = vmatpush.bf16.msra.mxu1 %v16508_v4  ;;  %v7482_v53 = vpack.c.bf16 %v7478_v18, %v7478_v18  ;;  %v7483_v4 = vpack.c.bf16 %v7479_v28, %v7479_v28  ;;  %v16540_v14 = vld [vmem:[%s22164_s3 + $0x850] sm:$0xff]  ;;  %v7821_v60 = vperm.slane %v7799_v57, 3  ;;  %v7827_v7 = vperm.slane %v20869_v26, 0  ;;  %v16555_v18 = vld [vmem:[%s22164_s3 + $0x8c8] sm:$0xff]  ;;  %v16577_v57 = vld [vmem:[%s22164_s3 + $0x978] sm:$0xff] }
 0x416   : > { %7774 = vmatpush.bf16.msra.mxu2 %v16516_v38  ;;  %7787 = vmatpush.bf16.msrb.mxu3 %v16524_v8  ;;  %v7485_v38 = vpack.c.bf16 %v7481_v0, %v7481_v0  ;;  %v16552_v8 = vld [vmem:[%s22164_s3 + $0x8b0] sm:$0xff]  ;;  %v7810_v33 = vperm.slane %v7797_v11, 1  ;;  %v7828_v40 = vperm.slane %v20869_v26, 1  ;;  %v7829_v42 = vperm.slane %v20869_v26, 2 }
 0x417   : > { %v16556_v21 = vld [vmem:[%s22164_s3 + $0x8d0] sm:$0xff]  ;;  %v7830_v62 = vperm.slane %v20869_v26, 3  ;;  %v16593_v26 = vld [vmem:[%s22164_s3 + $0x9f8] sm:$0xff] }
 0x418   : > { %v7805_v5 = vld [vmem:[#allocation2 + $0x120] ss:$8 sm:$0xf] }
 0x419   : > { %7749 = vmatpush.bf16.msra.mxu0 %v16499_v17  ;;  %7762 = vmatpush.bf16.msra.mxu1 %v16507_v27  ;;  %v16534_v17 = vld [vmem:[%s22164_s3 + $0x820] sm:$0xff] }
 0x41a   : > { %7775 = vmatpush.bf16.msra.mxu2 %v16515_v50  ;;  %7788 = vmatpush.bf16.msrb.mxu3 %v16523_v12  ;;  %v16542_v27 = vld [vmem:[%s22164_s3 + $0x860] sm:$0xff]  ;;  %v16549_v50 = vld [vmem:[%s22164_s3 + $0x898] sm:$0xff] }
 0x41b   : > { %v16557_v12 = vld [vmem:[%s22164_s3 + $0x8d8] sm:$0xff] }
 0x41c   : > { %v7807_v48 = vld [vmem:[#allocation2 + $0x160] ss:$8 sm:$0xf] }
 0x41d   : > { %7750 = vmatpush.bf16.msra.mxu0 %v16498_v23  ;;  %7763 = vmatpush.bf16.msra.mxu1 %v16506_v1  ;;  %v6152_v19 = vpop.f32.mrf.mxu0  ;;  %v6165_v15 = vpop.f32.mrf.mxu1  ;;  %v16548_v1 = vld [vmem:[%s22164_s3 + $0x890] sm:$0xff] }
 0x41e   : > { %7776 = vmatpush.bf16.msra.mxu2 %v16514_v51  ;;  %7789 = vmatpush.bf16.msrb.mxu3 %v16522_v10  ;;  %v6166_v9 = vadd.f32 %v6165_v15, %v6152_v19  ;;  %v7811_v51 = vperm.slane %v7797_v11, 2  ;;  %v7812_v10 = vperm.slane %v7797_v11, 3  ;;  %v7856_v15 = vperm.slane %v7807_v48, 2  ;;  %v16585_v11 = vld [vmem:[%s22164_s3 + $0x9b8] sm:$0xff] }
 0x420   : > { %7751 = vmatmul.bf16.vlgmr.msra.gmra.mxu0 %v7482_v53  ;;  %7764 = vmatmul.bf16.vlgmr.msra.gmra.mxu1 %v7483_v4  ;;  %v7864_v34 = vsel %vm4661_vm8, %v7811_v51, %v7820_v39  ;;  %v7845_v4 = vperm.slane %v7805_v5, 0  ;;  %v16583_v51 = vld [vmem:[%s22164_s3 + $0x9a8] sm:$0xff] }
 0x421   : > { %8143 = vmatpush.bf16.msrb.mxu0 %v16537_v46  ;;  %8156 = vmatpush.bf16.msrb.mxu1 %v16545_v16  ;;  %v7862_v46 = vsel %vm4661_vm8, %v7809_v36, %v7818_v44  ;;  %v16531_v16 = vld [vmem:[%s22164_s3 + $0x808] sm:$0xff]  ;;  %v16592_v36 = vld [vmem:[%s22164_s3 + $0x9f0] sm:$0xff] }
 0x422   : > { %8169 = vmatpush.bf16.msrb.mxu2 %v16553_v35  ;;  %8182 = vmatpush.bf16.msra.mxu3 %v16561_v41  ;;  %v7865_v35 = vsel %vm4661_vm8, %v7812_v10, %v7821_v60  ;;  %v16547_v41 = vld [vmem:[%s22164_s3 + $0x888] sm:$0xff]  ;;  %v7866_v28 = vsel %vm4666_vm9, %v7862_v46, %v7827_v7  ;;  %v16576_v60 = vld [vmem:[%s22164_s3 + $0x970] sm:$0xff]  ;;  %v16566_v46 = vld [vmem:[%s22164_s3 + $0x920] sm:$0xff] }
 0x423   : > { %7777 = vmatmul.bf16.vlgmr.msra.gmra.mxu2 %v7484_v30  ;;  %7790 = vmatmul.bf16.vlgmr.msrb.gmra.mxu3 %v7485_v38  ;;  %v7839_v30 = vperm.slane %v20877_v43, 3  ;;  %v7854_v38 = vperm.slane %v7807_v48, 0  ;;  %v16567_v7 = vld [vmem:[%s22164_s3 + $0x928] sm:$0xff] }
 0x424   : > { %v16591_v10 = vld [vmem:[%s22164_s3 + $0x9e8] sm:$0xff] }
 0x425   : > { %8144 = vmatpush.bf16.msrb.mxu0 %v16536_v61  ;;  %8157 = vmatpush.bf16.msrb.mxu1 %v16544_v24  ;;  %v6154_v47 = vpop.f32.mrf.mxu0  ;;  %v6167_v55 = vpop.f32.mrf.mxu1  ;;  %v7846_v61 = vperm.slane %v7805_v5, 1  ;;  %v7838_v24 = vperm.slane %v20877_v43, 2  ;;  %v16568_v43 = vld [vmem:[%s22164_s3 + $0x930] sm:$0xff] }
 0x426   : > { %8170 = vmatpush.bf16.msrb.mxu2 %v16552_v8  ;;  %8183 = vmatpush.bf16.msra.mxu3 %v16560_v54  ;;  %v6178_v45 = vpop.f32.mrf.mxu2  ;;  %v6191_v3 = vpop.f32.mrf.mxu3  ;;  %v7855_v8 = vperm.slane %v7807_v48, 1  ;;  %v7847_v54 = vperm.slane %v7805_v5, 2 }
 0x427   : > { %v6179_v32 = vadd.f32 %v6178_v45, %v6166_v9  ;;  %v7857_v9 = vperm.slane %v7807_v48, 3  ;;  %v16590_v48 = vld [vmem:[%s22164_s3 + $0x9e0] sm:$0xff] }
 0x429   : > { %8145 = vmatpush.bf16.msrb.mxu0 %v16535_v58  ;;  %8158 = vmatpush.bf16.msrb.mxu1 %v16543_v37  ;;  %v6192_v23 = vadd.f32 %v6191_v3, %v6179_v32  ;;  %v7848_v58 = vperm.slane %v7805_v5, 3  ;;  %v16530_v37 = vld [vmem:[%s22164_s3 + $0x800] sm:$0xff] }
 0x42a   : > { %8171 = vmatpush.bf16.msrb.mxu2 %v16551_v13  ;;  %8184 = vmatpush.bf16.msra.mxu3 %v16559_v31  ;;  %v16538_v13 = vld [vmem:[%s22164_s3 + $0x840] sm:$0xff]  ;;  %v7870_v31 = vsel %vm694_vm0, %v7866_v28, %v7836_v56 }
 0x42b   : > { %v20887_v6 = vadd.f32 %v6192_v23, %v20756_v2  ;;  %v7863_v2 = vsel %vm4661_vm8, %v7810_v33, %v7819_v20  ;;  %v16575_v33 = vld [vmem:[%s22164_s3 + $0x968] sm:$0xff] }
 0x42c   : > { %v7867_v19 = vsel %vm4666_vm9, %v7863_v2, %v7828_v40  ;;  %v16565_v40 = vld [vmem:[%s22164_s3 + $0x918] sm:$0xff] }
 0x42d   : > { %8146 = vmatpush.bf16.msrb.mxu0 %v16534_v17  ;;  %8159 = vmatpush.bf16.msrb.mxu1 %v16542_v27  ;;  %v16546_v17 = vld [vmem:[%s22164_s3 + $0x880] sm:$0xff]  ;;  %v16573_v2 = vld [vmem:[%s22164_s3 + $0x958] sm:$0xff] }
 0x42e   : > { %8172 = vmatpush.bf16.msrb.mxu2 %v16550_v25  ;;  %8185 = vmatpush.bf16.msra.mxu3 %v16558_v22  ;;  %v6180_v0 = vpop.f32.mrf.mxu2  ;;  %v6193_v53 = vpop.f32.mrf.mxu3  ;;  %v16554_v27 = vld [vmem:[%s22164_s3 + $0x8c0] sm:$0xff]  ;;  %v7871_v25 = vsel %vm694_vm0, %v7867_v19, %v7837_v63  ;;  %v7868_v22 = vsel %vm4666_vm9, %v7864_v34, %v7829_v42 }
 0x42f   : > { %v7872_v45 = vsel %vm694_vm0, %v7868_v22, %v7838_v24  ;;  %v8199_v34 = vld [vmem:[#allocation2 + $0x61] ss:$8 sm:$0xf] }
 0x430   : > { %v7876_v55 = vsel %vm4675_vm10, %v7872_v45, %v7847_v54  ;;  %v8197_v63 = vld [vmem:[#allocation2 + $0x21] ss:$8 sm:$0xf]  ;;  %v8218_v53 = vperm.slane %v8199_v34, 0 }
 0x431   : > { %8147 = vmatpush.bf16.msrb.mxu0 %v16533_v29  ;;  %8160 = vmatpush.bf16.msrb.mxu1 %v16541_v52  ;;  %v7869_v29 = vsel %vm4666_vm9, %v7865_v35, %v7830_v62  ;;  %v16569_v52 = vld [vmem:[%s22164_s3 + $0x938] sm:$0xff]  ;;  %v7880_v20 = vsel %vm1696_vm7, %v7876_v55, %v7856_v15  ;;  %v16564_v24 = vld [vmem:[%s22164_s3 + $0x910] sm:$0xff]  ;;  %v8211_v19 = vperm.slane %v8197_v63, 2  ;;  %v8212_v15 = vperm.slane %v8197_v63, 3  ;;  %v16571_v22 = vld [vmem:[%s22164_s3 + $0x948] sm:$0xff] }
 0x432   : > { %8173 = vmatpush.bf16.msrb.mxu2 %v16549_v50  ;;  %8186 = vmatpush.bf16.msra.mxu3 %v16557_v12  ;;  %v7874_v50 = vsel %vm4675_vm10, %v7870_v31, %v7845_v4  ;;  %v7875_v12 = vsel %vm4675_vm10, %v7871_v25, %v7846_v61  ;;  %v7873_v3 = vsel %vm694_vm0, %v7869_v29, %v7839_v30  ;;  %v16581_v35 = vld [vmem:[%s22164_s3 + $0x998] sm:$0xff]  ;;  %v8219_v4 = vperm.slane %v8199_v34, 1  ;;  %v16572_v30 = vld [vmem:[%s22164_s3 + $0x950] sm:$0xff]  ;;  %v16563_v25 = vld [vmem:[%s22164_s3 + $0x908] sm:$0xff] }
 0x433   : > { %v7878_v32 = vsel %vm1696_vm7, %v7874_v50, %v7854_v38  ;;  %v7879_v47 = vsel %vm1696_vm7, %v7875_v12, %v7855_v8  ;;  %v7877_v44 = vsel %vm4675_vm10, %v7873_v3, %v7848_v58  ;;  %v7884_v23 = vpack.c.bf16 %v7880_v20, %v7880_v20  ;;  %v21008_v42 = vld [vmem:[#allocation2 + $0xa1] ss:$8 sm:$0xf] }
 0x434   : > { %v7881_v39 = vsel %vm1696_vm7, %v7877_v44, %v7857_v9  ;;  %v8220_v61 = vperm.slane %v8199_v34, 2  ;;  %v21016_v38 = vld [vmem:[#allocation2 + $0xe1] ss:$8 sm:$0xf]  ;;  %v8221_v8 = vperm.slane %v8199_v34, 3  ;;  %v8210_v31 = vperm.slane %v8197_v63, 1 }
 0x435   : > { %8148 = vmatpush.bf16.msrb.mxu0 %v16532_v49  ;;  %8161 = vmatpush.bf16.msrb.mxu1 %v16540_v14  ;;  %v7882_v49 = vpack.c.bf16 %v7878_v32, %v7878_v32  ;;  %v7883_v14 = vpack.c.bf16 %v7879_v47, %v7879_v47  ;;  %v16580_v54 = vld [vmem:[%s22164_s3 + $0x990] sm:$0xff]  ;;  %v16579_v45 = vld [vmem:[%s22164_s3 + $0x988] sm:$0xff]  ;;  %v8229_v32 = vperm.slane %v21008_v42, 2  ;;  %v8230_v47 = vperm.slane %v21008_v42, 3  ;;  %v16609_v34 = vld [vmem:[%s22164_s3 + $0xa78] sm:$0xff] }
 0x436   : > { %8174 = vmatpush.bf16.msrb.mxu2 %v16548_v1  ;;  %8187 = vmatpush.bf16.msra.mxu3 %v16556_v21  ;;  %v7885_v1 = vpack.c.bf16 %v7881_v39, %v7881_v39  ;;  %v16584_v21 = vld [vmem:[%s22164_s3 + $0x9b0] sm:$0xff]  ;;  %v8264_v50 = vsel %vm4661_vm8, %v8211_v19, %v8220_v61  ;;  %v8265_v12 = vsel %vm4661_vm8, %v8212_v15, %v8221_v8  ;;  %v16587_v3 = vld [vmem:[%s22164_s3 + $0x9c8] sm:$0xff] }
 0x437   : > { %v16588_v58 = vld [vmem:[%s22164_s3 + $0x9d0] sm:$0xff] }
 0x438   : > { %v8205_v9 = vld [vmem:[#allocation2 + $0x121] ss:$8 sm:$0xf] }
 0x439   : > { %8149 = vmatpush.bf16.msrb.mxu0 %v16531_v16  ;;  %8162 = vmatpush.bf16.msrb.mxu1 %v16539_v59  ;;  %v16574_v16 = vld [vmem:[%s22164_s3 + $0x960] sm:$0xff]  ;;  %v8245_v20 = vperm.slane %v8205_v9, 0  ;;  %v8246_v39 = vperm.slane %v8205_v9, 1  ;;  %v16616_v19 = vld [vmem:[%s22164_s3 + $0xab0] sm:$0xff] }
 0x43a   : > { %8175 = vmatpush.bf16.msrb.mxu2 %v16547_v41  ;;  %8188 = vmatpush.bf16.msra.mxu3 %v16555_v18  ;;  %v16582_v59 = vld [vmem:[%s22164_s3 + $0x9a0] sm:$0xff]  ;;  %v16589_v41 = vld [vmem:[%s22164_s3 + $0x9d8] sm:$0xff]  ;;  %v16624_v15 = vld [vmem:[%s22164_s3 + $0xaf0] sm:$0xff] }
 0x43b   : > { %v8207_v29 = vld [vmem:[#allocation2 + $0x161] ss:$8 sm:$0xf] }
 0x43d   : > { %8150 = vmatpush.bf16.msrb.mxu0 %v16530_v37  ;;  %8163 = vmatpush.bf16.msrb.mxu1 %v16538_v13  ;;  %v20976_v5 = vpop.f32.mrf.mxu0  ;;  %v20978_v56 = vpop.f32.mrf.mxu1  ;;  %v8209_v37 = vperm.slane %v8197_v63, 0  ;;  %v8227_v13 = vperm.slane %v21008_v42, 0 }
 0x43e   : > { %8176 = vmatpush.bf16.msrb.mxu2 %v16546_v17  ;;  %8189 = vmatpush.bf16.msra.mxu3 %v16554_v27  ;;  %v8236_v17 = vperm.slane %v21016_v38, 0 }
 0x43f   : > { %v8262_v27 = vsel %vm4661_vm8, %v8209_v37, %v8218_v53  ;;  %v16608_v37 = vld [vmem:[%s22164_s3 + $0xa70] sm:$0xff] }
 0x440   : > { %8151 = vmatmul.bf16.vlgmr.msrb.gmra.mxu0 %v7882_v49  ;;  %8164 = vmatmul.bf16.vlgmr.msrb.gmra.mxu1 %v7883_v14  ;;  %v8238_v49 = vperm.slane %v21016_v38, 2  ;;  %v8239_v14 = vperm.slane %v21016_v38, 3 }
 0x441   : > { %8543 = vmatpush.bf16.msra.mxu0 %v16569_v52  ;;  %8556 = vmatpush.bf16.msra.mxu1 %v16577_v57  ;;  %v8228_v52 = vperm.slane %v21008_v42, 1  ;;  %v8263_v57 = vsel %vm4661_vm8, %v8210_v31, %v8219_v4 }
 0x442   : > { %8569 = vmatpush.bf16.msra.mxu2 %v16585_v11  ;;  %8582 = vmatpush.bf16.msrb.mxu3 %v16593_v26  ;;  %v8266_v11 = vsel %vm4666_vm9, %v8262_v27, %v8227_v13  ;;  %v8237_v26 = vperm.slane %v21016_v38, 1  ;;  %v16615_v27 = vld [vmem:[%s22164_s3 + $0xaa8] sm:$0xff] }
 0x443   : > { %8177 = vmatmul.bf16.vlgmr.msrb.gmra.mxu2 %v7884_v23  ;;  %8190 = vmatmul.bf16.vlgmr.msra.gmra.mxu3 %v7885_v1  ;;  %v8247_v23 = vperm.slane %v8205_v9, 2  ;;  %v8248_v1 = vperm.slane %v8205_v9, 3  ;;  %v16599_v9 = vld [vmem:[%s22164_s3 + $0xa28] sm:$0xff] }
 0x445   : > { %8544 = vmatpush.bf16.msra.mxu0 %v16568_v43  ;;  %8557 = vmatpush.bf16.msra.mxu1 %v16576_v60  ;;  %v6554_v62 = vpop.f32.mrf.mxu0  ;;  %v6567_v0 = vpop.f32.mrf.mxu1  ;;  %v8254_v43 = vperm.slane %v8207_v29, 0  ;;  %v8255_v60 = vperm.slane %v8207_v29, 1 }
 0x446   : > { %8570 = vmatpush.bf16.msra.mxu2 %v16584_v21  ;;  %8583 = vmatpush.bf16.msrb.mxu3 %v16592_v36  ;;  %v21004_v18 = vpop.f32.mrf.mxu2  ;;  %v21006_v28 = vpop.f32.mrf.mxu3  ;;  %v16562_v21 = vld [vmem:[%s22164_s3 + $0x900] sm:$0xff]  ;;  %v16617_v62 = vld [vmem:[%s22164_s3 + $0xab8] sm:$0xff] }
 0x447   : > { %v16570_v36 = vld [vmem:[%s22164_s3 + $0x940] sm:$0xff]  ;;  %v16625_v0 = vld [vmem:[%s22164_s3 + $0xaf8] sm:$0xff] }
 0x449   : > { %8545 = vmatpush.bf16.msra.mxu0 %v16567_v7  ;;  %8558 = vmatpush.bf16.msra.mxu1 %v16575_v33  ;;  %v8270_v7 = vsel %vm694_vm0, %v8266_v11, %v8236_v17  ;;  %v8267_v33 = vsel %vm4666_vm9, %v8263_v57, %v8228_v52  ;;  %v16607_v17 = vld [vmem:[%s22164_s3 + $0xa68] sm:$0xff]  ;;  %v16598_v52 = vld [vmem:[%s22164_s3 + $0xa20] sm:$0xff] }
 0x44a   : > { %8571 = vmatpush.bf16.msra.mxu2 %v16583_v51  ;;  %8584 = vmatpush.bf16.msrb.mxu3 %v16591_v10  ;;  %v8256_v51 = vperm.slane %v8207_v29, 2  ;;  %v8257_v10 = vperm.slane %v8207_v29, 3  ;;  %v16606_v57 = vld [vmem:[%s22164_s3 + $0xa60] sm:$0xff] }
 0x44b   : > { %v8599_v11 = vld [vmem:[#allocation2 + $0x62] ss:$8 sm:$0xf] }
 0x44d   : > { %8546 = vmatpush.bf16.msra.mxu0 %v16566_v46  ;;  %8559 = vmatpush.bf16.msra.mxu1 %v16574_v16  ;;  %v16578_v46 = vld [vmem:[%s22164_s3 + $0x980] sm:$0xff] }
 0x44e   : > { %8572 = vmatpush.bf16.msra.mxu2 %v16582_v59  ;;  %8585 = vmatpush.bf16.msrb.mxu3 %v16590_v48  ;;  %v6580_v55 = vpop.f32.mrf.mxu2  ;;  %v6593_v44 = vpop.f32.mrf.mxu3  ;;  %v16586_v16 = vld [vmem:[%s22164_s3 + $0x9c0] sm:$0xff]  ;;  %v8271_v59 = vsel %vm694_vm0, %v8267_v33, %v8237_v26  ;;  %v8268_v48 = vsel %vm4666_vm9, %v8264_v50, %v8229_v32  ;;  %v16613_v26 = vld [vmem:[%s22164_s3 + $0xa98] sm:$0xff]  ;;  %v16620_v33 = vld [vmem:[%s22164_s3 + $0xad0] sm:$0xff] }
 0x44f   : > { %v8272_v63 = vsel %vm694_vm0, %v8268_v48, %v8238_v49  ;;  %v16614_v50 = vld [vmem:[%s22164_s3 + $0xaa0] sm:$0xff]  ;;  %v16621_v32 = vld [vmem:[%s22164_s3 + $0xad8] sm:$0xff] }
 0x450   : > { %v8276_v61 = vsel %vm4675_vm10, %v8272_v63, %v8247_v23  ;;  %v8597_v44 = vld [vmem:[#allocation2 + $0x22] ss:$8 sm:$0xf] }
 0x451   : > { %8547 = vmatpush.bf16.msra.mxu0 %v16565_v40  ;;  %8560 = vmatpush.bf16.msra.mxu1 %v16573_v2  ;;  %v8269_v40 = vsel %vm4666_vm9, %v8265_v12, %v8230_v47  ;;  %v16601_v2 = vld [vmem:[%s22164_s3 + $0xa38] sm:$0xff]  ;;  %v16622_v12 = vld [vmem:[%s22164_s3 + $0xae0] sm:$0xff]  ;;  %v16596_v23 = vld [vmem:[%s22164_s3 + $0xa10] sm:$0xff] }
 0x452   : > { %8573 = vmatpush.bf16.msra.mxu2 %v16581_v35  ;;  %8586 = vmatpush.bf16.msrb.mxu3 %v16589_v41  ;;  %v8274_v35 = vsel %vm4675_vm10, %v8270_v7, %v8245_v20  ;;  %v8275_v41 = vsel %vm4675_vm10, %v8271_v59, %v8246_v39  ;;  %v8273_v42 = vsel %vm694_vm0, %v8269_v40, %v8239_v14  ;;  %v21144_v20 = vld [vmem:[#allocation2 + $0xa2] ss:$8 sm:$0xf]  ;;  %v8618_v14 = vperm.slane %v8599_v11, 0 }
 0x453   : > { %v8278_v53 = vsel %vm1696_vm7, %v8274_v35, %v8254_v43  ;;  %v8279_v4 = vsel %vm1696_vm7, %v8275_v41, %v8255_v60  ;;  %v8619_v43 = vperm.slane %v8599_v11, 1  ;;  %v8620_v60 = vperm.slane %v8599_v11, 2  ;;  %v16612_v7 = vld [vmem:[%s22164_s3 + $0xa90] sm:$0xff]  ;;  %v16603_v35 = vld [vmem:[%s22164_s3 + $0xa48] sm:$0xff] }
 0x454   : > { %v8282_v8 = vpack.c.bf16 %v8278_v53, %v8278_v53  ;;  %v8612_v59 = vperm.slane %v8597_v44, 3  ;;  %v8605_v48 = vld [vmem:[#allocation2 + $0x122] ss:$8 sm:$0xf]  ;;  %v8628_v63 = vperm.slane %v21144_v20, 1 }
 0x455   : > { %8548 = vmatpush.bf16.msra.mxu0 %v16564_v24  ;;  %8561 = vmatpush.bf16.msra.mxu1 %v16572_v30  ;;  %v8277_v24 = vsel %vm4675_vm10, %v8273_v42, %v8248_v1  ;;  %v8280_v30 = vsel %vm1696_vm7, %v8276_v61, %v8256_v51  ;;  %v16604_v1 = vld [vmem:[%s22164_s3 + $0xa50] sm:$0xff]  ;;  %v8609_v51 = vperm.slane %v8597_v44, 0  ;;  %v16611_v53 = vld [vmem:[%s22164_s3 + $0xa88] sm:$0xff] }
 0x456   : > { %8574 = vmatpush.bf16.msra.mxu2 %v16580_v54  ;;  %8587 = vmatpush.bf16.msrb.mxu3 %v16588_v58  ;;  %v8281_v38 = vsel %vm1696_vm7, %v8277_v24, %v8257_v10  ;;  %v8283_v54 = vpack.c.bf16 %v8279_v4, %v8279_v4  ;;  %v16600_v58 = vld [vmem:[%s22164_s3 + $0xa30] sm:$0xff]  ;;  %v8284_v13 = vpack.c.bf16 %v8280_v30, %v8280_v30  ;;  %v8627_v10 = vperm.slane %v21144_v20, 0  ;;  %v16619_v4 = vld [vmem:[%s22164_s3 + $0xac8] sm:$0xff] }
 0x457   : > { %v8285_v31 = vpack.c.bf16 %v8281_v38, %v8281_v38  ;;  %v8607_v41 = vld [vmem:[#allocation2 + $0x162] ss:$8 sm:$0xf]  ;;  %v8629_v30 = vperm.slane %v21144_v20, 2  ;;  %v8630_v38 = vperm.slane %v21144_v20, 3 }
 0x458   : > { %v16641_v20 = vld [vmem:[%s22164_s3 + $0xb78] sm:$0xff] }
 0x459   : > { %8549 = vmatpush.bf16.msra.mxu0 %v16563_v25  ;;  %8562 = vmatpush.bf16.msra.mxu1 %v16571_v22  ;;  %v16623_v25 = vld [vmem:[%s22164_s3 + $0xae8] sm:$0xff] }
 0x45a   : > { %8575 = vmatpush.bf16.msra.mxu2 %v16579_v45  ;;  %8588 = vmatpush.bf16.msrb.mxu3 %v16587_v3  ;;  %v16597_v45 = vld [vmem:[%s22164_s3 + $0xa18] sm:$0xff] }
 0x45b   : > { %v16605_v3 = vld [vmem:[%s22164_s3 + $0xa58] sm:$0xff] }
 0x45d   : > { %8550 = vmatpush.bf16.msra.mxu0 %v16562_v21  ;;  %8563 = vmatpush.bf16.msra.mxu1 %v16570_v36  ;;  %v21112_v22 = vpop.f32.mrf.mxu0  ;;  %v21114_v29 = vpop.f32.mrf.mxu1  ;;  %v21152_v21 = vld [vmem:[#allocation2 + $0xe2] ss:$8 sm:$0xf]  ;;  %v8621_v36 = vperm.slane %v8599_v11, 3 }
 0x45e   : > { %8576 = vmatpush.bf16.msra.mxu2 %v16578_v46  ;;  %8589 = vmatpush.bf16.msrb.mxu3 %v16586_v16  ;;  %v8610_v46 = vperm.slane %v8597_v44, 1  ;;  %v8611_v16 = vperm.slane %v8597_v44, 2  ;;  %v8636_v40 = vperm.slane %v21152_v21, 0  ;;  %v8637_v24 = vperm.slane %v21152_v21, 1  ;;  %v16633_v44 = vld [vmem:[%s22164_s3 + $0xb38] sm:$0xff] }
 0x460   : > { %8551 = vmatmul.bf16.vlgmr.msra.gmra.mxu0 %v8282_v8  ;;  %8564 = vmatmul.bf16.vlgmr.msra.gmra.mxu1 %v8283_v54  ;;  %v8663_v42 = vsel %vm4661_vm8, %v8610_v46, %v8619_v43 }
 0x461   : > { %8943 = vmatpush.bf16.msrb.mxu0 %v16601_v2  ;;  %8956 = vmatpush.bf16.msrb.mxu1 %v16609_v34  ;;  %v8662_v2 = vsel %vm4661_vm8, %v8609_v51, %v8618_v14  ;;  %v16595_v34 = vld [vmem:[%s22164_s3 + $0xa08] sm:$0xff] }
 0x462   : > { %8969 = vmatpush.bf16.msrb.mxu2 %v16617_v62  ;;  %8982 = vmatpush.bf16.msra.mxu3 %v16625_v0  ;;  %v8664_v62 = vsel %vm4661_vm8, %v8611_v16, %v8620_v60  ;;  %v8665_v0 = vsel %vm4661_vm8, %v8612_v59, %v8621_v36  ;;  %v8666_v61 = vsel %vm4666_vm9, %v8662_v2, %v8627_v10  ;;  %v16649_v60 = vld [vmem:[%s22164_s3 + $0xbb8] sm:$0xff]  ;;  %v16632_v16 = vld [vmem:[%s22164_s3 + $0xb30] sm:$0xff] }
 0x463   : > { %8577 = vmatmul.bf16.vlgmr.msra.gmra.mxu2 %v8284_v13  ;;  %8590 = vmatmul.bf16.vlgmr.msrb.gmra.mxu3 %v8285_v31  ;;  %v8638_v13 = vperm.slane %v21152_v21, 2  ;;  %v8639_v31 = vperm.slane %v21152_v21, 3  ;;  %v16640_v59 = vld [vmem:[%s22164_s3 + $0xb70] sm:$0xff] }
 0x464   : > { %v16648_v2 = vld [vmem:[%s22164_s3 + $0xbb0] sm:$0xff] }
 0x465   : > { %8944 = vmatpush.bf16.msrb.mxu0 %v16600_v58  ;;  %8957 = vmatpush.bf16.msrb.mxu1 %v16608_v37  ;;  %v6954_v39 = vpop.f32.mrf.mxu0  ;;  %v6967_v49 = vpop.f32.mrf.mxu1  ;;  %v8645_v58 = vperm.slane %v8605_v48, 0  ;;  %v8646_v37 = vperm.slane %v8605_v48, 1 }
 0x466   : > { %8970 = vmatpush.bf16.msrb.mxu2 %v16616_v19  ;;  %8983 = vmatpush.bf16.msra.mxu3 %v16624_v15  ;;  %v21140_v47 = vpop.f32.mrf.mxu2  ;;  %v21142_v55 = vpop.f32.mrf.mxu3  ;;  %v8654_v19 = vperm.slane %v8607_v41, 0  ;;  %v8655_v15 = vperm.slane %v8607_v41, 1 }
 0x469   : > { %8945 = vmatpush.bf16.msrb.mxu0 %v16599_v9  ;;  %8958 = vmatpush.bf16.msrb.mxu1 %v16607_v17  ;;  %v8647_v9 = vperm.slane %v8605_v48, 2  ;;  %v8648_v17 = vperm.slane %v8605_v48, 3 }
 0x46a   : > { %8971 = vmatpush.bf16.msrb.mxu2 %v16615_v27  ;;  %8984 = vmatpush.bf16.msra.mxu3 %v16623_v25  ;;  %v16594_v27 = vld [vmem:[%s22164_s3 + $0xa00] sm:$0xff] }
 0x46b   : > { %v16602_v25 = vld [vmem:[%s22164_s3 + $0xa40] sm:$0xff] }
 0x46d   : > { %8946 = vmatpush.bf16.msrb.mxu0 %v16598_v52  ;;  %8959 = vmatpush.bf16.msrb.mxu1 %v16606_v57  ;;  %v8670_v52 = vsel %vm694_vm0, %v8666_v61, %v8636_v40  ;;  %v8667_v57 = vsel %vm4666_vm9, %v8663_v42, %v8628_v63  ;;  %v16647_v63 = vld [vmem:[%s22164_s3 + $0xba8] sm:$0xff]  ;;  %v16646_v61 = vld [vmem:[%s22164_s3 + $0xba0] sm:$0xff] }
 0x46e   : > { %8972 = vmatpush.bf16.msrb.mxu2 %v16614_v50  ;;  %8985 = vmatpush.bf16.msra.mxu3 %v16622_v12  ;;  %v6980_v8 = vpop.f32.mrf.mxu2  ;;  %v6993_v54 = vpop.f32.mrf.mxu3  ;;  %v8656_v50 = vperm.slane %v8607_v41, 2  ;;  %v8657_v12 = vperm.slane %v8607_v41, 3  ;;  %v8671_v11 = vsel %vm694_vm0, %v8667_v57, %v8637_v24  ;;  %v8674_v39 = vsel %vm4675_vm10, %v8670_v52, %v8645_v58  ;;  %v16639_v41 = vld [vmem:[%s22164_s3 + $0xb68] sm:$0xff]  ;;  %v16654_v24 = vld [vmem:[%s22164_s3 + $0xbe0] sm:$0xff]  ;;  %v16653_v58 = vld [vmem:[%s22164_s3 + $0xbd8] sm:$0xff] }
 0x46f   : > { %v8675_v49 = vsel %vm4675_vm10, %v8671_v11, %v8646_v37  ;;  %v16655_v42 = vld [vmem:[%s22164_s3 + $0xbe8] sm:$0xff]  ;;  %v16645_v54 = vld [vmem:[%s22164_s3 + $0xb98] sm:$0xff]  ;;  %v16628_v52 = vld [vmem:[%s22164_s3 + $0xb10] sm:$0xff] }
 0x470   : > { %v8679_v21 = vsel %vm1696_vm7, %v8675_v49, %v8655_v15  ;;  %v8999_v8 = vld [vmem:[#allocation2 + $0x63] ss:$8 sm:$0xf] }
 0x471   : > { %8947 = vmatpush.bf16.msrb.mxu0 %v16597_v45  ;;  %8960 = vmatpush.bf16.msrb.mxu1 %v16605_v3  ;;  %v16610_v45 = vld [vmem:[%s22164_s3 + $0xa80] sm:$0xff]  ;;  %v8683_v46 = vpack.c.bf16 %v8679_v21, %v8679_v21  ;;  %v16636_v57 = vld [vmem:[%s22164_s3 + $0xb50] sm:$0xff] }
 0x472   : > { %8973 = vmatpush.bf16.msrb.mxu2 %v16613_v26  ;;  %8986 = vmatpush.bf16.msra.mxu3 %v16621_v32  ;;  %v16618_v3 = vld [vmem:[%s22164_s3 + $0xac0] sm:$0xff]  ;;  %v8668_v26 = vsel %vm4666_vm9, %v8664_v62, %v8629_v30  ;;  %v8669_v32 = vsel %vm4666_vm9, %v8665_v0, %v8630_v38  ;;  %v16629_v30 = vld [vmem:[%s22164_s3 + $0xb18] sm:$0xff] }
 0x473   : > { %v8672_v14 = vsel %vm694_vm0, %v8668_v26, %v8638_v13  ;;  %v8673_v43 = vsel %vm694_vm0, %v8669_v32, %v8639_v31  ;;  %v16637_v38 = vld [vmem:[%s22164_s3 + $0xb58] sm:$0xff] }
 0x474   : > { %v8676_v36 = vsel %vm4675_vm10, %v8672_v14, %v8647_v9  ;;  %v8997_v31 = vld [vmem:[#allocation2 + $0x23] ss:$8 sm:$0xf] }
 0x475   : > { %8948 = vmatpush.bf16.msrb.mxu0 %v16596_v23  ;;  %8961 = vmatpush.bf16.msrb.mxu1 %v16604_v1  ;;  %v16657_v23 = vld [vmem:[%s22164_s3 + $0xbf8] sm:$0xff]  ;;  %v8678_v1 = vsel %vm1696_vm7, %v8674_v39, %v8654_v19  ;;  %v9009_v11 = vperm.slane %v8997_v31, 0  ;;  %v9010_v32 = vperm.slane %v8997_v31, 1 }
 0x476   : > { %8974 = vmatpush.bf16.msrb.mxu2 %v16612_v7  ;;  %8987 = vmatpush.bf16.msra.mxu3 %v16620_v33  ;;  %v8677_v7 = vsel %vm4675_vm10, %v8673_v43, %v8648_v17  ;;  %v8680_v33 = vsel %vm1696_vm7, %v8676_v36, %v8656_v50  ;;  %v8682_v10 = vpack.c.bf16 %v8678_v1, %v8678_v1  ;;  %v21280_v19 = vld [vmem:[#allocation2 + $0xa3] ss:$8 sm:$0xf]  ;;  %v9018_v17 = vperm.slane %v8999_v8, 0 }
 0x477   : > { %v8681_v51 = vsel %vm1696_vm7, %v8677_v7, %v8657_v12  ;;  %v8684_v48 = vpack.c.bf16 %v8680_v33, %v8680_v33  ;;  %v21288_v50 = vld [vmem:[#allocation2 + $0xe3] ss:$8 sm:$0xf]  ;;  %v9021_v12 = vperm.slane %v8999_v8, 3  ;;  %v9027_v26 = vperm.slane %v21280_v19, 0 }
 0x478   : > { %v8685_v40 = vpack.c.bf16 %v8681_v51, %v8681_v51  ;;  %v9005_v39 = vld [vmem:[#allocation2 + $0x123] ss:$8 sm:$0xf]  ;;  %v9036_v49 = vperm.slane %v21288_v50, 0  ;;  %v9062_v14 = vsel %vm4661_vm8, %v9009_v11, %v9018_v17  ;;  %v9028_v1 = vperm.slane %v21280_v19, 1 }
 0x479   : > { %8949 = vmatpush.bf16.msrb.mxu0 %v16595_v34  ;;  %8962 = vmatpush.bf16.msrb.mxu1 %v16603_v35  ;;  %v16656_v34 = vld [vmem:[%s22164_s3 + $0xbf0] sm:$0xff]  ;;  %v16631_v35 = vld [vmem:[%s22164_s3 + $0xb28] sm:$0xff]  ;;  %v16665_v17 = vld [vmem:[%s22164_s3 + $0xc38] sm:$0xff] }
 0x47a   : > { %8975 = vmatpush.bf16.msrb.mxu2 %v16611_v53  ;;  %8988 = vmatpush.bf16.msra.mxu3 %v16619_v4  ;;  %v16630_v53 = vld [vmem:[%s22164_s3 + $0xb20] sm:$0xff]  ;;  %v16627_v43 = vld [vmem:[%s22164_s3 + $0xb08] sm:$0xff] }
 0x47b   : > { %v16638_v4 = vld [vmem:[%s22164_s3 + $0xb60] sm:$0xff]  ;;  %v16643_v33 = vld [vmem:[%s22164_s3 + $0xb88] sm:$0xff] }
 0x47c   : > { %v16651_v51 = vld [vmem:[%s22164_s3 + $0xbc8] sm:$0xff] }
 0x47d   : > { %8950 = vmatpush.bf16.msrb.mxu0 %v16594_v27  ;;  %8963 = vmatpush.bf16.msrb.mxu1 %v16602_v25  ;;  %v21248_v62 = vpop.f32.mrf.mxu0  ;;  %v21250_v0 = vpop.f32.mrf.mxu1  ;;  %v9019_v27 = vperm.slane %v8999_v8, 1  ;;  %v9020_v25 = vperm.slane %v8999_v8, 2 }
 0x47e   : > { %8976 = vmatpush.bf16.msrb.mxu2 %v16610_v45  ;;  %8989 = vmatpush.bf16.msra.mxu3 %v16618_v3  ;;  %v16644_v45 = vld [vmem:[%s22164_s3 + $0xb90] sm:$0xff] }
 0x47f   : > { %v16652_v3 = vld [vmem:[%s22164_s3 + $0xbd0] sm:$0xff]  ;;  %v9063_v21 = vsel %vm4661_vm8, %v9010_v32, %v9019_v27  ;;  %v16673_v27 = vld [vmem:[%s22164_s3 + $0xc78] sm:$0xff] }
 0x480   : > { %8951 = vmatmul.bf16.vlgmr.msrb.gmra.mxu0 %v8682_v10  ;;  %8964 = vmatmul.bf16.vlgmr.msrb.gmra.mxu1 %v8683_v46  ;;  %v9066_v10 = vsel %vm4666_vm9, %v9062_v14, %v9027_v26  ;;  %v9037_v46 = vperm.slane %v21288_v50, 1  ;;  %v16664_v14 = vld [vmem:[%s22164_s3 + $0xc30] sm:$0xff] }
 0x481   : > { %9343 = vmatpush.bf16.msra.mxu0 %v16633_v44  ;;  %9356 = vmatpush.bf16.msra.mxu1 %v16641_v20  ;;  %v9011_v44 = vperm.slane %v8997_v31, 2  ;;  %v9012_v20 = vperm.slane %v8997_v31, 3  ;;  %v16650_v31 = vld [vmem:[%s22164_s3 + $0xbc0] sm:$0xff] }
 0x482   : > { %9369 = vmatpush.bf16.msra.mxu2 %v16649_v60  ;;  %9382 = vmatpush.bf16.msrb.mxu3 %v16657_v23  ;;  %v16635_v60 = vld [vmem:[%s22164_s3 + $0xb48] sm:$0xff] }
 0x483   : > { %8977 = vmatmul.bf16.vlgmr.msrb.gmra.mxu2 %v8684_v48  ;;  %8990 = vmatmul.bf16.vlgmr.msra.gmra.mxu3 %v8685_v40  ;;  %v9007_v23 = vld [vmem:[#allocation2 + $0x163] ss:$8 sm:$0xf]  ;;  %v9064_v36 = vsel %vm4661_vm8, %v9011_v44, %v9020_v25  ;;  %v9065_v7 = vsel %vm4661_vm8, %v9012_v20, %v9021_v12 }
 0x484   : > { %v9056_v8 = vperm.slane %v9007_v23, 2  ;;  %v16681_v12 = vld [vmem:[%s22164_s3 + $0xcb8] sm:$0xff] }
 0x485   : > { %9344 = vmatpush.bf16.msra.mxu0 %v16632_v16  ;;  %9357 = vmatpush.bf16.msra.mxu1 %v16640_v59  ;;  %v7354_v15 = vpop.f32.mrf.mxu0  ;;  %v7367_v9 = vpop.f32.mrf.mxu1  ;;  %v9029_v16 = vperm.slane %v21280_v19, 2  ;;  %v9030_v59 = vperm.slane %v21280_v19, 3 }
 0x486   : > { %9370 = vmatpush.bf16.msra.mxu2 %v16648_v2  ;;  %9383 = vmatpush.bf16.msrb.mxu3 %v16656_v34  ;;  %v21276_v37 = vpop.f32.mrf.mxu2  ;;  %v21278_v13 = vpop.f32.mrf.mxu3  ;;  %v9045_v2 = vperm.slane %v9005_v39, 0  ;;  %v9046_v34 = vperm.slane %v9005_v39, 1 }
 0x487   : > { %v9068_v15 = vsel %vm4666_vm9, %v9064_v36, %v9029_v16  ;;  %v9069_v9 = vsel %vm4666_vm9, %v9065_v7, %v9030_v59  ;;  %v16663_v36 = vld [vmem:[%s22164_s3 + $0xc28] sm:$0xff]  ;;  %v16662_v16 = vld [vmem:[%s22164_s3 + $0xc20] sm:$0xff] }
 0x488   : > { %v16671_v7 = vld [vmem:[%s22164_s3 + $0xc68] sm:$0xff]  ;;  %v16670_v59 = vld [vmem:[%s22164_s3 + $0xc60] sm:$0xff] }
 0x489   : > { %9345 = vmatpush.bf16.msra.mxu0 %v16631_v35  ;;  %9358 = vmatpush.bf16.msra.mxu1 %v16639_v41  ;;  %v9038_v35 = vperm.slane %v21288_v50, 2  ;;  %v9039_v41 = vperm.slane %v21288_v50, 3 }
 0x48a   : > { %9371 = vmatpush.bf16.msra.mxu2 %v16647_v63  ;;  %9384 = vmatpush.bf16.msrb.mxu3 %v16655_v42  ;;  %v9054_v63 = vperm.slane %v9007_v23, 0  ;;  %v9055_v42 = vperm.slane %v9007_v23, 1 }
 0x48b   : > { %v9073_v50 = vsel %vm694_vm0, %v9069_v9, %v9039_v41  ;;  %v16677_v41 = vld [vmem:[%s22164_s3 + $0xc98] sm:$0xff]  ;;  %v16676_v9 = vld [vmem:[%s22164_s3 + $0xc90] sm:$0xff] }
 0x48d   : > { %9346 = vmatpush.bf16.msra.mxu0 %v16630_v53  ;;  %9359 = vmatpush.bf16.msra.mxu1 %v16638_v4  ;;  %v9047_v53 = vperm.slane %v9005_v39, 2  ;;  %v9048_v4 = vperm.slane %v9005_v39, 3 }
 0x48e   : > { %9372 = vmatpush.bf16.msra.mxu2 %v16646_v61  ;;  %9385 = vmatpush.bf16.msrb.mxu3 %v16654_v24  ;;  %v7380_v48 = vpop.f32.mrf.mxu2  ;;  %v7393_v40 = vpop.f32.mrf.mxu3  ;;  %v16626_v61 = vld [vmem:[%s22164_s3 + $0xb00] sm:$0xff] }
 0x48f   : > { %v16634_v24 = vld [vmem:[%s22164_s3 + $0xb40] sm:$0xff]  ;;  %v9077_v32 = vsel %vm4675_vm10, %v9073_v50, %v9048_v4 }
 0x490   : > { %v16678_v48 = vld [vmem:[%s22164_s3 + $0xca0] sm:$0xff] }
 0x491   : > { %9347 = vmatpush.bf16.msra.mxu0 %v16629_v30  ;;  %9360 = vmatpush.bf16.msra.mxu1 %v16637_v38  ;;  %v9070_v30 = vsel %vm694_vm0, %v9066_v10, %v9036_v49  ;;  %v9067_v38 = vsel %vm4666_vm9, %v9063_v21, %v9028_v1  ;;  %v16680_v1 = vld [vmem:[%s22164_s3 + $0xcb0] sm:$0xff]  ;;  %v16686_v40 = vld [vmem:[%s22164_s3 + $0xce0] sm:$0xff] }
 0x492   : > { %9373 = vmatpush.bf16.msra.mxu2 %v16645_v54  ;;  %9386 = vmatpush.bf16.msrb.mxu3 %v16653_v58  ;;  %v9057_v54 = vperm.slane %v9007_v23, 3  ;;  %v16642_v58 = vld [vmem:[%s22164_s3 + $0xb80] sm:$0xff]  ;;  %v9071_v19 = vsel %vm694_vm0, %v9067_v38, %v9037_v46  ;;  %v9074_v25 = vsel %vm4675_vm10, %v9070_v30, %v9045_v2  ;;  %v16688_v21 = vld [vmem:[%s22164_s3 + $0xcf0] sm:$0xff]  ;;  %v16661_v2 = vld [vmem:[%s22164_s3 + $0xc18] sm:$0xff] }
 0x493   : > { %v9397_v4 = vld [vmem:[#allocation2 + $0x24] ss:$8 sm:$0xf] }
 0x494   : > { %v9081_v20 = vsel %vm1696_vm7, %v9077_v32, %v9057_v54  ;;  %v9412_v50 = vperm.slane %v9397_v4, 3  ;;  %v9407_v32 = vld [vmem:[#allocation2 + $0x164] ss:$8 sm:$0xf] }
 0x495   : > { %9348 = vmatpush.bf16.msra.mxu0 %v16628_v52  ;;  %9361 = vmatpush.bf16.msra.mxu1 %v16636_v57  ;;  %v9075_v52 = vsel %vm4675_vm10, %v9071_v19, %v9046_v34  ;;  %v9072_v57 = vsel %vm694_vm0, %v9068_v15, %v9038_v35  ;;  %v9085_v23 = vpack.c.bf16 %v9081_v20, %v9081_v20  ;;  %v16669_v34 = vld [vmem:[%s22164_s3 + $0xc58] sm:$0xff] }
 0x496   : > { %9374 = vmatpush.bf16.msra.mxu2 %v16644_v45  ;;  %9387 = vmatpush.bf16.msrb.mxu3 %v16652_v3  ;;  %v16689_v45 = vld [vmem:[%s22164_s3 + $0xcf8] sm:$0xff]  ;;  %v9078_v3 = vsel %vm1696_vm7, %v9074_v25, %v9054_v63  ;;  %v9079_v11 = vsel %vm1696_vm7, %v9075_v52, %v9055_v42  ;;  %v9076_v26 = vsel %vm4675_vm10, %v9072_v57, %v9047_v53  ;;  %v9410_v52 = vperm.slane %v9397_v4, 1 }
 0x497   : > { %v9080_v44 = vsel %vm1696_vm7, %v9076_v26, %v9056_v8  ;;  %v9082_v39 = vpack.c.bf16 %v9078_v3, %v9078_v3  ;;  %v9083_v49 = vpack.c.bf16 %v9079_v11, %v9079_v11  ;;  %v9399_v35 = vld [vmem:[#allocation2 + $0x64] ss:$8 sm:$0xf]  ;;  %v9411_v57 = vperm.slane %v9397_v4, 2 }
 0x498   : > { %v16685_v63 = vld [vmem:[%s22164_s3 + $0xcd8] sm:$0xff]  ;;  %v9418_v38 = vperm.slane %v9399_v35, 0  ;;  %v9419_v8 = vperm.slane %v9399_v35, 1  ;;  %v9420_v54 = vperm.slane %v9399_v35, 2  ;;  %v9421_v15 = vperm.slane %v9399_v35, 3  ;;  %v16659_v11 = vld [vmem:[%s22164_s3 + $0xc08] sm:$0xff] }
 0x499   : > { %9349 = vmatpush.bf16.msra.mxu0 %v16627_v43  ;;  %9362 = vmatpush.bf16.msra.mxu1 %v16635_v60  ;;  %v16672_v43 = vld [vmem:[%s22164_s3 + $0xc70] sm:$0xff]  ;;  %v9084_v60 = vpack.c.bf16 %v9080_v44, %v9080_v44  ;;  %v16667_v26 = vld [vmem:[%s22164_s3 + $0xc48] sm:$0xff]  ;;  %v16658_v35 = vld [vmem:[%s22164_s3 + $0xc00] sm:$0xff] }
 0x49a   : > { %9375 = vmatpush.bf16.msra.mxu2 %v16643_v33  ;;  %9388 = vmatpush.bf16.msrb.mxu3 %v16651_v51  ;;  %v16679_v33 = vld [vmem:[%s22164_s3 + $0xca8] sm:$0xff]  ;;  %v9463_v20 = vsel %vm4661_vm8, %v9410_v52, %v9419_v8  ;;  %v16721_v52 = vld [vmem:[%s22164_s3 + $0xdf8] sm:$0xff] }
 0x49b   : > { %v16687_v51 = vld [vmem:[%s22164_s3 + $0xce8] sm:$0xff] }
 0x49c   : > { %v21424_v19 = vld [vmem:[#allocation2 + $0xe4] ss:$8 sm:$0xf] }
 0x49d   : > { %9350 = vmatpush.bf16.msra.mxu0 %v16626_v61  ;;  %9363 = vmatpush.bf16.msra.mxu1 %v16634_v24  ;;  %v21384_v10 = vpop.f32.mrf.mxu0  ;;  %v21386_v46 = vpop.f32.mrf.mxu1  ;;  %v21416_v61 = vld [vmem:[#allocation2 + $0xa4] ss:$8 sm:$0xf] }
 0x49e   : > { %9376 = vmatpush.bf16.msra.mxu2 %v16642_v58  ;;  %9389 = vmatpush.bf16.msrb.mxu3 %v16650_v31  ;;  %v16660_v58 = vld [vmem:[%s22164_s3 + $0xc10] sm:$0xff]  ;;  %v9427_v25 = vperm.slane %v21416_v61, 0  ;;  %v9428_v44 = vperm.slane %v21416_v61, 1 }
 0x49f   : > { %v16668_v31 = vld [vmem:[%s22164_s3 + $0xc50] sm:$0xff] }
 0x4a0   : > { %9351 = vmatmul.bf16.vlgmr.msra.gmra.mxu0 %v9082_v39  ;;  %9364 = vmatmul.bf16.vlgmr.msra.gmra.mxu1 %v9083_v49  ;;  %v9464_v39 = vsel %vm4661_vm8, %v9411_v57, %v9420_v54  ;;  %v9465_v49 = vsel %vm4661_vm8, %v9412_v50, %v9421_v15 }
 0x4a1   : > { %9743 = vmatpush.bf16.msrb.mxu0 %v16665_v17  ;;  %9756 = vmatpush.bf16.msrb.mxu1 %v16673_v27  ;;  %v16684_v17 = vld [vmem:[%s22164_s3 + $0xcd0] sm:$0xff]  ;;  %v9409_v27 = vperm.slane %v9397_v4, 0  ;;  %v9467_v4 = vsel %vm4666_vm9, %v9463_v20, %v9428_v44 }
 0x4a2   : > { %9769 = vmatpush.bf16.msrb.mxu2 %v16681_v12  ;;  %9782 = vmatpush.bf16.msra.mxu3 %v16689_v45  ;;  %v9405_v12 = vld [vmem:[#allocation2 + $0x124] ss:$8 sm:$0xf]  ;;  %v9436_v45 = vperm.slane %v21424_v19, 0 }
 0x4a3   : > { %9377 = vmatmul.bf16.vlgmr.msra.gmra.mxu2 %v9084_v60  ;;  %9390 = vmatmul.bf16.vlgmr.msrb.gmra.mxu3 %v9085_v23  ;;  %v9462_v3 = vsel %vm4661_vm8, %v9409_v27, %v9418_v38  ;;  %v9437_v23 = vperm.slane %v21424_v19, 1  ;;  %v16682_v38 = vld [vmem:[%s22164_s3 + $0xcc0] sm:$0xff]  ;;  %v16696_v44 = vld [vmem:[%s22164_s3 + $0xd30] sm:$0xff] }
 0x4a4   : > { %v9466_v60 = vsel %vm4666_vm9, %v9462_v3, %v9427_v25  ;;  %v16713_v25 = vld [vmem:[%s22164_s3 + $0xdb8] sm:$0xff]  ;;  %v16704_v20 = vld [vmem:[%s22164_s3 + $0xd70] sm:$0xff] }
 0x4a5   : > { %9744 = vmatpush.bf16.msrb.mxu0 %v16664_v14  ;;  %9757 = vmatpush.bf16.msrb.mxu1 %v16672_v43  ;;  %v7754_v24 = vpop.f32.mrf.mxu0  ;;  %v7767_v30 = vpop.f32.mrf.mxu1  ;;  %v16675_v14 = vld [vmem:[%s22164_s3 + $0xc88] sm:$0xff]  ;;  %v9471_v8 = vsel %vm694_vm0, %v9467_v4, %v9437_v23 }
 0x4a6   : > { %9770 = vmatpush.bf16.msrb.mxu2 %v16680_v1  ;;  %9783 = vmatpush.bf16.msra.mxu3 %v16688_v21  ;;  %v21412_v42 = vpop.f32.mrf.mxu2  ;;  %v21414_v53 = vpop.f32.mrf.mxu3  ;;  %v16683_v43 = vld [vmem:[%s22164_s3 + $0xcc8] sm:$0xff]  ;;  %v9429_v1 = vperm.slane %v21416_v61, 2  ;;  %v9430_v21 = vperm.slane %v21416_v61, 3  ;;  %v9456_v61 = vperm.slane %v9407_v32, 2  ;;  %v9457_v24 = vperm.slane %v9407_v32, 3  ;;  %v16674_v30 = vld [vmem:[%s22164_s3 + $0xc80] sm:$0xff] }
 0x4a7   : > { %v21561_v4 = vld [vmem:[#allocation2 + $0xa5] ss:$8 sm:$0xf] }
 0x4a8   : > { %v9468_v54 = vsel %vm4666_vm9, %v9464_v39, %v9429_v1  ;;  %v6566_v39 = vadd.f32 %v20978_v56, %v20976_v5  ;;  %v6966_v1 = vadd.f32 %v21114_v29, %v21112_v22  ;;  %v16695_v5 = vld [vmem:[%s22164_s3 + $0xd28] sm:$0xff] }
 0x4a9   : > { %9745 = vmatpush.bf16.msrb.mxu0 %v16663_v36  ;;  %9758 = vmatpush.bf16.msrb.mxu1 %v16671_v7  ;;  %v16703_v56 = vld [vmem:[%s22164_s3 + $0xd68] sm:$0xff] }
 0x4aa   : > { %9771 = vmatpush.bf16.msrb.mxu2 %v16679_v33  ;;  %9784 = vmatpush.bf16.msra.mxu3 %v16687_v51  ;;  %v9445_v33 = vperm.slane %v9405_v12, 0  ;;  %v9446_v51 = vperm.slane %v9405_v12, 1  ;;  %v6579_v23 = vadd.f32 %v21004_v18, %v6566_v39  ;;  %v7366_v18 = vadd.f32 %v21250_v0, %v21248_v62  ;;  %v16711_v22 = vld [vmem:[%s22164_s3 + $0xda8] sm:$0xff]  ;;  %v16694_v0 = vld [vmem:[%s22164_s3 + $0xd20] sm:$0xff] }
 0x4ab   : > { %v16719_v29 = vld [vmem:[%s22164_s3 + $0xde8] sm:$0xff] }
 0x4ac   : > { %v9807_v39 = vld [vmem:[#allocation2 + $0x165] ss:$8 sm:$0xf] }
 0x4ad   : > { %9746 = vmatpush.bf16.msrb.mxu0 %v16662_v16  ;;  %9759 = vmatpush.bf16.msrb.mxu1 %v16670_v59  ;;  %v9438_v16 = vperm.slane %v21424_v19, 2  ;;  %v9439_v59 = vperm.slane %v21424_v19, 3  ;;  %v16705_v19 = vld [vmem:[%s22164_s3 + $0xd78] sm:$0xff] }
 0x4ae   : > { %9772 = vmatpush.bf16.msrb.mxu2 %v16678_v48  ;;  %9785 = vmatpush.bf16.msra.mxu3 %v16686_v40  ;;  %v7780_v36 = vpop.f32.mrf.mxu2  ;;  %v7793_v7 = vpop.f32.mrf.mxu3  ;;  %v9454_v48 = vperm.slane %v9407_v32, 0  ;;  %v9455_v40 = vperm.slane %v9407_v32, 1 }
 0x4af   : > { %v6592_v36 = vadd.f32 %v21006_v28, %v6579_v23  ;;  %v7379_v7 = vadd.f32 %v21276_v37, %v7366_v18  ;;  %v16707_v23 = vld [vmem:[%s22164_s3 + $0xd88] sm:$0xff]  ;;  %v9830_v18 = vperm.slane %v21561_v4, 3 }
 0x4b1   : > { %9747 = vmatpush.bf16.msrb.mxu0 %v16661_v2  ;;  %9760 = vmatpush.bf16.msrb.mxu1 %v16669_v34  ;;  %v9447_v2 = vperm.slane %v9405_v12, 2  ;;  %v9448_v34 = vperm.slane %v9405_v12, 3 }
 0x4b2   : > { %9773 = vmatpush.bf16.msrb.mxu2 %v16677_v41  ;;  %9786 = vmatpush.bf16.msra.mxu3 %v16685_v63  ;;  %v16666_v41 = vld [vmem:[%s22164_s3 + $0xc40] sm:$0xff]  ;;  %v9470_v63 = vsel %vm694_vm0, %v9466_v60, %v9436_v45  ;;  %v16720_v60 = vld [vmem:[%s22164_s3 + $0xdf0] sm:$0xff] }
 0x4b3   : > { %v9474_v15 = vsel %vm4675_vm10, %v9470_v63, %v9445_v33 }
 0x4b4   : > { %v9478_v57 = vsel %vm1696_vm7, %v9474_v15, %v9454_v48  ;;  %v7392_v48 = vadd.f32 %v21278_v13, %v7379_v7  ;;  %v16717_v13 = vld [vmem:[%s22164_s3 + $0xdd8] sm:$0xff] }
 0x4b5   : > { %9748 = vmatpush.bf16.msrb.mxu0 %v16660_v58  ;;  %9761 = vmatpush.bf16.msrb.mxu1 %v16668_v31  ;;  %v9469_v58 = vsel %vm4666_vm9, %v9465_v49, %v9430_v21  ;;  %v16697_v31 = vld [vmem:[%s22164_s3 + $0xd38] sm:$0xff]  ;;  %v6979_v21 = vadd.f32 %v21140_v47, %v6966_v1  ;;  %v7766_v47 = vadd.f32 %v21386_v46, %v21384_v10  ;;  %v16710_v10 = vld [vmem:[%s22164_s3 + $0xda0] sm:$0xff]  ;;  %v16715_v1 = vld [vmem:[%s22164_s3 + $0xdc8] sm:$0xff] }
 0x4b6   : > { %9774 = vmatpush.bf16.msrb.mxu2 %v16676_v9  ;;  %9787 = vmatpush.bf16.msra.mxu3 %v16684_v17  ;;  %v9475_v9 = vsel %vm4675_vm10, %v9471_v8, %v9446_v51  ;;  %v9472_v17 = vsel %vm694_vm0, %v9468_v54, %v9438_v16  ;;  %v9473_v27 = vsel %vm694_vm0, %v9469_v58, %v9439_v59  ;;  %v16702_v16 = vld [vmem:[%s22164_s3 + $0xd60] sm:$0xff]  ;;  %v16692_v58 = vld [vmem:[%s22164_s3 + $0xd10] sm:$0xff] }
 0x4b7   : > { %v9479_v50 = vsel %vm1696_vm7, %v9475_v9, %v9455_v40  ;;  %v9476_v12 = vsel %vm4675_vm10, %v9472_v17, %v9447_v2  ;;  %v9477_v45 = vsel %vm4675_vm10, %v9473_v27, %v9448_v34  ;;  %v6992_v28 = vadd.f32 %v21142_v55, %v6979_v21  ;;  %v16718_v46 = vld [vmem:[%s22164_s3 + $0xde0] sm:$0xff]  ;;  %v16693_v55 = vld [vmem:[%s22164_s3 + $0xd18] sm:$0xff]  ;;  %v16708_v27 = vld [vmem:[%s22164_s3 + $0xd90] sm:$0xff] }
 0x4b8   : > { %v9480_v3 = vsel %vm1696_vm7, %v9476_v12, %v9456_v61  ;;  %v9483_v32 = vpack.c.bf16 %v9479_v50, %v9479_v50  ;;  %v7779_v37 = vadd.f32 %v21412_v42, %v7766_v47  ;;  %v6595_v59 = vadd.f32 %v6592_v36, %v20887_v6  ;;  %v9799_v40 = vld [vmem:[#allocation2 + $0x65] ss:$8 sm:$0xf] }
 0x4b9   : > { %9749 = vmatpush.bf16.msrb.mxu0 %v16659_v11  ;;  %9762 = vmatpush.bf16.msrb.mxu1 %v16667_v26  ;;  %v9481_v11 = vsel %vm1696_vm7, %v9477_v45, %v9457_v24  ;;  %v9482_v26 = vpack.c.bf16 %v9478_v57, %v9478_v57  ;;  %v9484_v49 = vpack.c.bf16 %v9480_v3, %v9480_v3  ;;  %v16701_v42 = vld [vmem:[%s22164_s3 + $0xd58] sm:$0xff]  ;;  %v9818_v61 = vperm.slane %v9799_v40, 0 }
 0x4ba   : > { %9775 = vmatpush.bf16.msrb.mxu2 %v16675_v14  ;;  %9788 = vmatpush.bf16.msra.mxu3 %v16683_v43  ;;  %v9485_v14 = vpack.c.bf16 %v9481_v11, %v9481_v11  ;;  %v16712_v43 = vld [vmem:[%s22164_s3 + $0xdb0] sm:$0xff]  ;;  %v6995_v2 = vadd.f32 %v6992_v28, %v6595_v59  ;;  %v7792_v34 = vadd.f32 %v21414_v53, %v7779_v37  ;;  %v16709_v6 = vld [vmem:[%s22164_s3 + $0xd98] sm:$0xff]  ;;  %v9819_v8 = vperm.slane %v9799_v40, 1  ;;  %v16690_v28 = vld [vmem:[%s22164_s3 + $0xd00] sm:$0xff] }
 0x4bb   : > { %v9820_v54 = vperm.slane %v9799_v40, 2  ;;  %v9821_v15 = vperm.slane %v9799_v40, 3  ;;  %v9827_v57 = vperm.slane %v21561_v4, 0  ;;  %v9805_v11 = vld [vmem:[#allocation2 + $0x125] ss:$8 sm:$0xf] }
 0x4bc   : > { %v7395_v24 = vadd.f32 %v7392_v48, %v6995_v2  ;;  %v9829_v21 = vperm.slane %v21561_v4, 2  ;;  %v9845_v36 = vperm.slane %v9805_v11, 0  ;;  %v9846_v7 = vperm.slane %v9805_v11, 1  ;;  %v16698_v37 = vld [vmem:[%s22164_s3 + $0xd40] sm:$0xff] }
 0x4bd   : > { %9750 = vmatpush.bf16.msrb.mxu0 %v16658_v35  ;;  %9763 = vmatpush.bf16.msrb.mxu1 %v16666_v41  ;;  %v8152_v33 = vpop.f32.mrf.mxu0  ;;  %v8165_v51 = vpop.f32.mrf.mxu1  ;;  %v9797_v35 = vld [vmem:[#allocation2 + $0x25] ss:$8 sm:$0xf]  ;;  %v9856_v59 = vperm.slane %v9807_v39, 2  ;;  %v9857_v48 = vperm.slane %v9807_v39, 3 }
 0x4be   : > { %9776 = vmatpush.bf16.msrb.mxu2 %v16674_v30  ;;  %9789 = vmatpush.bf16.msra.mxu3 %v16682_v38  ;;  %v8166_v62 = vadd.f32 %v8165_v51, %v8152_v33  ;;  %v7795_v9 = vadd.f32 %v7792_v34, %v7395_v24  ;;  %v9810_v50 = vperm.slane %v9797_v35, 1  ;;  %v9811_v12 = vperm.slane %v9797_v35, 2  ;;  %v16706_v40 = vld [vmem:[%s22164_s3 + $0xd80] sm:$0xff]  ;;  %v16753_v24 = vld [vmem:[%s22164_s3 + $0xef8] sm:$0xff] }
 0x4bf   : > { %v9812_v45 = vperm.slane %v9797_v35, 3  ;;  %v9854_v51 = vperm.slane %v9807_v39, 0 }
 0x4c0   : > { %9751 = vmatmul.bf16.vlgmr.msrb.gmra.mxu0 %v9482_v26  ;;  %9764 = vmatmul.bf16.vlgmr.msrb.gmra.mxu1 %v9483_v32 }
 0x4c1   : > { %10143 = vmatpush.bf16.msra.mxu0 %v16697_v31  ;;  %10156 = vmatpush.bf16.msra.mxu1 %v16705_v19  ;;  %v16700_v31 = vld [vmem:[%s22164_s3 + $0xd50] sm:$0xff] }
 0x4c2   : > { %10169 = vmatpush.bf16.msra.mxu2 %v16713_v25  ;;  %10182 = vmatpush.bf16.msrb.mxu3 %v16721_v52  ;;  %v21569_v19 = vld [vmem:[#allocation2 + $0xe5] ss:$8 sm:$0xf]  ;;  %v9809_v52 = vperm.slane %v9797_v35, 0 }
 0x4c3   : > { %9777 = vmatmul.bf16.vlgmr.msrb.gmra.mxu2 %v9484_v49  ;;  %9790 = vmatmul.bf16.vlgmr.msra.gmra.mxu3 %v9485_v14  ;;  %v16716_v25 = vld [vmem:[%s22164_s3 + $0xdd0] sm:$0xff]  ;;  %v9836_v26 = vperm.slane %v21569_v19, 0  ;;  %v9828_v49 = vperm.slane %v21561_v4, 1  ;;  %v9863_v14 = vsel %vm4661_vm8, %v9810_v50, %v9819_v8  ;;  %v9838_v47 = vperm.slane %v21569_v19, 2  ;;  %v16735_v50 = vld [vmem:[%s22164_s3 + $0xe68] sm:$0xff] }
 0x4c4   : > { %v9862_v32 = vsel %vm4661_vm8, %v9809_v52, %v9818_v61  ;;  %v9839_v33 = vperm.slane %v21569_v19, 3  ;;  %v16745_v61 = vld [vmem:[%s22164_s3 + $0xeb8] sm:$0xff]  ;;  %v16752_v52 = vld [vmem:[%s22164_s3 + $0xef0] sm:$0xff] }
 0x4c5   : > { %10144 = vmatpush.bf16.msra.mxu0 %v16696_v44  ;;  %10157 = vmatpush.bf16.msra.mxu1 %v16704_v20  ;;  %v8154_v38 = vpop.f32.mrf.mxu0  ;;  %v8167_v53 = vpop.f32.mrf.mxu1  ;;  %v16691_v44 = vld [vmem:[%s22164_s3 + $0xd08] sm:$0xff] }
 0x4c6   : > { %10170 = vmatpush.bf16.msra.mxu2 %v16712_v43  ;;  %10183 = vmatpush.bf16.msrb.mxu3 %v16720_v60  ;;  %v8178_v41 = vpop.f32.mrf.mxu2  ;;  %v8191_v63 = vpop.f32.mrf.mxu3  ;;  %v16699_v20 = vld [vmem:[%s22164_s3 + $0xd48] sm:$0xff]  ;;  %v9864_v43 = vsel %vm4661_vm8, %v9811_v12, %v9820_v54  ;;  %v9865_v60 = vsel %vm4661_vm8, %v9812_v45, %v9821_v15  ;;  %v16728_v15 = vld [vmem:[%s22164_s3 + $0xe30] sm:$0xff] }
 0x4c7   : > { %v8179_v30 = vadd.f32 %v8178_v41, %v8166_v62  ;;  %v9855_v62 = vperm.slane %v9807_v39, 1  ;;  %v9868_v2 = vsel %vm4666_vm9, %v9864_v43, %v9829_v21  ;;  %v9869_v34 = vsel %vm4666_vm9, %v9865_v60, %v9830_v18  ;;  %v16743_v12 = vld [vmem:[%s22164_s3 + $0xea8] sm:$0xff]  ;;  %v16742_v39 = vld [vmem:[%s22164_s3 + $0xea0] sm:$0xff]  ;;  %v16733_v43 = vld [vmem:[%s22164_s3 + $0xe58] sm:$0xff] }
 0x4c8   : > { %v9873_v4 = vsel %vm694_vm0, %v9869_v34, %v9839_v33  ;;  %v16751_v45 = vld [vmem:[%s22164_s3 + $0xee8] sm:$0xff] }
 0x4c9   : > { %10145 = vmatpush.bf16.msra.mxu0 %v16695_v5  ;;  %10158 = vmatpush.bf16.msra.mxu1 %v16703_v56  ;;  %v8192_v17 = vadd.f32 %v8191_v63, %v8179_v30  ;;  %v9866_v5 = vsel %vm4666_vm9, %v9862_v32, %v9827_v57  ;;  %v9837_v56 = vperm.slane %v21569_v19, 1  ;;  %v9872_v63 = vsel %vm694_vm0, %v9868_v2, %v9838_v47  ;;  %v16727_v57 = vld [vmem:[%s22164_s3 + $0xe28] sm:$0xff] }
 0x4ca   : > { %10171 = vmatpush.bf16.msra.mxu2 %v16711_v22  ;;  %10184 = vmatpush.bf16.msrb.mxu3 %v16719_v29  ;;  %v10199_v60 = vld [vmem:[#allocation2 + $0x66] ss:$8 sm:$0xf] }
 0x4cb   : > { %v21578_v3 = vadd.f32 %v8192_v17, %v7795_v9  ;;  %v16736_v9 = vld [vmem:[%s22164_s3 + $0xe70] sm:$0xff]  ;;  %v10219_v47 = vperm.slane %v10199_v60, 1  ;;  %v10220_v33 = vperm.slane %v10199_v60, 2 }
 0x4cc   : > { %v10197_v21 = vld [vmem:[#allocation2 + $0x26] ss:$8 sm:$0xf] }
 0x4cd   : > { %10146 = vmatpush.bf16.msra.mxu0 %v16694_v0  ;;  %10159 = vmatpush.bf16.msra.mxu1 %v16702_v16  ;;  %v9847_v0 = vperm.slane %v9805_v11, 2  ;;  %v9848_v16 = vperm.slane %v9805_v11, 3  ;;  %v21691_v18 = vld [vmem:[#allocation2 + $0xa6] ss:$8 sm:$0xf] }
 0x4ce   : > { %10172 = vmatpush.bf16.msra.mxu2 %v16710_v10  ;;  %10185 = vmatpush.bf16.msrb.mxu3 %v16718_v46  ;;  %v8180_v22 = vpop.f32.mrf.mxu2  ;;  %v8193_v29 = vpop.f32.mrf.mxu3  ;;  %v9870_v10 = vsel %vm694_vm0, %v9866_v5, %v9836_v26  ;;  %v9867_v46 = vsel %vm4666_vm9, %v9863_v14, %v9828_v49  ;;  %v16750_v49 = vld [vmem:[%s22164_s3 + $0xee0] sm:$0xff]  ;;  %v16725_v14 = vld [vmem:[%s22164_s3 + $0xe18] sm:$0xff] }
 0x4cf   : > { %v9874_v35 = vsel %vm4675_vm10, %v9870_v10, %v9845_v36  ;;  %v9876_v53 = vsel %vm4675_vm10, %v9872_v63, %v9847_v0  ;;  %v9877_v8 = vsel %vm4675_vm10, %v9873_v4, %v9848_v16  ;;  %v21699_v0 = vld [vmem:[#allocation2 + $0xe6] ss:$8 sm:$0xf]  ;;  %v10221_v16 = vperm.slane %v10199_v60, 3 }
 0x4d0   : > { %v9878_v30 = vsel %vm1696_vm7, %v9874_v35, %v9854_v51  ;;  %v9880_v54 = vsel %vm1696_vm7, %v9876_v53, %v9856_v59  ;;  %v16724_v51 = vld [vmem:[%s22164_s3 + $0xe10] sm:$0xff]  ;;  %v10227_v59 = vperm.slane %v21691_v18, 0  ;;  %v10236_v34 = vperm.slane %v21699_v0, 0  ;;  %v16731_v35 = vld [vmem:[%s22164_s3 + $0xe48] sm:$0xff] }
 0x4d1   : > { %10147 = vmatpush.bf16.msra.mxu0 %v16693_v55  ;;  %10160 = vmatpush.bf16.msra.mxu1 %v16701_v42  ;;  %v16714_v55 = vld [vmem:[%s22164_s3 + $0xdc0] sm:$0xff]  ;;  %v9871_v42 = vsel %vm694_vm0, %v9867_v46, %v9837_v56  ;;  %v9884_v17 = vpack.c.bf16 %v9880_v54, %v9880_v54  ;;  %v16748_v10 = vld [vmem:[%s22164_s3 + $0xed0] sm:$0xff]  ;;  %v10209_v46 = vperm.slane %v10197_v21, 0  ;;  %v10228_v63 = vperm.slane %v21691_v18, 1 }
 0x4d2   : > { %10173 = vmatpush.bf16.msra.mxu2 %v16709_v6  ;;  %10186 = vmatpush.bf16.msrb.mxu3 %v16717_v13  ;;  %v16729_v6 = vld [vmem:[%s22164_s3 + $0xe38] sm:$0xff]  ;;  %v9875_v41 = vsel %vm4675_vm10, %v9871_v42, %v9846_v7  ;;  %v10218_v7 = vperm.slane %v10199_v60, 0  ;;  %v10237_v53 = vperm.slane %v21699_v0, 1  ;;  %v10230_v54 = vperm.slane %v21691_v18, 3 }
 0x4d3   : > { %v16737_v13 = vld [vmem:[%s22164_s3 + $0xe78] sm:$0xff]  ;;  %v9879_v38 = vsel %vm1696_vm7, %v9875_v41, %v9855_v62  ;;  %v16732_v62 = vld [vmem:[%s22164_s3 + $0xe50] sm:$0xff] }
 0x4d4   : > { %v9883_v19 = vpack.c.bf16 %v9879_v38, %v9879_v38  ;;  %v10205_v2 = vld [vmem:[#allocation2 + $0x126] ss:$8 sm:$0xf] }
 0x4d5   : > { %10148 = vmatpush.bf16.msra.mxu0 %v16692_v58  ;;  %10161 = vmatpush.bf16.msra.mxu1 %v16700_v31  ;;  %v9881_v58 = vsel %vm1696_vm7, %v9877_v8, %v9857_v48  ;;  %v9882_v31 = vpack.c.bf16 %v9878_v30, %v9878_v30  ;;  %v10210_v48 = vperm.slane %v10197_v21, 1  ;;  %v10207_v41 = vld [vmem:[#allocation2 + $0x166] ss:$8 sm:$0xf]  ;;  %v10229_v8 = vperm.slane %v21691_v18, 2 }
 0x4d6   : > { %10174 = vmatpush.bf16.msra.mxu2 %v16708_v27  ;;  %10187 = vmatpush.bf16.msrb.mxu3 %v16716_v25  ;;  %v9885_v27 = vpack.c.bf16 %v9881_v58, %v9881_v58  ;;  %v16744_v25 = vld [vmem:[%s22164_s3 + $0xeb0] sm:$0xff]  ;;  %v16747_v30 = vld [vmem:[%s22164_s3 + $0xec8] sm:$0xff]  ;;  %v16769_v60 = vld [vmem:[%s22164_s3 + $0xf78] sm:$0xff] }
 0x4d7   : > { %v16785_v18 = vld [vmem:[%s22164_s3 + $0xff8] sm:$0xff] }
 0x4d9   : > { %10149 = vmatpush.bf16.msra.mxu0 %v16691_v44  ;;  %10162 = vmatpush.bf16.msra.mxu1 %v16699_v20  ;;  %v16726_v44 = vld [vmem:[%s22164_s3 + $0xe20] sm:$0xff] }
 0x4da   : > { %10175 = vmatpush.bf16.msra.mxu2 %v16707_v23  ;;  %10188 = vmatpush.bf16.msrb.mxu3 %v16715_v1  ;;  %v16734_v20 = vld [vmem:[%s22164_s3 + $0xe60] sm:$0xff]  ;;  %v16741_v23 = vld [vmem:[%s22164_s3 + $0xe98] sm:$0xff] }
 0x4db   : > { %v16749_v1 = vld [vmem:[%s22164_s3 + $0xed8] sm:$0xff] }
 0x4dd   : > { %10150 = vmatpush.bf16.msra.mxu0 %v16690_v28  ;;  %10163 = vmatpush.bf16.msra.mxu1 %v16698_v37  ;;  %v8552_v11 = vpop.f32.mrf.mxu0  ;;  %v8565_v26 = vpop.f32.mrf.mxu1  ;;  %v16740_v37 = vld [vmem:[%s22164_s3 + $0xe90] sm:$0xff] }
 0x4de   : > { %10176 = vmatpush.bf16.msra.mxu2 %v16706_v40  ;;  %10189 = vmatpush.bf16.msrb.mxu3 %v16714_v55  ;;  %v8566_v32 = vadd.f32 %v8565_v26, %v8552_v11  ;;  %v10211_v40 = vperm.slane %v10197_v21, 2  ;;  %v10212_v55 = vperm.slane %v10197_v21, 3  ;;  %v10256_v26 = vperm.slane %v10207_v41, 2  ;;  %v16777_v21 = vld [vmem:[%s22164_s3 + $0xfb8] sm:$0xff] }
 0x4e0   : > { %10151 = vmatmul.bf16.vlgmr.msra.gmra.mxu0 %v9882_v31  ;;  %10164 = vmatmul.bf16.vlgmr.msra.gmra.mxu1 %v9883_v19  ;;  %v10264_v4 = vsel %vm4661_vm8, %v10211_v40, %v10220_v33  ;;  %v10245_v19 = vperm.slane %v10205_v2, 0  ;;  %v16775_v40 = vld [vmem:[%s22164_s3 + $0xfa8] sm:$0xff] }
 0x4e1   : > { %10543 = vmatpush.bf16.msrb.mxu0 %v16729_v6  ;;  %10556 = vmatpush.bf16.msrb.mxu1 %v16737_v13  ;;  %v10262_v6 = vsel %vm4661_vm8, %v10209_v46, %v10218_v7  ;;  %v16723_v13 = vld [vmem:[%s22164_s3 + $0xe08] sm:$0xff]  ;;  %v16784_v46 = vld [vmem:[%s22164_s3 + $0xff0] sm:$0xff] }
 0x4e2   : > { %10569 = vmatpush.bf16.msrb.mxu2 %v16745_v61  ;;  %10582 = vmatpush.bf16.msra.mxu3 %v16753_v24  ;;  %v10265_v61 = vsel %vm4661_vm8, %v10212_v55, %v10221_v16  ;;  %v16739_v24 = vld [vmem:[%s22164_s3 + $0xe88] sm:$0xff]  ;;  %v10266_v38 = vsel %vm4666_vm9, %v10262_v6, %v10227_v59  ;;  %v16768_v16 = vld [vmem:[%s22164_s3 + $0xf70] sm:$0xff] }
 0x4e3   : > { %10177 = vmatmul.bf16.vlgmr.msra.gmra.mxu2 %v9884_v17  ;;  %10190 = vmatmul.bf16.vlgmr.msrb.gmra.mxu3 %v9885_v27  ;;  %v10239_v17 = vperm.slane %v21699_v0, 3  ;;  %v10254_v27 = vperm.slane %v10207_v41, 0  ;;  %v16759_v59 = vld [vmem:[%s22164_s3 + $0xf28] sm:$0xff] }
 0x4e4   : > { %v16783_v55 = vld [vmem:[%s22164_s3 + $0xfe8] sm:$0xff] }
 0x4e5   : > { %10544 = vmatpush.bf16.msrb.mxu0 %v16728_v15  ;;  %10557 = vmatpush.bf16.msrb.mxu1 %v16736_v9  ;;  %v8554_v29 = vpop.f32.mrf.mxu0  ;;  %v8567_v36 = vpop.f32.mrf.mxu1  ;;  %v10246_v15 = vperm.slane %v10205_v2, 1  ;;  %v10238_v9 = vperm.slane %v21699_v0, 2  ;;  %v16760_v0 = vld [vmem:[%s22164_s3 + $0xf30] sm:$0xff] }
 0x4e6   : > { %10570 = vmatpush.bf16.msrb.mxu2 %v16744_v25  ;;  %10583 = vmatpush.bf16.msra.mxu3 %v16752_v52  ;;  %v8578_v5 = vpop.f32.mrf.mxu2  ;;  %v8591_v56 = vpop.f32.mrf.mxu3  ;;  %v10255_v25 = vperm.slane %v10207_v41, 1  ;;  %v10247_v52 = vperm.slane %v10205_v2, 2 }
 0x4e7   : > { %v8579_v22 = vadd.f32 %v8578_v5, %v8566_v32  ;;  %v10257_v32 = vperm.slane %v10207_v41, 3  ;;  %v16774_v41 = vld [vmem:[%s22164_s3 + $0xfa0] sm:$0xff] }
 0x4e9   : > { %10545 = vmatpush.bf16.msrb.mxu0 %v16727_v57  ;;  %10558 = vmatpush.bf16.msrb.mxu1 %v16735_v50  ;;  %v8592_v28 = vadd.f32 %v8591_v56, %v8579_v22  ;;  %v10248_v57 = vperm.slane %v10205_v2, 3  ;;  %v16722_v50 = vld [vmem:[%s22164_s3 + $0xe00] sm:$0xff] }
 0x4ea   : > { %10571 = vmatpush.bf16.msrb.mxu2 %v16743_v12  ;;  %10584 = vmatpush.bf16.msra.mxu3 %v16751_v45  ;;  %v16730_v12 = vld [vmem:[%s22164_s3 + $0xe40] sm:$0xff]  ;;  %v10270_v45 = vsel %vm694_vm0, %v10266_v38, %v10236_v34  ;;  %v16781_v38 = vld [vmem:[%s22164_s3 + $0xfd8] sm:$0xff] }
 0x4eb   : > { %v21709_v42 = vadd.f32 %v8592_v28, %v21578_v3  ;;  %v10263_v3 = vsel %vm4661_vm8, %v10210_v48, %v10219_v47  ;;  %v16767_v48 = vld [vmem:[%s22164_s3 + $0xf68] sm:$0xff] }
 0x4ec   : > { %v10267_v11 = vsel %vm4666_vm9, %v10263_v3, %v10228_v63  ;;  %v16782_v63 = vld [vmem:[%s22164_s3 + $0xfe0] sm:$0xff] }
 0x4ed   : > { %10546 = vmatpush.bf16.msrb.mxu0 %v16726_v44  ;;  %10559 = vmatpush.bf16.msrb.mxu1 %v16734_v20  ;;  %v16738_v44 = vld [vmem:[%s22164_s3 + $0xe80] sm:$0xff] }
 0x4ee   : > { %10572 = vmatpush.bf16.msrb.mxu2 %v16742_v39  ;;  %10585 = vmatpush.bf16.msra.mxu3 %v16750_v49  ;;  %v8580_v58 = vpop.f32.mrf.mxu2  ;;  %v8593_v31 = vpop.f32.mrf.mxu3  ;;  %v16746_v20 = vld [vmem:[%s22164_s3 + $0xec0] sm:$0xff]  ;;  %v10271_v39 = vsel %vm694_vm0, %v10267_v11, %v10237_v53  ;;  %v10268_v49 = vsel %vm4666_vm9, %v10264_v4, %v10229_v8  ;;  %v16757_v4 = vld [vmem:[%s22164_s3 + $0xf18] sm:$0xff] }
 0x4ef   : > { %v10272_v5 = vsel %vm694_vm0, %v10268_v49, %v10238_v9  ;;  %v10599_v3 = vld [vmem:[#allocation2 + $0x67] ss:$8 sm:$0xf] }
 0x4f0   : > { %v10276_v36 = vsel %vm4675_vm10, %v10272_v5, %v10247_v52  ;;  %v21822_v53 = vld [vmem:[#allocation2 + $0xa7] ss:$8 sm:$0xf]  ;;  %v10618_v31 = vperm.slane %v10599_v3, 0 }
 0x4f1   : > { %10547 = vmatpush.bf16.msrb.mxu0 %v16725_v14  ;;  %10560 = vmatpush.bf16.msrb.mxu1 %v16733_v43  ;;  %v10269_v14 = vsel %vm4666_vm9, %v10265_v61, %v10230_v54  ;;  %v16761_v43 = vld [vmem:[%s22164_s3 + $0xf38] sm:$0xff]  ;;  %v10280_v47 = vsel %vm1696_vm7, %v10276_v36, %v10256_v26  ;;  %v16756_v52 = vld [vmem:[%s22164_s3 + $0xf10] sm:$0xff]  ;;  %v10628_v5 = vperm.slane %v21822_v53, 1 }
 0x4f2   : > { %10573 = vmatpush.bf16.msrb.mxu2 %v16741_v23  ;;  %10586 = vmatpush.bf16.msra.mxu3 %v16749_v1  ;;  %v10274_v23 = vsel %vm4675_vm10, %v10270_v45, %v10245_v19  ;;  %v10275_v1 = vsel %vm4675_vm10, %v10271_v39, %v10246_v15  ;;  %v10273_v56 = vsel %vm694_vm0, %v10269_v14, %v10239_v17  ;;  %v16765_v61 = vld [vmem:[%s22164_s3 + $0xf58] sm:$0xff]  ;;  %v10619_v19 = vperm.slane %v10599_v3, 1 }
 0x4f3   : > { %v10278_v22 = vsel %vm1696_vm7, %v10274_v23, %v10254_v27  ;;  %v10279_v29 = vsel %vm1696_vm7, %v10275_v1, %v10255_v25  ;;  %v10277_v7 = vsel %vm4675_vm10, %v10273_v56, %v10248_v57  ;;  %v10284_v28 = vpack.c.bf16 %v10280_v47, %v10280_v47  ;;  %v21824_v58 = vld [vmem:[#allocation2 + $0xe7] ss:$8 sm:$0xf] }
 0x4f4   : > { %v10281_v33 = vsel %vm1696_vm7, %v10277_v7, %v10257_v32  ;;  %v10620_v15 = vperm.slane %v10599_v3, 2  ;;  %v10621_v25 = vperm.slane %v10599_v3, 3  ;;  %v16764_v57 = vld [vmem:[%s22164_s3 + $0xf50] sm:$0xff]  ;;  %v10629_v56 = vperm.slane %v21822_v53, 2  ;;  %v16771_v47 = vld [vmem:[%s22164_s3 + $0xf88] sm:$0xff]  ;;  %v16770_v3 = vld [vmem:[%s22164_s3 + $0xf80] sm:$0xff] }
 0x4f5   : > { %10548 = vmatpush.bf16.msrb.mxu0 %v16724_v51  ;;  %10561 = vmatpush.bf16.msrb.mxu1 %v16732_v62  ;;  %v10282_v51 = vpack.c.bf16 %v10278_v22, %v10278_v22  ;;  %v10283_v62 = vpack.c.bf16 %v10279_v29, %v10279_v29  ;;  %v16772_v32 = vld [vmem:[%s22164_s3 + $0xf90] sm:$0xff]  ;;  %v16763_v22 = vld [vmem:[%s22164_s3 + $0xf48] sm:$0xff]  ;;  %v10637_v29 = vperm.slane %v21824_v58, 1  ;;  %v10638_v36 = vperm.slane %v21824_v58, 2 }
 0x4f6   : > { %10574 = vmatpush.bf16.msrb.mxu2 %v16740_v37  ;;  %10587 = vmatpush.bf16.msra.mxu3 %v16748_v10  ;;  %v10285_v37 = vpack.c.bf16 %v10281_v33, %v10281_v33  ;;  %v16776_v10 = vld [vmem:[%s22164_s3 + $0xfb0] sm:$0xff]  ;;  %v10630_v7 = vperm.slane %v21822_v53, 3  ;;  %v16779_v33 = vld [vmem:[%s22164_s3 + $0xfc8] sm:$0xff] }
 0x4f7   : > { %v10605_v49 = vld [vmem:[#allocation2 + $0x127] ss:$8 sm:$0xf] }
 0x4f8   : > { %v10607_v1 = vld [vmem:[#allocation2 + $0x167] ss:$8 sm:$0xf] }
 0x4f9   : > { %10549 = vmatpush.bf16.msrb.mxu0 %v16723_v13  ;;  %10562 = vmatpush.bf16.msrb.mxu1 %v16731_v35  ;;  %v16758_v13 = vld [vmem:[%s22164_s3 + $0xf20] sm:$0xff] }
 0x4fa   : > { %10575 = vmatpush.bf16.msrb.mxu2 %v16739_v24  ;;  %10588 = vmatpush.bf16.msra.mxu3 %v16747_v30  ;;  %v16766_v35 = vld [vmem:[%s22164_s3 + $0xf60] sm:$0xff]  ;;  %v16773_v30 = vld [vmem:[%s22164_s3 + $0xf98] sm:$0xff] }
 0x4fb   : > { %v10597_v24 = vld [vmem:[#allocation2 + $0x27] ss:$8 sm:$0xf] }
 0x4fc   : > { %v10610_v45 = vperm.slane %v10597_v24, 1  ;;  %v10611_v11 = vperm.slane %v10597_v24, 2  ;;  %v10612_v39 = vperm.slane %v10597_v24, 3 }
 0x4fd   : > { %10550 = vmatpush.bf16.msrb.mxu0 %v16722_v50  ;;  %10563 = vmatpush.bf16.msrb.mxu1 %v16730_v12  ;;  %v8952_v2 = vpop.f32.mrf.mxu0  ;;  %v8965_v34 = vpop.f32.mrf.mxu1  ;;  %v10609_v50 = vperm.slane %v10597_v24, 0  ;;  %v10627_v12 = vperm.slane %v21822_v53, 0 }
 0x4fe   : > { %10576 = vmatpush.bf16.msrb.mxu2 %v16738_v44  ;;  %10589 = vmatpush.bf16.msra.mxu3 %v16746_v20  ;;  %v8966_v6 = vadd.f32 %v8965_v34, %v8952_v2  ;;  %v16780_v44 = vld [vmem:[%s22164_s3 + $0xfd0] sm:$0xff]  ;;  %v10636_v20 = vperm.slane %v21824_v58, 0  ;;  %v10657_v34 = vperm.slane %v10607_v1, 3 }
 0x4ff   : > { %v10662_v14 = vsel %vm4661_vm8, %v10609_v50, %v10618_v31 }
 0x500   : > { %10551 = vmatmul.bf16.vlgmr.msrb.gmra.mxu0 %v10282_v51  ;;  %10564 = vmatmul.bf16.vlgmr.msrb.gmra.mxu1 %v10283_v62  ;;  %v10645_v51 = vperm.slane %v10605_v49, 0 }
 0x501   : > { %10943 = vmatpush.bf16.msra.mxu0 %v16761_v43  ;;  %10956 = vmatpush.bf16.msra.mxu1 %v16769_v60  ;;  %v10663_v43 = vsel %vm4661_vm8, %v10610_v45, %v10619_v19  ;;  %v10664_v60 = vsel %vm4661_vm8, %v10611_v11, %v10620_v15 }
 0x502   : > { %10969 = vmatpush.bf16.msra.mxu2 %v16777_v21  ;;  %10982 = vmatpush.bf16.msrb.mxu3 %v16785_v18  ;;  %v10665_v21 = vsel %vm4661_vm8, %v10612_v39, %v10621_v25  ;;  %v16755_v18 = vld [vmem:[%s22164_s3 + $0xf08] sm:$0xff]  ;;  %v10668_v2 = vsel %vm4666_vm9, %v10664_v60, %v10629_v56 }
 0x503   : > { %10577 = vmatmul.bf16.vlgmr.msrb.gmra.mxu2 %v10284_v28  ;;  %10590 = vmatmul.bf16.vlgmr.msra.gmra.mxu3 %v10285_v37 }
 0x505   : > { %10944 = vmatpush.bf16.msra.mxu0 %v16760_v0  ;;  %10957 = vmatpush.bf16.msra.mxu1 %v16768_v16  ;;  %v8954_v17 = vpop.f32.mrf.mxu0  ;;  %v8967_v27 = vpop.f32.mrf.mxu1  ;;  %v10646_v0 = vperm.slane %v10605_v49, 1  ;;  %v10639_v16 = vperm.slane %v21824_v58, 3 }
 0x506   : > { %10970 = vmatpush.bf16.msra.mxu2 %v16776_v10  ;;  %10983 = vmatpush.bf16.msrb.mxu3 %v16784_v46  ;;  %v8978_v8 = vpop.f32.mrf.mxu2  ;;  %v8991_v54 = vpop.f32.mrf.mxu3  ;;  %v10654_v10 = vperm.slane %v10607_v1, 0  ;;  %v10655_v46 = vperm.slane %v10607_v1, 1 }
 0x507   : > { %v8979_v9 = vadd.f32 %v8978_v8, %v8966_v6  ;;  %v16754_v6 = vld [vmem:[%s22164_s3 + $0xf00] sm:$0xff] }
 0x509   : > { %10945 = vmatpush.bf16.msra.mxu0 %v16759_v59  ;;  %10958 = vmatpush.bf16.msra.mxu1 %v16767_v48  ;;  %v8992_v26 = vadd.f32 %v8991_v54, %v8979_v9  ;;  %v10647_v59 = vperm.slane %v10605_v49, 2  ;;  %v10648_v48 = vperm.slane %v10605_v49, 3 }
 0x50a   : > { %10971 = vmatpush.bf16.msra.mxu2 %v16775_v40  ;;  %10984 = vmatpush.bf16.msrb.mxu3 %v16783_v55  ;;  %v10667_v40 = vsel %vm4666_vm9, %v10663_v43, %v10628_v5  ;;  %v10656_v55 = vperm.slane %v10607_v1, 2 }
 0x50b   : > { %v21844_v23 = vadd.f32 %v8992_v26, %v21709_v42  ;;  %v10666_v42 = vsel %vm4666_vm9, %v10662_v14, %v10627_v12 }
 0x50c   : > { %v10670_v62 = vsel %vm694_vm0, %v10666_v42, %v10636_v20 }
 0x50d   : > { %10946 = vmatpush.bf16.msra.mxu0 %v16758_v13  ;;  %10959 = vmatpush.bf16.msra.mxu1 %v16766_v35  ;;  %v16762_v13 = vld [vmem:[%s22164_s3 + $0xf40] sm:$0xff]  ;;  %v10671_v35 = vsel %vm694_vm0, %v10667_v40, %v10637_v29 }
 0x50e   : > { %10972 = vmatpush.bf16.msra.mxu2 %v16774_v41  ;;  %10985 = vmatpush.bf16.msrb.mxu3 %v16782_v63  ;;  %v8980_v28 = vpop.f32.mrf.mxu2  ;;  %v8993_v37 = vpop.f32.mrf.mxu3  ;;  %v10672_v41 = vsel %vm694_vm0, %v10668_v2, %v10638_v36  ;;  %v10669_v63 = vsel %vm4666_vm9, %v10665_v21, %v10630_v7  ;;  %v10675_v24 = vsel %vm4675_vm10, %v10671_v35, %v10646_v0 }
 0x50f   : > { %v10679_v53 = vsel %vm1696_vm7, %v10675_v24, %v10655_v46  ;;  %v10676_v8 = vsel %vm4675_vm10, %v10672_v41, %v10647_v59 }
 0x510   : > { %v10680_v58 = vsel %vm1696_vm7, %v10676_v8, %v10656_v55  ;;  %v10683_v15 = vpack.c.bf16 %v10679_v53, %v10679_v53 }
 0x511   : > { %10947 = vmatpush.bf16.msra.mxu0 %v16757_v4  ;;  %10960 = vmatpush.bf16.msra.mxu1 %v16765_v61  ;;  %v16778_v4 = vld [vmem:[%s22164_s3 + $0xfc0] sm:$0xff]  ;;  %v10674_v61 = vsel %vm4675_vm10, %v10670_v62, %v10645_v51  ;;  %v10684_v9 = vpack.c.bf16 %v10680_v58, %v10680_v58 }
 0x512   : > { %10973 = vmatpush.bf16.msra.mxu2 %v16773_v30  ;;  %10986 = vmatpush.bf16.msrb.mxu3 %v16781_v38  ;;  %v10673_v30 = vsel %vm694_vm0, %v10669_v63, %v10639_v16  ;;  %v10678_v38 = vsel %vm1696_vm7, %v10674_v61, %v10654_v10 }
 0x513   : > { %v10677_v54 = vsel %vm4675_vm10, %v10673_v30, %v10648_v48  ;;  %v10682_v19 = vpack.c.bf16 %v10678_v38, %v10678_v38 }
 0x514   : > { %v10681_v31 = vsel %vm1696_vm7, %v10677_v54, %v10657_v34  ;;  %v16816_v54 = vld [vmem:[%s22165_s4] ss:$0 sm:$0xff] }
 0x515   : > { %10948 = vmatpush.bf16.msra.mxu0 %v16756_v52  ;;  %10961 = vmatpush.bf16.msra.mxu1 %v16764_v57  ;;  %v10685_v17 = vpack.c.bf16 %v10681_v31, %v10681_v31 }
 0x516   : > { %10974 = vmatpush.bf16.msra.mxu2 %v16772_v32  ;;  %10987 = vmatpush.bf16.msrb.mxu3 %v16780_v44 }
 0x519   : > { %10949 = vmatpush.bf16.msra.mxu0 %v16755_v18  ;;  %10962 = vmatpush.bf16.msra.mxu1 %v16763_v22 }
 0x51a   : > { %10975 = vmatpush.bf16.msra.mxu2 %v16771_v47  ;;  %10988 = vmatpush.bf16.msrb.mxu3 %v16779_v33 }
 0x51d   : > { %10950 = vmatpush.bf16.msra.mxu0 %v16754_v6  ;;  %10963 = vmatpush.bf16.msra.mxu1 %v16762_v13  ;;  %v9352_v27 = vpop.f32.mrf.mxu0  ;;  %v9365_v25 = vpop.f32.mrf.mxu1 }
 0x51e   : > { %10976 = vmatpush.bf16.msra.mxu2 %v16770_v3  ;;  %10989 = vmatpush.bf16.msrb.mxu3 %v16778_v4  ;;  %v9366_v52 = vadd.f32 %v9365_v25, %v9352_v27  ;;  %v11024_v27 = vld [vmem:[%s22167_s6 + $0x8] sm:$0xff]  ;;  %v11023_v25 = vld [vmem:[%s22167_s6] sm:$0xff] }
 0x520   : > { %10951 = vmatmul.bf16.vlgmr.msra.gmra.mxu0 %v10682_v19  ;;  %10964 = vmatmul.bf16.vlgmr.msra.gmra.mxu1 %v10683_v15 }
 0x521   : > { %10977 = vmatmul.bf16.vlgmr.msra.gmra.mxu2 %v10684_v9  ;;  %10990 = vmatmul.bf16.vlgmr.msrb.gmra.mxu3 %v10685_v17 }
 0x522   : > { %11047 = vmatpush.msrb.mxu0 %v11024_v27 }
 0x524   : > { %11048 = vmatpush.msrb.mxu0 %v11023_v25 }
 0x525   : > { %v9354_v45 = vpop.f32.mrf.mxu0  ;;  %v9367_v11 = vpop.f32.mrf.mxu1 }
 0x526   : > { %v9378_v57 = vpop.f32.mrf.mxu2  ;;  %v9391_v50 = vpop.f32.mrf.mxu3  ;;  %v11019_v11 = vld [vmem:[%s22166_s5] sm:$0xf] }
 0x527   : > { %v9379_v12 = vadd.f32 %v9378_v57, %v9366_v52  ;;  %v16053_v52 = vld [vmem:[%s22167_s6 + $0x18] sm:$0xff]  ;;  %v16057_v57 = vld [vmem:[%s22167_s6 + $0x28] sm:$0xff] }
 0x528   : > { %11078 = vmatpush.msrb.mxu1 %v16053_v52  ;;  %11109 = vmatpush.msrb.mxu2 %v16057_v57 }
 0x529   : > { %v9392_v26 = vadd.f32 %v9391_v50, %v9379_v12  ;;  %v16056_v50 = vld [vmem:[%s22167_s6 + $0x20] sm:$0xff]  ;;  %v16052_v12 = vld [vmem:[%s22167_s6 + $0x10] sm:$0xff] }
 0x52a   : > { %11079 = vmatpush.msrb.mxu1 %v16052_v12  ;;  %11110 = vmatpush.msrb.mxu2 %v16056_v50 }
 0x52b   : > { %v9395_v32 = vadd.f32 %v9392_v26, %v21844_v23 }
 0x52e   : > { %v9380_v44 = vpop.f32.mrf.mxu2  ;;  %v9393_v20 = vpop.f32.mrf.mxu3 }
 0x53d   : > { %v9752_v39 = vpop.f32.mrf.mxu0  ;;  %v9765_v49 = vpop.f32.mrf.mxu1 }
 0x53e   : > { %v9766_v14 = vadd.f32 %v9765_v49, %v9752_v39 }
 0x545   : > { %v9754_v5 = vpop.f32.mrf.mxu0  ;;  %v9767_v56 = vpop.f32.mrf.mxu1 }
 0x546   : > { %v9778_v43 = vpop.f32.mrf.mxu2  ;;  %v9791_v60 = vpop.f32.mrf.mxu3 }
 0x547   : > { %v9779_v1 = vadd.f32 %v9778_v43, %v9766_v14 }
 0x549   : > { %v9792_v21 = vadd.f32 %v9791_v60, %v9779_v1  ;;  %v16817_v1 = vld [vmem:[%s22168_s7] ss:$0 sm:$0xff] }
 0x54b   : > { %v9795_v18 = vadd.f32 %v9792_v21, %v9395_v32  ;;  %v16818_v21 = vld [vmem:[%s22168_s7 + $0x1] ss:$0 sm:$0xff] }
 0x54e   : > { %v9780_v22 = vpop.f32.mrf.mxu2  ;;  %v9793_v42 = vpop.f32.mrf.mxu3 }
 0x54f   : > { %v16819_v42 = vld [vmem:[%s22168_s7 + $0x2] ss:$0 sm:$0xff] }
 0x55d   : > { %v10152_v29 = vpop.f32.mrf.mxu0  ;;  %v10165_v36 = vpop.f32.mrf.mxu1 }
 0x55e   : > { %v10166_v40 = vadd.f32 %v10165_v36, %v10152_v29 }
 0x565   : > { %v10154_v33 = vpop.f32.mrf.mxu0  ;;  %v10167_v23 = vpop.f32.mrf.mxu1 }
 0x566   : > { %v10178_v7 = vpop.f32.mrf.mxu2  ;;  %v10191_v47 = vpop.f32.mrf.mxu3 }
 0x567   : > { %v10179_v55 = vadd.f32 %v10178_v7, %v10166_v40 }
 0x569   : > { %v10192_v35 = vadd.f32 %v10191_v47, %v10179_v55 }
 0x56b   : > { %v10195_v61 = vadd.f32 %v10192_v35, %v9795_v18 }
 0x56e   : > { %v10180_v51 = vpop.f32.mrf.mxu2  ;;  %v10193_v62 = vpop.f32.mrf.mxu3 }
 0x57d   : > { %v10552_v0 = vpop.f32.mrf.mxu0  ;;  %v10565_v16 = vpop.f32.mrf.mxu1 }
 0x57e   : > { %v10566_v2 = vadd.f32 %v10565_v16, %v10552_v0 }
 0x585   : > { %v10554_v10 = vpop.f32.mrf.mxu0  ;;  %v10567_v46 = vpop.f32.mrf.mxu1 }
 0x586   : > { %v10578_v28 = vpop.f32.mrf.mxu2  ;;  %v10591_v37 = vpop.f32.mrf.mxu3 }
 0x587   : > { %v10579_v13 = vadd.f32 %v10578_v28, %v10566_v2 }
 0x589   : > { %v10592_v41 = vadd.f32 %v10591_v37, %v10579_v13 }
 0x58b   : > { %v10595_v53 = vadd.f32 %v10592_v41, %v10195_v61 }
 0x58e   : > { %v10580_v59 = vpop.f32.mrf.mxu2  ;;  %v10593_v48 = vpop.f32.mrf.mxu3 }
 0x59d   : > { %v10952_v34 = vpop.f32.mrf.mxu0  ;;  %v10965_v6 = vpop.f32.mrf.mxu1 }
 0x59e   : > { %v10966_v63 = vadd.f32 %v10965_v6, %v10952_v34 }
 0x5a4   : > { %v10978_v3 = vpop.f32.mrf.mxu2  ;;  %v10991_v4 = vpop.f32.mrf.mxu3 }
 0x5a5   : > { %v10979_v24 = vadd.f32 %v10978_v3, %v10966_v63  ;;  %v10954_v30 = vpop.f32.mrf.mxu0  ;;  %v10967_v38 = vpop.f32.mrf.mxu1 }
 0x5a7   : > { %v10992_v8 = vadd.f32 %v10991_v4, %v10979_v24 }
 0x5a9   : > { %v10995_v58 = vadd.f32 %v10992_v8, %v10595_v53 }
 0x5ab   : > { %v11000_v31 = vadd.f32 %v16816_v54, %v10995_v58 }
 0x5ac   : > { %v10980_v19 = vpop.f32.mrf.mxu2  ;;  %v10993_v15 = vpop.f32.mrf.mxu3 }
 0x5ad   : > { %11009 = vrot.lane.b32.xlu0 %v11000_v31, %s16859_s30  ;;  %v11002_v9 = vrot.slane %v11000_v31, 6  ;;  %v11007_v17 = vrot.slane %v11000_v31, 2  ;;  %v11013_v20 = vrot.slane %v11000_v31, 4 }
 0x5af   : > { %11003 = vrot.lane.b32.xlu1 %v11002_v9, %s16859_s30 }
 0x5b5   : > { %11015 = vrot.lane.b32.xlu0 %v11007_v17, %s16859_s30  ;;  %s16861_s30 = smov 116  }
 0x61f   : > { %v11010_v45 = vpop.permute.xlu0 %11009 }
 0x620   : > { %v11012_v49 = vsel %vm4666_vm9, %v11007_v17, %v11010_v45 }
 0x621   : > { %v11004_v26 = vpop.permute.xlu1 %11003 }
 0x622   : > { %v21919_v32 = vsel %vm4666_vm9, %v11000_v31, %v11004_v26 }
 0x623   : > { %v11021_v44 = vadd.f32 %v11019_v11, %v21919_v32 }
 0x625   : > { %16051 = vmatmul.msk.f32.vlgmr.msrb.gmra.mxu0 %vm11029_vm11, %v11021_v44 }
 0x627   : > { %v11016_v39 = vpop.permute.xlu0 %11015 }
 0x628   : > { %v11018_v14 = vsel %vm4666_vm9, %v11013_v20, %v11016_v39 }
 0x629   : > { %v11020_v43 = vadd.f32 %v11018_v14, %v11012_v49 }
 0x62b   : > { %v11022_v60 = vadd.f32 %v11020_v43, %v11019_v11  ;;  %16059 = vmatmul.msk.f32.vlgmr.msrb.gmra.mxu2 %vm11029_vm11, %v11020_v43 }
 0x62d   : > { %16055 = vmatmul.msk.f32.vlgmr.msrb.gmra.mxu1 %vm11029_vm11, %v11022_v60 }
 0x6a2   : > { %v11050_v5 = vpop.f32.mrf.mxu0 }
 0x6a3   : > { %v11051_v56 = vadd.f32 %v16817_v1, %v11050_v5 }
 0x6a5   : > { %11194 = vrot.lane.b32.xlu2 %v11051_v56, %s16860_s29 }
 0x6aa   : > { %v11081_v18 = vpop.f32.mrf.mxu1 }
 0x6ab   : > { %v11082_v22 = vadd.f32 %v16818_v21, %v11081_v18 }
 0x6ad   : > { %11356 = vrot.lane.b32.xlu0 %v11082_v22, %s16861_s30  ;;  %16060 = vmatpush.xpose.msk.msra.mxu3 %vm11115_vm12, %v11082_v22 }
 0x6ae   : > { %11196 = vrot.lane.b32.xlu1 %v11082_v22, %s16860_s29  ;;  %11276 = vrot.lane.b32.xlu2 %v11082_v22, %s16862_s20  ;;  %v11112_v29 = vpop.f32.mrf.mxu2 }
 0x6af   : > { %v21941_v36 = vadd.f32 %v16819_v42, %v11112_v29 }
 0x6b0   : > { %16061 = vmatmul.msk.f32.vlgmr.msra.gmra.mxu3 %vm11115_vm12, %v11051_v56 }
 0x6b1   : > { %16062 = vmatpush.msk.msra.mxu0 %vm4675_vm10, %v21941_v36 }
 0x6b6   : > { %11274 = vrot.lane.b32.xlu1 %v11051_v56, %s16862_s20  ;;  %11354 = vrot.lane.b32.xlu2 %v11051_v56, %s16861_s30 }
 0x6ff   : > { %v11195_v7 = vpop.permute.xlu2 %11194 }
 0x708   : > { %v11277_v47 = vpop.permute.xlu2 %11276 }
 0x709   : > { %16068 = vmatpush.xpose.msk.msrb.mxu3 %vm11115_vm12, %v11277_v47 }
 0x710   : > { %v11355_v62 = vpop.permute.xlu2 %11354 }
 0x71f   : > { %v11357_v33 = vpop.permute.xlu0 %11356 }
 0x720   : > { %v11197_v23 = vpop.permute.xlu1 %11196 }
 0x721   : > { %16064 = vmatpush.xpose.msk.msra.mxu1 %vm11115_vm12, %v11197_v23 }
 0x724   : > { %16065 = vmatmul.msk.f32.vlgmr.msra.gmra.mxu1 %vm11115_vm12, %v11195_v7 }
 0x725   : > { %16072 = vmatpush.xpose.msk.msrb.mxu1 %vm11115_vm12, %v11357_v33 }
 0x728   : > { %v11275_v51 = vpop.permute.xlu1 %11274 }
 0x729   : > { %16069 = vmatmul.msk.f32.vlgmr.msrb.gmra.mxu3 %vm11115_vm12, %v11275_v51 }
 0x72c   : > { %16073 = vmatmul.msk.f32.vlgmr.msrb.gmra.mxu1 %vm11115_vm12, %v11355_v62 }
 0x733   : > { %v11139_v0 = vpop.f32.mrf.mxu3 }
 0x734   : > { %v11142_v16 = vmul.f32 0.5, %v11139_v0 }
 0x736   : > { %v11144_v28 = vsel %vm11143_vm13, %v11142_v16, -inf }
 0x737   : > { %11145 = vmax.xlane.f32.xlu1 %v11144_v28 }
 0x7a1   : > { %v11219_v37 = vpop.f32.mrf.mxu1 }
 0x7a2   : > { %v11222_v10 = vmul.f32 0.5, %v11219_v37 }
 0x7a4   : > { %v11223_v46 = vsel %vm11143_vm13, %v11222_v10, -inf }
 0x7a5   : > { %11224 = vmax.xlane.f32.xlu0 %v11223_v46 }
 0x7a9   : > { %v11379_v59 = vpop.f32.mrf.mxu1 }
 0x7aa   : > { %v11382_v48 = vmul.f32 0.5, %v11379_v59  ;;  %v11146_v40 = vpop.xlane.xlu1 %11145 }
 0x7ab   : > { %v11147_v55 = vsub.f32 %v11142_v16, %v11146_v40 }
 0x7ac   : > { %v11383_v2 = vsel %vm11143_vm13, %v11382_v48, -inf  ;;  %v11299_v6 = vpop.f32.mrf.mxu3 }
 0x7ad   : > { %v11148_v34 = vmul.f32 1.442695, %v11147_v55  ;;  %11384 = vmax.xlane.f32.xlu2 %v11383_v2  ;;  %v11302_v13 = vmul.f32 0.5, %v11299_v6 }
 0x7af   : > { %16827 = vpow2.f32 %v11148_v34  ;;  %v11303_v35 = vsel %vm11143_vm13, %v11302_v13, -inf }
 0x7b5   : > { %v16828_v41 = vpop.eup %16827  ;;  %11304 = vmax.xlane.f32.xlu2 %v11303_v35 }
 0x7b6   : > { %v11150_v63 = vsel %vm11143_vm13, %v16828_v41, 0.0 }
 0x7b7   : > { %11151 = vadd.xlane.f32.xlu1 %v11150_v63 }
 0x7d0   : > { %11247 = vrot.lane.b32.xlu1 %v21941_v36, %s16860_s29 }
 0x818   : > { %v11225_v3 = vpop.xlane.xlu0 %11224 }
 0x819   : > { %v11226_v4 = vsub.f32 %v11222_v10, %v11225_v3 }
 0x81b   : > { %v11227_v61 = vmul.f32 1.442695, %v11226_v4 }
 0x81d   : > { %16829 = vpow2.f32 %v11227_v61 }
 0x820   : > { %v11385_v24 = vpop.xlane.xlu2 %11384 }
 0x821   : > { %v11386_v30 = vsub.f32 %v11382_v48, %v11385_v24 }
 0x823   : > { %v16830_v38 = vpop.eup %16829  ;;  %v11387_v53 = vmul.f32 1.442695, %v11386_v30 }
 0x824   : > { %v11229_v8 = vsel %vm11143_vm13, %v16830_v38, 0.0 }
 0x825   : > { %16831 = vpow2.f32 %v11387_v53  ;;  %11230 = vadd.xlane.f32.xlu0 %v11229_v8  ;;  %v11452_v8 = vld [vmem:[%s22169_s8 + $0x8] sm:$0xff] }
 0x826   : > { %11474 = vmatpush.msra.mxu3 %v11452_v8 }
 0x828   : > { %v11305_v54 = vpop.xlane.xlu2 %11304 }
 0x829   : > { %v11306_v58 = vsub.f32 %v11302_v13, %v11305_v54  ;;  %v11451_v54 = vld [vmem:[%s22169_s8] sm:$0xff] }
 0x82a   : > { %v11152_v31 = vpop.xlane.xlu1 %11151  ;;  %11475 = vmatpush.msra.mxu3 %v11451_v54 }
 0x82b   : > { %v21962_v19 = vpop.eup %16831  ;;  %v11307_v15 = vmul.f32 1.442695, %v11306_v58  ;;  %16833 = vrcp.f32 %v11152_v31  ;;  %v11164_v50 = vand.u32 2147483648, %v11152_v31  ;;  %v11162_v45 = vand.u32 2147483647, %v11152_v31 }
 0x82c   : > { %v11389_v9 = vsel %vm11143_vm13, %v21962_v19, 0.0  ;;  %vm11158_vm15 = vweird.f32 %v11152_v31 }
 0x82d   : > { %16835 = vpow2.f32 %v11307_v15  ;;  %11390 = vadd.xlane.f32.xlu2 %v11389_v9  ;;  %v11165_v26 = vor.u32 1.1754944e-38, %v11164_v50  ;;  %vm11163_vm1 = vcmp.eq.f32.partialorder %v11162_v45, 8.507059e+37 }
 0x831   : > { %v16834_v17 = vpop.eup %16833 }
 0x832   : > { %v11154_v27 = vmul.f32 %v16834_v17, %v11152_v31  ;;  %vm11159_vm14 = vweird.f32 %v16834_v17 }
 0x833   : > { %v21966_v25 = vpop.eup %16835  ;;  %vm11160_vm0 = vmor %vm11158_vm15, %vm11159_vm14 }
 0x834   : > { %v11155_v52 = vsub.f32 1.0, %v11154_v27  ;;  %v11309_v57 = vsel %vm11143_vm13, %v21966_v25, 0.0  ;;  %v16820_v27 = vld [vmem:[%s22170_s9] ss:$0 sm:$0xff] }
 0x835   : > { %11310 = vadd.xlane.f32.xlu0 %v11309_v57 }
 0x836   : > { %v11156_v12 = vmul.f32 %v16834_v17, %v11155_v52 }
 0x838   : > { %v11157_v11 = vadd.f32 %v16834_v17, %v11156_v12  ;;  %v16866_v12 = vmov 16.0  }
 0x83a   : > { %v11161_v44 = vsel %vm11160_vm0, %v16834_v17, %v11157_v11 }
 0x83b   : > { %v11166_v20 = vsel %vm11163_vm1, %v11165_v26, %v11161_v44 }
 0x83c   : > { %v11167_v39 = vmul.f32 %v16828_v41, %v11166_v20 }
 0x83e   : > { %16063 = vmatmul.msk.f32.vlgmr.msra.gmra.mxu0 %vm11115_vm12, %v11167_v39 }
 0x842   : > { %v11248_v49 = vpop.permute.xlu1 %11247 }
 0x843   : > { %16066 = vmatpush.msk.msra.mxu2 %vm4675_vm10, %v11248_v49 }
 0x845   : > { %11407 = vrot.lane.b32.xlu2 %v21941_v36, %s16861_s30 }
 0x849   : > { %11327 = vrot.lane.b32.xlu0 %v21941_v36, %s16862_s20 }
 0x898   : > { %v11231_v14 = vpop.xlane.xlu0 %11230 }
 0x899   : > { %16837 = vrcp.f32 %v11231_v14  ;;  %v11243_v56 = vand.u32 2147483648, %v11231_v14  ;;  %v11241_v18 = vand.u32 2147483647, %v11231_v14  ;;  %vm11237_vm3 = vweird.f32 %v11231_v14 }
 0x89b   : > { %v11244_v29 = vor.u32 1.1754944e-38, %v11243_v56  ;;  %vm11242_vm5 = vcmp.eq.f32.partialorder %v11241_v18, 8.507059e+37  ;;  %v11554_v56 = vld [vmem:[%s22173_s12 + $0x38] sm:$0xff]  ;;  %v11552_v18 = vld [vmem:[%s22173_s12 + $0x28] sm:$0xff] }
 0x89c   : > { %11571 = vmatpush.msra.mxu1 %v11554_v56 }
 0x89f   : > { %v16838_v43 = vpop.eup %16837 }
 0x8a0   : > { %v11233_v60 = vmul.f32 %v16838_v43, %v11231_v14  ;;  %v11391_v1 = vpop.xlane.xlu2 %11390  ;;  %vm11238_vm2 = vweird.f32 %v16838_v43 }
 0x8a1   : > { %16839 = vrcp.f32 %v11391_v1  ;;  %vm11239_vm4 = vmor %vm11237_vm3, %vm11238_vm2  ;;  %v11403_v0 = vand.u32 2147483648, %v11391_v1  ;;  %v11401_v28 = vand.u32 2147483647, %v11391_v1  ;;  %vm11397_vm7 = vweird.f32 %v11391_v1 }
 0x8a2   : > { %v11234_v5 = vsub.f32 1.0, %v11233_v60  ;;  %vm11449_vm2 = vcmask 97280   ;;  %vm11483_vm3 = vcmask 125952  }
 0x8a3   : > { %v11404_v46 = vor.u32 1.1754944e-38, %v11403_v0  ;;  %vm11402_vm13 = vcmp.eq.f32.partialorder %v11401_v28, 8.507059e+37 }
 0x8a4   : > { %v11235_v21 = vmul.f32 %v16838_v43, %v11234_v5  ;;  %v11517_v5 = vld [vmem:[%s22171_s10] sm:$0xff] }
 0x8a6   : > { %v11236_v22 = vadd.f32 %v16838_v43, %v11235_v21  ;;  %v11553_v21 = vld [vmem:[%s22173_s12 + $0x30] sm:$0xff] }
 0x8a7   : > { %v16840_v42 = vpop.eup %16839  ;;  %11572 = vmatpush.msra.mxu1 %v11553_v21  ;;  %v11682_v21 = vld [vmem:[%s22178_s17 + $0x78] sm:$0xff] }
 0x8a8   : > { %v11240_v7 = vsel %vm11239_vm4, %v16838_v43, %v11236_v22  ;;  %v11393_v47 = vmul.f32 %v16840_v42, %v11391_v1  ;;  %v11311_v36 = vpop.xlane.xlu0 %11310  ;;  %v11408_v33 = vpop.permute.xlu2 %11407  ;;  %vm11398_vm6 = vweird.f32 %v16840_v42  ;;  %v11518_v1 = vld [vmem:[%s22171_s10 + $0x8] sm:$0xff] }
 0x8a9   : > { %v11245_v23 = vsel %vm11242_vm5, %v11244_v29, %v11240_v7  ;;  %16841 = vrcp.f32 %v11311_v36  ;;  %16074 = vmatpush.msk.msrb.mxu2 %vm4675_vm10, %v11408_v33  ;;  %vm11399_vm8 = vmor %vm11397_vm7, %vm11398_vm6  ;;  %v11323_v34 = vand.u32 2147483648, %v11311_v36  ;;  %v11321_v13 = vand.u32 2147483647, %v11311_v36  ;;  %v11551_v29 = vld [vmem:[%s22173_s12 + $0x20] sm:$0xff]  ;;  %11573 = vmatpush.msra.mxu1 %v11552_v18  ;;  %v11678_v18 = vld [vmem:[%s22178_s17 + $0x58] sm:$0xff] }
 0x8aa   : > { %v11246_v51 = vmul.f32 %v16830_v38, %v11245_v23  ;;  %v11394_v62 = vsub.f32 1.0, %v11393_v47  ;;  %vm11317_vm15 = vweird.f32 %v11311_v36  ;;  %16843 = vrcp.f32 %v16866_v12  ;;  %v11550_v47 = vld [vmem:[%s22173_s12 + $0x18] sm:$0xff] }
 0x8ab   : > { %v11324_v41 = vor.u32 1.1754944e-38, %v11323_v34  ;;  %vm11322_vm1 = vcmp.eq.f32.partialorder %v11321_v13, 8.507059e+37  ;;  %11574 = vmatpush.msra.mxu1 %v11551_v29  ;;  %vm11559_vm7 = vcmask 523264   ;;  %v11620_v29 = vld [vmem:[%s22177_s16 + $0x10] sm:$0xff] }
 0x8ac   : > { %v11395_v16 = vmul.f32 %v16840_v42, %v11394_v62  ;;  %16067 = vmatmul.msk.f32.vlgmr.msra.gmra.mxu2 %vm11115_vm12, %v11246_v51 }
 0x8ad   : > { %11575 = vmatpush.msra.mxu1 %v11550_v47  ;;  %v11667_v47 = vld [vmem:[%s22178_s17] sm:$0xff] }
 0x8ae   : > { %v11396_v37 = vadd.f32 %v16840_v42, %v11395_v16  ;;  %v16821_v16 = vld [vmem:[%s22175_s14] ss:$0 sm:$0xff] }
 0x8af   : > { %v16842_v10 = vpop.eup %16841 }
 0x8b0   : > { %v11400_v59 = vsel %vm11399_vm8, %v16840_v42, %v11396_v37  ;;  %v11313_v48 = vmul.f32 %v16842_v10, %v11311_v36  ;;  %vm11318_vm14 = vweird.f32 %v16842_v10  ;;  %v16844_v45 = vpop.eup %16843  ;;  %v16822_v37 = vld [vmem:[%s22176_s15] ss:$0 sm:$0xff] }
 0x8b1   : > { %v11405_v40 = vsel %vm11402_vm13, %v11404_v46, %v11400_v59  ;;  %vm11319_vm0 = vmor %vm11317_vm15, %vm11318_vm14  ;;  %v11488_v11 = vmul.f32 16.0, %v16844_v45  ;;  %vm11622_vm15 = vcmask 15360  }
 0x8b2   : > { %v11406_v55 = vmul.f32 %v21962_v19, %v11405_v40  ;;  %v11314_v2 = vsub.f32 1.0, %v11313_v48  ;;  %v11549_v48 = vld [vmem:[%s22173_s12 + $0x10] sm:$0xff]  ;;  %v11548_v40 = vld [vmem:[%s22173_s12 + $0x8] sm:$0xff] }
 0x8b3   : > { %v11489_v26 = vsub.f32 1.0, %v11488_v11  ;;  %11576 = vmatpush.msra.mxu1 %v11549_v48 }
 0x8b4   : > { %v11315_v6 = vmul.f32 %v16842_v10, %v11314_v2  ;;  %16075 = vmatmul.msk.f32.vlgmr.msrb.gmra.mxu2 %vm11115_vm12, %v11406_v55  ;;  %v11547_v55 = vld [vmem:[%s22173_s12] sm:$0xff] }
 0x8b5   : > { %v11490_v44 = vmul.f32 %v16844_v45, %v11489_v26  ;;  %11577 = vmatpush.msra.mxu1 %v11548_v40  ;;  %v16823_v2 = vld [vmem:[%s22172_s11] ss:$0 sm:$0xff] }
 0x8b6   : > { %v11316_v35 = vadd.f32 %v16842_v10, %v11315_v6  ;;  %v11679_v26 = vld [vmem:[%s22178_s17 + $0x60] sm:$0xff] }
 0x8b7   : > { %v11491_v20 = vadd.f32 %v16844_v45, %v11490_v44  ;;  %11578 = vmatpush.msra.mxu1 %v11547_v55  ;;  %v11680_v44 = vld [vmem:[%s22178_s17 + $0x68] sm:$0xff]  ;;  %11724 = vmatpush.msrb.mxu3 %v11679_v26  ;;  %v11683_v40 = vld [vmem:[#allocation2] sm:$0xff] }
 0x8b8   : > { %v11320_v63 = vsel %vm11319_vm0, %v16842_v10, %v11316_v35  ;;  %v16824_v35 = vld [vmem:[%s22174_s13] ss:$0 sm:$0xff] }
 0x8b9   : > { %v11325_v3 = vsel %vm11322_vm1, %v11324_v41, %v11320_v63 }
 0x8ba   : > { %v11326_v4 = vmul.f32 %v21966_v25, %v11325_v3 }
 0x8bb   : > { %v11328_v61 = vpop.permute.xlu0 %11327  ;;  %v11191_v30 = vpop.f32.mrf.mxu0 }
 0x8bc   : > { %16070 = vmatpush.msk.msrb.mxu0 %vm4675_vm10, %v11328_v61  ;;  %vm11447_vm10 = vcmask 64512  }
 0x8bd   : > { %16071 = vmatmul.msk.f32.vlgmr.msrb.gmra.mxu0 %vm11115_vm12, %v11326_v4 }
 0x8be   : > { %11540 = vmatpush.msra.mxu0 %v11518_v1 }
 0x8c0   : > { %11541 = vmatpush.msra.mxu0 %v11517_v5  ;;  %v11618_v5 = vld [vmem:[%s22177_s16] sm:$0xff] }
 0x8c2   : > { %11753 = vmatpush.msrb.mxu0 %v11680_v44  ;;  %v11697_v44 = vld [vmem:[#allocation2 + $0x70] sm:$0xff] }
 0x92f   : > { %v11271_v24 = vpop.f32.mrf.mxu2 }
 0x930   : > { %11435 = vrot.lane.b32.xlu1 %v11271_v24, %s16863_s19 }
 0x937   : > { %v11431_v38 = vpop.f32.mrf.mxu2 }
 0x938   : > { %11443 = vrot.lane.b32.xlu2 %v11431_v38, %s16864_s1 }
 0x93a   : > { %v11351_v53 = vpop.f32.mrf.mxu0 }
 0x93b   : > { %11439 = vrot.lane.b32.xlu0 %v11351_v53, %s16865_s22 }
 0x992   : > { %v11444_v15 = vpop.permute.xlu2 %11443 }
 0x9a2   : > { %v11436_v58 = vpop.permute.xlu1 %11435 }
 0x9a3   : > { %v11446_v31 = vsel %vm11115_vm12, %v11191_v30, %v11436_v58  ;;  %vm11492_vm12 = vweird.f32 %v16844_v45 }
 0x9a4   : > { %v21996_v39 = vsel %vm11492_vm12, %v16844_v45, %v11491_v20  ;;  %v11681_v20 = vld [vmem:[%s22178_s17 + $0x70] sm:$0xff] }
 0x9a5   : > { %11782 = vmatpush.msrb.mxu1 %v11681_v20 }
 0x9ad   : > { %v11440_v19 = vpop.permute.xlu0 %11439 }
 0x9ae   : > { %v11448_v9 = vsel %vm11447_vm10, %v11446_v31, %v11440_v19 }
 0x9af   : > { %v11450_v17 = vsel %vm11449_vm2, %v11448_v9, %v11444_v15 }
 0x9b0   : > { %16076 = vmatmul.msk.f32.vlgmr.msra.gmra.mxu3 %vm11029_vm11, %v11450_v17 }
 0xa33   : > { %v11477_v25 = vpop.f32.mrf.mxu3 }
 0xa34   : > { %v11478_v52 = vadd.f32 %v16820_v27, %v11477_v25  ;;  %v16825_v25 = vld [vmem:[%s22175_s14 + $0x1] ss:$0 sm:$0xff] }
 0xa36   : > { %v11480_v57 = vadd.f32 %v11478_v52, %v21919_v32 }
 0xa38   : > { %v11484_v50 = vsel %vm11483_vm3, %v11480_v57, 0.0 }
 0xa39   : > { %11485 = vadd.xlane.f32.xlu1 %v11484_v50  ;;  %v16826_v50 = vld [vmem:[%s22176_s15 + $0x1] ss:$0 sm:$0xff] }
 0xaac   : > { %v11486_v49 = vpop.xlane.xlu1 %11485 }
 0xaad   : > { %v11494_v14 = vmul.f32 %v21996_v39, %v11486_v49  ;;  %v11676_v49 = vld [vmem:[%s22178_s17 + $0x48] sm:$0xff] }
 0xaae   : > { %11754 = vmatpush.msrb.mxu0 %v11676_v49  ;;  %v11695_v49 = vld [vmem:[#allocation2 + $0x60] sm:$0xff] }
 0xaaf   : > { %v11495_v43 = vsub.f32 %v11480_v57, %v11494_v14  ;;  %v11677_v14 = vld [vmem:[%s22178_s17 + $0x50] sm:$0xff] }
 0xab0   : > { %11783 = vmatpush.msrb.mxu1 %v11677_v14 }
 0xab1   : > { %v11496_v60 = vmul.f32 %v11495_v43, %v11495_v43 }
 0xab3   : > { %v11497_v32 = vsel %vm11483_vm3, %v11496_v60, 0.0  ;;  %v11672_v60 = vld [vmem:[%s22178_s17 + $0x28] sm:$0xff] }
 0xab4   : > { %11498 = vadd.xlane.f32.xlu0 %v11497_v32  ;;  %v11673_v32 = vld [vmem:[%s22178_s17 + $0x30] sm:$0xff]  ;;  %11755 = vmatpush.msrb.mxu0 %v11672_v60  ;;  %v11698_v60 = vld [vmem:[#allocation2 + $0x78] sm:$0xff] }
 0xab5   : > { %11784 = vmatpush.msrb.mxu1 %v11673_v32 }
 0xb27   : > { %v11499_v22 = vpop.xlane.xlu0 %11498 }
 0xb28   : > { %v11500_v42 = vmul.f32 %v11499_v22, %v21996_v39  ;;  %v11674_v22 = vld [vmem:[%s22178_s17 + $0x38] sm:$0xff] }
 0xb2a   : > { %v11501_v7 = vadd.f32 1e-05, %v11500_v42  ;;  %v11619_v42 = vld [vmem:[%s22177_s16 + $0x8] sm:$0xff] }
 0xb2c   : > { %16845 = vrsqrt.f32 %v11501_v7  ;;  %vm11508_vm5 = vweird.f32 %v11501_v7 }
 0xb32   : > { %v16846_v36 = vpop.eup %16845 }
 0xb33   : > { %v11503_v33 = vmul.f32 %v16846_v36, %v11501_v7  ;;  %vm11509_vm4 = vweird.f32 %v16846_v36  ;;  %v11621_v7 = vld [vmem:[%s22177_s16 + $0x18] sm:$0xff] }
 0xb34   : > { %vm11510_vm6 = vmor %vm11508_vm5, %vm11509_vm4 }
 0xb35   : > { %v11504_v23 = vmul.f32 %v16846_v36, %v11503_v33  ;;  %v11669_v33 = vld [vmem:[%s22178_s17 + $0x10] sm:$0xff] }
 0xb36   : > { %11785 = vmatpush.msrb.mxu1 %v11669_v33 }
 0xb37   : > { %v11505_v51 = vmul.f32 0.5, %v11504_v23  ;;  %v11670_v23 = vld [vmem:[%s22178_s17 + $0x18] sm:$0xff] }
 0xb39   : > { %v11506_v62 = vsub.f32 1.5, %v11505_v51 }
 0xb3b   : > { %v11507_v0 = vmul.f32 %v16846_v36, %v11506_v62 }
 0xb3d   : > { %v11511_v28 = vsel %vm11510_vm6, %v16846_v36, %v11507_v0  ;;  %v11668_v36 = vld [vmem:[%s22178_s17 + $0x8] sm:$0xff] }
 0xb3e   : > { %v11512_v10 = vmul.f32 %v11511_v28, %v11495_v43  ;;  %v11671_v43 = vld [vmem:[%s22178_s17 + $0x20] sm:$0xff]  ;;  %11756 = vmatpush.msrb.mxu0 %v11668_v36  ;;  %v11684_v28 = vld [vmem:[#allocation2 + $0x8] sm:$0xff] }
 0xb40   : > { %v11514_v46 = vmul.f32 %v16821_v16, %v11512_v10 }
 0xb42   : > { %v11516_v59 = vadd.f32 %v16822_v37, %v11514_v46  ;;  %v11685_v46 = vld [vmem:[#allocation2 + $0x10] sm:$0xff] }
 0xb44   : > { %16077 = vmatmul.msk.f32.vlgmr.msra.gmra.mxu0 %vm11029_vm11, %v11516_v59 }
 0xbc1   : > { %v11543_v34 = vpop.f32.mrf.mxu0 }
 0xbc2   : > { %v11544_v6 = vadd.f32 %v16823_v2, %v11543_v34  ;;  %v11686_v34 = vld [vmem:[#allocation2 + $0x18] sm:$0xff] }
 0xbc4   : > { %v11546_v13 = vmax.f32 %v11544_v6, 0.0 }
 0xbc6   : > { %16078 = vmatmul.msk.f32.vlgmr.msra.gmra.mxu1 %vm11559_vm7, %v11546_v13 }
 0xc43   : > { %v11580_v41 = vpop.f32.mrf.mxu1 }
 0xc44   : > { %v11581_v63 = vadd.f32 %v16824_v35, %v11580_v41  ;;  %v11688_v35 = vld [vmem:[#allocation2 + $0x28] sm:$0xff] }
 0xc46   : > { %v11583_v3 = vadd.f32 %v11581_v63, %v11516_v59 }
 0xc48   : > { %v11586_v4 = vsel %vm11483_vm3, %v11583_v3, 0.0 }
 0xc49   : > { %11587 = vadd.xlane.f32.xlu2 %v11586_v4 }
 0xcbc   : > { %v11588_v61 = vpop.xlane.xlu2 %11587 }
 0xcbd   : > { %v11589_v24 = vmul.f32 %v11588_v61, %v21996_v39 }
 0xcbf   : > { %v11590_v30 = vsub.f32 %v11583_v3, %v11589_v24  ;;  %v11689_v3 = vld [vmem:[#allocation2 + $0x30] sm:$0xff]  ;;  %v11687_v24 = vld [vmem:[#allocation2 + $0x20] sm:$0xff] }
 0xcc1   : > { %v11591_v38 = vmul.f32 %v11590_v30, %v11590_v30 }
 0xcc3   : > { %v11592_v53 = vsel %vm11483_vm3, %v11591_v38, 0.0 }
 0xcc4   : > { %11593 = vadd.xlane.f32.xlu1 %v11592_v53  ;;  %v11690_v53 = vld [vmem:[#allocation2 + $0x38] sm:$0xff] }
 0xd37   : > { %v11594_v8 = vpop.xlane.xlu1 %11593 }
 0xd38   : > { %v11595_v54 = vmul.f32 %v11594_v8, %v21996_v39  ;;  %v11675_v39 = vld [vmem:[%s22178_s17 + $0x40] sm:$0xff] }
 0xd39   : > { %11725 = vmatpush.msrb.mxu3 %v11675_v39 }
 0xd3a   : > { %v11596_v58 = vadd.f32 1e-05, %v11595_v54 }
 0xd3b   : > { %11726 = vmatpush.msrb.mxu3 %v11671_v43 }
 0xd3c   : > { %16847 = vrsqrt.f32 %v11596_v58  ;;  %vm11603_vm13 = vweird.f32 %v11596_v58 }
 0xd3d   : > { %11727 = vmatpush.msrb.mxu3 %v11667_v47 }
 0xd42   : > { %v16848_v31 = vpop.eup %16847 }
 0xd43   : > { %v11598_v19 = vmul.f32 %v16848_v31, %v11596_v58  ;;  %vm11604_vm8 = vweird.f32 %v16848_v31  ;;  %v11692_v58 = vld [vmem:[#allocation2 + $0x48] sm:$0xff] }
 0xd44   : > { %vm11605_vm14 = vmor %vm11603_vm13, %vm11604_vm8 }
 0xd45   : > { %v11599_v15 = vmul.f32 %v16848_v31, %v11598_v19 }
 0xd47   : > { %v11600_v9 = vmul.f32 0.5, %v11599_v15  ;;  %v11693_v15 = vld [vmem:[#allocation2 + $0x50] sm:$0xff] }
 0xd49   : > { %v11601_v17 = vsub.f32 1.5, %v11600_v9 }
 0xd4b   : > { %v11602_v27 = vmul.f32 %v16848_v31, %v11601_v17 }
 0xd4d   : > { %v11606_v52 = vsel %vm11605_vm14, %v16848_v31, %v11602_v27  ;;  %v11691_v27 = vld [vmem:[#allocation2 + $0x40] sm:$0xff] }
 0xd4e   : > { %v11607_v57 = vmul.f32 %v11606_v52, %v11590_v30 }
 0xd50   : > { %v11609_v12 = vmul.f32 %v16825_v25, %v11607_v57  ;;  %v11694_v57 = vld [vmem:[#allocation2 + $0x58] sm:$0xff] }
 0xd52   : > { %v11611_v45 = vadd.f32 %v16826_v50, %v11609_v12 }
 0xd54   : > { %v11613_v11 = vrot.slane %v11611_v45, 2 }
 0xd56   : > { %11614 = vrot.lane.b32.xlu0 %v11613_v11, %s16867_s26  ;;  %s22140_s26 = scalar_lea.vmem %s22179_s18, %s16102_s23 }
 0xdc8   : > { %v11615_v1 = vpop.permute.xlu0 %11614 }
 0xdc9   : > { %v11617_v56 = vsel %vm11029_vm11, %v11611_v45, %v11615_v1  ;;  %v11696_v45 = vld [vmem:[#allocation2 + $0x68] sm:$0xff] }
 0xdca   : > { %16079 = vmatpush.msk.msra.mxu2 %vm4666_vm9, %v11617_v56  ;;  %vm11699_vm9 = vcmask 261120  }
 0xdcb   : > { %16080 = vmatmul.msk.f32.vlgmr.msra.gmra.mxu2 %vm11622_vm15, %v11618_v5 }
 0xdcc   : > { %11811 = vmatpush.msrb.mxu2 %v11682_v21 }
 0xdce   : > { %11812 = vmatpush.msrb.mxu2 %v11678_v18 }
 0xdd0   : > { %11813 = vmatpush.msrb.mxu2 %v11674_v22 }
 0xdd2   : > { %11814 = vmatpush.msrb.mxu2 %v11670_v23 }
 0xdd3   : > { %16081 = vmatmul.msk.f32.gmra.mxu2 %vm11622_vm15, %v11619_v42 }
 0xddb   : > { %16082 = vmatmul.msk.f32.gmra.mxu2 %vm11622_vm15, %v11620_v29 }
 0xde3   : > { %16083 = vmatmul.msk.f32.gmra.mxu2 %vm11622_vm15, %v11621_v7 }
 0xe4e   : > { %v11655_v51 = vpop.f32.mrf.mxu2 }
 0xe4f   : > { %16084 = vmatmul.msk.f32.vlgmr.msrb.gmra.mxu3 %vm11699_vm9, %v11655_v51  ;;  %16088 = vmatmul.msk.f32.vlgmr.msrb.gmra.mxu0 %vm11699_vm9, %v11655_v51 }
 0xe50   : > { %16092 = vmatmul.msk.f32.vlgmr.msrb.gmra.mxu1 %vm11699_vm9, %v11655_v51  ;;  %16096 = vmatmul.msk.f32.vlgmr.msrb.gmra.mxu2 %vm11699_vm9, %v11655_v51 }
 0xe56   : > { %v11658_v62 = vpop.f32.mrf.mxu2 }
 0xe57   : > { %16085 = vmatmul.msk.f32.gmra.mxu3 %vm11699_vm9, %v11658_v62  ;;  %16089 = vmatmul.msk.f32.gmra.mxu0 %vm11699_vm9, %v11658_v62 }
 0xe58   : > { %16093 = vmatmul.msk.f32.gmra.mxu1 %vm11699_vm9, %v11658_v62  ;;  %16097 = vmatmul.msk.f32.gmra.mxu2 %vm11699_vm9, %v11658_v62 }
 0xe5e   : > { %v11661_v0 = vpop.f32.mrf.mxu2 }
 0xe5f   : > { %16086 = vmatmul.msk.f32.gmra.mxu3 %vm11699_vm9, %v11661_v0  ;;  %16090 = vmatmul.msk.f32.gmra.mxu0 %vm11699_vm9, %v11661_v0 }
 0xe60   : > { %16094 = vmatmul.msk.f32.gmra.mxu1 %vm11699_vm9, %v11661_v0  ;;  %16098 = vmatmul.msk.f32.gmra.mxu2 %vm11699_vm9, %v11661_v0 }
 0xe66   : > { %v11664_v16 = vpop.f32.mrf.mxu2 }
 0xe67   : > { %16087 = vmatmul.msk.f32.gmra.mxu3 %vm11699_vm9, %v11664_v16  ;;  %16091 = vmatmul.msk.f32.gmra.mxu0 %vm11699_vm9, %v11664_v16 }
 0xe68   : > { %16095 = vmatmul.msk.f32.gmra.mxu1 %vm11699_vm9, %v11664_v16  ;;  %16099 = vmatmul.msk.f32.gmra.mxu2 %vm11699_vm9, %v11664_v16 }
 0xecc   : > { %v11758_v37 = vpop.f32.mrf.mxu0 }
 0xecd   : > { %v11759_v10 = vadd.f32 %v11758_v37, %v11684_v28  ;;  %v11787_v59 = vpop.f32.mrf.mxu1 }
 0xece   : > { %v11788_v48 = vadd.f32 %v11787_v59, %v11685_v46 }
 0xecf   : > { %11829 = vst [vmem:[%s22140_s26 + $0x8] sm:$0xff] %v11759_v10 }
 0xed0   : > { %11830 = vst [vmem:[%s22140_s26 + $0x10] sm:$0xff] %v11788_v48 }
 0xed2   : > { %v11729_v55 = vpop.f32.mrf.mxu3 }
 0xed3   : > { %v11730_v2 = vadd.f32 %v11729_v55, %v11683_v40  ;;  %v11816_v6 = vpop.f32.mrf.mxu2 }
 0xed4   : > { %v11817_v13 = vadd.f32 %v11816_v6, %v11686_v34  ;;  %v11761_v41 = vpop.f32.mrf.mxu0 }
 0xed5   : > { %11828 = vst [vmem:[%s22140_s26] sm:$0xff] %v11730_v2  ;;  %v11762_v63 = vadd.f32 %v11761_v41, %v11688_v35  ;;  %v11790_v4 = vpop.f32.mrf.mxu1 }
 0xed6   : > { %11831 = vst [vmem:[%s22140_s26 + $0x18] sm:$0xff] %v11817_v13  ;;  %v11791_v61 = vadd.f32 %v11790_v4, %v11689_v3 }
 0xed7   : > { %11833 = vst [vmem:[%s22140_s26 + $0x28] sm:$0xff] %v11762_v63 }
 0xed8   : > { %11834 = vst [vmem:[%s22140_s26 + $0x30] sm:$0xff] %v11791_v61 }
 0xeda   : > { %v11732_v30 = vpop.f32.mrf.mxu3 }
 0xedb   : > { %v11733_v38 = vadd.f32 %v11732_v30, %v11687_v24  ;;  %v11819_v8 = vpop.f32.mrf.mxu2 }
 0xedc   : > { %v11820_v54 = vadd.f32 %v11819_v8, %v11690_v53  ;;  %v11764_v31 = vpop.f32.mrf.mxu0 }
 0xedd   : > { %11832 = vst [vmem:[%s22140_s26 + $0x20] sm:$0xff] %v11733_v38  ;;  %v11765_v19 = vadd.f32 %v11764_v31, %v11692_v58  ;;  %v11793_v9 = vpop.f32.mrf.mxu1 }
 0xede   : > { %11835 = vst [vmem:[%s22140_s26 + $0x38] sm:$0xff] %v11820_v54  ;;  %v11794_v17 = vadd.f32 %v11793_v9, %v11693_v15 }
 0xedf   : > { %11837 = vst [vmem:[%s22140_s26 + $0x48] sm:$0xff] %v11765_v19 }
 0xee0   : > { %11838 = vst [vmem:[%s22140_s26 + $0x50] sm:$0xff] %v11794_v17 }
 0xee2   : > { %v11735_v25 = vpop.f32.mrf.mxu3 }
 0xee3   : > { %v11736_v52 = vadd.f32 %v11735_v25, %v11691_v27  ;;  %v11822_v50 = vpop.f32.mrf.mxu2 }
 0xee4   : > { %v11823_v12 = vadd.f32 %v11822_v50, %v11694_v57  ;;  %v11767_v11 = vpop.f32.mrf.mxu0 }
 0xee5   : > { %11836 = vst [vmem:[%s22140_s26 + $0x40] sm:$0xff] %v11736_v52  ;;  %v11768_v26 = vadd.f32 %v11767_v11, %v11696_v45  ;;  %v11796_v20 = vpop.f32.mrf.mxu1 }
 0xee6   : > { %11839 = vst [vmem:[%s22140_s26 + $0x58] sm:$0xff] %v11823_v12  ;;  %v11797_v39 = vadd.f32 %v11796_v20, %v11697_v44 }
 0xee7   : > { %11841 = vst [vmem:[%s22140_s26 + $0x68] sm:$0xff] %v11768_v26 }
 0xee8   : > { %11842 = vst [vmem:[%s22140_s26 + $0x70] sm:$0xff] %v11797_v39 }
 0xeea   : > { %v11738_v14 = vpop.f32.mrf.mxu3 }
 0xeeb   : > { %v11739_v43 = vadd.f32 %v11738_v14, %v11695_v49  ;;  %v11825_v32 = vpop.f32.mrf.mxu2 }
 0xeec   : > { %v11826_v1 = vadd.f32 %v11825_v32, %v11698_v60 }
 0xeed   : > { %11840 = vst [vmem:[%s22140_s26 + $0x60] sm:$0xff] %v11739_v43 }
 0xeee   : > { %11843 = vst [vmem:[%s22140_s26 + $0x78] sm:$0xff] %v11826_v1 }
 0xeef PF: > { %s28_s27 = sadd.s32 1, %s16857_s27  }
 0xef0   : > { %p25_p4 = scmp.ge.s32.totalorder %s28_s27, 4  }
 0xef2   :  { %27 = sbr.rel (!%p25_p4) target bundleno = 4 (0x4), region = 260 }

</bundles_post_ra>
